<compile_context>
chip_gen: v7x
topology: tpu7x:2x2x1
jax: 0.10.0
libtpu: 0.0.40
codegen_flags: <defaults>
</compile_context>

<pallas_src>
import numpy as np
import jax
import jax.numpy as jnp
from jax.experimental import pallas as pl
from jax.experimental.pallas import tpu as pltpu


# ----------------------------- host-side glue -------------------------------

def conv2d_out_len(L_in, K, stride, padding):
    return (L_in + 2 * padding - K) // stride + 1


def conv2d_as_matrix(w, H_in, W_in, stride, padding):
    """Dense M s.t. flat_out = flat_in @ M reproduces Conv2d (no bias).
    w: (Cout, Cin, KH, KW) (PyTorch Conv2d weight layout).
    Flat convention: c*H*W + h*W + w (contiguous NCHW)."""
    Cout, Cin, KH, KW = w.shape
    H_out = conv2d_out_len(H_in, KH, stride, padding)
    W_out = conv2d_out_len(W_in, KW, stride, padding)
    M = np.zeros((Cin * H_in * W_in, Cout * H_out * W_out), dtype=np.float32)
    for co in range(Cout):
        for ho in range(H_out):
            for wo in range(W_out):
                o = (co * H_out + ho) * W_out + wo
                for ci in range(Cin):
                    for kh in range(KH):
                        hi = ho * stride - padding + kh
                        if not (0 <= hi < H_in):
                            continue
                        for kw in range(KW):
                            wi = wo * stride - padding + kw
                            if not (0 <= wi < W_in):
                                continue
                            M[(ci * H_in + hi) * W_in + wi, o] += w[co, ci, kh, kw]
    return M, H_out, W_out


def _round_up(n, m):
    return ((n + m - 1) // m) * m


def _pad2(a, rows, cols):
    out = np.zeros((rows, cols), np.float32)
    out[:a.shape[0], :a.shape[1]] = a
    return out


def _pad_bias(b, cols):
    out = np.zeros((1, cols), np.float32)
    out[0, :b.shape[0]] = b
    return out


def _pick_batch_tile(B, max_tb=512):
    """Choose the batch tile.

    Cost model (kernel is MXU-bound): ~3-4 ns of MXU per row vs ~0.35 us of
    per-grid-step overhead, so one grid step "costs" roughly 96 padded rows.
    Minimize  b_pad + 96 * n_steps  over tiles that are multiples of 16 rows
    (bf16 sublane pack).  Then, for batches large enough, make sure there are
    at least 2 grid steps so the "parallel" axis shards across both v7x
    TensorCores (harmless on v5e/v6e).
    """
    STEP_COST_ROWS = 96
    candidates = [t for t in (1024, 512, 256, 128, 64, 32, 16) if t <= max_tb]
    if not candidates:
        candidates = [16]

    def cost(tb):
        b_pad = _round_up(B, tb)
        return b_pad + STEP_COST_ROWS * (b_pad // tb)

    tb = min(candidates, key=cost)
    if _round_up(B, tb) // tb == 1 and B > 16:
        # Split a single-step grid in two (multiple-of-16 rows) for megacore.
        tb = min(tb, max(16, _round_up((B + 1) // 2, 16)))
    return tb, _round_up(B, tb)


# ------------------------------ Pallas kernel --------------------------------

def encoder_kernel(x_ref,
                   m1_ref, b1_ref,
                   m2_ref, b2_ref,
                   m3_ref, b3_ref,
                   m4_ref, b4_ref,
                   m5_ref, b5_ref,
                   out_ref):
    def mm(h_bf16, w_ref):
        # bf16 operands on the MXU, f32 accumulation.
        return jnp.dot(h_bf16, w_ref[...], preferred_element_type=jnp.float32)

    def bias_leaky_bf16(h, b_ref):
        h = h + b_ref[...]                   # f32 bias add (VPU)
        h = jnp.maximum(h, 0.01 * h)         # LeakyReLU(0.01): single mul+max
        return h.astype(jnp.bfloat16)        # bf16 inter-layer activation

    h = x_ref[...].astype(jnp.bfloat16)                  # (TB, 128)
    h = bias_leaky_bf16(mm(h, m1_ref), b1_ref)           # Conv1 -> (TB, 896)
    h = bias_leaky_bf16(mm(h, m2_ref), b2_ref)           # Conv2 -> (TB, 640)
    h = bias_leaky_bf16(mm(h, m3_ref), b3_ref)           # Conv3 -> (TB, 512)
    h = bias_leaky_bf16(mm(h, m4_ref), b4_ref)           # Linear(512,1024)
    out_ref[...] = mm(h, m5_ref) + b5_ref[...]           # Linear(1024,latent), no act


def encoder_forward(x, params, *, latent_size, max_tb=512):
    """x: (B, 100) (or any (B, ...) with 100 features) -> (B, latent_size) f32."""
    B = x.shape[0]
    x = x.reshape(B, -1).astype(jnp.float32)
    in_dim = x.shape[1]
    in_pad = params["m1"].shape[0]
    out_pad = params["m5"].shape[1]

    tb, b_pad = _pick_batch_tile(B, max_tb)

    # One fused pad (lane-dense 100->128 + batch round-up).  Skipped entirely
    # when the caller already provides a (b_pad, in_pad) buffer.
    if b_pad != B or in_pad != in_dim:
        x = jnp.pad(x, ((0, b_pad - B), (0, in_pad - in_dim)))

    weight_keys = ("m1", "b1", "m2", "b2", "m3", "b3", "m4", "b4", "m5", "b5")
    weight_args = [params[k] for k in weight_keys]

    x_spec = pl.BlockSpec((tb, in_pad), lambda i: (i, 0))
    out_spec = pl.BlockSpec((tb, out_pad), lambda i: (i, 0))

    mat_keys = ("m1", "m2", "m3", "m4", "m5")
    flops = 2 * b_pad * sum(int(params[k].shape[0]) * int(params[k].shape[1])
                            for k in mat_keys)
    bytes_accessed = (b_pad * in_pad * 4
                      + sum(int(p.size) * int(p.dtype.itemsize) for p in weight_args)
                      + b_pad * out_pad * 4)
    cost = pl.CostEstimate(flops=flops, transcendentals=0,
                           bytes_accessed=int(bytes_accessed))

    def build(single_buffer_weights):
        if single_buffer_weights:
            # Constant index_map + Buffered(1): fetched once, held in a single
            # VMEM buffer across all grid steps (no useless double-buffering).
            w_specs = [pl.BlockSpec(p.shape, lambda i: (0, 0),
                                    pipeline_mode=pl.Buffered(1))
                       for p in weight_args]
        else:
            w_specs = [pl.BlockSpec(p.shape, lambda i: (0, 0))
                       for p in weight_args]
        return pl.pallas_call(
            encoder_kernel,
            out_shape=jax.ShapeDtypeStruct((b_pad, out_pad), jnp.float32),
            grid=(b_pad // tb,),
            in_specs=[x_spec] + w_specs,
            out_specs=out_spec,
            compiler_params=pltpu.CompilerParams(
                dimension_semantics=("parallel",),     # megacore on v7x
                vmem_limit_bytes=32 * 1024 * 1024),    # headroom on v5e's 16MiB default
            cost_estimate=cost,
        )

    try:
        out = build(True)(x, *weight_args)
    except Exception:
        # Conservative fallback if Buffered(1) single-buffering is rejected by
        # this jax/Mosaic version; semantics are identical.
        out = build(False)(x, *weight_args)

    # Strip batch padding and lane padding (pure glue, tiny).
    return out[:B, :latent_size]


# ------------------------------ reference (numpy) ----------------------------

def _leaky_np(x, slope=0.01):
    return np.where(x >= 0.0, x, slope * x)


def conv2d_ref(x, w, b, stride, padding):
    Bn, Cin, H, W = x.shape
    Cout, _, KH, KW = w.shape
    Ho = conv2d_out_len(H, KH, stride, padding)
    Wo = conv2d_out_len(W, KW, stride, padding)
    xp = np.zeros((Bn, Cin, H + 2 * padding, W + 2 * padding), np.float32)
    xp[:, :, padding:padding + H, padding:padding + W] = x
    out = np.zeros((Bn, Cout, Ho, Wo), np.float32)
    for ho in range(Ho):
        for wo in range(Wo):
            patch = xp[:, :, ho * stride:ho * stride + KH, wo * stride:wo * stride + KW]
            out[:, :, ho, wo] = np.einsum("bchw,ochw->bo", patch, w)
    return out + b[None, :, None, None]


def ref_forward(x, raw, latent_size):
    B = x.shape[0]
    h = x.reshape(B, 1, 10, 10)
    h = _leaky_np(conv2d_ref(h, raw["wc1"], raw["bc1"], 1, 1))
    h = _leaky_np(conv2d_ref(h, raw["wc2"], raw["bc2"], 2, 1))
    h = _leaky_np(conv2d_ref(h, raw["wc3"], raw["bc3"], 2, 1))
    h = h.reshape(B, -1)                                    # Flatten -> (B, 512)
    h = _leaky_np(h @ raw["w4"] + raw["b4"])
    return h @ raw["w5"] + raw["b5"]


# ----------------------------------- main -------------------------------------

if __name__ == "__main__":
    LATENT = 16
    B = 8
    D_IN = 100

    key = jax.random.PRNGKey(0)
    ks = jax.random.split(key, 11)

    def rnd(k, shape, scale=0.05):
        return np.asarray(jax.random.normal(k, shape, dtype=jnp.float32)) * scale

    # Raw parameters (same shapes the PyTorch module would create; the two
    # Linear weights are stored already transposed as (in, out)).
    raw = {
        "wc1": rnd(ks[0], (8, 1, 3, 3)),   "bc1": rnd(ks[1], (8,)),
        "wc2": rnd(ks[2], (16, 8, 2, 2)),  "bc2": rnd(ks[3], (16,)),
        "wc3": rnd(ks[4], (32, 16, 2, 2)), "bc3": rnd(ks[5], (32,)),
        "w4":  rnd(ks[6], (512, 1024)),    "b4":  rnd(ks[7], (1024,)),
        "w5":  rnd(ks[8], (1024, LATENT)), "b5":  rnd(ks[9], (LATENT,)),
    }

    # Convs -> dense matmul matrices (host-side glue).
    M1, H1, W1 = conv2d_as_matrix(raw["wc1"], 10, 10, stride=1, padding=1)  # (100, 800)
    M2, H2, W2 = conv2d_as_matrix(raw["wc2"], H1, W1, stride=2, padding=1)  # (800, 576)
    M3, H3, W3 = conv2d_as_matrix(raw["wc3"], H2, W2, stride=2, padding=1)  # (576, 512)

    # Lane-dense (multiple-of-128) padded, bf16 matrices; f32 biases.
    P_IN, P1, P2, P3, P4, P_OUT = 128, 896, 640, 512, 1024, 128
    params = {
        "m1": jnp.asarray(_pad2(M1, P_IN, P1), jnp.bfloat16),
        "b1": jnp.asarray(_pad_bias(np.repeat(raw["bc1"], H1 * W1), P1)),
        "m2": jnp.asarray(_pad2(M2, P1, P2), jnp.bfloat16),
        "b2": jnp.asarray(_pad_bias(np.repeat(raw["bc2"], H2 * W2), P2)),
        "m3": jnp.asarray(_pad2(M3, P2, P3), jnp.bfloat16),
        "b3": jnp.asarray(_pad_bias(np.repeat(raw["bc3"], H3 * W3), P3)),
        "m4": jnp.asarray(_pad2(raw["w4"], P3, P4), jnp.bfloat16),
        "b4": jnp.asarray(_pad_bias(raw["b4"], P4)),
        "m5": jnp.asarray(_pad2(raw["w5"], P4, P_OUT), jnp.bfloat16),
        "b5": jnp.asarray(_pad_bias(raw["b5"], P_OUT)),
    }

    # Deterministic input (B, 100)  (== Reshape target (B,1,10,10) flattened).
    x = jax.random.normal(ks[10], (B, D_IN), dtype=jnp.float32)

    out = encoder_forward(x, params, latent_size=LATENT)
    out = jax.block_until_ready(out)
    assert out.shape == (B, LATENT), out.shape

    # Correctness check against a direct f32 numpy Conv2d/Linear reference.
    # (Tolerance loosened because the kernel uses bf16 operands / f32 accum.)
    ref = ref_forward(np.asarray(x), raw, LATENT)
    np.testing.assert_allclose(np.asarray(out), ref, rtol=3e-2, atol=3e-3)

    print("KERNEL_OK")
</pallas_src>

<mosaic_0001>
module attributes {stable_mosaic.version = 11 : i64} {
  func.func @encoder_kernel(%arg0: i32, %arg1: memref<16x128xf32, #tpu.memory_space<vmem>>, %arg2: memref<128x896xbf16, #tpu.memory_space<vmem>>, %arg3: memref<1x896xf32, #tpu.memory_space<vmem>>, %arg4: memref<896x640xbf16, #tpu.memory_space<vmem>>, %arg5: memref<1x640xf32, #tpu.memory_space<vmem>>, %arg6: memref<640x512xbf16, #tpu.memory_space<vmem>>, %arg7: memref<1x512xf32, #tpu.memory_space<vmem>>, %arg8: memref<512x1024xbf16, #tpu.memory_space<vmem>>, %arg9: memref<1x1024xf32, #tpu.memory_space<vmem>>, %arg10: memref<1024x128xbf16, #tpu.memory_space<vmem>>, %arg11: memref<1x128xf32, #tpu.memory_space<vmem>>, %arg12: memref<16x128xf32, #tpu.memory_space<vmem>>) attributes {dimension_semantics = [#tpu.dimension_semantics<parallel>], iteration_bounds = array<i64: 1>, scalar_prefetch = 0 : i64, scratch_operands = 0 : i64, tpu.core_type = #tpu.core_type<tc>, window_params = [{transform_indices = @transform_0, window_bounds = array<i64: 16, 128>}, {pipeline_mode = #tpu.pipeline_mode<synchronous>, transform_indices = @transform_1, window_bounds = array<i64: 128, 896>}, {pipeline_mode = #tpu.pipeline_mode<synchronous>, transform_indices = @transform_2, window_bounds = array<i64: 1, 896>}, {pipeline_mode = #tpu.pipeline_mode<synchronous>, transform_indices = @transform_3, window_bounds = array<i64: 896, 640>}, {pipeline_mode = #tpu.pipeline_mode<synchronous>, transform_indices = @transform_4, window_bounds = array<i64: 1, 640>}, {pipeline_mode = #tpu.pipeline_mode<synchronous>, transform_indices = @transform_5, window_bounds = array<i64: 640, 512>}, {pipeline_mode = #tpu.pipeline_mode<synchronous>, transform_indices = @transform_6, window_bounds = array<i64: 1, 512>}, {pipeline_mode = #tpu.pipeline_mode<synchronous>, transform_indices = @transform_7, window_bounds = array<i64: 512, 1024>}, {pipeline_mode = #tpu.pipeline_mode<synchronous>, transform_indices = @transform_8, window_bounds = array<i64: 1, 1024>}, {pipeline_mode = #tpu.pipeline_mode<synchronous>, transform_indices = @transform_9, window_bounds = array<i64: 1024, 128>}, {pipeline_mode = #tpu.pipeline_mode<synchronous>, transform_indices = @transform_10, window_bounds = array<i64: 1, 128>}, {transform_indices = @transform_11, window_bounds = array<i64: 16, 128>}]} {
    %c0 = arith.constant 0 : index
    %c0_0 = arith.constant 0 : index
    %0 = vector.load %arg1[%c0, %c0_0] : memref<16x128xf32, #tpu.memory_space<vmem>>, vector<16x128xf32>
    %1 = arith.truncf %0 : vector<16x128xf32> to vector<16x128xbf16>
    %c0_1 = arith.constant 0 : index
    %c0_2 = arith.constant 0 : index
    %2 = vector.load %arg2[%c0_1, %c0_2] : memref<128x896xbf16, #tpu.memory_space<vmem>>, vector<128x896xbf16>
    %cst = arith.constant dense<0.000000e+00> : vector<16x896xf32>
    %3 = tpu.matmul %1, %2, %cst {dimension_numbers = #tpu.dot_dimension_numbers<[1], [0], [0], [1], [0, 0, 1, 1], [], []>} : vector<16x128xbf16>, vector<128x896xbf16>, vector<16x896xf32> -> vector<16x896xf32>
    %c0_3 = arith.constant 0 : index
    %c0_4 = arith.constant 0 : index
    %4 = vector.load %arg3[%c0_3, %c0_4] : memref<1x896xf32, #tpu.memory_space<vmem>>, vector<1x896xf32>
    %5 = vector.broadcast %4 : vector<1x896xf32> to vector<16x896xf32>
    %6 = arith.addf %3, %5 : vector<16x896xf32>
    %cst_5 = arith.constant 0.00999999977 : f32
    %7 = vector.broadcast %cst_5 : f32 to vector<16x896xf32>
    %8 = arith.mulf %7, %6 : vector<16x896xf32>
    %9 = arith.maximumf %6, %8 : vector<16x896xf32>
    %10 = arith.truncf %9 : vector<16x896xf32> to vector<16x896xbf16>
    %c0_6 = arith.constant 0 : index
    %c0_7 = arith.constant 0 : index
    %11 = vector.load %arg4[%c0_6, %c0_7] : memref<896x640xbf16, #tpu.memory_space<vmem>>, vector<896x640xbf16>
    %cst_8 = arith.constant dense<0.000000e+00> : vector<16x640xf32>
    %12 = tpu.matmul %10, %11, %cst_8 {dimension_numbers = #tpu.dot_dimension_numbers<[1], [0], [0], [1], [0, 0, 1, 1], [], []>} : vector<16x896xbf16>, vector<896x640xbf16>, vector<16x640xf32> -> vector<16x640xf32>
    %c0_9 = arith.constant 0 : index
    %c0_10 = arith.constant 0 : index
    %13 = vector.load %arg5[%c0_9, %c0_10] : memref<1x640xf32, #tpu.memory_space<vmem>>, vector<1x640xf32>
    %14 = vector.broadcast %13 : vector<1x640xf32> to vector<16x640xf32>
    %15 = arith.addf %12, %14 : vector<16x640xf32>
    %cst_11 = arith.constant 0.00999999977 : f32
    %16 = vector.broadcast %cst_11 : f32 to vector<16x640xf32>
    %17 = arith.mulf %16, %15 : vector<16x640xf32>
    %18 = arith.maximumf %15, %17 : vector<16x640xf32>
    %19 = arith.truncf %18 : vector<16x640xf32> to vector<16x640xbf16>
    %c0_12 = arith.constant 0 : index
    %c0_13 = arith.constant 0 : index
    %20 = vector.load %arg6[%c0_12, %c0_13] : memref<640x512xbf16, #tpu.memory_space<vmem>>, vector<640x512xbf16>
    %cst_14 = arith.constant dense<0.000000e+00> : vector<16x512xf32>
    %21 = tpu.matmul %19, %20, %cst_14 {dimension_numbers = #tpu.dot_dimension_numbers<[1], [0], [0], [1], [0, 0, 1, 1], [], []>} : vector<16x640xbf16>, vector<640x512xbf16>, vector<16x512xf32> -> vector<16x512xf32>
    %c0_15 = arith.constant 0 : index
    %c0_16 = arith.constant 0 : index
    %22 = vector.load %arg7[%c0_15, %c0_16] : memref<1x512xf32, #tpu.memory_space<vmem>>, vector<1x512xf32>
    %23 = vector.broadcast %22 : vector<1x512xf32> to vector<16x512xf32>
    %24 = arith.addf %21, %23 : vector<16x512xf32>
    %cst_17 = arith.constant 0.00999999977 : f32
    %25 = vector.broadcast %cst_17 : f32 to vector<16x512xf32>
    %26 = arith.mulf %25, %24 : vector<16x512xf32>
    %27 = arith.maximumf %24, %26 : vector<16x512xf32>
    %28 = arith.truncf %27 : vector<16x512xf32> to vector<16x512xbf16>
    %c0_18 = arith.constant 0 : index
    %c0_19 = arith.constant 0 : index
    %29 = vector.load %arg8[%c0_18, %c0_19] : memref<512x1024xbf16, #tpu.memory_space<vmem>>, vector<512x1024xbf16>
    %cst_20 = arith.constant dense<0.000000e+00> : vector<16x1024xf32>
    %30 = tpu.matmul %28, %29, %cst_20 {dimension_numbers = #tpu.dot_dimension_numbers<[1], [0], [0], [1], [0, 0, 1, 1], [], []>} : vector<16x512xbf16>, vector<512x1024xbf16>, vector<16x1024xf32> -> vector<16x1024xf32>
    %c0_21 = arith.constant 0 : index
    %c0_22 = arith.constant 0 : index
    %31 = vector.load %arg9[%c0_21, %c0_22] : memref<1x1024xf32, #tpu.memory_space<vmem>>, vector<1x1024xf32>
    %32 = vector.broadcast %31 : vector<1x1024xf32> to vector<16x1024xf32>
    %33 = arith.addf %30, %32 : vector<16x1024xf32>
    %cst_23 = arith.constant 0.00999999977 : f32
    %34 = vector.broadcast %cst_23 : f32 to vector<16x1024xf32>
    %35 = arith.mulf %34, %33 : vector<16x1024xf32>
    %36 = arith.maximumf %33, %35 : vector<16x1024xf32>
    %37 = arith.truncf %36 : vector<16x1024xf32> to vector<16x1024xbf16>
    %c0_24 = arith.constant 0 : index
    %c0_25 = arith.constant 0 : index
    %38 = vector.load %arg10[%c0_24, %c0_25] : memref<1024x128xbf16, #tpu.memory_space<vmem>>, vector<1024x128xbf16>
    %cst_26 = arith.constant dense<0.000000e+00> : vector<16x128xf32>
    %39 = tpu.matmul %37, %38, %cst_26 {dimension_numbers = #tpu.dot_dimension_numbers<[1], [0], [0], [1], [0, 0, 1, 1], [], []>} : vector<16x1024xbf16>, vector<1024x128xbf16>, vector<16x128xf32> -> vector<16x128xf32>
    %c0_27 = arith.constant 0 : index
    %c0_28 = arith.constant 0 : index
    %40 = vector.load %arg11[%c0_27, %c0_28] : memref<1x128xf32, #tpu.memory_space<vmem>>, vector<1x128xf32>
    %41 = vector.broadcast %40 : vector<1x128xf32> to vector<16x128xf32>
    %42 = arith.addf %39, %41 : vector<16x128xf32>
    %c0_29 = arith.constant 0 : index
    %c0_30 = arith.constant 0 : index
    %43 = vector.load %arg12[%c0_29, %c0_30] : memref<16x128xf32, #tpu.memory_space<vmem>>, vector<16x128xf32>
    tpu.vector_store %arg12[%c0_29, %c0_30], %42 {strides = array<i32>} : memref<16x128xf32, #tpu.memory_space<vmem>>, vector<16x128xf32>,
    return
  }
  func.func @transform_0(%arg0: i32) -> (i32, i32) {
    %c0_i32 = arith.constant 0 : i32
    %c0_i32_0 = arith.constant 0 : i32
    return %arg0, %c0_i32 : i32, i32
  }
  func.func @transform_1(%arg0: i32) -> (i32, i32) {
    %c0_i32 = arith.constant 0 : i32
    %c0_i32_0 = arith.constant 0 : i32
    %c0_i32_1 = arith.constant 0 : i32
    return %c0_i32, %c0_i32_0 : i32, i32
  }
  func.func @transform_2(%arg0: i32) -> (i32, i32) {
    %c0_i32 = arith.constant 0 : i32
    %c0_i32_0 = arith.constant 0 : i32
    %c0_i32_1 = arith.constant 0 : i32
    return %c0_i32, %c0_i32_0 : i32, i32
  }
  func.func @transform_3(%arg0: i32) -> (i32, i32) {
    %c0_i32 = arith.constant 0 : i32
    %c0_i32_0 = arith.constant 0 : i32
    %c0_i32_1 = arith.constant 0 : i32
    return %c0_i32, %c0_i32_0 : i32, i32
  }
  func.func @transform_4(%arg0: i32) -> (i32, i32) {
    %c0_i32 = arith.constant 0 : i32
    %c0_i32_0 = arith.constant 0 : i32
    %c0_i32_1 = arith.constant 0 : i32
    return %c0_i32, %c0_i32_0 : i32, i32
  }
  func.func @transform_5(%arg0: i32) -> (i32, i32) {
    %c0_i32 = arith.constant 0 : i32
    %c0_i32_0 = arith.constant 0 : i32
    %c0_i32_1 = arith.constant 0 : i32
    return %c0_i32, %c0_i32_0 : i32, i32
  }
  func.func @transform_6(%arg0: i32) -> (i32, i32) {
    %c0_i32 = arith.constant 0 : i32
    %c0_i32_0 = arith.constant 0 : i32
    %c0_i32_1 = arith.constant 0 : i32
    return %c0_i32, %c0_i32_0 : i32, i32
  }
  func.func @transform_7(%arg0: i32) -> (i32, i32) {
    %c0_i32 = arith.constant 0 : i32
    %c0_i32_0 = arith.constant 0 : i32
    %c0_i32_1 = arith.constant 0 : i32
    return %c0_i32, %c0_i32_0 : i32, i32
  }
  func.func @transform_8(%arg0: i32) -> (i32, i32) {
    %c0_i32 = arith.constant 0 : i32
    %c0_i32_0 = arith.constant 0 : i32
    %c0_i32_1 = arith.constant 0 : i32
    return %c0_i32, %c0_i32_0 : i32, i32
  }
  func.func @transform_9(%arg0: i32) -> (i32, i32) {
    %c0_i32 = arith.constant 0 : i32
    %c0_i32_0 = arith.constant 0 : i32
    %c0_i32_1 = arith.constant 0 : i32
    return %c0_i32, %c0_i32_0 : i32, i32
  }
  func.func @transform_10(%arg0: i32) -> (i32, i32) {
    %c0_i32 = arith.constant 0 : i32
    %c0_i32_0 = arith.constant 0 : i32
    %c0_i32_1 = arith.constant 0 : i32
    return %c0_i32, %c0_i32_0 : i32, i32
  }
  func.func @transform_11(%arg0: i32) -> (i32, i32) {
    %c0_i32 = arith.constant 0 : i32
    %c0_i32_0 = arith.constant 0 : i32
    return %arg0, %c0_i32 : i32, i32
  }
}

module attributes {stable_mosaic.version = 11 : i64} {
  func.func @encoder_kernel(%arg0: i32, %arg1: memref<16x128xf32, #tpu.memory_space<vmem>>, %arg2: memref<128x896xbf16, #tpu.memory_space<vmem>>, %arg3: memref<1x896xf32, #tpu.memory_space<vmem>>, %arg4: memref<896x640xbf16, #tpu.memory_space<vmem>>, %arg5: memref<1x640xf32, #tpu.memory_space<vmem>>, %arg6: memref<640x512xbf16, #tpu.memory_space<vmem>>, %arg7: memref<1x512xf32, #tpu.memory_space<vmem>>, %arg8: memref<512x1024xbf16, #tpu.memory_space<vmem>>, %arg9: memref<1x1024xf32, #tpu.memory_space<vmem>>, %arg10: memref<1024x128xbf16, #tpu.memory_space<vmem>>, %arg11: memref<1x128xf32, #tpu.memory_space<vmem>>, %arg12: memref<16x128xf32, #tpu.memory_space<vmem>>) attributes {dimension_semantics = [#tpu.dimension_semantics<parallel>], iteration_bounds = array<i64: 1>, scalar_prefetch = 0 : i64, scratch_operands = 0 : i64, tpu.core_type = #tpu.core_type<tc>, window_params = [{transform_indices = @transform_0, window_bounds = array<i64: 16, 128>}, {pipeline_mode = #tpu.pipeline_mode<synchronous>, transform_indices = @transform_1, window_bounds = array<i64: 128, 896>}, {pipeline_mode = #tpu.pipeline_mode<synchronous>, transform_indices = @transform_2, window_bounds = array<i64: 1, 896>}, {pipeline_mode = #tpu.pipeline_mode<synchronous>, transform_indices = @transform_3, window_bounds = array<i64: 896, 640>}, {pipeline_mode = #tpu.pipeline_mode<synchronous>, transform_indices = @transform_4, window_bounds = array<i64: 1, 640>}, {pipeline_mode = #tpu.pipeline_mode<synchronous>, transform_indices = @transform_5, window_bounds = array<i64: 640, 512>}, {pipeline_mode = #tpu.pipeline_mode<synchronous>, transform_indices = @transform_6, window_bounds = array<i64: 1, 512>}, {pipeline_mode = #tpu.pipeline_mode<synchronous>, transform_indices = @transform_7, window_bounds = array<i64: 512, 1024>}, {pipeline_mode = #tpu.pipeline_mode<synchronous>, transform_indices = @transform_8, window_bounds = array<i64: 1, 1024>}, {pipeline_mode = #tpu.pipeline_mode<synchronous>, transform_indices = @transform_9, window_bounds = array<i64: 1024, 128>}, {pipeline_mode = #tpu.pipeline_mode<synchronous>, transform_indices = @transform_10, window_bounds = array<i64: 1, 128>}, {transform_indices = @transform_11, window_bounds = array<i64: 16, 128>}]} {
    %c0 = arith.constant 0 : index
    %c0_0 = arith.constant 0 : index
    %0 = vector.load %arg1[%c0, %c0_0] : memref<16x128xf32, #tpu.memory_space<vmem>>, vector<16x128xf32>
    %1 = arith.truncf %0 : vector<16x128xf32> to vector<16x128xbf16>
    %c0_1 = arith.constant 0 : index
    %c0_2 = arith.constant 0 : index
    %2 = vector.load %arg2[%c0_1, %c0_2] : memref<128x896xbf16, #tpu.memory_space<vmem>>, vector<128x896xbf16>
    %cst = arith.constant dense<0.000000e+00> : vector<16x896xf32>
    %3 = tpu.matmul %1, %2, %cst {dimension_numbers = #tpu.dot_dimension_numbers<[1], [0], [0], [1], [0, 0, 1, 1], [], []>} : vector<16x128xbf16>, vector<128x896xbf16>, vector<16x896xf32> -> vector<16x896xf32>
    %c0_3 = arith.constant 0 : index
    %c0_4 = arith.constant 0 : index
    %4 = vector.load %arg3[%c0_3, %c0_4] : memref<1x896xf32, #tpu.memory_space<vmem>>, vector<1x896xf32>
    %5 = vector.broadcast %4 : vector<1x896xf32> to vector<16x896xf32>
    %6 = arith.addf %3, %5 : vector<16x896xf32>
    %cst_5 = arith.constant 0.00999999977 : f32
    %7 = vector.broadcast %cst_5 : f32 to vector<16x896xf32>
    %8 = arith.mulf %7, %6 : vector<16x896xf32>
    %9 = arith.maximumf %6, %8 : vector<16x896xf32>
    %10 = arith.truncf %9 : vector<16x896xf32> to vector<16x896xbf16>
    %c0_6 = arith.constant 0 : index
    %c0_7 = arith.constant 0 : index
    %11 = vector.load %arg4[%c0_6, %c0_7] : memref<896x640xbf16, #tpu.memory_space<vmem>>, vector<896x640xbf16>
    %cst_8 = arith.constant dense<0.000000e+00> : vector<16x640xf32>
    %12 = tpu.matmul %10, %11, %cst_8 {dimension_numbers = #tpu.dot_dimension_numbers<[1], [0], [0], [1], [0, 0, 1, 1], [], []>} : vector<16x896xbf16>, vector<896x640xbf16>, vector<16x640xf32> -> vector<16x640xf32>
    %c0_9 = arith.constant 0 : index
    %c0_10 = arith.constant 0 : index
    %13 = vector.load %arg5[%c0_9, %c0_10] : memref<1x640xf32, #tpu.memory_space<vmem>>, vector<1x640xf32>
    %14 = vector.broadcast %13 : vector<1x640xf32> to vector<16x640xf32>
    %15 = arith.addf %12, %14 : vector<16x640xf32>
    %cst_11 = arith.constant 0.00999999977 : f32
    %16 = vector.broadcast %cst_11 : f32 to vector<16x640xf32>
    %17 = arith.mulf %16, %15 : vector<16x640xf32>
    %18 = arith.maximumf %15, %17 : vector<16x640xf32>
    %19 = arith.truncf %18 : vector<16x640xf32> to vector<16x640xbf16>
    %c0_12 = arith.constant 0 : index
    %c0_13 = arith.constant 0 : index
    %20 = vector.load %arg6[%c0_12, %c0_13] : memref<640x512xbf16, #tpu.memory_space<vmem>>, vector<640x512xbf16>
    %cst_14 = arith.constant dense<0.000000e+00> : vector<16x512xf32>
    %21 = tpu.matmul %19, %20, %cst_14 {dimension_numbers = #tpu.dot_dimension_numbers<[1], [0], [0], [1], [0, 0, 1, 1], [], []>} : vector<16x640xbf16>, vector<640x512xbf16>, vector<16x512xf32> -> vector<16x512xf32>
    %c0_15 = arith.constant 0 : index
    %c0_16 = arith.constant 0 : index
    %22 = vector.load %arg7[%c0_15, %c0_16] : memref<1x512xf32, #tpu.memory_space<vmem>>, vector<1x512xf32>
    %23 = vector.broadcast %22 : vector<1x512xf32> to vector<16x512xf32>
    %24 = arith.addf %21, %23 : vector<16x512xf32>
    %cst_17 = arith.constant 0.00999999977 : f32
    %25 = vector.broadcast %cst_17 : f32 to vector<16x512xf32>
    %26 = arith.mulf %25, %24 : vector<16x512xf32>
    %27 = arith.maximumf %24, %26 : vector<16x512xf32>
    %28 = arith.truncf %27 : vector<16x512xf32> to vector<16x512xbf16>
    %c0_18 = arith.constant 0 : index
    %c0_19 = arith.constant 0 : index
    %29 = vector.load %arg8[%c0_18, %c0_19] : memref<512x1024xbf16, #tpu.memory_space<vmem>>, vector<512x1024xbf16>
    %cst_20 = arith.constant dense<0.000000e+00> : vector<16x1024xf32>
    %30 = tpu.matmul %28, %29, %cst_20 {dimension_numbers = #tpu.dot_dimension_numbers<[1], [0], [0], [1], [0, 0, 1, 1], [], []>} : vector<16x512xbf16>, vector<512x1024xbf16>, vector<16x1024xf32> -> vector<16x1024xf32>
    %c0_21 = arith.constant 0 : index
    %c0_22 = arith.constant 0 : index
    %31 = vector.load %arg9[%c0_21, %c0_22] : memref<1x1024xf32, #tpu.memory_space<vmem>>, vector<1x1024xf32>
    %32 = vector.broadcast %31 : vector<1x1024xf32> to vector<16x1024xf32>
    %33 = arith.addf %30, %32 : vector<16x1024xf32>
    %cst_23 = arith.constant 0.00999999977 : f32
    %34 = vector.broadcast %cst_23 : f32 to vector<16x1024xf32>
    %35 = arith.mulf %34, %33 : vector<16x1024xf32>
    %36 = arith.maximumf %33, %35 : vector<16x1024xf32>
    %37 = arith.truncf %36 : vector<16x1024xf32> to vector<16x1024xbf16>
    %c0_24 = arith.constant 0 : index
    %c0_25 = arith.constant 0 : index
    %38 = vector.load %arg10[%c0_24, %c0_25] : memref<1024x128xbf16, #tpu.memory_space<vmem>>, vector<1024x128xbf16>
    %cst_26 = arith.constant dense<0.000000e+00> : vector<16x128xf32>
    %39 = tpu.matmul %37, %38, %cst_26 {dimension_numbers = #tpu.dot_dimension_numbers<[1], [0], [0], [1], [0, 0, 1, 1], [], []>} : vector<16x1024xbf16>, vector<1024x128xbf16>, vector<16x128xf32> -> vector<16x128xf32>
    %c0_27 = arith.constant 0 : index
    %c0_28 = arith.constant 0 : index
    %40 = vector.load %arg11[%c0_27, %c0_28] : memref<1x128xf32, #tpu.memory_space<vmem>>, vector<1x128xf32>
    %41 = vector.broadcast %40 : vector<1x128xf32> to vector<16x128xf32>
    %42 = arith.addf %39, %41 : vector<16x128xf32>
    %c0_29 = arith.constant 0 : index
    %c0_30 = arith.constant 0 : index
    %43 = vector.load %arg12[%c0_29, %c0_30] : memref<16x128xf32, #tpu.memory_space<vmem>>, vector<16x128xf32>
    tpu.vector_store %arg12[%c0_29, %c0_30], %42 {strides = array<i32>} : memref<16x128xf32, #tpu.memory_space<vmem>>, vector<16x128xf32>,
    return
  }
  func.func @transform_0(%arg0: i32) -> (i32, i32) {
    %c0_i32 = arith.constant 0 : i32
    %c0_i32_0 = arith.constant 0 : i32
    return %arg0, %c0_i32 : i32, i32
  }
  func.func @transform_1(%arg0: i32) -> (i32, i32) {
    %c0_i32 = arith.constant 0 : i32
    %c0_i32_0 = arith.constant 0 : i32
    %c0_i32_1 = arith.constant 0 : i32
    return %c0_i32, %c0_i32_0 : i32, i32
  }
  func.func @transform_2(%arg0: i32) -> (i32, i32) {
    %c0_i32 = arith.constant 0 : i32
    %c0_i32_0 = arith.constant 0 : i32
    %c0_i32_1 = arith.constant 0 : i32
    return %c0_i32, %c0_i32_0 : i32, i32
  }
  func.func @transform_3(%arg0: i32) -> (i32, i32) {
    %c0_i32 = arith.constant 0 : i32
    %c0_i32_0 = arith.constant 0 : i32
    %c0_i32_1 = arith.constant 0 : i32
    return %c0_i32, %c0_i32_0 : i32, i32
  }
  func.func @transform_4(%arg0: i32) -> (i32, i32) {
    %c0_i32 = arith.constant 0 : i32
    %c0_i32_0 = arith.constant 0 : i32
    %c0_i32_1 = arith.constant 0 : i32
    return %c0_i32, %c0_i32_0 : i32, i32
  }
  func.func @transform_5(%arg0: i32) -> (i32, i32) {
    %c0_i32 = arith.constant 0 : i32
    %c0_i32_0 = arith.constant 0 : i32
    %c0_i32_1 = arith.constant 0 : i32
    return %c0_i32, %c0_i32_0 : i32, i32
  }
  func.func @transform_6(%arg0: i32) -> (i32, i32) {
    %c0_i32 = arith.constant 0 : i32
    %c0_i32_0 = arith.constant 0 : i32
    %c0_i32_1 = arith.constant 0 : i32
    return %c0_i32, %c0_i32_0 : i32, i32
  }
  func.func @transform_7(%arg0: i32) -> (i32, i32) {
    %c0_i32 = arith.constant 0 : i32
    %c0_i32_0 = arith.constant 0 : i32
    %c0_i32_1 = arith.constant 0 : i32
    return %c0_i32, %c0_i32_0 : i32, i32
  }
  func.func @transform_8(%arg0: i32) -> (i32, i32) {
    %c0_i32 = arith.constant 0 : i32
    %c0_i32_0 = arith.constant 0 : i32
    %c0_i32_1 = arith.constant 0 : i32
    return %c0_i32, %c0_i32_0 : i32, i32
  }
  func.func @transform_9(%arg0: i32) -> (i32, i32) {
    %c0_i32 = arith.constant 0 : i32
    %c0_i32_0 = arith.constant 0 : i32
    %c0_i32_1 = arith.constant 0 : i32
    return %c0_i32, %c0_i32_0 : i32, i32
  }
  func.func @transform_10(%arg0: i32) -> (i32, i32) {
    %c0_i32 = arith.constant 0 : i32
    %c0_i32_0 = arith.constant 0 : i32
    %c0_i32_1 = arith.constant 0 : i32
    return %c0_i32, %c0_i32_0 : i32, i32
  }
  func.func @transform_11(%arg0: i32) -> (i32, i32) {
    %c0_i32 = arith.constant 0 : i32
    %c0_i32_0 = arith.constant 0 : i32
    return %arg0, %c0_i32 : i32, i32
  }
}

</mosaic_0001>

<bundles_post_ra>
// kernel: tpu_custom_call.1
= control target key start
LH: loop header
LB: loop body
LE: loop exit
PB: predicated region body
PF: predicated region fallthrough
CT: control target
= control target key end

     0   :  { %16 = vsyncpa [#allocation3], 0  ;;  %s9683_s0 = inlined_call_operand.hbm [shape: f32[16,128], index: 0, kind: input, shape index: {}]   ;;  %s9684_s1 = inlined_call_operand.hbm [shape: bf16[128,896], index: 1, kind: input, shape index: {}]   ;;  %s9685_s2 = inlined_call_operand.hbm [shape: f32[1,896], index: 2, kind: input, shape index: {}]   ;;  %s9686_s3 = inlined_call_operand.hbm [shape: bf16[896,640], index: 3, kind: input, shape index: {}]   ;;  %s9687_s4 = inlined_call_operand.hbm [shape: f32[1,640], index: 4, kind: input, shape index: {}]   ;;  %s9688_s5 = inlined_call_operand.hbm [shape: bf16[640,512], index: 5, kind: input, shape index: {}]   ;;  %s9689_s6 = inlined_call_operand.hbm [shape: f32[1,512], index: 6, kind: input, shape index: {}]   ;;  %s9690_s7 = inlined_call_operand.hbm [shape: bf16[512,1024], index: 7, kind: input, shape index: {}]   ;;  %s9691_s8 = inlined_call_operand.hbm [shape: f32[1,1024], index: 8, kind: input, shape index: {}]   ;;  %s9692_s9 = inlined_call_operand.hbm [shape: bf16[1024,128], index: 9, kind: input, shape index: {}]   ;;  %s9693_s10 = inlined_call_operand.hbm [shape: f32[1,128], index: 10, kind: input, shape index: {}]   ;;  %s9694_s11 = inlined_call_operand.hbm [shape: f32[16,128], index: 11, kind: output, shape index: {}]  }
   0x1   :  { %17 = vsyncpa [#allocation6], 0 }
   0x2   :  { %18 = vsyncpa [#allocation9], 0 }
   0x3   :  { %19 = vsyncpa [#allocation12], 0 }
   0x4   :  { %20 = vsyncpa [#allocation15], 0 }
   0x5   :  { %21 = vsyncpa [#allocation18], 0 }
   0x6   :  { %22 = vsyncpa [#allocation4], 0  ;;  %s9255_s17 = smov [#allocation5]   ;;  %s8977_s21 = scalar_lea.hbm %s9684_s1, 7168 }
   0x7   :  { %s40_s18 = sshll.u32 %s9255_s17, 4  ;;  %p8978_p0 = scmp.ne.s32.totalorder %s9684_s1, %s8977_s21  ;;  %s41_s18 = int_to_ptr.vmem [resolvable:$true] %s40_s18 }
   0x8   :  { %p8981_p1 = scmp.lt.u32.totalorder %s8977_s21, %s9684_s1 }
   0xa   :  { %p8983_p2 = pnand %p8981_p1, %p8978_p0 }
   0xc   :  { %8986 = shalt.err (!%p8983_p2)
}
   0xd   :  { %s8987_s26 = scalar_lea.vmem %s41_s18, 7168  ;;  %p8992_p4 = scmp.lt.s32.totalorder %s41_s18, %s41_s18 }
   0xe   :  { %p8988_p3 = scmp.ne.s32.totalorder %s41_s18, %s8987_s26  ;;  %p8993_p5 = scmp.lt.s32.totalorder %s8987_s26, %s8987_s26 }
  0x10   :  { %p8994_p6 = por %p8993_p5, %p8992_p4 }
  0x12   :  { %p8995_p7 = pnand %p8994_p6, %p8988_p3 }
  0x14   :  { %8998 = shalt.err (!%p8995_p7)
}
  0x15   :  { %s9256_s27 = smov 448   ;;  %s9257_s28 = smov 28  }
  0x16   :  { %46 = dma.hbm_to_vmem [thread:$0]  %s9684_s1, 7168, %s41_s18, [#allocation6], %s9256_s27, %s9256_s27, %s9257_s28  }
  0x17   :  { %s9258_s12 = smov [#allocation8]   ;;  %s8999_s16 = scalar_lea.hbm %s9686_s3, 35840 }
  0x18   :  { %s62_s13 = sshll.u32 %s9258_s12, 4  ;;  %p9000_p8 = scmp.ne.s32.totalorder %s9686_s3, %s8999_s16  ;;  %s63_s13 = int_to_ptr.vmem [resolvable:$true] %s62_s13 }
  0x19   :  { %p9003_p9 = scmp.lt.u32.totalorder %s8999_s16, %s9686_s3 }
  0x1b   :  { %p9005_p10 = pnand %p9003_p9, %p9000_p8 }
  0x1d   :  { %9008 = shalt.err (!%p9005_p10)
}
  0x1e   :  { %s9009_s22 = scalar_lea.vmem %s63_s13, 35840  ;;  %p9014_p12 = scmp.lt.s32.totalorder %s63_s13, %s63_s13 }
  0x1f   :  { %p9010_p11 = scmp.ne.s32.totalorder %s63_s13, %s9009_s22  ;;  %p9015_p13 = scmp.lt.s32.totalorder %s9009_s22, %s9009_s22 }
  0x21   :  { %p9016_p0 = por %p9015_p13, %p9014_p12 }
  0x23   :  { %p9017_p1 = pnand %p9016_p0, %p9010_p11 }
  0x25   :  { %9020 = shalt.err (!%p9017_p1)
}
  0x26   :  { %s9259_s1 = smov 320   ;;  %s9260_s18 = smov 20  }
  0x27   :  { %68 = dma.hbm_to_vmem [thread:$0]  %s9686_s3, 35840, %s63_s13, [#allocation9], %s9259_s1, %s9259_s1, %s9260_s18  }
  0x28   :  { %s9261_s25 = smov [#allocation11]   ;;  %s9021_s29 = scalar_lea.hbm %s9688_s5, 20480 }
  0x29   :  { %s84_s26 = sshll.u32 %s9261_s25, 4  ;;  %p9022_p2 = scmp.ne.s32.totalorder %s9688_s5, %s9021_s29  ;;  %s85_s26 = int_to_ptr.vmem [resolvable:$true] %s84_s26 }
  0x2a   :  { %p9025_p3 = scmp.lt.u32.totalorder %s9021_s29, %s9688_s5 }
  0x2c   :  { %p9027_p4 = pnand %p9025_p3, %p9022_p2 }
  0x2e   :  { %9030 = shalt.err (!%p9027_p4)
}
  0x2f   :  { %s9031_s16 = scalar_lea.vmem %s85_s26, 20480  ;;  %p9036_p6 = scmp.lt.s32.totalorder %s85_s26, %s85_s26 }
  0x30   :  { %p9032_p5 = scmp.ne.s32.totalorder %s85_s26, %s9031_s16  ;;  %p9037_p7 = scmp.lt.s32.totalorder %s9031_s16, %s9031_s16 }
  0x32   :  { %p9038_p8 = por %p9037_p7, %p9036_p6 }
  0x34   :  { %p9039_p9 = pnand %p9038_p8, %p9032_p5 }
  0x36   :  { %9042 = shalt.err (!%p9039_p9)
}
  0x37   :  { %s9262_s3 = smov 256   ;;  %s9263_s13 = smov 16  }
  0x38   :  { %90 = dma.hbm_to_vmem [thread:$0]  %s9688_s5, 20480, %s85_s26, [#allocation12], %s9262_s3, %s9262_s3, %s9263_s13  }
  0x39   :  { %s9264_s20 = smov [#allocation14]   ;;  %s9043_s18 = scalar_lea.hbm %s9690_s7, 32768 }
  0x3a   :  { %s106_s21 = sshll.u32 %s9264_s20, 4  ;;  %p9044_p10 = scmp.ne.s32.totalorder %s9690_s7, %s9043_s18  ;;  %s107_s21 = int_to_ptr.vmem [resolvable:$true] %s106_s21 }
  0x3b   :  { %p9047_p11 = scmp.lt.u32.totalorder %s9043_s18, %s9690_s7 }
  0x3d   :  { %p9049_p12 = pnand %p9047_p11, %p9044_p10 }
  0x3f   :  { %9052 = shalt.err (!%p9049_p12)
}
  0x40   :  { %s9053_s28 = scalar_lea.vmem %s107_s21, 32768  ;;  %p9058_p0 = scmp.lt.s32.totalorder %s107_s21, %s107_s21 }
  0x41   :  { %p9054_p13 = scmp.ne.s32.totalorder %s107_s21, %s9053_s28  ;;  %p9059_p1 = scmp.lt.s32.totalorder %s9053_s28, %s9053_s28 }
  0x43   :  { %p9060_p2 = por %p9059_p1, %p9058_p0 }
  0x45   :  { %p9061_p3 = pnand %p9060_p2, %p9054_p13 }
  0x47   :  { %9064 = shalt.err (!%p9061_p3)
}
  0x48   :  { %s9265_s5 = smov 512   ;;  %s9266_s26 = smov 32  }
  0x49   :  { %112 = dma.hbm_to_vmem [thread:$0]  %s9690_s7, 32768, %s107_s21, [#allocation15], %s9265_s5, %s9265_s5, %s9266_s26  }
  0x4a   :  { %s9267_s12 = smov [#allocation17]   ;;  %s9065_s3 = scalar_lea.hbm %s9692_s9, 8192 }
  0x4b   :  { %s128_s14 = sshll.u32 %s9267_s12, 4  ;;  %p9066_p4 = scmp.ne.s32.totalorder %s9692_s9, %s9065_s3  ;;  %s129_s14 = int_to_ptr.vmem [resolvable:$true] %s128_s14 }
  0x4c   :  { %p9069_p5 = scmp.lt.u32.totalorder %s9065_s3, %s9692_s9 }
  0x4e   :  { %p9071_p6 = pnand %p9069_p5, %p9066_p4 }
  0x50   :  { %9074 = shalt.err (!%p9071_p6)
}
  0x51   :  { %s9075_s22 = scalar_lea.vmem %s129_s14, 8192  ;;  %p9080_p8 = scmp.lt.s32.totalorder %s129_s14, %s129_s14 }
  0x52   :  { %p9076_p7 = scmp.ne.s32.totalorder %s129_s14, %s9075_s22  ;;  %p9081_p9 = scmp.lt.s32.totalorder %s9075_s22, %s9075_s22 }
  0x54   :  { %p9082_p10 = por %p9081_p9, %p9080_p8 }
  0x56   :  { %p9083_p11 = pnand %p9082_p10, %p9076_p7 }
  0x58   :  { %9086 = shalt.err (!%p9083_p11)
}
  0x59   :  { %s9268_s7 = smov 64   ;;  %s9269_s21 = smov 4  }
  0x5a   :  { %134 = dma.hbm_to_vmem [thread:$0]  %s9692_s9, 8192, %s129_s14, [#allocation18], %s9268_s7, %s9268_s7, %s9269_s21  }
  0x5b   :  { %s9270_s23 = smov [#allocation2]   ;;  %s9087_s28 = scalar_lea.hbm %s9683_s0, 256 }
  0x5c   :  { %s28_s24 = sshll.u32 %s9270_s23, 4  ;;  %p9088_p12 = scmp.ne.s32.totalorder %s9683_s0, %s9087_s28  ;;  %s29_s24 = int_to_ptr.vmem [resolvable:$true] %s28_s24 }
  0x5d   :  { %p9091_p13 = scmp.lt.u32.totalorder %s9087_s28, %s9683_s0 }
  0x5f   :  { %p9093_p0 = pnand %p9091_p13, %p9088_p12 }
  0x61   :  { %9096 = shalt.err (!%p9093_p0)
}
  0x62   :  { %s9097_s12 = scalar_lea.vmem %s29_s24, 256  ;;  %p9102_p2 = scmp.lt.s32.totalorder %s29_s24, %s29_s24 }
  0x63   :  { %p9098_p1 = scmp.ne.s32.totalorder %s29_s24, %s9097_s12  ;;  %p9103_p3 = scmp.lt.s32.totalorder %s9097_s12, %s9097_s12 }
  0x65   :  { %p9104_p4 = por %p9103_p3, %p9102_p2 }
  0x67   :  { %p9105_p5 = pnand %p9104_p4, %p9098_p1 }
  0x69   :  { %9108 = shalt.err (!%p9105_p5)
}
  0x6a   :  { %s9271_s9 = smov 128   ;;  %s9272_s14 = smov 8  }
  0x6b   :  { %34 = dma.hbm_to_vmem [thread:$0]  %s9683_s0, 256, %s29_s24, [#allocation3], %s9271_s9, %s9271_s9, %s9272_s14  }
  0x6c   :  { %s9273_s3 = smov [#allocation7]   ;;  %s9274_s17 = smov [#allocation10]  }
  0x6d   :  { %s53_s13 = sshll.u32 %s9273_s3, 4  ;;  %s75_s19 = sshll.u32 %s9274_s17, 4  ;;  %s54_s13 = int_to_ptr.vmem [resolvable:$true] %s53_s13  ;;  %s76_s19 = int_to_ptr.vmem [resolvable:$true] %s75_s19 }
  0x6e   :  { %s9109_s7 = scalar_lea.hbm %s9685_s2, 112 }
  0x6f   :  { %p9110_p6 = scmp.ne.s32.totalorder %s9685_s2, %s9109_s7  ;;  %p9113_p7 = scmp.lt.u32.totalorder %s9109_s7, %s9685_s2 }
  0x71   :  { %p9115_p8 = pnand %p9113_p7, %p9110_p6 }
  0x73   :  { %9118 = shalt.err (!%p9115_p8)
}
  0x74   :  { %s9119_s0 = scalar_lea.vmem %s54_s13, 112  ;;  %s9123_s24 = scalar_lea.vmem %s54_s13, 128 }
  0x75   :  { %p9120_p9 = scmp.ne.s32.totalorder %s54_s13, %s9119_s0  ;;  %p9124_p10 = scmp.lt.s32.totalorder %s54_s13, %s54_s13 }
  0x76   :  { %p9125_p11 = scmp.lt.s32.totalorder %s9123_s24, %s9119_s0 }
  0x78   :  { %p9126_p12 = por %p9125_p11, %p9124_p10 }
  0x7a   :  { %p9127_p13 = pnand %p9126_p12, %p9120_p9 }
  0x7c   :  { %9130 = shalt.err (!%p9127_p13)
}
  0x7d   :  { %56 = dma.hbm_to_vmem [thread:$0]  %s9685_s2, 112, %s54_s13, [#allocation6]  }
  0x7e   :  { %s9131_s26 = scalar_lea.hbm %s9687_s4, 80 }
  0x7f   :  { %p9132_p0 = scmp.ne.s32.totalorder %s9687_s4, %s9131_s26  ;;  %p9135_p1 = scmp.lt.u32.totalorder %s9131_s26, %s9687_s4 }
  0x81   :  { %p9137_p2 = pnand %p9135_p1, %p9132_p0 }
  0x83   :  { %9140 = shalt.err (!%p9137_p2)
}
  0x84   :  { %s9141_s16 = scalar_lea.vmem %s76_s19, 80  ;;  %s9145_s3 = scalar_lea.vmem %s76_s19, 96 }
  0x85   :  { %p9142_p3 = scmp.ne.s32.totalorder %s76_s19, %s9141_s16  ;;  %p9146_p4 = scmp.lt.s32.totalorder %s76_s19, %s76_s19 }
  0x86   :  { %p9147_p5 = scmp.lt.s32.totalorder %s9145_s3, %s9141_s16 }
  0x88   :  { %p9148_p6 = por %p9147_p5, %p9146_p4 }
  0x8a   :  { %p9149_p7 = pnand %p9148_p6, %p9142_p3 }
  0x8c   :  { %9152 = shalt.err (!%p9149_p7)
}
  0x8d   :  { %78 = dma.hbm_to_vmem [thread:$0]  %s9687_s4, 80, %s76_s19, [#allocation9]  }
  0x8e   :  { %s9275_s17 = smov [#allocation13]   ;;  %s9276_s22 = smov [#allocation16]  }
  0x8f   :  { %s97_s20 = sshll.u32 %s9275_s17, 4  ;;  %s119_s7 = sshll.u32 %s9276_s22, 4  ;;  %s98_s20 = int_to_ptr.vmem [resolvable:$true] %s97_s20  ;;  %s120_s7 = int_to_ptr.vmem [resolvable:$true] %s119_s7 }
  0x90   :  { %s9153_s18 = scalar_lea.hbm %s9689_s6, 64 }
  0x91   :  { %p9154_p8 = scmp.ne.s32.totalorder %s9689_s6, %s9153_s18  ;;  %p9157_p9 = scmp.lt.u32.totalorder %s9153_s18, %s9689_s6 }
  0x93   :  { %p9159_p10 = pnand %p9157_p9, %p9154_p8 }
  0x95   :  { %9162 = shalt.err (!%p9159_p10)
}
  0x96   :  { %s9163_s4 = scalar_lea.vmem %s98_s20, 64  ;;  %p9168_p12 = scmp.lt.s32.totalorder %s98_s20, %s98_s20 }
  0x97   :  { %p9164_p11 = scmp.ne.s32.totalorder %s98_s20, %s9163_s4  ;;  %p9169_p13 = scmp.lt.s32.totalorder %s9163_s4, %s9163_s4 }
  0x99   :  { %p9170_p0 = por %p9169_p13, %p9168_p12 }
  0x9b   :  { %p9171_p1 = pnand %p9170_p0, %p9164_p11 }
  0x9d   :  { %9174 = shalt.err (!%p9171_p1)
}
  0x9e   :  { %100 = dma.hbm_to_vmem [thread:$0]  %s9689_s6, 64, %s98_s20, [#allocation12]  }
  0x9f   :  { %s9175_s26 = scalar_lea.hbm %s9691_s8, 128 }
  0xa0   :  { %p9176_p2 = scmp.ne.s32.totalorder %s9691_s8, %s9175_s26  ;;  %p9179_p3 = scmp.lt.u32.totalorder %s9175_s26, %s9691_s8 }
  0xa2   :  { %p9181_p4 = pnand %p9179_p3, %p9176_p2 }
  0xa4   :  { %9184 = shalt.err (!%p9181_p4)
}
  0xa5   :  { %s9185_s16 = scalar_lea.vmem %s120_s7, 128  ;;  %p9190_p6 = scmp.lt.s32.totalorder %s120_s7, %s120_s7 }
  0xa6   :  { %p9186_p5 = scmp.ne.s32.totalorder %s120_s7, %s9185_s16  ;;  %p9191_p7 = scmp.lt.s32.totalorder %s9185_s16, %s9185_s16 }
  0xa8   :  { %p9192_p8 = por %p9191_p7, %p9190_p6 }
  0xaa   :  { %p9193_p9 = pnand %p9192_p8, %p9186_p5 }
  0xac   :  { %9196 = shalt.err (!%p9193_p9)
}
  0xad   :  { %122 = dma.hbm_to_vmem [thread:$0]  %s9691_s8, 128, %s120_s7, [#allocation15]  }
  0xae   :  { %s9277_s2 = smov [#allocation19]   ;;  %s9197_s22 = scalar_lea.hbm %s9693_s10, 16 }
  0xaf   :  { %s141_s13 = sshll.u32 %s9277_s2, 4  ;;  %p9198_p10 = scmp.ne.s32.totalorder %s9693_s10, %s9197_s22  ;;  %s142_s13 = int_to_ptr.vmem [resolvable:$true] %s141_s13 }
  0xb0   :  { %p9201_p11 = scmp.lt.u32.totalorder %s9197_s22, %s9693_s10 }
  0xb2   :  { %p9203_p12 = pnand %p9201_p11, %p9198_p10 }
  0xb4   :  { %9206 = shalt.err (!%p9203_p12)
}
  0xb5   :  { %s9207_s0 = scalar_lea.vmem %s142_s13, 16  ;;  %s9211_s8 = scalar_lea.vmem %s142_s13, 32 }
  0xb6   :  { %p9208_p13 = scmp.ne.s32.totalorder %s142_s13, %s9207_s0  ;;  %p9212_p0 = scmp.lt.s32.totalorder %s142_s13, %s142_s13 }
  0xb7   :  { %p9213_p1 = scmp.lt.s32.totalorder %s9211_s8, %s9207_s0 }
  0xb9   :  { %p9214_p2 = por %p9213_p1, %p9212_p0 }
  0xbb   :  { %p9215_p3 = pnand %p9214_p2, %p9208_p13 }
  0xbd   :  { %9218 = shalt.err (!%p9215_p3)
}
  0xbe   :  { %144 = dma.hbm_to_vmem [thread:$0]  %s9693_s10, 16, %s142_s13, [#allocation18]  }
  0xbf   :  { %9241 = dma.done.wait [#allocation3], 256  }
  0xc0   :  { %9242 = vsyncadd [#allocation3], 4294967040 }
  0xc1   :  { %9243 = dma.done.wait [#allocation6], 7280  }
  0xc2   :  { %9244 = vsyncadd [#allocation6], 4294960016 }
  0xc3   :  { %9245 = dma.done.wait [#allocation9], 35920  }
  0xc4   :  { %9246 = vsyncadd [#allocation9], 4294931376 }
  0xc5   :  { %9247 = dma.done.wait [#allocation12], 20544  }
  0xc6   :  { %9248 = vsyncadd [#allocation12], 4294946752 }
  0xc7   :  { %9249 = dma.done.wait [#allocation15], 32896  }
  0xc8   :  { %9250 = vsyncadd [#allocation15], 4294934400 }
  0xc9   :  { %9251 = dma.done.wait [#allocation18], 8208  }
  0xca   :  { %9252 = vsyncadd [#allocation18], 4294959088  ;;  %v9278_v0 = vmov 0   ;;  %v8201_v1 = vld [vmem:[#allocation5 + $0x4] ss:$28 sps:$4 sm:$0xff]   ;;  %v179_v26 = vld [vmem:[#allocation2] sm:$0xff] }
  0xcb   :  { %603 = vmatprep.mubr.bf16.mxu0 %v9278_v0  ;;  %646 = vmatprep.mubr.bf16.mxu1 %v9278_v0  ;;  %v8203_v2 = vld [vmem:[#allocation5] ss:$28 sps:$4 sm:$0xff]   ;;  %v8206_v4 = vld [vmem:[#allocation5 + $0x38] ss:$28 sps:$4 sm:$0xff]   ;;  %v8209_v6 = vld [vmem:[#allocation5 + $0x70] ss:$28 sps:$4 sm:$0xff]  }
  0xcc   :  { %571 = vmatprep.subr.bf16.mxu0 %v8201_v1  ;;  %v8204_v3 = vld [vmem:[#allocation5 + $0x3c] ss:$28 sps:$4 sm:$0xff]   ;;  %v8207_v5 = vld [vmem:[#allocation5 + $0x74] ss:$28 sps:$4 sm:$0xff]   ;;  %v8210_v7 = vld [vmem:[#allocation5 + $0xac] ss:$28 sps:$4 sm:$0xff]  }
  0xcd   :  { %572 = vmatpush1.bf16.msra.mxu0 %v8203_v2  ;;  %v8212_v8 = vld [vmem:[#allocation5 + $0xa8] ss:$28 sps:$4 sm:$0xff]   ;;  %v8215_v13 = vld [vmem:[#allocation5 + $0xe0] ss:$28 sps:$4 sm:$0xff]   ;;  %v8218_v17 = vld [vmem:[#allocation5 + $0x118] ss:$28 sps:$4 sm:$0xff]  }
  0xce   :  { %573 = vmatprep.subr.bf16.mxu0 %v8204_v3  ;;  %v8213_v9 = vld [vmem:[#allocation5 + $0xe4] ss:$28 sps:$4 sm:$0xff]   ;;  %v8225_v10 = vld [vmem:[#allocation5 + $0xc] ss:$28 sps:$4 sm:$0xff]   ;;  %v8216_v15 = vld [vmem:[#allocation5 + $0x11c] ss:$28 sps:$4 sm:$0xff]  }
  0xcf   :  { %v8227_v11 = vld [vmem:[#allocation5 + $0x8] ss:$28 sps:$4 sm:$0xff]   ;;  %614 = vmatprep.subr.bf16.mxu1 %v8225_v10  ;;  %v8230_v14 = vld [vmem:[#allocation5 + $0x40] ss:$28 sps:$4 sm:$0xff]   ;;  %v8233_v18 = vld [vmem:[#allocation5 + $0x78] ss:$28 sps:$4 sm:$0xff]  }
  0xd0   :  { %v8228_v12 = vld [vmem:[#allocation5 + $0x44] ss:$28 sps:$4 sm:$0xff]   ;;  %615 = vmatpush1.bf16.msra.mxu1 %v8227_v11  ;;  %v8231_v16 = vld [vmem:[#allocation5 + $0x7c] ss:$28 sps:$4 sm:$0xff]   ;;  %v8219_v19 = vld [vmem:[#allocation5 + $0x154] ss:$28 sps:$4 sm:$0xff]  }
  0xd1   :  { %574 = vmatpush1.bf16.msra.mxu0 %v8206_v4  ;;  %616 = vmatprep.subr.bf16.mxu1 %v8228_v12  ;;  %v8234_v20 = vld [vmem:[#allocation5 + $0xb4] ss:$28 sps:$4 sm:$0xff]   ;;  %v8222_v23 = vld [vmem:[#allocation5 + $0x18c] ss:$28 sps:$4 sm:$0xff]   ;;  %v180_v27 = vld [vmem:[#allocation2 + $0x8] sm:$0xff]  ;;  %v9279_v46 = vmov 0.0  }
  0xd2   :  { %575 = vmatprep.subr.bf16.mxu0 %v8207_v5  ;;  %v8221_v21 = vld [vmem:[#allocation5 + $0x150] ss:$28 sps:$4 sm:$0xff]   ;;  %v8224_v25 = vld [vmem:[#allocation5 + $0x188] ss:$28 sps:$4 sm:$0xff]   ;;  %v9479_v31 = vpack.c.bf16 %v180_v27, %v179_v26  ;;  %v8242_v32 = vld [vmem:[#allocation5 + $0x120] ss:$28 sps:$4 sm:$0xff]  }
  0xd3   :  { %v8236_v22 = vld [vmem:[#allocation5 + $0xb0] ss:$28 sps:$4 sm:$0xff]   ;;  %v8239_v28 = vld [vmem:[#allocation5 + $0xe8] ss:$28 sps:$4 sm:$0xff]   ;;  %v8243_v34 = vld [vmem:[#allocation5 + $0x15c] ss:$28 sps:$4 sm:$0xff]  }
  0xd4   :  { %617 = vmatpush1.bf16.msra.mxu1 %v8230_v14  ;;  %v8237_v24 = vld [vmem:[#allocation5 + $0xec] ss:$28 sps:$4 sm:$0xff]   ;;  %v8240_v29 = vld [vmem:[#allocation5 + $0x124] ss:$28 sps:$4 sm:$0xff]   ;;  %v8251_v30 = vld [vmem:[#allocation5 + $0x14] ss:$28 sps:$4 sm:$0xff]  }
  0xd5   :  { %576 = vmatpush1.bf16.msra.mxu0 %v8209_v6  ;;  %618 = vmatprep.subr.bf16.mxu1 %v8231_v16  ;;  %v8249_v33 = vld [vmem:[#allocation5 + $0x10] ss:$28 sps:$4 sm:$0xff]   ;;  %v8245_v36 = vld [vmem:[#allocation5 + $0x158] ss:$28 sps:$4 sm:$0xff]   ;;  %v8252_v38 = vld [vmem:[#allocation5 + $0x48] ss:$28 sps:$4 sm:$0xff]  }
  0xd6   :  { %577 = vmatprep.subr.bf16.mxu0 %v8210_v7  ;;  %v8254_v35 = vld [vmem:[#allocation5 + $0x4c] ss:$28 sps:$4 sm:$0xff]   ;;  %v8246_v37 = vld [vmem:[#allocation5 + $0x194] ss:$28 sps:$4 sm:$0xff]   ;;  %v8257_v39 = vld [vmem:[#allocation5 + $0x84] ss:$28 sps:$4 sm:$0xff]  }
  0xd7   :  { %v8248_v40 = vld [vmem:[#allocation5 + $0x190] ss:$28 sps:$4 sm:$0xff]   ;;  %v8255_v41 = vld [vmem:[#allocation5 + $0x80] ss:$28 sps:$4 sm:$0xff]   ;;  %v8258_v43 = vld [vmem:[#allocation5 + $0xb8] ss:$28 sps:$4 sm:$0xff]  }
  0xd8   :  { %619 = vmatpush1.bf16.msra.mxu1 %v8233_v18  ;;  %v8260_v42 = vld [vmem:[#allocation5 + $0xbc] ss:$28 sps:$4 sm:$0xff]   ;;  %v8263_v45 = vld [vmem:[#allocation5 + $0xf4] ss:$28 sps:$4 sm:$0xff]   ;;  %v8266_v49 = vld [vmem:[#allocation5 + $0x12c] ss:$28 sps:$4 sm:$0xff]  }
  0xd9   :  { %578 = vmatpush1.bf16.msra.mxu0 %v8212_v8  ;;  %620 = vmatprep.subr.bf16.mxu1 %v8234_v20  ;;  %v8273_v44 = vld [vmem:[#allocation5 + $0x18] ss:$28 sps:$4 sm:$0xff]   ;;  %v8261_v47 = vld [vmem:[#allocation5 + $0xf0] ss:$28 sps:$4 sm:$0xff]   ;;  %vm9280_vm0 = vmmov 0   ;;  %s9281_s10 = smov [#allocation20]  }
  0xda   :  { %579 = vmatprep.subr.bf16.mxu0 %v8213_v9  ;;  %v8274_v48 = vld [vmem:[#allocation5 + $0x50] ss:$28 sps:$4 sm:$0xff]   ;;  %v8264_v50 = vld [vmem:[#allocation5 + $0x128] ss:$28 sps:$4 sm:$0xff]   ;;  %v8267_v53 = vld [vmem:[#allocation5 + $0x160] ss:$28 sps:$4 sm:$0xff]  }
  0xdb   :  { %v8275_v51 = vld [vmem:[#allocation5 + $0x88] ss:$28 sps:$4 sm:$0xff]   ;;  %v8276_v54 = vld [vmem:[#allocation5 + $0xc0] ss:$28 sps:$4 sm:$0xff]   ;;  %v8270_v56 = vld [vmem:[#allocation5 + $0x198] ss:$28 sps:$4 sm:$0xff]  }
  0xdc   :  { %621 = vmatpush1.bf16.msra.mxu1 %v8236_v22  ;;  %v8269_v52 = vld [vmem:[#allocation5 + $0x164] ss:$28 sps:$4 sm:$0xff]   ;;  %v8272_v55 = vld [vmem:[#allocation5 + $0x19c] ss:$28 sps:$4 sm:$0xff]   ;;  %v8278_v59 = vld [vmem:[#allocation5 + $0x130] ss:$28 sps:$4 sm:$0xff]  }
  0xdd   :  { %580 = vmatpush1.bf16.msra.mxu0 %v8215_v13  ;;  %622 = vmatprep.subr.bf16.mxu1 %v8237_v24  ;;  %v8277_v57 = vld [vmem:[#allocation5 + $0xf8] ss:$28 sps:$4 sm:$0xff]   ;;  %v8283_v58 = vld [vmem:[#allocation8 + $0x4] ss:$20 sps:$4 sm:$0xff]   ;;  %v8281_v60 = vld [vmem:[#allocation8] ss:$20 sps:$4 sm:$0xff]  }
  0xde   :  { %581 = vmatprep.subr.bf16.mxu0 %v8216_v15  ;;  %v8289_v61 = vld [vmem:[#allocation8 + $0x2c] ss:$20 sps:$4 sm:$0xff]   ;;  %v8287_v63 = vld [vmem:[#allocation8 + $0x28] ss:$20 sps:$4 sm:$0xff]   ;;  %v8280_v2 = vld [vmem:[#allocation5 + $0x1a0] ss:$28 sps:$4 sm:$0xff]  }
  0xdf   :  { %v8279_v62 = vld [vmem:[#allocation5 + $0x168] ss:$28 sps:$4 sm:$0xff]   ;;  %v8295_v1 = vld [vmem:[#allocation8 + $0x54] ss:$20 sps:$4 sm:$0xff]   ;;  %v8293_v3 = vld [vmem:[#allocation8 + $0x50] ss:$20 sps:$4 sm:$0xff]  }
  0xe0   :  { %623 = vmatpush1.bf16.msra.mxu1 %v8239_v28  ;;  %v8286_v4 = vld [vmem:[#allocation8 + $0xc] ss:$20 sps:$4 sm:$0xff]   ;;  %v8301_v5 = vld [vmem:[#allocation8 + $0x7c] ss:$20 sps:$4 sm:$0xff]   ;;  %v8292_v7 = vld [vmem:[#allocation8 + $0x34] ss:$20 sps:$4 sm:$0xff]  }
  0xe1   :  { %582 = vmatpush1.bf16.msra.mxu0 %v8218_v17  ;;  %624 = vmatprep.subr.bf16.mxu1 %v8240_v29  ;;  %v8284_v6 = vld [vmem:[#allocation8 + $0x8] ss:$20 sps:$4 sm:$0xff]   ;;  %v8299_v8 = vld [vmem:[#allocation8 + $0x78] ss:$20 sps:$4 sm:$0xff]   ;;  %v8290_v10 = vld [vmem:[#allocation8 + $0x30] ss:$20 sps:$4 sm:$0xff]  }
  0xe2   :  { %583 = vmatprep.subr.bf16.mxu0 %v8219_v19  ;;  %v8307_v9 = vld [vmem:[#allocation8 + $0xa4] ss:$20 sps:$4 sm:$0xff]   ;;  %v8305_v11 = vld [vmem:[#allocation8 + $0xa0] ss:$20 sps:$4 sm:$0xff]   ;;  %v8298_v12 = vld [vmem:[#allocation8 + $0x5c] ss:$20 sps:$4 sm:$0xff]  }
  0xe3   :  { %v8313_v13 = vld [vmem:[#allocation8 + $0xcc] ss:$20 sps:$4 sm:$0xff]   ;;  %v8311_v15 = vld [vmem:[#allocation8 + $0xc8] ss:$20 sps:$4 sm:$0xff]   ;;  %v8304_v16 = vld [vmem:[#allocation8 + $0x84] ss:$20 sps:$4 sm:$0xff]  }
  0xe4   :  { %625 = vmatpush1.bf16.msra.mxu1 %v8242_v32  ;;  %v8296_v14 = vld [vmem:[#allocation8 + $0x58] ss:$20 sps:$4 sm:$0xff]   ;;  %v8319_v17 = vld [vmem:[#allocation8 + $0xf4] ss:$20 sps:$4 sm:$0xff]   ;;  %v8317_v19 = vld [vmem:[#allocation8 + $0xf0] ss:$20 sps:$4 sm:$0xff]  }
  0xe5   :  { %584 = vmatpush1.bf16.msra.mxu0 %v8221_v21  ;;  %626 = vmatprep.subr.bf16.mxu1 %v8243_v34  ;;  %v8302_v18 = vld [vmem:[#allocation8 + $0x80] ss:$20 sps:$4 sm:$0xff]   ;;  %v8325_v21 = vld [vmem:[#allocation8 + $0x11c] ss:$20 sps:$4 sm:$0xff]   ;;  %v8328_v32 = vld [vmem:[#allocation8 + $0x124] ss:$20 sps:$4 sm:$0xff]  }
  0xe6   :  { %585 = vmatprep.subr.bf16.mxu0 %v8222_v23  ;;  %v8310_v20 = vld [vmem:[#allocation8 + $0xac] ss:$20 sps:$4 sm:$0xff]   ;;  %v8308_v22 = vld [vmem:[#allocation8 + $0xa8] ss:$20 sps:$4 sm:$0xff]   ;;  %v8314_v26 = vld [vmem:[#allocation8 + $0xd0] ss:$20 sps:$4 sm:$0xff]  }
  0xe7   :  { %v8323_v23 = vld [vmem:[#allocation8 + $0x118] ss:$20 sps:$4 sm:$0xff]   ;;  %v8316_v24 = vld [vmem:[#allocation8 + $0xd4] ss:$20 sps:$4 sm:$0xff]   ;;  %v8322_v28 = vld [vmem:[#allocation8 + $0xfc] ss:$20 sps:$4 sm:$0xff]  }
  0xe8   :  { %627 = vmatpush1.bf16.msra.mxu1 %v8245_v36  ;;  %v8329_v27 = vld [vmem:[#allocation8 + $0x140] ss:$20 sps:$4 sm:$0xff]   ;;  %s7040_s25 = sshll.u32 %s9281_s10, 4  ;;  %s7041_s25 = int_to_ptr.vmem [resolvable:$true] %s7040_s25 }
  0xe9   :  { %586 = vmatpush1.bf16.msra.mxu0 %v8224_v25  ;;  %628 = vmatprep.subr.bf16.mxu1 %v8246_v37  ;;  %v8331_v25 = vld [vmem:[#allocation8 + $0x144] ss:$20 sps:$4 sm:$0xff]   ;;  %v8337_v29 = vld [vmem:[#allocation8 + $0x16c] ss:$20 sps:$4 sm:$0xff]   ;;  %v8349_v37 = vld [vmem:[#allocation8 + $0x1bc] ss:$20 sps:$4 sm:$0xff]   ;;  %p9224_p5 = scmp.lt.s32.totalorder %s7041_s25, %s7041_s25 }
  0xea   :  { %657 = vmatprep.subr.bf16.mxu0 %v8251_v30  ;;  %v8320_v30 = vld [vmem:[#allocation8 + $0xf8] ss:$20 sps:$4 sm:$0xff]   ;;  %v8326_v34 = vld [vmem:[#allocation8 + $0x120] ss:$20 sps:$4 sm:$0xff]   ;;  %s9219_s4 = scalar_lea.vmem %s7041_s25, 256 }
  0xeb   :  { %v8334_v36 = vld [vmem:[#allocation8 + $0x14c] ss:$20 sps:$4 sm:$0xff]   ;;  %p9220_p4 = scmp.ne.s32.totalorder %s7041_s25, %s9219_s4  ;;  %p9225_p6 = scmp.lt.s32.totalorder %s9219_s4, %s9219_s4 }
  0xec   :  { %604 = vmatmul.mubr.bf16.vlgmr.msra.gmra.mrb[0].mxu0 %v9479_v31  ;;  %629 = vmatpush1.bf16.msra.mxu1 %v8248_v40  ;;  %v8340_v40 = vld [vmem:[#allocation8 + $0x174] ss:$20 sps:$4 sm:$0xff]  }
  0xed   :  { %658 = vmatpush1.bf16.msra.mxu0 %v8249_v33  ;;  %689 = vmatprep.mubr.bf16.mxu0 %v9278_v0  ;;  %v8343_v33 = vld [vmem:[#allocation8 + $0x194] ss:$20 sps:$4 sm:$0xff]   ;;  %p9226_p7 = por %p9225_p6, %p9224_p5 }
  0xee   :  { %659 = vmatprep.subr.bf16.mxu0 %v8254_v35  ;;  %8046 = vmatprep.subr.bf16.mxu1 %v9279_v46  ;;  %v8341_v35 = vld [vmem:[#allocation8 + $0x190] ss:$20 sps:$4 sm:$0xff]  }
  0xef   :  { %647 = vmatmul.mubr.bf16.vlgmr.msra.gmra.mrb[0].mxu1 %v9479_v31  ;;  %p9227_p8 = pnand %p9226_p7, %p9220_p4 }
  0xf0   :  { %8047 = vmatpush3.bf16.msra.mxu1 %v8273_v44  ;;  %8062 = vmatprep.mubr.msk.bf16.mxu1 %vm9280_vm0, %v9279_v46  ;;  %v8346_v44 = vld [vmem:[#allocation8 + $0x19c] ss:$20 sps:$4 sm:$0xff]  }
  0xf1   :  { %660 = vmatpush1.bf16.msra.mxu0 %v8252_v38  ;;  %8048 = vmatprep.subr.bf16.mxu1 %v9279_v46  ;;  %v8332_v38 = vld [vmem:[#allocation8 + $0x148] ss:$20 sps:$4 sm:$0xff]  }
  0xf2   :  { %661 = vmatprep.subr.bf16.mxu0 %v8257_v39  ;;  %v8347_v39 = vld [vmem:[#allocation8 + $0x1b8] ss:$20 sps:$4 sm:$0xff]  }
  0xf4   :  { %8049 = vmatpush3.bf16.msra.mxu1 %v8274_v48  ;;  %v8352_v48 = vld [vmem:[#allocation8 + $0x1c4] ss:$20 sps:$4 sm:$0xff]  }
  0xf5   :  { %662 = vmatpush1.bf16.msra.mxu0 %v8255_v41  ;;  %8050 = vmatprep.subr.bf16.mxu1 %v9279_v46  ;;  %v8355_v41 = vld [vmem:[#allocation8 + $0x1e4] ss:$20 sps:$4 sm:$0xff]  }
  0xf6   :  { %663 = vmatprep.subr.bf16.mxu0 %v8260_v42  ;;  %v8338_v42 = vld [vmem:[#allocation8 + $0x170] ss:$20 sps:$4 sm:$0xff]  }
  0xf8   :  { %8051 = vmatpush3.bf16.msra.mxu1 %v8275_v51  ;;  %v8367_v51 = vld [vmem:[#allocation8 + $0x234] ss:$20 sps:$4 sm:$0xff]  }
  0xf9   :  { %664 = vmatpush1.bf16.msra.mxu0 %v8258_v43  ;;  %8052 = vmatprep.subr.bf16.mxu1 %v9279_v46  ;;  %v8353_v43 = vld [vmem:[#allocation8 + $0x1e0] ss:$20 sps:$4 sm:$0xff]  }
  0xfa   :  { %665 = vmatprep.subr.bf16.mxu0 %v8263_v45  ;;  %v8344_v45 = vld [vmem:[#allocation8 + $0x198] ss:$20 sps:$4 sm:$0xff]  }
  0xfc   :  { %8053 = vmatpush3.bf16.msra.mxu1 %v8276_v54  ;;  %v8356_v54 = vld [vmem:[#allocation8 + $0x1e8] ss:$20 sps:$4 sm:$0xff]  }
  0xfd   :  { %666 = vmatpush1.bf16.msra.mxu0 %v8261_v47  ;;  %8054 = vmatprep.subr.bf16.mxu1 %v9279_v46  ;;  %v8361_v47 = vld [vmem:[#allocation8 + $0x20c] ss:$20 sps:$4 sm:$0xff]  }
  0xfe   :  { %667 = vmatprep.subr.bf16.mxu0 %v8266_v49  ;;  %v8359_v49 = vld [vmem:[#allocation8 + $0x208] ss:$20 sps:$4 sm:$0xff]  }
 0x100   :  { %8055 = vmatpush3.bf16.msra.mxu1 %v8277_v57  ;;  %v8371_v57 = vld [vmem:[#allocation8 + $0x258] ss:$20 sps:$4 sm:$0xff]  }
 0x101   :  { %668 = vmatpush1.bf16.msra.mxu0 %v8264_v50  ;;  %8056 = vmatprep.subr.bf16.mxu1 %v9279_v46  ;;  %v8350_v50 = vld [vmem:[#allocation8 + $0x1c0] ss:$20 sps:$4 sm:$0xff]  }
 0x102   :  { %669 = vmatprep.subr.bf16.mxu0 %v8269_v52  ;;  %v8358_v52 = vld [vmem:[#allocation8 + $0x1ec] ss:$20 sps:$4 sm:$0xff]  }
 0x104   :  { %8057 = vmatpush3.bf16.msra.mxu1 %v8278_v59  ;;  %v8379_v59 = vld [vmem:[#allocation8 + $0x284] ss:$20 sps:$4 sm:$0xff]  }
 0x105   :  { %670 = vmatpush1.bf16.msra.mxu0 %v8267_v53  ;;  %8058 = vmatprep.subr.bf16.mxu1 %v9279_v46  ;;  %v8365_v53 = vld [vmem:[#allocation8 + $0x230] ss:$20 sps:$4 sm:$0xff]  }
 0x106   :  { %671 = vmatprep.subr.bf16.mxu0 %v8272_v55  ;;  %v8373_v55 = vld [vmem:[#allocation8 + $0x25c] ss:$20 sps:$4 sm:$0xff]  }
 0x108   :  { %8059 = vmatpush3.bf16.msra.mxu1 %v8279_v62  ;;  %v8376_v62 = vld [vmem:[#allocation8 + $0x264] ss:$20 sps:$4 sm:$0xff]  }
 0x109   :  { %672 = vmatpush1.bf16.msra.mxu0 %v8270_v56  ;;  %8060 = vmatprep.subr.bf16.mxu1 %v9279_v46  ;;  %v8364_v56 = vld [vmem:[#allocation8 + $0x214] ss:$20 sps:$4 sm:$0xff]  }
 0x10a   :  { %2595 = vmatprep.subr.bf16.mxu0 %v8283_v58  ;;  %v8362_v58 = vld [vmem:[#allocation8 + $0x210] ss:$20 sps:$4 sm:$0xff]  }
 0x10c   :  { %690 = vmatmul.mubr.bf16.vlgmr.msra.gmra.mrb[4].mxu0 %v9479_v31  ;;  %8061 = vmatpush3.bf16.msra.mxu1 %v8280_v2  ;;  %v248_v2 = vlaneseq }
 0x10d   :  { %2596 = vmatpush1.bf16.msra.mxu0 %v8281_v60  ;;  %2767 = vmatprep.subr.bf16.mxu1 %v8286_v4  ;;  %v8370_v60 = vld [vmem:[#allocation8 + $0x23c] ss:$20 sps:$4 sm:$0xff]  }
 0x10e   :  { %2597 = vmatprep.subr.bf16.mxu0 %v8289_v61  ;;  %v8368_v61 = vld [vmem:[#allocation8 + $0x238] ss:$20 sps:$4 sm:$0xff]  }
 0x10f   :  { %8063 = vmatmul.mubr.bf16.vlgmr.msra.gmra.mrb[4].mxu1 %v9479_v31  ;;  %v8335_v31 = vld [vmem:[#allocation8 + $0x168] ss:$20 sps:$4 sm:$0xff]  }
 0x110   :  { %2768 = vmatpush1.bf16.msra.mxu1 %v8284_v6 }
 0x111   :  { %2598 = vmatpush1.bf16.msra.mxu0 %v8287_v63  ;;  %2769 = vmatprep.subr.bf16.mxu1 %v8292_v7  ;;  %v8374_v63 = vld [vmem:[#allocation8 + $0x260] ss:$20 sps:$4 sm:$0xff]  }
 0x112   :  { %2599 = vmatprep.subr.bf16.mxu0 %v8295_v1  ;;  %v8382_v1 = vld [vmem:[#allocation8 + $0x28c] ss:$20 sps:$4 sm:$0xff]  }
 0x114   :  { %2770 = vmatpush1.bf16.msra.mxu1 %v8290_v10 }
 0x115   :  { %2600 = vmatpush1.bf16.msra.mxu0 %v8293_v3  ;;  %2771 = vmatprep.subr.bf16.mxu1 %v8298_v12  ;;  %v9496_v3 = vshrl.u32 %v248_v2, 7  ;;  %v8406_v2 = vld [vmem:[#allocation8 + $0x32c] ss:$20 sps:$4 sm:$0xff]  }
 0x116   :  { %2601 = vmatprep.subr.bf16.mxu0 %v8301_v5  ;;  %v9501_v5 = vld [vmem:[#allocation7] sm:$0xff] }
 0x117   :  { %v9499_v4 = vsub.s32 0, %v9496_v3  ;;  %v9504_v6 = vsub.s32 1, %v9496_v3 }
 0x118   :  { %2772 = vmatpush1.bf16.msra.mxu1 %v8296_v14 }
 0x119   :  { %2602 = vmatpush1.bf16.msra.mxu0 %v8299_v8  ;;  %2773 = vmatprep.subr.bf16.mxu1 %v8304_v16  ;;  %v251_v7 = vrot.slane %v9501_v5, %v9499_v4  ;;  %v255_v8 = vrot.slane %v9501_v5, %v9504_v6 }
 0x11a   :  { %2603 = vmatprep.subr.bf16.mxu0 %v8307_v9 }
 0x11c   :  { %2774 = vmatpush1.bf16.msra.mxu1 %v8302_v18 }
 0x11d   :  { %2604 = vmatpush1.bf16.msra.mxu0 %v8305_v11  ;;  %2775 = vmatprep.subr.bf16.mxu1 %v8310_v20  ;;  %v9511_v20 = vsub.s32 2, %v9496_v3 }
 0x11e   :  { %2605 = vmatprep.subr.bf16.mxu0 %v8313_v13 }
 0x120   :  { %2776 = vmatpush1.bf16.msra.mxu1 %v8308_v22  ;;  %v9514_v22 = vsub.s32 3, %v9496_v3 }
 0x121   :  { %2606 = vmatpush1.bf16.msra.mxu0 %v8311_v15  ;;  %2777 = vmatprep.subr.bf16.mxu1 %v8316_v24 }
 0x122   :  { %2607 = vmatprep.subr.bf16.mxu0 %v8319_v17 }
 0x124   :  { %2778 = vmatpush1.bf16.msra.mxu1 %v8314_v26 }
 0x125   :  { %2608 = vmatpush1.bf16.msra.mxu0 %v8317_v19  ;;  %2779 = vmatprep.subr.bf16.mxu1 %v8322_v28  ;;  %v8380_v28 = vld [vmem:[#allocation8 + $0x288] ss:$20 sps:$4 sm:$0xff]  }
 0x126   :  { %2609 = vmatprep.subr.bf16.mxu0 %v8325_v21 }
 0x128   :  { %2780 = vmatpush1.bf16.msra.mxu1 %v8320_v30  ;;  %v259_v30 = vrot.slane %v9501_v5, %v9511_v20 }
 0x129   :  { %2610 = vmatpush1.bf16.msra.mxu0 %v8323_v23  ;;  %2781 = vmatprep.subr.bf16.mxu1 %v8328_v32  ;;  %v263_v32 = vrot.slane %v9501_v5, %v9514_v22 }
 0x12a   :  { %2611 = vmatprep.subr.bf16.mxu0 %v8331_v25 }
 0x12c   :  { %2782 = vmatpush1.bf16.msra.mxu1 %v8326_v34  ;;  %v8388_v34 = vld [vmem:[#allocation8 + $0x2b4] ss:$20 sps:$4 sm:$0xff]  }
 0x12d   :  { %2612 = vmatpush1.bf16.msra.mxu0 %v8329_v27  ;;  %2783 = vmatprep.subr.bf16.mxu1 %v8334_v36  ;;  %v8377_v27 = vld [vmem:[#allocation8 + $0x280] ss:$20 sps:$4 sm:$0xff]  }
 0x12e   :  { %2613 = vmatprep.subr.bf16.mxu0 %v8337_v29 }
 0x130   :  { %2784 = vmatpush1.bf16.msra.mxu1 %v8332_v38 }
 0x131   :  { %2614 = vmatpush1.bf16.msra.mxu0 %v8335_v31  ;;  %2785 = vmatprep.subr.bf16.mxu1 %v8340_v40  ;;  %v8391_v40 = vld [vmem:[#allocation8 + $0x2d4] ss:$20 sps:$4 sm:$0xff]  }
 0x132   :  { %2615 = vmatprep.subr.bf16.mxu0 %v8343_v33  ;;  %v8385_v33 = vld [vmem:[#allocation8 + $0x2ac] ss:$20 sps:$4 sm:$0xff]  }
 0x134   :  { %2786 = vmatpush1.bf16.msra.mxu1 %v8338_v42 }
 0x135   :  { %2616 = vmatpush1.bf16.msra.mxu0 %v8341_v35  ;;  %2787 = vmatprep.subr.bf16.mxu1 %v8346_v44  ;;  %v8383_v35 = vld [vmem:[#allocation8 + $0x2a8] ss:$20 sps:$4 sm:$0xff]  }
 0x136   :  { %2617 = vmatprep.subr.bf16.mxu0 %v8349_v37 }
 0x138   :  { %2788 = vmatpush1.bf16.msra.mxu1 %v8344_v45 }
 0x139   :  { %2618 = vmatpush1.bf16.msra.mxu0 %v8347_v39  ;;  %2789 = vmatprep.subr.bf16.mxu1 %v8352_v48  ;;  %v8386_v39 = vld [vmem:[#allocation8 + $0x2b0] ss:$20 sps:$4 sm:$0xff]  }
 0x13a   :  { %2619 = vmatprep.subr.bf16.mxu0 %v8355_v41 }
 0x13c   :  { %2790 = vmatpush1.bf16.msra.mxu1 %v8350_v50 }
 0x13d   :  { %2620 = vmatpush1.bf16.msra.mxu0 %v8353_v43  ;;  %2791 = vmatprep.subr.bf16.mxu1 %v8358_v52  ;;  %v8394_v43 = vld [vmem:[#allocation8 + $0x2dc] ss:$20 sps:$4 sm:$0xff]  }
 0x13e   :  { %2621 = vmatprep.subr.bf16.mxu0 %v8361_v47  ;;  %v8389_v52 = vld [vmem:[#allocation8 + $0x2d0] ss:$20 sps:$4 sm:$0xff]  }
 0x140   :  { %2792 = vmatpush1.bf16.msra.mxu1 %v8356_v54 }
 0x141   :  { %2622 = vmatpush1.bf16.msra.mxu0 %v8359_v49  ;;  %2793 = vmatprep.subr.bf16.mxu1 %v8364_v56  ;;  %v8397_v56 = vld [vmem:[#allocation8 + $0x2fc] ss:$20 sps:$4 sm:$0xff]  }
 0x142   :  { %2623 = vmatprep.subr.bf16.mxu0 %v8367_v51 }
 0x144   :  { %2794 = vmatpush1.bf16.msra.mxu1 %v8362_v58 }
 0x145   :  { %2624 = vmatpush1.bf16.msra.mxu0 %v8365_v53  ;;  %2795 = vmatprep.subr.bf16.mxu1 %v8370_v60  ;;  %v8392_v53 = vld [vmem:[#allocation8 + $0x2d8] ss:$20 sps:$4 sm:$0xff]  }
 0x146   :  { %2625 = vmatprep.subr.bf16.mxu0 %v8373_v55 }
 0x148   :  { %2796 = vmatpush1.bf16.msra.mxu1 %v8368_v61  ;;  %v8395_v61 = vld [vmem:[#allocation8 + $0x2f8] ss:$20 sps:$4 sm:$0xff]  }
 0x149   :  { %2626 = vmatpush1.bf16.msra.mxu0 %v8371_v57  ;;  %2797 = vmatprep.subr.bf16.mxu1 %v8376_v62  ;;  %v8400_v57 = vld [vmem:[#allocation8 + $0x304] ss:$20 sps:$4 sm:$0xff]   ;;  %v8398_v62 = vld [vmem:[#allocation8 + $0x300] ss:$20 sps:$4 sm:$0xff]  }
 0x14a   :  { %2638 = vmatprep.subr.bf16.mxu0 %v8379_v59 }
 0x14c   :  { %2798 = vmatpush1.bf16.msra.mxu1 %v8374_v63 }
 0x14d   :  { %2810 = vmatprep.subr.bf16.mxu1 %v8382_v1  ;;  %v8403_v1 = vld [vmem:[#allocation8 + $0x324] ss:$20 sps:$4 sm:$0xff]  }
 0x1bf   :  { %v605_v9 = vpop.f32.mrb[0].mxu0 }
 0x1c0   :  { %v606_v10 = vadd.f32 %v605_v9, %v251_v7  ;;  %v607_v11 = vpop.f32.mrb[1].mxu0  ;;  %v8404_v9 = vld [vmem:[#allocation8 + $0x328] ss:$20 sps:$4 sm:$0xff]  }
 0x1c1   :  { %v608_v12 = vadd.f32 %v607_v11, %v255_v8  ;;  %v609_v13 = vpop.f32.mrb[2].mxu0  ;;  %v8409_v11 = vld [vmem:[#allocation8 + $0x34c] ss:$20 sps:$4 sm:$0xff]  }
 0x1c2   :  { %v741_v14 = vmul.f32 0.01, %v606_v10  ;;  %v610_v15 = vadd.f32 %v609_v13, %v251_v7  ;;  %v611_v16 = vpop.f32.mrb[3].mxu0  ;;  %v648_v36 = vpop.f32.mrb[0].mxu1  ;;  %v9535_v7 = vsub.s32 4, %v9496_v3 }
 0x1c3   :  { %v742_v17 = vmul.f32 0.01, %v608_v12  ;;  %v612_v18 = vadd.f32 %v611_v16, %v255_v8  ;;  %v649_v37 = vadd.f32 %v648_v36, %v259_v30  ;;  %v650_v38 = vpop.f32.mrb[1].mxu1  ;;  %v8401_v8 = vld [vmem:[#allocation8 + $0x320] ss:$20 sps:$4 sm:$0xff]  }
 0x1c4   :  { %v748_v19 = vmul.f32 0.01, %v610_v15  ;;  %v755_v23 = vmax.f32 %v606_v10, %v741_v14  ;;  %v651_v41 = vadd.f32 %v650_v38, %v263_v32  ;;  %v652_v42 = vpop.f32.mrb[2].mxu1  ;;  %v270_v10 = vsub.s32 5, %v9496_v3  ;;  %v8407_v14 = vld [vmem:[#allocation8 + $0x348] ss:$20 sps:$4 sm:$0xff]  }
 0x1c5   :  { %v749_v21 = vmul.f32 0.01, %v612_v18  ;;  %v756_v25 = vmax.f32 %v608_v12, %v742_v17  ;;  %v743_v44 = vmul.f32 0.01, %v649_v37  ;;  %v653_v45 = vadd.f32 %v652_v42, %v259_v30  ;;  %v654_v47 = vpop.f32.mrb[3].mxu1 }
 0x1c6   :  { %v762_v24 = vmax.f32 %v610_v15, %v748_v19  ;;  %v744_v48 = vmul.f32 0.01, %v651_v41  ;;  %v655_v49 = vadd.f32 %v654_v47, %v263_v32  ;;  %v8412_v12 = vld [vmem:[#allocation8 + $0x354] ss:$20 sps:$4 sm:$0xff]   ;;  %v267_v13 = vrot.slane %v9501_v5, %v9535_v7  ;;  %v8410_v15 = vld [vmem:[#allocation8 + $0x350] ss:$20 sps:$4 sm:$0xff]  }
 0x1c7   :  { %v763_v26 = vmax.f32 %v612_v18, %v749_v21  ;;  %v757_v50 = vmax.f32 %v649_v37, %v743_v44  ;;  %v750_v51 = vmul.f32 0.01, %v653_v45  ;;  %v271_v16 = vrot.slane %v9501_v5, %v270_v10  ;;  %v8415_v17 = vld [vmem:[#allocation8 + $0x374] ss:$20 sps:$4 sm:$0xff]   ;;  %v8418_v18 = vld [vmem:[#allocation8 + $0x37c] ss:$20 sps:$4 sm:$0xff]  }
 0x1c8   :  { %v9516_v29 = vpack.c.bf16 %v762_v24, %v755_v23  ;;  %v758_v54 = vmax.f32 %v651_v41, %v744_v48  ;;  %v751_v55 = vmul.f32 0.01, %v655_v49  ;;  %v8413_v19 = vld [vmem:[#allocation8 + $0x370] ss:$20 sps:$4 sm:$0xff]   ;;  %v274_v37 = vsub.s32 6, %v9496_v3 }
 0x1c9   :  { %v9520_v31 = vpack.c.bf16 %v763_v26, %v756_v25  ;;  %v764_v58 = vmax.f32 %v653_v45, %v750_v51  ;;  %v8416_v25 = vld [vmem:[#allocation8 + $0x378] ss:$20 sps:$4 sm:$0xff]   ;;  %v8421_v26 = vld [vmem:[#allocation8 + $0x39c] ss:$20 sps:$4 sm:$0xff]   ;;  %v8422_v41 = vld [vmem:[#allocation8 + $0x3a0] ss:$20 sps:$4 sm:$0xff]  }
 0x1ca   :  { %v765_v59 = vmax.f32 %v655_v49, %v751_v55  ;;  %v8424_v30 = vld [vmem:[#allocation8 + $0x3a4] ss:$20 sps:$4 sm:$0xff]   ;;  %v8430_v45 = vld [vmem:[#allocation8 + $0x3cc] ss:$20 sps:$4 sm:$0xff]   ;;  %v8428_v49 = vld [vmem:[#allocation8 + $0x3c8] ss:$20 sps:$4 sm:$0xff]  }
 0x1cb   :  { %2627 = vmatprep.mubr.bf16.mxu0 %v9520_v31  ;;  %2799 = vmatprep.mubr.bf16.mxu1 %v9520_v31  ;;  %v9528_v60 = vpack.c.bf16 %v764_v58, %v757_v50  ;;  %v8427_v44 = vld [vmem:[#allocation8 + $0x3c4] ss:$20 sps:$4 sm:$0xff]   ;;  %v8425_v48 = vld [vmem:[#allocation8 + $0x3c0] ss:$20 sps:$4 sm:$0xff]  }
 0x1cc   :  { %2628 = vmatmul.mubr.bf16.vlgmr.msra.gmra.mrb[8].mxu0 %v9516_v29  ;;  %2800 = vmatmul.mubr.bf16.vlgmr.msra.gmra.mrb[8].mxu1 %v9516_v29  ;;  %v9530_v63 = vpack.c.bf16 %v765_v59, %v758_v54  ;;  %v8433_v54 = vld [vmem:[#allocation8 + $0x3ec] ss:$20 sps:$4 sm:$0xff]   ;;  %v8436_v55 = vld [vmem:[#allocation8 + $0x3f4] ss:$20 sps:$4 sm:$0xff]  }
 0x1cd   :  { %2639 = vmatpush1.bf16.msra.mxu0 %v8377_v27  ;;  %2811 = vmatpush1.bf16.msra.mxu1 %v8380_v28  ;;  %v8439_v59 = vld [vmem:[#allocation8 + $0x414] ss:$20 sps:$4 sm:$0xff]  }
 0x1ce   :  { %2640 = vmatprep.subr.bf16.mxu0 %v8385_v33  ;;  %2812 = vmatprep.subr.bf16.mxu1 %v8388_v34 }
 0x1cf   :  { %2670 = vmatprep.mubr.bf16.mxu0 %v9530_v63  ;;  %2842 = vmatprep.mubr.bf16.mxu1 %v9530_v63 }
 0x1d1   :  { %2641 = vmatpush1.bf16.msra.mxu0 %v8383_v35  ;;  %2813 = vmatpush1.bf16.msra.mxu1 %v8386_v39 }
 0x1d2   :  { %2642 = vmatprep.subr.bf16.mxu0 %v8391_v40  ;;  %2814 = vmatprep.subr.bf16.mxu1 %v8394_v43  ;;  %v8419_v40 = vld [vmem:[#allocation8 + $0x398] ss:$20 sps:$4 sm:$0xff]  }
 0x1d5   :  { %2643 = vmatpush1.bf16.msra.mxu0 %v8389_v52  ;;  %2815 = vmatpush1.bf16.msra.mxu1 %v8392_v53  ;;  %v275_v52 = vrot.slane %v9501_v5, %v274_v37  ;;  %v8442_v5 = vld [vmem:[#allocation8 + $0x41c] ss:$20 sps:$4 sm:$0xff]  }
 0x1d6   :  { %2644 = vmatprep.subr.bf16.mxu0 %v8397_v56  ;;  %2816 = vmatprep.subr.bf16.mxu1 %v8400_v57  ;;  %v8431_v56 = vld [vmem:[#allocation8 + $0x3e8] ss:$20 sps:$4 sm:$0xff]   ;;  %v8434_v57 = vld [vmem:[#allocation8 + $0x3f0] ss:$20 sps:$4 sm:$0xff]  }
 0x1d9   :  { %2645 = vmatpush1.bf16.msra.mxu0 %v8395_v61  ;;  %2817 = vmatpush1.bf16.msra.mxu1 %v8398_v62 }
 0x1da   :  { %2646 = vmatprep.subr.bf16.mxu0 %v8403_v1  ;;  %2818 = vmatprep.subr.bf16.mxu1 %v8406_v2 }
 0x1dd   :  { %2647 = vmatpush1.bf16.msra.mxu0 %v8401_v8  ;;  %2819 = vmatpush1.bf16.msra.mxu1 %v8404_v9 }
 0x1de   :  { %2648 = vmatprep.subr.bf16.mxu0 %v8409_v11  ;;  %2820 = vmatprep.subr.bf16.mxu1 %v8412_v12  ;;  %v8437_v11 = vld [vmem:[#allocation8 + $0x410] ss:$20 sps:$4 sm:$0xff]   ;;  %v8440_v12 = vld [vmem:[#allocation8 + $0x418] ss:$20 sps:$4 sm:$0xff]  }
 0x1df   :  { %v691_v21 = vpop.f32.mrb[4].mxu0 }
 0x1e0   :  { %v692_v23 = vadd.f32 %v691_v21, %v267_v13  ;;  %v693_v24 = vpop.f32.mrb[5].mxu0 }
 0x1e1   :  { %2649 = vmatpush1.bf16.msra.mxu0 %v8407_v14  ;;  %2821 = vmatpush1.bf16.msra.mxu1 %v8410_v15  ;;  %v694_v27 = vadd.f32 %v693_v24, %v271_v16  ;;  %v695_v28 = vpop.f32.mrb[6].mxu0  ;;  %v8445_v15 = vld [vmem:[#allocation8 + $0x43c] ss:$20 sps:$4 sm:$0xff]   ;;  %v8454_v24 = vld [vmem:[#allocation8 + $0x46c] ss:$20 sps:$4 sm:$0xff]  }
 0x1e2   :  { %2650 = vmatprep.subr.bf16.mxu0 %v8415_v17  ;;  %2822 = vmatprep.subr.bf16.mxu1 %v8418_v18  ;;  %v745_v32 = vmul.f32 0.01, %v692_v23  ;;  %v696_v33 = vadd.f32 %v695_v28, %v267_v13  ;;  %v697_v34 = vpop.f32.mrb[7].mxu0  ;;  %v734_v58 = vpop.f32.mrb[4].mxu1  ;;  %v8443_v18 = vld [vmem:[#allocation8 + $0x438] ss:$20 sps:$4 sm:$0xff]  }
 0x1e3   :  { %v746_v35 = vmul.f32 0.01, %v694_v27  ;;  %v698_v36 = vadd.f32 %v697_v34, %v271_v16  ;;  %v735_v61 = vadd.f32 %v734_v58, %v275_v52  ;;  %v8064_v62 = vpop.f32.mrb[5].mxu1  ;;  %v8448_v16 = vld [vmem:[#allocation8 + $0x444] ss:$20 sps:$4 sm:$0xff]  }
 0x1e4   :  { %v759_v38 = vmax.f32 %v692_v23, %v745_v32  ;;  %v752_v39 = vmul.f32 0.01, %v696_v33  ;;  %v737_v1 = vpop.f32.mrb[6].mxu1  ;;  %v8451_v23 = vld [vmem:[#allocation8 + $0x464] ss:$20 sps:$4 sm:$0xff]  }
 0x1e5   :  { %2651 = vmatpush1.bf16.msra.mxu0 %v8413_v19  ;;  %2823 = vmatpush1.bf16.msra.mxu1 %v8416_v25  ;;  %v760_v42 = vmax.f32 %v694_v27, %v746_v35  ;;  %v753_v43 = vmul.f32 0.01, %v698_v36  ;;  %v747_v2 = vmul.f32 0.01, %v735_v61  ;;  %v738_v8 = vadd.f32 %v737_v1, %v275_v52  ;;  %v8065_v9 = vpop.f32.mrb[7].mxu1 }
 0x1e6   :  { %2652 = vmatprep.subr.bf16.mxu0 %v8421_v26  ;;  %2824 = vmatprep.subr.bf16.mxu1 %v8424_v30  ;;  %v766_v47 = vmax.f32 %v696_v33, %v752_v39  ;;  %v8446_v19 = vld [vmem:[#allocation8 + $0x440] ss:$20 sps:$4 sm:$0xff]   ;;  %v8452_v26 = vld [vmem:[#allocation8 + $0x468] ss:$20 sps:$4 sm:$0xff]   ;;  %v8458_v32 = vld [vmem:[#allocation8 + $0x490] ss:$20 sps:$4 sm:$0xff]  }
 0x1e7   :  { %v767_v50 = vmax.f32 %v698_v36, %v753_v43  ;;  %v761_v13 = vmax.f32 %v735_v61, %v747_v2  ;;  %v754_v14 = vmul.f32 0.01, %v738_v8  ;;  %v8449_v25 = vld [vmem:[#allocation8 + $0x460] ss:$20 sps:$4 sm:$0xff]   ;;  %v8455_v30 = vld [vmem:[#allocation8 + $0x488] ss:$20 sps:$4 sm:$0xff]  }
 0x1e8   :  { %v9544_v51 = vpack.c.bf16 %v766_v47, %v759_v38  ;;  %v8457_v27 = vld [vmem:[#allocation8 + $0x48c] ss:$20 sps:$4 sm:$0xff]   ;;  %v8460_v28 = vld [vmem:[#allocation8 + $0x494] ss:$20 sps:$4 sm:$0xff]   ;;  %v8466_v34 = vld [vmem:[#allocation8 + $0x4bc] ss:$20 sps:$4 sm:$0xff]  }
 0x1e9   :  { %2653 = vmatpush1.bf16.msra.mxu0 %v8419_v40  ;;  %2825 = vmatpush1.bf16.msra.mxu1 %v8422_v41  ;;  %v9549_v53 = vpack.c.bf16 %v767_v50, %v760_v42  ;;  %v768_v17 = vmax.f32 %v738_v8, %v754_v14  ;;  %v8463_v33 = vld [vmem:[#allocation8 + $0x4b4] ss:$20 sps:$4 sm:$0xff]   ;;  %v8461_v35 = vld [vmem:[#allocation8 + $0x4b0] ss:$20 sps:$4 sm:$0xff]   ;;  %v8464_v36 = vld [vmem:[#allocation8 + $0x4b8] ss:$20 sps:$4 sm:$0xff]  }
 0x1ea   :  { %2654 = vmatprep.subr.bf16.mxu0 %v8427_v44  ;;  %2826 = vmatprep.subr.bf16.mxu1 %v8430_v45  ;;  %v8469_v38 = vld [vmem:[#allocation8 + $0x4dc] ss:$20 sps:$4 sm:$0xff]   ;;  %v8472_v39 = vld [vmem:[#allocation8 + $0x4e4] ss:$20 sps:$4 sm:$0xff]   ;;  %v8470_v41 = vld [vmem:[#allocation8 + $0x4e0] ss:$20 sps:$4 sm:$0xff]  }
 0x1eb   :  { %v9551_v21 = vpack.c.bf16 %v768_v17, %v761_v13  ;;  %v8467_v40 = vld [vmem:[#allocation8 + $0x4d8] ss:$20 sps:$4 sm:$0xff]   ;;  %v8473_v44 = vld [vmem:[#allocation8 + $0x500] ss:$20 sps:$4 sm:$0xff]   ;;  %v8476_v45 = vld [vmem:[#allocation8 + $0x508] ss:$20 sps:$4 sm:$0xff]  }
 0x1ec   :  { %v8475_v42 = vld [vmem:[#allocation8 + $0x504] ss:$20 sps:$4 sm:$0xff]   ;;  %v8478_v43 = vld [vmem:[#allocation8 + $0x50c] ss:$20 sps:$4 sm:$0xff]   ;;  %v8487_v52 = vld [vmem:[#allocation8 + $0x554] ss:$20 sps:$4 sm:$0xff]  }
 0x1ed   :  { %2655 = vmatpush1.bf16.msra.mxu0 %v8425_v48  ;;  %2827 = vmatpush1.bf16.msra.mxu1 %v8428_v49  ;;  %v8481_v47 = vld [vmem:[#allocation8 + $0x52c] ss:$20 sps:$4 sm:$0xff]   ;;  %v8484_v48 = vld [vmem:[#allocation8 + $0x534] ss:$20 sps:$4 sm:$0xff]   ;;  %v8482_v50 = vld [vmem:[#allocation8 + $0x530] ss:$20 sps:$4 sm:$0xff]  }
 0x1ee   :  { %2656 = vmatprep.subr.bf16.mxu0 %v8433_v54  ;;  %2828 = vmatprep.subr.bf16.mxu1 %v8436_v55  ;;  %v8479_v49 = vld [vmem:[#allocation8 + $0x528] ss:$20 sps:$4 sm:$0xff]   ;;  %v8485_v55 = vld [vmem:[#allocation8 + $0x550] ss:$20 sps:$4 sm:$0xff]   ;;  %v8494_v61 = vld [vmem:[#allocation8 + $0x580] ss:$20 sps:$4 sm:$0xff]  }
 0x1ef   :  { %v8490_v54 = vld [vmem:[#allocation8 + $0x55c] ss:$20 sps:$4 sm:$0xff]   ;;  %v8496_v58 = vld [vmem:[#allocation8 + $0x584] ss:$20 sps:$4 sm:$0xff]   ;;  %v8502_v1 = vld [vmem:[#allocation8 + $0x5ac] ss:$20 sps:$4 sm:$0xff]  }
 0x1f0   :  { %v8499_v62 = vld [vmem:[#allocation8 + $0x5a4] ss:$20 sps:$4 sm:$0xff]   ;;  %v8500_v2 = vld [vmem:[#allocation8 + $0x5a8] ss:$20 sps:$4 sm:$0xff]   ;;  %v8505_v8 = vld [vmem:[#allocation8 + $0x5cc] ss:$20 sps:$4 sm:$0xff]  }
 0x1f1   :  { %2657 = vmatpush1.bf16.msra.mxu0 %v8431_v56  ;;  %2829 = vmatpush1.bf16.msra.mxu1 %v8434_v57  ;;  %v8488_v56 = vld [vmem:[#allocation8 + $0x558] ss:$20 sps:$4 sm:$0xff]   ;;  %v8493_v57 = vld [vmem:[#allocation8 + $0x57c] ss:$20 sps:$4 sm:$0xff]   ;;  %v8508_v9 = vld [vmem:[#allocation8 + $0x5d4] ss:$20 sps:$4 sm:$0xff]  }
 0x1f2   :  { %2658 = vmatprep.subr.bf16.mxu0 %v8439_v59  ;;  %2830 = vmatprep.subr.bf16.mxu1 %v8442_v5  ;;  %v8491_v59 = vld [vmem:[#allocation8 + $0x578] ss:$20 sps:$4 sm:$0xff]   ;;  %v8497_v5 = vld [vmem:[#allocation8 + $0x5a0] ss:$20 sps:$4 sm:$0xff]   ;;  %v8514_v14 = vld [vmem:[#allocation8 + $0x5fc] ss:$20 sps:$4 sm:$0xff]  }
 0x1f3   :  { %v8511_v13 = vld [vmem:[#allocation8 + $0x5f4] ss:$20 sps:$4 sm:$0xff]   ;;  %v8517_v17 = vld [vmem:[#allocation8 + $0x61c] ss:$20 sps:$4 sm:$0xff]  }
 0x1f5   :  { %2659 = vmatpush1.bf16.msra.mxu0 %v8437_v11  ;;  %2831 = vmatpush1.bf16.msra.mxu1 %v8440_v12  ;;  %v8503_v11 = vld [vmem:[#allocation8 + $0x5c8] ss:$20 sps:$4 sm:$0xff]   ;;  %v8506_v12 = vld [vmem:[#allocation8 + $0x5d0] ss:$20 sps:$4 sm:$0xff]  }
 0x1f6   :  { %2660 = vmatprep.subr.bf16.mxu0 %v8445_v15  ;;  %2832 = vmatprep.subr.bf16.mxu1 %v8448_v16  ;;  %v8509_v15 = vld [vmem:[#allocation8 + $0x5f0] ss:$20 sps:$4 sm:$0xff]   ;;  %v8512_v16 = vld [vmem:[#allocation8 + $0x5f8] ss:$20 sps:$4 sm:$0xff]  }
 0x1f9   :  { %2661 = vmatpush1.bf16.msra.mxu0 %v8443_v18  ;;  %2833 = vmatpush1.bf16.msra.mxu1 %v8446_v19  ;;  %v8520_v18 = vld [vmem:[#allocation8 + $0x624] ss:$20 sps:$4 sm:$0xff]  }
 0x1fa   :  { %2662 = vmatprep.subr.bf16.mxu0 %v8451_v23  ;;  %2834 = vmatprep.subr.bf16.mxu1 %v8454_v24  ;;  %v8515_v19 = vld [vmem:[#allocation8 + $0x618] ss:$20 sps:$4 sm:$0xff]   ;;  %v8518_v23 = vld [vmem:[#allocation8 + $0x620] ss:$20 sps:$4 sm:$0xff]  }
 0x1fb   :  { %v8523_v24 = vld [vmem:[#allocation8 + $0x644] ss:$20 sps:$4 sm:$0xff]  }
 0x1fd   :  { %2663 = vmatpush1.bf16.msra.mxu0 %v8449_v25  ;;  %2835 = vmatpush1.bf16.msra.mxu1 %v8452_v26  ;;  %v8526_v25 = vld [vmem:[#allocation8 + $0x64c] ss:$20 sps:$4 sm:$0xff]  }
 0x1fe   :  { %2664 = vmatprep.subr.bf16.mxu0 %v8457_v27  ;;  %2836 = vmatprep.subr.bf16.mxu1 %v8460_v28  ;;  %v8521_v26 = vld [vmem:[#allocation8 + $0x640] ss:$20 sps:$4 sm:$0xff]   ;;  %v8524_v27 = vld [vmem:[#allocation8 + $0x648] ss:$20 sps:$4 sm:$0xff]  }
 0x1ff   :  { %v8529_v28 = vld [vmem:[#allocation8 + $0x66c] ss:$20 sps:$4 sm:$0xff]  }
 0x201   :  { %2665 = vmatpush1.bf16.msra.mxu0 %v8455_v30  ;;  %2837 = vmatpush1.bf16.msra.mxu1 %v8458_v32  ;;  %v8532_v30 = vld [vmem:[#allocation8 + $0x674] ss:$20 sps:$4 sm:$0xff]  }
 0x202   :  { %2666 = vmatprep.subr.bf16.mxu0 %v8463_v33  ;;  %2838 = vmatprep.subr.bf16.mxu1 %v8466_v34  ;;  %v8527_v32 = vld [vmem:[#allocation8 + $0x668] ss:$20 sps:$4 sm:$0xff]   ;;  %v8530_v33 = vld [vmem:[#allocation8 + $0x670] ss:$20 sps:$4 sm:$0xff]  }
 0x203   :  { %v8535_v34 = vld [vmem:[#allocation8 + $0x694] ss:$20 sps:$4 sm:$0xff]  }
 0x205   :  { %2667 = vmatpush1.bf16.msra.mxu0 %v8461_v35  ;;  %2839 = vmatpush1.bf16.msra.mxu1 %v8464_v36  ;;  %v8538_v35 = vld [vmem:[#allocation8 + $0x69c] ss:$20 sps:$4 sm:$0xff]  }
 0x206   :  { %2668 = vmatprep.subr.bf16.mxu0 %v8469_v38  ;;  %2840 = vmatprep.subr.bf16.mxu1 %v8472_v39  ;;  %v8533_v36 = vld [vmem:[#allocation8 + $0x690] ss:$20 sps:$4 sm:$0xff]   ;;  %v8536_v38 = vld [vmem:[#allocation8 + $0x698] ss:$20 sps:$4 sm:$0xff]  }
 0x207   :  { %v8541_v39 = vld [vmem:[#allocation8 + $0x6bc] ss:$20 sps:$4 sm:$0xff]  }
 0x209   :  { %2669 = vmatpush1.bf16.msra.mxu0 %v8467_v40  ;;  %2841 = vmatpush1.bf16.msra.mxu1 %v8470_v41  ;;  %v8544_v40 = vld [vmem:[#allocation8 + $0x6c4] ss:$20 sps:$4 sm:$0xff]  }
 0x20a   :  { %2681 = vmatprep.subr.bf16.mxu0 %v8475_v42  ;;  %2853 = vmatprep.subr.bf16.mxu1 %v8478_v43  ;;  %v8539_v41 = vld [vmem:[#allocation8 + $0x6b8] ss:$20 sps:$4 sm:$0xff]   ;;  %v8542_v42 = vld [vmem:[#allocation8 + $0x6c0] ss:$20 sps:$4 sm:$0xff]  }
 0x20b   :  { %v8547_v43 = vld [vmem:[#allocation8 + $0x6e4] ss:$20 sps:$4 sm:$0xff]  }
 0x20c   :  { %2671 = vmatmul.mubr.bf16.vlgmr.msra.gmra.mrb[8].mxu0 %v9528_v60  ;;  %2843 = vmatmul.mubr.bf16.vlgmr.msra.gmra.mrb[8].mxu1 %v9528_v60 }
 0x20d   :  { %2682 = vmatpush1.bf16.msra.mxu0 %v8473_v44  ;;  %2854 = vmatpush1.bf16.msra.mxu1 %v8476_v45  ;;  %v8550_v44 = vld [vmem:[#allocation8 + $0x6ec] ss:$20 sps:$4 sm:$0xff]  }
 0x20e   :  { %2683 = vmatprep.subr.bf16.mxu0 %v8481_v47  ;;  %2855 = vmatprep.subr.bf16.mxu1 %v8484_v48  ;;  %v8545_v45 = vld [vmem:[#allocation8 + $0x6e0] ss:$20 sps:$4 sm:$0xff]   ;;  %v8548_v47 = vld [vmem:[#allocation8 + $0x6e8] ss:$20 sps:$4 sm:$0xff]  }
 0x20f   :  { %2713 = vmatprep.mubr.bf16.mxu0 %v9549_v53  ;;  %2885 = vmatprep.mubr.bf16.mxu1 %v9549_v53  ;;  %v8553_v48 = vld [vmem:[#allocation8 + $0x70c] ss:$20 sps:$4 sm:$0xff]  }
 0x211   :  { %2684 = vmatpush1.bf16.msra.mxu0 %v8479_v49  ;;  %2856 = vmatpush1.bf16.msra.mxu1 %v8482_v50  ;;  %v8556_v49 = vld [vmem:[#allocation8 + $0x714] ss:$20 sps:$4 sm:$0xff]  }
 0x212   :  { %2685 = vmatprep.subr.bf16.mxu0 %v8487_v52  ;;  %2857 = vmatprep.subr.bf16.mxu1 %v8490_v54  ;;  %v8551_v50 = vld [vmem:[#allocation8 + $0x708] ss:$20 sps:$4 sm:$0xff]   ;;  %v8554_v52 = vld [vmem:[#allocation8 + $0x710] ss:$20 sps:$4 sm:$0xff]  }
 0x213   :  { %v8559_v54 = vld [vmem:[#allocation8 + $0x734] ss:$20 sps:$4 sm:$0xff]  }
 0x215   :  { %2686 = vmatpush1.bf16.msra.mxu0 %v8485_v55  ;;  %2858 = vmatpush1.bf16.msra.mxu1 %v8488_v56  ;;  %v8562_v55 = vld [vmem:[#allocation8 + $0x73c] ss:$20 sps:$4 sm:$0xff]  }
 0x216   :  { %2687 = vmatprep.subr.bf16.mxu0 %v8493_v57  ;;  %2859 = vmatprep.subr.bf16.mxu1 %v8496_v58  ;;  %v8557_v56 = vld [vmem:[#allocation8 + $0x730] ss:$20 sps:$4 sm:$0xff]   ;;  %v8560_v57 = vld [vmem:[#allocation8 + $0x738] ss:$20 sps:$4 sm:$0xff]  }
 0x217   :  { %v8565_v58 = vld [vmem:[#allocation8 + $0x75c] ss:$20 sps:$4 sm:$0xff]  }
 0x219   :  { %2688 = vmatpush1.bf16.msra.mxu0 %v8491_v59  ;;  %2860 = vmatpush1.bf16.msra.mxu1 %v8494_v61  ;;  %v8568_v59 = vld [vmem:[#allocation8 + $0x764] ss:$20 sps:$4 sm:$0xff]  }
 0x21a   :  { %2689 = vmatprep.subr.bf16.mxu0 %v8499_v62  ;;  %2861 = vmatprep.subr.bf16.mxu1 %v8502_v1  ;;  %v8563_v61 = vld [vmem:[#allocation8 + $0x758] ss:$20 sps:$4 sm:$0xff]   ;;  %v8566_v62 = vld [vmem:[#allocation8 + $0x760] ss:$20 sps:$4 sm:$0xff]  }
 0x21b   :  { %v8571_v1 = vld [vmem:[#allocation8 + $0x784] ss:$20 sps:$4 sm:$0xff]  }
 0x21d   :  { %2690 = vmatpush1.bf16.msra.mxu0 %v8497_v5  ;;  %2862 = vmatpush1.bf16.msra.mxu1 %v8500_v2  ;;  %v8574_v5 = vld [vmem:[#allocation8 + $0x78c] ss:$20 sps:$4 sm:$0xff]  }
 0x21e   :  { %2691 = vmatprep.subr.bf16.mxu0 %v8505_v8  ;;  %2863 = vmatprep.subr.bf16.mxu1 %v8508_v9  ;;  %v8569_v2 = vld [vmem:[#allocation8 + $0x780] ss:$20 sps:$4 sm:$0xff]   ;;  %v8572_v8 = vld [vmem:[#allocation8 + $0x788] ss:$20 sps:$4 sm:$0xff]  }
 0x21f   :  { %v8577_v9 = vld [vmem:[#allocation8 + $0x7ac] ss:$20 sps:$4 sm:$0xff]  }
 0x221   :  { %2692 = vmatpush1.bf16.msra.mxu0 %v8503_v11  ;;  %2864 = vmatpush1.bf16.msra.mxu1 %v8506_v12  ;;  %v8580_v11 = vld [vmem:[#allocation8 + $0x7b4] ss:$20 sps:$4 sm:$0xff]  }
 0x222   :  { %2693 = vmatprep.subr.bf16.mxu0 %v8511_v13  ;;  %2865 = vmatprep.subr.bf16.mxu1 %v8514_v14  ;;  %v8575_v12 = vld [vmem:[#allocation8 + $0x7a8] ss:$20 sps:$4 sm:$0xff]   ;;  %v8578_v13 = vld [vmem:[#allocation8 + $0x7b0] ss:$20 sps:$4 sm:$0xff]  }
 0x223   :  { %v8583_v14 = vld [vmem:[#allocation8 + $0x7d4] ss:$20 sps:$4 sm:$0xff]  }
 0x225   :  { %2694 = vmatpush1.bf16.msra.mxu0 %v8509_v15  ;;  %2866 = vmatpush1.bf16.msra.mxu1 %v8512_v16  ;;  %v8586_v15 = vld [vmem:[#allocation8 + $0x7dc] ss:$20 sps:$4 sm:$0xff]  }
 0x226   :  { %2695 = vmatprep.subr.bf16.mxu0 %v8517_v17  ;;  %2867 = vmatprep.subr.bf16.mxu1 %v8520_v18  ;;  %v8581_v16 = vld [vmem:[#allocation8 + $0x7d0] ss:$20 sps:$4 sm:$0xff]   ;;  %v8584_v17 = vld [vmem:[#allocation8 + $0x7d8] ss:$20 sps:$4 sm:$0xff]  }
 0x227   :  { %v8589_v18 = vld [vmem:[#allocation8 + $0x7fc] ss:$20 sps:$4 sm:$0xff]  }
 0x229   :  { %2696 = vmatpush1.bf16.msra.mxu0 %v8515_v19  ;;  %2868 = vmatpush1.bf16.msra.mxu1 %v8518_v23  ;;  %v8592_v19 = vld [vmem:[#allocation8 + $0x804] ss:$20 sps:$4 sm:$0xff]  }
 0x22a   :  { %2697 = vmatprep.subr.bf16.mxu0 %v8523_v24  ;;  %2869 = vmatprep.subr.bf16.mxu1 %v8526_v25  ;;  %v8587_v23 = vld [vmem:[#allocation8 + $0x7f8] ss:$20 sps:$4 sm:$0xff]   ;;  %v8590_v24 = vld [vmem:[#allocation8 + $0x800] ss:$20 sps:$4 sm:$0xff]  }
 0x22b   :  { %v8595_v25 = vld [vmem:[#allocation8 + $0x824] ss:$20 sps:$4 sm:$0xff]  }
 0x22d   :  { %2698 = vmatpush1.bf16.msra.mxu0 %v8521_v26  ;;  %2870 = vmatpush1.bf16.msra.mxu1 %v8524_v27  ;;  %v8598_v26 = vld [vmem:[#allocation8 + $0x82c] ss:$20 sps:$4 sm:$0xff]  }
 0x22e   :  { %2699 = vmatprep.subr.bf16.mxu0 %v8529_v28  ;;  %2871 = vmatprep.subr.bf16.mxu1 %v8532_v30  ;;  %v8593_v27 = vld [vmem:[#allocation8 + $0x820] ss:$20 sps:$4 sm:$0xff]   ;;  %v8596_v28 = vld [vmem:[#allocation8 + $0x828] ss:$20 sps:$4 sm:$0xff]  }
 0x22f   :  { %v8601_v30 = vld [vmem:[#allocation8 + $0x84c] ss:$20 sps:$4 sm:$0xff]  }
 0x231   :  { %2700 = vmatpush1.bf16.msra.mxu0 %v8527_v32  ;;  %2872 = vmatpush1.bf16.msra.mxu1 %v8530_v33  ;;  %v8604_v32 = vld [vmem:[#allocation8 + $0x854] ss:$20 sps:$4 sm:$0xff]  }
 0x232   :  { %2701 = vmatprep.subr.bf16.mxu0 %v8535_v34  ;;  %2873 = vmatprep.subr.bf16.mxu1 %v8538_v35  ;;  %v8599_v33 = vld [vmem:[#allocation8 + $0x848] ss:$20 sps:$4 sm:$0xff]   ;;  %v8602_v34 = vld [vmem:[#allocation8 + $0x850] ss:$20 sps:$4 sm:$0xff]  }
 0x233   :  { %v8607_v35 = vld [vmem:[#allocation8 + $0x874] ss:$20 sps:$4 sm:$0xff]  }
 0x235   :  { %2702 = vmatpush1.bf16.msra.mxu0 %v8533_v36  ;;  %2874 = vmatpush1.bf16.msra.mxu1 %v8536_v38  ;;  %v8610_v36 = vld [vmem:[#allocation8 + $0x87c] ss:$20 sps:$4 sm:$0xff]  }
 0x236   :  { %2703 = vmatprep.subr.bf16.mxu0 %v8541_v39  ;;  %2875 = vmatprep.subr.bf16.mxu1 %v8544_v40  ;;  %v8605_v38 = vld [vmem:[#allocation8 + $0x870] ss:$20 sps:$4 sm:$0xff]   ;;  %v8608_v39 = vld [vmem:[#allocation8 + $0x878] ss:$20 sps:$4 sm:$0xff]  }
 0x237   :  { %v8613_v40 = vld [vmem:[#allocation8 + $0x89c] ss:$20 sps:$4 sm:$0xff]  }
 0x239   :  { %2704 = vmatpush1.bf16.msra.mxu0 %v8539_v41  ;;  %2876 = vmatpush1.bf16.msra.mxu1 %v8542_v42  ;;  %v8616_v41 = vld [vmem:[#allocation8 + $0x8a4] ss:$20 sps:$4 sm:$0xff]  }
 0x23a   :  { %2705 = vmatprep.subr.bf16.mxu0 %v8547_v43  ;;  %2877 = vmatprep.subr.bf16.mxu1 %v8550_v44  ;;  %v8611_v42 = vld [vmem:[#allocation8 + $0x898] ss:$20 sps:$4 sm:$0xff]   ;;  %v8614_v43 = vld [vmem:[#allocation8 + $0x8a0] ss:$20 sps:$4 sm:$0xff]   ;;  %v8617_v44 = vld [vmem:[#allocation8 + $0x150] ss:$20 sps:$4 sm:$0xff]  }
 0x23d   :  { %2706 = vmatpush1.bf16.msra.mxu0 %v8545_v45  ;;  %2878 = vmatpush1.bf16.msra.mxu1 %v8548_v47  ;;  %v8618_v45 = vld [vmem:[#allocation8 + $0x3d0] ss:$20 sps:$4 sm:$0xff]  }
 0x23e   :  { %2707 = vmatprep.subr.bf16.mxu0 %v8553_v48  ;;  %2879 = vmatprep.subr.bf16.mxu1 %v8556_v49  ;;  %v8619_v47 = vld [vmem:[#allocation8 + $0x10] ss:$20 sps:$4 sm:$0xff]   ;;  %v8621_v49 = vld [vmem:[#allocation8 + $0x178] ss:$20 sps:$4 sm:$0xff]  }
 0x23f   :  { %v8620_v48 = vld [vmem:[#allocation8 + $0x290] ss:$20 sps:$4 sm:$0xff]  }
 0x241   :  { %2708 = vmatpush1.bf16.msra.mxu0 %v8551_v50  ;;  %2880 = vmatpush1.bf16.msra.mxu1 %v8554_v52  ;;  %v8622_v50 = vld [vmem:[#allocation8 + $0x3f8] ss:$20 sps:$4 sm:$0xff]  }
 0x242   :  { %2709 = vmatprep.subr.bf16.mxu0 %v8559_v54  ;;  %2881 = vmatprep.subr.bf16.mxu1 %v8562_v55  ;;  %v8623_v52 = vld [vmem:[#allocation8 + $0x38] ss:$20 sps:$4 sm:$0xff]   ;;  %v8625_v55 = vld [vmem:[#allocation8 + $0x1a0] ss:$20 sps:$4 sm:$0xff]  }
 0x243   :  { %v8624_v54 = vld [vmem:[#allocation8 + $0x2b8] ss:$20 sps:$4 sm:$0xff]  }
 0x245   :  { %2710 = vmatpush1.bf16.msra.mxu0 %v8557_v56  ;;  %2882 = vmatpush1.bf16.msra.mxu1 %v8560_v57  ;;  %v8626_v56 = vld [vmem:[#allocation8 + $0x420] ss:$20 sps:$4 sm:$0xff]  }
 0x246   :  { %2711 = vmatprep.subr.bf16.mxu0 %v8565_v58  ;;  %2883 = vmatprep.subr.bf16.mxu1 %v8568_v59  ;;  %v8627_v57 = vld [vmem:[#allocation8 + $0x60] ss:$20 sps:$4 sm:$0xff]   ;;  %v8629_v59 = vld [vmem:[#allocation8 + $0x1c8] ss:$20 sps:$4 sm:$0xff]  }
 0x247   :  { %v8628_v58 = vld [vmem:[#allocation8 + $0x2e0] ss:$20 sps:$4 sm:$0xff]  }
 0x249   :  { %2712 = vmatpush1.bf16.msra.mxu0 %v8563_v61  ;;  %2884 = vmatpush1.bf16.msra.mxu1 %v8566_v62  ;;  %v8630_v61 = vld [vmem:[#allocation8 + $0x448] ss:$20 sps:$4 sm:$0xff]  }
 0x24a   :  { %2724 = vmatprep.subr.bf16.mxu0 %v8571_v1  ;;  %2896 = vmatprep.subr.bf16.mxu1 %v8574_v5  ;;  %v8631_v62 = vld [vmem:[#allocation8 + $0x88] ss:$20 sps:$4 sm:$0xff]   ;;  %v8633_v1 = vld [vmem:[#allocation8 + $0x1f0] ss:$20 sps:$4 sm:$0xff]  }
 0x24b   :  { %v8635_v5 = vld [vmem:[#allocation8 + $0xb0] ss:$20 sps:$4 sm:$0xff]  }
 0x24c   :  { %2714 = vmatmul.mubr.bf16.vlgmr.msra.gmra.mrb[8].mxu0 %v9544_v51  ;;  %2886 = vmatmul.mubr.bf16.vlgmr.msra.gmra.mrb[8].mxu1 %v9544_v51 }
 0x24d   :  { %2725 = vmatpush1.bf16.msra.mxu0 %v8569_v2  ;;  %2897 = vmatpush1.bf16.msra.mxu1 %v8572_v8  ;;  %v8636_v2 = vld [vmem:[#allocation8 + $0x330] ss:$20 sps:$4 sm:$0xff]   ;;  %v8637_v8 = vld [vmem:[#allocation8 + $0x218] ss:$20 sps:$4 sm:$0xff]  }
 0x24e   :  { %2726 = vmatprep.subr.bf16.mxu0 %v8577_v9  ;;  %2898 = vmatprep.subr.bf16.mxu1 %v8580_v11  ;;  %v8638_v9 = vld [vmem:[#allocation8 + $0x498] ss:$20 sps:$4 sm:$0xff]  }
 0x24f   :  { %2756 = vmatprep.mubr.bf16.mxu0 %v9278_v0  ;;  %2928 = vmatprep.mubr.bf16.mxu1 %v9278_v0  ;;  %v8639_v11 = vld [vmem:[#allocation8 + $0xd8] ss:$20 sps:$4 sm:$0xff]  }
 0x251   :  { %2727 = vmatpush1.bf16.msra.mxu0 %v8575_v12  ;;  %2899 = vmatpush1.bf16.msra.mxu1 %v8578_v13  ;;  %v8640_v12 = vld [vmem:[#allocation8 + $0x358] ss:$20 sps:$4 sm:$0xff]   ;;  %v8641_v13 = vld [vmem:[#allocation8 + $0x240] ss:$20 sps:$4 sm:$0xff]  }
 0x252   :  { %2728 = vmatprep.subr.bf16.mxu0 %v8583_v14  ;;  %2900 = vmatprep.subr.bf16.mxu1 %v8586_v15  ;;  %v8642_v14 = vld [vmem:[#allocation8 + $0x4c0] ss:$20 sps:$4 sm:$0xff]  }
 0x253   :  { %v8643_v15 = vld [vmem:[#allocation8 + $0x100] ss:$20 sps:$4 sm:$0xff]  }
 0x255   :  { %2729 = vmatpush1.bf16.msra.mxu0 %v8581_v16  ;;  %2901 = vmatpush1.bf16.msra.mxu1 %v8584_v17  ;;  %v8644_v16 = vld [vmem:[#allocation8 + $0x380] ss:$20 sps:$4 sm:$0xff]   ;;  %v8645_v17 = vld [vmem:[#allocation8 + $0x268] ss:$20 sps:$4 sm:$0xff]  }
 0x256   :  { %2730 = vmatprep.subr.bf16.mxu0 %v8589_v18  ;;  %2902 = vmatprep.subr.bf16.mxu1 %v8592_v19  ;;  %v8646_v18 = vld [vmem:[#allocation8 + $0x4e8] ss:$20 sps:$4 sm:$0xff]  }
 0x257   :  { %v8647_v19 = vld [vmem:[#allocation8 + $0x128] ss:$20 sps:$4 sm:$0xff]  }
 0x259   :  { %2731 = vmatpush1.bf16.msra.mxu0 %v8587_v23  ;;  %2903 = vmatpush1.bf16.msra.mxu1 %v8590_v24  ;;  %v8648_v23 = vld [vmem:[#allocation8 + $0x3a8] ss:$20 sps:$4 sm:$0xff]   ;;  %v8649_v24 = vld [vmem:[#allocation8 + $0x650] ss:$20 sps:$4 sm:$0xff]  }
 0x25a   :  { %2732 = vmatprep.subr.bf16.mxu0 %v8595_v25  ;;  %2904 = vmatprep.subr.bf16.mxu1 %v8598_v26  ;;  %v8650_v25 = vld [vmem:[#allocation8 + $0x510] ss:$20 sps:$4 sm:$0xff]  }
 0x25b   :  { %v8651_v26 = vld [vmem:[#allocation8 + $0x790] ss:$20 sps:$4 sm:$0xff]  }
 0x25d   :  { %2733 = vmatpush1.bf16.msra.mxu0 %v8593_v27  ;;  %2905 = vmatpush1.bf16.msra.mxu1 %v8596_v28  ;;  %v8652_v27 = vld [vmem:[#allocation8 + $0x678] ss:$20 sps:$4 sm:$0xff]  }
 0x25e   :  { %2734 = vmatprep.subr.bf16.mxu0 %v8601_v30  ;;  %2906 = vmatprep.subr.bf16.mxu1 %v8604_v32  ;;  %v8653_v28 = vld [vmem:[#allocation8 + $0x538] ss:$20 sps:$4 sm:$0xff]   ;;  %v8655_v32 = vld [vmem:[#allocation8 + $0x6a0] ss:$20 sps:$4 sm:$0xff]  }
 0x25f   :  { %v8654_v30 = vld [vmem:[#allocation8 + $0x7b8] ss:$20 sps:$4 sm:$0xff]  }
 0x261   :  { %2735 = vmatpush1.bf16.msra.mxu0 %v8599_v33  ;;  %2907 = vmatpush1.bf16.msra.mxu1 %v8602_v34  ;;  %v8656_v33 = vld [vmem:[#allocation8 + $0x560] ss:$20 sps:$4 sm:$0xff]   ;;  %v8658_v34 = vld [vmem:[#allocation8 + $0x6c8] ss:$20 sps:$4 sm:$0xff]  }
 0x262   :  { %2736 = vmatprep.subr.bf16.mxu0 %v8607_v35  ;;  %2908 = vmatprep.subr.bf16.mxu1 %v8610_v36  ;;  %v8661_v35 = vld [vmem:[#allocation8 + $0x6f0] ss:$20 sps:$4 sm:$0xff]  }
 0x263   :  { %v8662_v36 = vld [vmem:[#allocation8 + $0x5b0] ss:$20 sps:$4 sm:$0xff]  }
 0x265   :  { %2737 = vmatpush1.bf16.msra.mxu0 %v8605_v38  ;;  %2909 = vmatpush1.bf16.msra.mxu1 %v8608_v39  ;;  %v8663_v38 = vld [vmem:[#allocation8 + $0x830] ss:$20 sps:$4 sm:$0xff]   ;;  %v8664_v39 = vld [vmem:[#allocation8 + $0x718] ss:$20 sps:$4 sm:$0xff]  }
 0x266   :  { %2738 = vmatprep.subr.bf16.mxu0 %v8613_v40  ;;  %2910 = vmatprep.subr.bf16.mxu1 %v8616_v41  ;;  %v8665_v40 = vld [vmem:[#allocation8 + $0x5d8] ss:$20 sps:$4 sm:$0xff]  }
 0x267   :  { %v8666_v41 = vld [vmem:[#allocation8 + $0x858] ss:$20 sps:$4 sm:$0xff]  }
 0x269   :  { %2739 = vmatpush1.bf16.msra.mxu0 %v8611_v42  ;;  %2911 = vmatpush1.bf16.msra.mxu1 %v8614_v43  ;;  %v8667_v42 = vld [vmem:[#allocation8 + $0x740] ss:$20 sps:$4 sm:$0xff]  }
 0x26a   :  { %7883 = vmatprep.subr.bf16.mxu0 %v8617_v44  ;;  %7905 = vmatprep.subr.bf16.mxu1 %v8618_v45  ;;  %v8668_v43 = vld [vmem:[#allocation8 + $0x600] ss:$20 sps:$4 sm:$0xff]   ;;  %v8670_v45 = vld [vmem:[#allocation8 + $0x768] ss:$20 sps:$4 sm:$0xff]  }
 0x26b   :  { %v8669_v44 = vld [vmem:[#allocation8 + $0x880] ss:$20 sps:$4 sm:$0xff]  }
 0x26c   :  { %2757 = vmatmul.mubr.bf16.vlgmr.msra.gmra.mrb[8].mxu0 %v9551_v21  ;;  %2929 = vmatmul.mubr.bf16.vlgmr.msra.gmra.mrb[8].mxu1 %v9551_v21 }
 0x26d   :  { %7884 = vmatpush3.bf16.msra.mxu0 %v8619_v47  ;;  %2971 = vmatprep.mubr.bf16.mxu0 %v9520_v31  ;;  %v8632_v31 = vld [vmem:[#allocation8 + $0x308] ss:$20 sps:$4 sm:$0xff]  }
 0x26e   :  { %7906 = vmatpush3.bf16.msra.mxu1 %v8620_v48  ;;  %3012 = vmatprep.mubr.bf16.mxu1 %v9530_v63  ;;  %v8634_v63 = vld [vmem:[#allocation8 + $0x470] ss:$20 sps:$4 sm:$0xff]   ;;  %v8671_v47 = vld [vmem:[#allocation8 + $0x628] ss:$20 sps:$4 sm:$0xff]  }
 0x26f   :  { %7885 = vmatprep.subr.bf16.mxu0 %v8621_v49  ;;  %7907 = vmatprep.subr.bf16.mxu1 %v8622_v50  ;;  %v8672_v48 = vld [vmem:[#allocation8 + $0x8a8] ss:$20 sps:$4 sm:$0xff]   ;;  %v8678_v50 = vld [vmem:[#allocation11 + $0xc] ss:$16 sps:$4 sm:$0xff]  }
 0x270   :  { %v8675_v49 = vld [vmem:[#allocation11 + $0x4] ss:$16 sps:$4 sm:$0xff]  }
 0x271   :  { %7886 = vmatpush3.bf16.msra.mxu0 %v8623_v52  ;;  %v8673_v52 = vld [vmem:[#allocation11] ss:$16 sps:$4 sm:$0xff]  }
 0x272   :  { %7908 = vmatpush3.bf16.msra.mxu1 %v8624_v54  ;;  %7887 = vmatprep.subr.bf16.mxu0 %v8625_v55  ;;  %v8676_v54 = vld [vmem:[#allocation11 + $0x8] ss:$16 sps:$4 sm:$0xff]   ;;  %v8681_v55 = vld [vmem:[#allocation11 + $0x24] ss:$16 sps:$4 sm:$0xff]  }
 0x273   :  { %7909 = vmatprep.subr.bf16.mxu1 %v8626_v56  ;;  %v8684_v56 = vld [vmem:[#allocation11 + $0x2c] ss:$16 sps:$4 sm:$0xff]  }
 0x275   :  { %7888 = vmatpush3.bf16.msra.mxu0 %v8627_v57  ;;  %v8679_v57 = vld [vmem:[#allocation11 + $0x20] ss:$16 sps:$4 sm:$0xff]  }
 0x276   :  { %7910 = vmatpush3.bf16.msra.mxu1 %v8628_v58  ;;  %7889 = vmatprep.subr.bf16.mxu0 %v8629_v59  ;;  %v8682_v58 = vld [vmem:[#allocation11 + $0x28] ss:$16 sps:$4 sm:$0xff]   ;;  %v8687_v59 = vld [vmem:[#allocation11 + $0x44] ss:$16 sps:$4 sm:$0xff]  }
 0x277   :  { %7911 = vmatprep.subr.bf16.mxu1 %v8630_v61  ;;  %v8685_v61 = vld [vmem:[#allocation11 + $0x40] ss:$16 sps:$4 sm:$0xff]  }
 0x279   :  { %7890 = vmatpush3.bf16.msra.mxu0 %v8631_v62  ;;  %v8688_v62 = vld [vmem:[#allocation11 + $0x48] ss:$16 sps:$4 sm:$0xff]  }
 0x27a   :  { %7912 = vmatpush3.bf16.msra.mxu1 %v8632_v31  ;;  %7891 = vmatprep.subr.bf16.mxu0 %v8633_v1  ;;  %v8693_v31 = vld [vmem:[#allocation11 + $0x64] ss:$16 sps:$4 sm:$0xff]   ;;  %v8696_v1 = vld [vmem:[#allocation11 + $0x6c] ss:$16 sps:$4 sm:$0xff]  }
 0x27b   :  { %7913 = vmatprep.subr.bf16.mxu1 %v8634_v63  ;;  %v8699_v63 = vld [vmem:[#allocation11 + $0x84] ss:$16 sps:$4 sm:$0xff]  }
 0x27d   :  { %7892 = vmatpush3.bf16.msra.mxu0 %v8635_v5  ;;  %v8702_v5 = vld [vmem:[#allocation11 + $0x8c] ss:$16 sps:$4 sm:$0xff]  }
 0x27e   :  { %7914 = vmatpush3.bf16.msra.mxu1 %v8636_v2  ;;  %7893 = vmatprep.subr.bf16.mxu0 %v8637_v8  ;;  %v8697_v2 = vld [vmem:[#allocation11 + $0x80] ss:$16 sps:$4 sm:$0xff]   ;;  %v8700_v8 = vld [vmem:[#allocation11 + $0x88] ss:$16 sps:$4 sm:$0xff]  }
 0x27f   :  { %7915 = vmatprep.subr.bf16.mxu1 %v8638_v9  ;;  %v8705_v9 = vld [vmem:[#allocation11 + $0xa4] ss:$16 sps:$4 sm:$0xff]  }
 0x281   :  { %7894 = vmatpush3.bf16.msra.mxu0 %v8639_v11  ;;  %v8708_v11 = vld [vmem:[#allocation11 + $0xac] ss:$16 sps:$4 sm:$0xff]  }
 0x282   :  { %7916 = vmatpush3.bf16.msra.mxu1 %v8640_v12  ;;  %7895 = vmatprep.subr.bf16.mxu0 %v8641_v13  ;;  %v8703_v12 = vld [vmem:[#allocation11 + $0xa0] ss:$16 sps:$4 sm:$0xff]   ;;  %v8706_v13 = vld [vmem:[#allocation11 + $0xa8] ss:$16 sps:$4 sm:$0xff]  }
 0x283   :  { %7917 = vmatprep.subr.bf16.mxu1 %v8642_v14  ;;  %v8711_v14 = vld [vmem:[#allocation11 + $0xc4] ss:$16 sps:$4 sm:$0xff]  }
 0x285   :  { %7896 = vmatpush3.bf16.msra.mxu0 %v8643_v15  ;;  %v8714_v15 = vld [vmem:[#allocation11 + $0xcc] ss:$16 sps:$4 sm:$0xff]  }
 0x286   :  { %7918 = vmatpush3.bf16.msra.mxu1 %v8644_v16  ;;  %7897 = vmatprep.subr.bf16.mxu0 %v8645_v17  ;;  %v8709_v16 = vld [vmem:[#allocation11 + $0xc0] ss:$16 sps:$4 sm:$0xff]   ;;  %v8712_v17 = vld [vmem:[#allocation11 + $0xc8] ss:$16 sps:$4 sm:$0xff]  }
 0x287   :  { %7919 = vmatprep.subr.bf16.mxu1 %v8646_v18  ;;  %v8717_v18 = vld [vmem:[#allocation11 + $0xe4] ss:$16 sps:$4 sm:$0xff]  }
 0x289   :  { %7898 = vmatpush3.bf16.msra.mxu0 %v8647_v19  ;;  %v8720_v19 = vld [vmem:[#allocation11 + $0xec] ss:$16 sps:$4 sm:$0xff]  }
 0x28a   :  { %7920 = vmatpush3.bf16.msra.mxu1 %v8648_v23  ;;  %7927 = vmatprep.subr.bf16.mxu0 %v8649_v24  ;;  %v8715_v23 = vld [vmem:[#allocation11 + $0xe0] ss:$16 sps:$4 sm:$0xff]   ;;  %v8718_v24 = vld [vmem:[#allocation11 + $0xe8] ss:$16 sps:$4 sm:$0xff]  }
 0x28b   :  { %8066 = vmatprep.subr.bf16.mxu1 %v9279_v46 }
 0x28c   :  { %2972 = vmatmul.mubr.bf16.vlgmr.msra.gmra.mrb[12].mxu0 %v9516_v29  ;;  %v8657_v29 = vld [vmem:[#allocation8 + $0x7e0] ss:$20 sps:$4 sm:$0xff]  }
 0x28d   :  { %3013 = vmatmul.mubr.bf16.vlgmr.msra.gmra.mrb[12].mxu1 %v9528_v60  ;;  %7928 = vmatpush3.bf16.msra.mxu0 %v8650_v25  ;;  %v8659_v60 = vld [vmem:[#allocation8 + $0x588] ss:$20 sps:$4 sm:$0xff]  }
 0x28e   :  { %3053 = vmatprep.mubr.bf16.mxu0 %v9549_v53  ;;  %8067 = vmatpush3.bf16.msra.mxu1 %v8651_v26  ;;  %v8660_v53 = vld [vmem:[#allocation8 + $0x808] ss:$20 sps:$4 sm:$0xff]   ;;  %v8726_v26 = vld [vmem:[#allocation11 + $0x10c] ss:$16 sps:$4 sm:$0xff]  }
 0x28f   :  { %7929 = vmatprep.subr.bf16.mxu0 %v8652_v27  ;;  %8068 = vmatprep.subr.bf16.mxu1 %v9279_v46  ;;  %v8723_v25 = vld [vmem:[#allocation11 + $0x104] ss:$16 sps:$4 sm:$0xff]   ;;  %v8721_v27 = vld [vmem:[#allocation11 + $0x100] ss:$16 sps:$4 sm:$0xff]  }
 0x290   :  { %8082 = vmatprep.mubr.msk.bf16.mxu1 %vm9280_vm0, %v9279_v46 }
 0x291   :  { %7930 = vmatpush3.bf16.msra.mxu0 %v8653_v28  ;;  %v8724_v28 = vld [vmem:[#allocation11 + $0x108] ss:$16 sps:$4 sm:$0xff]  }
 0x292   :  { %8069 = vmatpush3.bf16.msra.mxu1 %v8654_v30  ;;  %7931 = vmatprep.subr.bf16.mxu0 %v8655_v32  ;;  %v8729_v30 = vld [vmem:[#allocation11 + $0x124] ss:$16 sps:$4 sm:$0xff]   ;;  %v8732_v32 = vld [vmem:[#allocation11 + $0x12c] ss:$16 sps:$4 sm:$0xff]  }
 0x293   :  { %8070 = vmatprep.subr.bf16.mxu1 %v9279_v46 }
 0x295   :  { %7932 = vmatpush3.bf16.msra.mxu0 %v8656_v33  ;;  %v8727_v33 = vld [vmem:[#allocation11 + $0x120] ss:$16 sps:$4 sm:$0xff]  }
 0x296   :  { %8071 = vmatpush3.bf16.msra.mxu1 %v8657_v29  ;;  %7933 = vmatprep.subr.bf16.mxu0 %v8658_v34  ;;  %v8730_v29 = vld [vmem:[#allocation11 + $0x128] ss:$16 sps:$4 sm:$0xff]   ;;  %v8735_v34 = vld [vmem:[#allocation11 + $0x144] ss:$16 sps:$4 sm:$0xff]  }
 0x297   :  { %8072 = vmatprep.subr.bf16.mxu1 %v9279_v46 }
 0x299   :  { %7934 = vmatpush3.bf16.msra.mxu0 %v8659_v60  ;;  %v8738_v60 = vld [vmem:[#allocation11 + $0x14c] ss:$16 sps:$4 sm:$0xff]  }
 0x29a   :  { %8073 = vmatpush3.bf16.msra.mxu1 %v8660_v53  ;;  %7935 = vmatprep.subr.bf16.mxu0 %v8661_v35  ;;  %v8733_v53 = vld [vmem:[#allocation11 + $0x140] ss:$16 sps:$4 sm:$0xff]   ;;  %v8736_v35 = vld [vmem:[#allocation11 + $0x148] ss:$16 sps:$4 sm:$0xff]  }
 0x29b   :  { %8074 = vmatprep.subr.bf16.mxu1 %v9279_v46 }
 0x29d   :  { %7936 = vmatpush3.bf16.msra.mxu0 %v8662_v36  ;;  %v8741_v36 = vld [vmem:[#allocation11 + $0x164] ss:$16 sps:$4 sm:$0xff]  }
 0x29e   :  { %8075 = vmatpush3.bf16.msra.mxu1 %v8663_v38  ;;  %7937 = vmatprep.subr.bf16.mxu0 %v8664_v39  ;;  %v8744_v38 = vld [vmem:[#allocation11 + $0x16c] ss:$16 sps:$4 sm:$0xff]   ;;  %v8739_v39 = vld [vmem:[#allocation11 + $0x160] ss:$16 sps:$4 sm:$0xff]  }
 0x29f   :  { %8076 = vmatprep.subr.bf16.mxu1 %v9279_v46 }
 0x2a1   :  { %7938 = vmatpush3.bf16.msra.mxu0 %v8665_v40  ;;  %v8742_v40 = vld [vmem:[#allocation11 + $0x168] ss:$16 sps:$4 sm:$0xff]  }
 0x2a2   :  { %8077 = vmatpush3.bf16.msra.mxu1 %v8666_v41  ;;  %7939 = vmatprep.subr.bf16.mxu0 %v8667_v42  ;;  %v8747_v41 = vld [vmem:[#allocation11 + $0x184] ss:$16 sps:$4 sm:$0xff]   ;;  %v8750_v42 = vld [vmem:[#allocation11 + $0x18c] ss:$16 sps:$4 sm:$0xff]  }
 0x2a3   :  { %8078 = vmatprep.subr.bf16.mxu1 %v9279_v46 }
 0x2a5   :  { %7940 = vmatpush3.bf16.msra.mxu0 %v8668_v43  ;;  %v8745_v43 = vld [vmem:[#allocation11 + $0x180] ss:$16 sps:$4 sm:$0xff]  }
 0x2a6   :  { %8079 = vmatpush3.bf16.msra.mxu1 %v8669_v44  ;;  %7941 = vmatprep.subr.bf16.mxu0 %v8670_v45  ;;  %v8748_v44 = vld [vmem:[#allocation11 + $0x188] ss:$16 sps:$4 sm:$0xff]   ;;  %v8753_v45 = vld [vmem:[#allocation11 + $0x1a4] ss:$16 sps:$4 sm:$0xff]  }
 0x2a7   :  { %8080 = vmatprep.subr.bf16.mxu1 %v9279_v46  ;;  %v8690_v46 = vld [vmem:[#allocation11 + $0x4c] ss:$16 sps:$4 sm:$0xff]  }
 0x2a9   :  { %7942 = vmatpush3.bf16.msra.mxu0 %v8671_v47  ;;  %v8756_v47 = vld [vmem:[#allocation11 + $0x1ac] ss:$16 sps:$4 sm:$0xff]  }
 0x2aa   :  { %8081 = vmatpush3.bf16.msra.mxu1 %v8672_v48  ;;  %4110 = vmatprep.subr.bf16.mxu0 %v8675_v49  ;;  %v8751_v48 = vld [vmem:[#allocation11 + $0x1a0] ss:$16 sps:$4 sm:$0xff]   ;;  %v8754_v49 = vld [vmem:[#allocation11 + $0x1a8] ss:$16 sps:$4 sm:$0xff]  }
 0x2ab   :  { %4239 = vmatprep.subr.bf16.mxu1 %v8678_v50  ;;  %v8759_v50 = vld [vmem:[#allocation11 + $0x1c4] ss:$16 sps:$4 sm:$0xff]  }
 0x2ac   :  { %3054 = vmatmul.mubr.bf16.vlgmr.msra.gmra.mrb[16].mxu0 %v9544_v51  ;;  %v8691_v51 = vld [vmem:[#allocation11 + $0x60] ss:$16 sps:$4 sm:$0xff]  }
 0x2ad   :  { %8083 = vmatmul.mubr.bf16.vlgmr.msra.gmra.mrb[16].mxu1 %v9551_v21  ;;  %4111 = vmatpush1.bf16.msra.mxu0 %v8673_v52  ;;  %v8694_v21 = vld [vmem:[#allocation11 + $0x68] ss:$16 sps:$4 sm:$0xff]   ;;  %v8762_v52 = vld [vmem:[#allocation11 + $0x1cc] ss:$16 sps:$4 sm:$0xff]  }
 0x2ae   :  { %4240 = vmatpush1.bf16.msra.mxu1 %v8676_v54  ;;  %4112 = vmatprep.subr.bf16.mxu0 %v8681_v55  ;;  %v8757_v54 = vld [vmem:[#allocation11 + $0x1c0] ss:$16 sps:$4 sm:$0xff]   ;;  %v8760_v55 = vld [vmem:[#allocation11 + $0x1c8] ss:$16 sps:$4 sm:$0xff]  }
 0x2af   :  { %4241 = vmatprep.subr.bf16.mxu1 %v8684_v56  ;;  %v8765_v56 = vld [vmem:[#allocation11 + $0x1e4] ss:$16 sps:$4 sm:$0xff]  }
 0x2b1   :  { %4113 = vmatpush1.bf16.msra.mxu0 %v8679_v57  ;;  %v8768_v57 = vld [vmem:[#allocation11 + $0x1ec] ss:$16 sps:$4 sm:$0xff]  }
 0x2b2   :  { %4242 = vmatpush1.bf16.msra.mxu1 %v8682_v58  ;;  %4114 = vmatprep.subr.bf16.mxu0 %v8687_v59  ;;  %v8763_v58 = vld [vmem:[#allocation11 + $0x1e0] ss:$16 sps:$4 sm:$0xff]   ;;  %v8766_v59 = vld [vmem:[#allocation11 + $0x1e8] ss:$16 sps:$4 sm:$0xff]  }
 0x2b3   :  { %4243 = vmatprep.subr.bf16.mxu1 %v8690_v46  ;;  %v8771_v46 = vld [vmem:[#allocation11 + $0x204] ss:$16 sps:$4 sm:$0xff]  }
 0x2b5   :  { %4115 = vmatpush1.bf16.msra.mxu0 %v8685_v61  ;;  %v8774_v61 = vld [vmem:[#allocation11 + $0x20c] ss:$16 sps:$4 sm:$0xff]  }
 0x2b6   :  { %4244 = vmatpush1.bf16.msra.mxu1 %v8688_v62  ;;  %4116 = vmatprep.subr.bf16.mxu0 %v8693_v31  ;;  %v9580_v62 = vld [vmem:[#allocation10] sm:$0x1f] }
 0x2b7   :  { %4245 = vmatprep.subr.bf16.mxu1 %v8696_v1  ;;  %v1117_v31 = vrot.slane %v9580_v62, %v9499_v4  ;;  %v1125_v1 = vrot.slane %v9580_v62, %v9511_v20 }
 0x2b9   :  { %4117 = vmatpush1.bf16.msra.mxu0 %v8691_v51  ;;  %v1121_v51 = vrot.slane %v9580_v62, %v9504_v6 }
 0x2ba   :  { %4246 = vmatpush1.bf16.msra.mxu1 %v8694_v21  ;;  %4118 = vmatprep.subr.bf16.mxu0 %v8699_v63  ;;  %v1129_v21 = vrot.slane %v9580_v62, %v9514_v22 }
 0x2bb   :  { %4247 = vmatprep.subr.bf16.mxu1 %v8702_v5 }
 0x2bd   :  { %4119 = vmatpush1.bf16.msra.mxu0 %v8697_v2 }
 0x2be   :  { %4248 = vmatpush1.bf16.msra.mxu1 %v8700_v8  ;;  %4120 = vmatprep.subr.bf16.mxu0 %v8705_v9 }
 0x2bf   :  { %4249 = vmatprep.subr.bf16.mxu1 %v8708_v11 }
 0x2c1   :  { %4121 = vmatpush1.bf16.msra.mxu0 %v8703_v12 }
 0x2c2   :  { %4250 = vmatpush1.bf16.msra.mxu1 %v8706_v13  ;;  %4122 = vmatprep.subr.bf16.mxu0 %v8711_v14 }
 0x2c3   :  { %4251 = vmatprep.subr.bf16.mxu1 %v8714_v15 }
 0x2c5   :  { %4123 = vmatpush1.bf16.msra.mxu0 %v8709_v16 }
 0x2c6   :  { %4252 = vmatpush1.bf16.msra.mxu1 %v8712_v17  ;;  %4124 = vmatprep.subr.bf16.mxu0 %v8717_v18 }
 0x2c7   :  { %4253 = vmatprep.subr.bf16.mxu1 %v8720_v19 }
 0x2c9   :  { %4125 = vmatpush1.bf16.msra.mxu0 %v8715_v23 }
 0x2ca   :  { %4254 = vmatpush1.bf16.msra.mxu1 %v8718_v24  ;;  %4126 = vmatprep.subr.bf16.mxu0 %v8723_v25 }
 0x2cb   :  { %4255 = vmatprep.subr.bf16.mxu1 %v8726_v26 }
 0x2cd   :  { %4127 = vmatpush1.bf16.msra.mxu0 %v8721_v27 }
 0x2ce   :  { %4256 = vmatpush1.bf16.msra.mxu1 %v8724_v28  ;;  %4128 = vmatprep.subr.bf16.mxu0 %v8729_v30 }
 0x2cf   :  { %4257 = vmatprep.subr.bf16.mxu1 %v8732_v32 }
 0x2d1   :  { %4129 = vmatpush1.bf16.msra.mxu0 %v8727_v33 }
 0x2d2   :  { %4258 = vmatpush1.bf16.msra.mxu1 %v8730_v29  ;;  %4130 = vmatprep.subr.bf16.mxu0 %v8735_v34 }
 0x2d3   :  { %4259 = vmatprep.subr.bf16.mxu1 %v8738_v60 }
 0x2d5   :  { %4131 = vmatpush1.bf16.msra.mxu0 %v8733_v53 }
 0x2d6   :  { %4260 = vmatpush1.bf16.msra.mxu1 %v8736_v35  ;;  %4132 = vmatprep.subr.bf16.mxu0 %v8741_v36 }
 0x2d7   :  { %4261 = vmatprep.subr.bf16.mxu1 %v8744_v38 }
 0x2d9   :  { %4133 = vmatpush1.bf16.msra.mxu0 %v8739_v39 }
 0x2da   :  { %4262 = vmatpush1.bf16.msra.mxu1 %v8742_v40  ;;  %4134 = vmatprep.subr.bf16.mxu0 %v8747_v41 }
 0x2db   :  { %4263 = vmatprep.subr.bf16.mxu1 %v8750_v42 }
 0x2dd   :  { %4135 = vmatpush1.bf16.msra.mxu0 %v8745_v43 }
 0x2de   :  { %4264 = vmatpush1.bf16.msra.mxu1 %v8748_v44  ;;  %4136 = vmatprep.subr.bf16.mxu0 %v8753_v45  ;;  %v8769_v44 = vld [vmem:[#allocation11 + $0x200] ss:$16 sps:$4 sm:$0xff]   ;;  %v8772_v45 = vld [vmem:[#allocation11 + $0x208] ss:$16 sps:$4 sm:$0xff]  }
 0x2df   :  { %4265 = vmatprep.subr.bf16.mxu1 %v8756_v47 }
 0x2e1   :  { %4137 = vmatpush1.bf16.msra.mxu0 %v8751_v48  ;;  %v8777_v48 = vld [vmem:[#allocation11 + $0x224] ss:$16 sps:$4 sm:$0xff]  }
 0x2e2   :  { %4266 = vmatpush1.bf16.msra.mxu1 %v8754_v49  ;;  %4138 = vmatprep.subr.bf16.mxu0 %v8759_v50  ;;  %v8780_v49 = vld [vmem:[#allocation11 + $0x22c] ss:$16 sps:$4 sm:$0xff]   ;;  %v8775_v50 = vld [vmem:[#allocation11 + $0x220] ss:$16 sps:$4 sm:$0xff]  }
 0x2e3   :  { %4267 = vmatprep.subr.bf16.mxu1 %v8762_v52  ;;  %v8778_v52 = vld [vmem:[#allocation11 + $0x228] ss:$16 sps:$4 sm:$0xff]  }
 0x2e5   :  { %4139 = vmatpush1.bf16.msra.mxu0 %v8757_v54  ;;  %v8783_v54 = vld [vmem:[#allocation11 + $0x244] ss:$16 sps:$4 sm:$0xff]  }
 0x2e6   :  { %4268 = vmatpush1.bf16.msra.mxu1 %v8760_v55  ;;  %4140 = vmatprep.subr.bf16.mxu0 %v8765_v56  ;;  %v8786_v55 = vld [vmem:[#allocation11 + $0x24c] ss:$16 sps:$4 sm:$0xff]   ;;  %v8781_v56 = vld [vmem:[#allocation11 + $0x240] ss:$16 sps:$4 sm:$0xff]  }
 0x2e7   :  { %4269 = vmatprep.subr.bf16.mxu1 %v8768_v57  ;;  %v8784_v57 = vld [vmem:[#allocation11 + $0x248] ss:$16 sps:$4 sm:$0xff]  }
 0x2e9   :  { %4141 = vmatpush1.bf16.msra.mxu0 %v8763_v58  ;;  %v8789_v58 = vld [vmem:[#allocation11 + $0x264] ss:$16 sps:$4 sm:$0xff]  }
 0x2ea   :  { %4270 = vmatpush1.bf16.msra.mxu1 %v8766_v59  ;;  %4153 = vmatprep.subr.bf16.mxu0 %v8771_v46  ;;  %v8792_v59 = vld [vmem:[#allocation11 + $0x26c] ss:$16 sps:$4 sm:$0xff]   ;;  %v8787_v46 = vld [vmem:[#allocation11 + $0x260] ss:$16 sps:$4 sm:$0xff]  }
 0x2eb   :  { %4282 = vmatprep.subr.bf16.mxu1 %v8774_v61  ;;  %v8790_v61 = vld [vmem:[#allocation11 + $0x268] ss:$16 sps:$4 sm:$0xff]  }
 0x33f   :  { %v2758_v63 = vpop.f32.mrb[8].mxu0  ;;  %v2930_v5 = vpop.f32.mrb[8].mxu1 }
 0x340   :  { %v8086_v2 = vadd.f32 %v2758_v63, %v1117_v31  ;;  %v8090_v8 = vadd.f32 %v2930_v5, %v1125_v1  ;;  %v2760_v9 = vpop.f32.mrb[9].mxu0  ;;  %v2932_v11 = vpop.f32.mrb[9].mxu1  ;;  %v8801_v63 = vld [vmem:[#allocation11 + $0x2a4] ss:$16 sps:$4 sm:$0xff]   ;;  %v8804_v5 = vld [vmem:[#allocation11 + $0x2ac] ss:$16 sps:$4 sm:$0xff]  }
 0x341   :  { %v8087_v12 = vadd.f32 %v2760_v9, %v1121_v51  ;;  %v8091_v13 = vadd.f32 %v2932_v11, %v1129_v21  ;;  %v2762_v14 = vpop.f32.mrb[10].mxu0  ;;  %v2934_v15 = vpop.f32.mrb[10].mxu1  ;;  %v8807_v9 = vld [vmem:[#allocation11 + $0x2c4] ss:$16 sps:$4 sm:$0xff]   ;;  %v8810_v11 = vld [vmem:[#allocation11 + $0x2cc] ss:$16 sps:$4 sm:$0xff]  }
 0x342   :  { %v3103_v16 = vmul.f32 0.01, %v8086_v2  ;;  %v3105_v17 = vmul.f32 0.01, %v8090_v8  ;;  %v8088_v18 = vadd.f32 %v2762_v14, %v1117_v31  ;;  %v8092_v19 = vadd.f32 %v2934_v15, %v1125_v1  ;;  %v2764_v23 = vpop.f32.mrb[11].mxu0  ;;  %v2936_v24 = vpop.f32.mrb[11].mxu1 }
 0x343   :  { %v3104_v25 = vmul.f32 0.01, %v8087_v12  ;;  %v3106_v26 = vmul.f32 0.01, %v8091_v13  ;;  %v8089_v27 = vadd.f32 %v2764_v23, %v1121_v51  ;;  %v8093_v28 = vadd.f32 %v2936_v24, %v1129_v21  ;;  %v8795_v31 = vld [vmem:[#allocation11 + $0x284] ss:$16 sps:$4 sm:$0xff]  }
 0x344   :  { %v3108_v30 = vmul.f32 0.01, %v8088_v18  ;;  %v3110_v32 = vmul.f32 0.01, %v8092_v19  ;;  %v3113_v34 = vmax.f32 %v8086_v2, %v3103_v16  ;;  %v3115_v60 = vmax.f32 %v8090_v8, %v3105_v17  ;;  %v8798_v1 = vld [vmem:[#allocation11 + $0x28c] ss:$16 sps:$4 sm:$0xff]  }
 0x345   :  { %v3109_v33 = vmul.f32 0.01, %v8089_v27  ;;  %v3111_v29 = vmul.f32 0.01, %v8093_v28  ;;  %v3114_v36 = vmax.f32 %v8087_v12, %v3104_v25  ;;  %v3116_v38 = vmax.f32 %v8091_v13, %v3106_v26  ;;  %v8793_v51 = vld [vmem:[#allocation11 + $0x280] ss:$16 sps:$4 sm:$0xff]  }
 0x346   :  { %v3118_v53 = vmax.f32 %v8088_v18, %v3108_v30  ;;  %v3120_v35 = vmax.f32 %v8092_v19, %v3110_v32  ;;  %v8796_v21 = vld [vmem:[#allocation11 + $0x288] ss:$16 sps:$4 sm:$0xff]   ;;  %v8799_v2 = vld [vmem:[#allocation11 + $0x2a0] ss:$16 sps:$4 sm:$0xff]   ;;  %v1133_v13 = vrot.slane %v9580_v62, %v9535_v7 }
 0x347   :  { %v3119_v39 = vmax.f32 %v8089_v27, %v3109_v33  ;;  %v3121_v40 = vmax.f32 %v8093_v28, %v3111_v29  ;;  %v8802_v8 = vld [vmem:[#allocation11 + $0x2a8] ss:$16 sps:$4 sm:$0xff]   ;;  %v8805_v19 = vld [vmem:[#allocation11 + $0x2c0] ss:$16 sps:$4 sm:$0xff]   ;;  %v8813_v27 = vld [vmem:[#allocation11 + $0x2e4] ss:$16 sps:$4 sm:$0xff]  }
 0x348   :  { %v3123_v41 = vpack.c.bf16 %v3118_v53, %v3113_v34  ;;  %v9590_v42 = vpack.c.bf16 %v3120_v35, %v3115_v60  ;;  %v8808_v23 = vld [vmem:[#allocation11 + $0x2c8] ss:$16 sps:$4 sm:$0xff]   ;;  %v8816_v28 = vld [vmem:[#allocation11 + $0x2ec] ss:$16 sps:$4 sm:$0xff]   ;;  %v8811_v60 = vld [vmem:[#allocation11 + $0x2e0] ss:$16 sps:$4 sm:$0xff]  }
 0x349   :  { %v3124_v43 = vpack.c.bf16 %v3119_v39, %v3114_v36  ;;  %v3126_v47 = vpack.c.bf16 %v3121_v40, %v3116_v38  ;;  %v8814_v53 = vld [vmem:[#allocation11 + $0x2e8] ss:$16 sps:$4 sm:$0xff]   ;;  %v8819_v35 = vld [vmem:[#allocation11 + $0x304] ss:$16 sps:$4 sm:$0xff]   ;;  %v8822_v36 = vld [vmem:[#allocation11 + $0x30c] ss:$16 sps:$4 sm:$0xff]  }
 0x34a   :  { %v8817_v39 = vld [vmem:[#allocation11 + $0x300] ss:$16 sps:$4 sm:$0xff]   ;;  %v8820_v40 = vld [vmem:[#allocation11 + $0x308] ss:$16 sps:$4 sm:$0xff]  }
 0x34b   :  { %4142 = vmatprep.mubr.bf16.mxu0 %v3124_v43  ;;  %4271 = vmatprep.mubr.bf16.mxu1 %v3124_v43  ;;  %v8828_v43 = vld [vmem:[#allocation11 + $0x32c] ss:$16 sps:$4 sm:$0xff]  }
 0x34c   :  { %4143 = vmatmul.mubr.bf16.vlgmr.msra.gmra.mrb[20].mxu0 %v3123_v41  ;;  %4272 = vmatmul.mubr.bf16.vlgmr.msra.gmra.mrb[20].mxu1 %v3123_v41  ;;  %v8825_v41 = vld [vmem:[#allocation11 + $0x324] ss:$16 sps:$4 sm:$0xff]  }
 0x34d   :  { %4154 = vmatpush1.bf16.msra.mxu0 %v8769_v44  ;;  %4283 = vmatpush1.bf16.msra.mxu1 %v8772_v45  ;;  %v8823_v44 = vld [vmem:[#allocation11 + $0x320] ss:$16 sps:$4 sm:$0xff]   ;;  %v8826_v45 = vld [vmem:[#allocation11 + $0x328] ss:$16 sps:$4 sm:$0xff]  }
 0x34e   :  { %4185 = vmatprep.mubr.bf16.mxu0 %v3126_v47  ;;  %4314 = vmatprep.mubr.bf16.mxu1 %v3126_v47  ;;  %v8831_v47 = vld [vmem:[#allocation11 + $0x344] ss:$16 sps:$4 sm:$0xff]  }
 0x34f   :  { %4155 = vmatprep.subr.bf16.mxu0 %v8777_v48  ;;  %4284 = vmatprep.subr.bf16.mxu1 %v8780_v49  ;;  %v8834_v48 = vld [vmem:[#allocation11 + $0x34c] ss:$16 sps:$4 sm:$0xff]   ;;  %v8829_v49 = vld [vmem:[#allocation11 + $0x340] ss:$16 sps:$4 sm:$0xff]  }
 0x351   :  { %4156 = vmatpush1.bf16.msra.mxu0 %v8775_v50  ;;  %4285 = vmatpush1.bf16.msra.mxu1 %v8778_v52  ;;  %v8832_v50 = vld [vmem:[#allocation11 + $0x348] ss:$16 sps:$4 sm:$0xff]   ;;  %v8837_v52 = vld [vmem:[#allocation11 + $0x364] ss:$16 sps:$4 sm:$0xff]  }
 0x352   :  { %4157 = vmatprep.subr.bf16.mxu0 %v8783_v54  ;;  %4286 = vmatprep.subr.bf16.mxu1 %v8786_v55  ;;  %v8840_v54 = vld [vmem:[#allocation11 + $0x36c] ss:$16 sps:$4 sm:$0xff]   ;;  %v8835_v55 = vld [vmem:[#allocation11 + $0x360] ss:$16 sps:$4 sm:$0xff]  }
 0x355   :  { %4158 = vmatpush1.bf16.msra.mxu0 %v8781_v56  ;;  %4287 = vmatpush1.bf16.msra.mxu1 %v8784_v57  ;;  %v8838_v56 = vld [vmem:[#allocation11 + $0x368] ss:$16 sps:$4 sm:$0xff]   ;;  %v8843_v57 = vld [vmem:[#allocation11 + $0x384] ss:$16 sps:$4 sm:$0xff]  }
 0x356   :  { %4159 = vmatprep.subr.bf16.mxu0 %v8789_v58  ;;  %4288 = vmatprep.subr.bf16.mxu1 %v8792_v59  ;;  %v8846_v58 = vld [vmem:[#allocation11 + $0x38c] ss:$16 sps:$4 sm:$0xff]   ;;  %v8841_v59 = vld [vmem:[#allocation11 + $0x380] ss:$16 sps:$4 sm:$0xff]  }
 0x359   :  { %4160 = vmatpush1.bf16.msra.mxu0 %v8787_v46  ;;  %4289 = vmatpush1.bf16.msra.mxu1 %v8790_v61  ;;  %v8844_v46 = vld [vmem:[#allocation11 + $0x388] ss:$16 sps:$4 sm:$0xff]   ;;  %v8849_v61 = vld [vmem:[#allocation11 + $0x3a4] ss:$16 sps:$4 sm:$0xff]  }
 0x35a   :  { %4161 = vmatprep.subr.bf16.mxu0 %v8795_v31  ;;  %4290 = vmatprep.subr.bf16.mxu1 %v8798_v1  ;;  %v8852_v31 = vld [vmem:[#allocation11 + $0x3ac] ss:$16 sps:$4 sm:$0xff]   ;;  %v8847_v1 = vld [vmem:[#allocation11 + $0x3a0] ss:$16 sps:$4 sm:$0xff]  }
 0x35d   :  { %4162 = vmatpush1.bf16.msra.mxu0 %v8793_v51  ;;  %4291 = vmatpush1.bf16.msra.mxu1 %v8796_v21  ;;  %v8850_v51 = vld [vmem:[#allocation11 + $0x3a8] ss:$16 sps:$4 sm:$0xff]   ;;  %v8855_v21 = vld [vmem:[#allocation11 + $0x3c4] ss:$16 sps:$4 sm:$0xff]  }
 0x35e   :  { %4163 = vmatprep.subr.bf16.mxu0 %v8801_v63  ;;  %4292 = vmatprep.subr.bf16.mxu1 %v8804_v5  ;;  %v8858_v63 = vld [vmem:[#allocation11 + $0x3cc] ss:$16 sps:$4 sm:$0xff]  }
 0x35f   :  { %v7899_v12 = vpop.f32.mrb[12].mxu0 }
 0x360   :  { %v7921_v14 = vpop.f32.mrb[12].mxu1  ;;  %v7900_v15 = vpop.f32.mrb[13].mxu0 }
 0x361   :  { %v7901_v16 = vadd.f32 %v7900_v15, %v7899_v12  ;;  %v7922_v17 = vpop.f32.mrb[13].mxu1  ;;  %4164 = vmatpush1.bf16.msra.mxu0 %v8799_v2  ;;  %4293 = vmatpush1.bf16.msra.mxu1 %v8802_v8  ;;  %v7902_v18 = vpop.f32.mrb[14].mxu0 }
 0x362   :  { %v7923_v24 = vadd.f32 %v7922_v17, %v7921_v14  ;;  %v7924_v25 = vpop.f32.mrb[14].mxu1  ;;  %v7903_v26 = vpop.f32.mrb[15].mxu0  ;;  %4165 = vmatprep.subr.bf16.mxu0 %v8807_v9  ;;  %4294 = vmatprep.subr.bf16.mxu1 %v8810_v11  ;;  %v8856_v14 = vld [vmem:[#allocation11 + $0x3c8] ss:$16 sps:$4 sm:$0xff]   ;;  %v8861_v17 = vld [vmem:[#allocation11 + $0x3e4] ss:$16 sps:$4 sm:$0xff]  }
 0x363   :  { %v2974_v30 = vadd.f32 %v7901_v16, %v1133_v13  ;;  %v7904_v32 = vadd.f32 %v7903_v26, %v7902_v18  ;;  %v7925_v33 = vpop.f32.mrb[15].mxu1  ;;  %v8864_v18 = vld [vmem:[#allocation11 + $0x3ec] ss:$16 sps:$4 sm:$0xff]  }
 0x364   :  { %v7926_v62 = vadd.f32 %v7925_v33, %v7924_v25 }
 0x365   :  { %v9594_v29 = vadd.f32 %v7923_v24, %v2974_v30  ;;  %v2977_v34 = vadd.f32 %v7904_v32, %v1133_v13  ;;  %4166 = vmatpush1.bf16.msra.mxu0 %v8805_v19  ;;  %4295 = vmatpush1.bf16.msra.mxu1 %v8808_v23  ;;  %v8853_v13 = vld [vmem:[#allocation11 + $0x3c0] ss:$16 sps:$4 sm:$0xff]   ;;  %v8867_v30 = vld [vmem:[#allocation11 + $0x404] ss:$16 sps:$4 sm:$0xff]   ;;  %v8870_v32 = vld [vmem:[#allocation11 + $0x40c] ss:$16 sps:$4 sm:$0xff]  }
 0x366   :  { %4167 = vmatprep.subr.bf16.mxu0 %v8813_v27  ;;  %4296 = vmatprep.subr.bf16.mxu1 %v8816_v28  ;;  %v8859_v27 = vld [vmem:[#allocation11 + $0x3e0] ss:$16 sps:$4 sm:$0xff]   ;;  %v8862_v28 = vld [vmem:[#allocation11 + $0x3e8] ss:$16 sps:$4 sm:$0xff]  }
 0x367   :  { %v9596_v38 = vadd.f32 %v7926_v62, %v2977_v34 }
 0x369   :  { %4168 = vmatpush1.bf16.msra.mxu0 %v8811_v60  ;;  %4297 = vmatpush1.bf16.msra.mxu1 %v8814_v53  ;;  %v8865_v60 = vld [vmem:[#allocation11 + $0x400] ss:$16 sps:$4 sm:$0xff]   ;;  %v8873_v53 = vld [vmem:[#allocation11 + $0x424] ss:$16 sps:$4 sm:$0xff]  }
 0x36a   :  { %4169 = vmatprep.subr.bf16.mxu0 %v8819_v35  ;;  %4298 = vmatprep.subr.bf16.mxu1 %v8822_v36  ;;  %v8876_v35 = vld [vmem:[#allocation11 + $0x42c] ss:$16 sps:$4 sm:$0xff]  }
 0x36d   :  { %4170 = vmatpush1.bf16.msra.mxu0 %v8817_v39  ;;  %4299 = vmatpush1.bf16.msra.mxu1 %v8820_v40  ;;  %v8871_v39 = vld [vmem:[#allocation11 + $0x420] ss:$16 sps:$4 sm:$0xff]   ;;  %v8874_v40 = vld [vmem:[#allocation11 + $0x428] ss:$16 sps:$4 sm:$0xff]  }
 0x36e   :  { %4171 = vmatprep.subr.bf16.mxu0 %v8825_v41  ;;  %4300 = vmatprep.subr.bf16.mxu1 %v8828_v43  ;;  %v8879_v43 = vld [vmem:[#allocation11 + $0x444] ss:$16 sps:$4 sm:$0xff]  }
 0x371   :  { %4172 = vmatpush1.bf16.msra.mxu0 %v8823_v44  ;;  %4301 = vmatpush1.bf16.msra.mxu1 %v8826_v45  ;;  %v8882_v44 = vld [vmem:[#allocation11 + $0x44c] ss:$16 sps:$4 sm:$0xff]   ;;  %v8877_v45 = vld [vmem:[#allocation11 + $0x440] ss:$16 sps:$4 sm:$0xff]  }
 0x372   :  { %4173 = vmatprep.subr.bf16.mxu0 %v8831_v47  ;;  %4302 = vmatprep.subr.bf16.mxu1 %v8834_v48  ;;  %v8880_v47 = vld [vmem:[#allocation11 + $0x448] ss:$16 sps:$4 sm:$0xff]   ;;  %v8888_v48 = vld [vmem:[#allocation11 + $0x46c] ss:$16 sps:$4 sm:$0xff]  }
 0x375   :  { %4174 = vmatpush1.bf16.msra.mxu0 %v8829_v49  ;;  %4303 = vmatpush1.bf16.msra.mxu1 %v8832_v50  ;;  %v8883_v49 = vld [vmem:[#allocation11 + $0x460] ss:$16 sps:$4 sm:$0xff]   ;;  %v8886_v50 = vld [vmem:[#allocation11 + $0x468] ss:$16 sps:$4 sm:$0xff]  }
 0x376   :  { %4175 = vmatprep.subr.bf16.mxu0 %v8837_v52  ;;  %4304 = vmatprep.subr.bf16.mxu1 %v8840_v54  ;;  %v8891_v52 = vld [vmem:[#allocation11 + $0x484] ss:$16 sps:$4 sm:$0xff]   ;;  %v8894_v54 = vld [vmem:[#allocation11 + $0x48c] ss:$16 sps:$4 sm:$0xff]  }
 0x379   :  { %4176 = vmatpush1.bf16.msra.mxu0 %v8835_v55  ;;  %4305 = vmatpush1.bf16.msra.mxu1 %v8838_v56  ;;  %v8889_v55 = vld [vmem:[#allocation11 + $0x480] ss:$16 sps:$4 sm:$0xff]   ;;  %v8897_v56 = vld [vmem:[#allocation11 + $0x4a4] ss:$16 sps:$4 sm:$0xff]  }
 0x37a   :  { %4177 = vmatprep.subr.bf16.mxu0 %v8843_v57  ;;  %4306 = vmatprep.subr.bf16.mxu1 %v8846_v58  ;;  %v8900_v57 = vld [vmem:[#allocation11 + $0x4ac] ss:$16 sps:$4 sm:$0xff]   ;;  %v8895_v58 = vld [vmem:[#allocation11 + $0x4a0] ss:$16 sps:$4 sm:$0xff]  }
 0x37d   :  { %4178 = vmatpush1.bf16.msra.mxu0 %v8841_v59  ;;  %4307 = vmatpush1.bf16.msra.mxu1 %v8844_v46  ;;  %v8898_v59 = vld [vmem:[#allocation11 + $0x4a8] ss:$16 sps:$4 sm:$0xff]   ;;  %v8903_v46 = vld [vmem:[#allocation11 + $0x4c4] ss:$16 sps:$4 sm:$0xff]  }
 0x37e   :  { %4179 = vmatprep.subr.bf16.mxu0 %v8849_v61  ;;  %4308 = vmatprep.subr.bf16.mxu1 %v8852_v31  ;;  %v8906_v61 = vld [vmem:[#allocation11 + $0x4cc] ss:$16 sps:$4 sm:$0xff]   ;;  %v8901_v31 = vld [vmem:[#allocation11 + $0x4c0] ss:$16 sps:$4 sm:$0xff]  }
 0x37f   :  { %v7943_v5 = vpop.f32.mrb[16].mxu0 }
 0x380   :  { %v3096_v2 = vpop.f32.mrb[16].mxu1  ;;  %v7944_v8 = vpop.f32.mrb[17].mxu0 }
 0x381   :  { %v7945_v9 = vadd.f32 %v7944_v8, %v7943_v5  ;;  %v8084_v11 = vpop.f32.mrb[17].mxu1  ;;  %4180 = vmatpush1.bf16.msra.mxu0 %v8847_v1  ;;  %4309 = vmatpush1.bf16.msra.mxu1 %v8850_v51  ;;  %v7946_v12 = vpop.f32.mrb[18].mxu0  ;;  %v8904_v1 = vld [vmem:[#allocation11 + $0x4c8] ss:$16 sps:$4 sm:$0xff]   ;;  %v8909_v51 = vld [vmem:[#allocation11 + $0x4e4] ss:$16 sps:$4 sm:$0xff]  }
 0x382   :  { %v3099_v15 = vpop.f32.mrb[18].mxu1  ;;  %v7947_v16 = vpop.f32.mrb[19].mxu0  ;;  %4181 = vmatprep.subr.bf16.mxu0 %v8855_v21  ;;  %4310 = vmatprep.subr.bf16.mxu1 %v8858_v63  ;;  %v8912_v21 = vld [vmem:[#allocation11 + $0x4ec] ss:$16 sps:$4 sm:$0xff]   ;;  %v4388_v63 = vld [vmem:[#allocation14] sm:$0xff] }
 0x383   :  { %v3056_v19 = vadd.f32 %v7945_v9, %v9594_v29  ;;  %v7948_v23 = vadd.f32 %v7947_v16, %v7946_v12  ;;  %v8085_v24 = vpop.f32.mrb[19].mxu1  ;;  %v8868_v29 = vld [vmem:[#allocation11 + $0x408] ss:$16 sps:$4 sm:$0xff]   ;;  %v4393_v8 = vld [vmem:[#allocation14 + $0x28] sm:$0xff] }
 0x384   :  { %v4392_v5 = vld [vmem:[#allocation14 + $0x20] sm:$0xff]  ;;  %v8907_v9 = vld [vmem:[#allocation11 + $0x4e0] ss:$16 sps:$4 sm:$0xff]  }
 0x385   :  { %v3097_v25 = vadd.f32 %v3096_v2, %v3056_v19  ;;  %v3059_v26 = vadd.f32 %v7948_v23, %v9596_v38  ;;  %4182 = vmatpush1.bf16.msra.mxu0 %v8853_v13  ;;  %4311 = vmatpush1.bf16.msra.mxu1 %v8856_v14  ;;  %v4389_v2 = vld [vmem:[#allocation14 + $0x8] sm:$0xff]  ;;  %v8910_v11 = vld [vmem:[#allocation11 + $0x4e8] ss:$16 sps:$4 sm:$0xff]   ;;  %v7554_v12 = vcombine.high %v4388_v63, %v4392_v5 }
 0x386   :  { %4183 = vmatprep.subr.bf16.mxu0 %v8861_v17  ;;  %4312 = vmatprep.subr.bf16.mxu1 %v8864_v18  ;;  %v7556_v13 = vcombine.high %v4389_v2, %v4393_v8  ;;  %v4396_v14 = vld [vmem:[#allocation14 + $0x40] sm:$0xff]  ;;  %v4397_v16 = vld [vmem:[#allocation14 + $0x48] sm:$0xff]  ;;  %v7553_v18 = vcombine.low %v4388_v63, %v4392_v5  ;;  %v7555_v19 = vcombine.low %v4389_v2, %v4393_v8 }
 0x387   :  { %v3107_v33 = vmul.f32 0.01, %v3097_v25  ;;  %v3100_v62 = vadd.f32 %v3099_v15, %v3059_v26  ;;  %v4400_v15 = vld [vmem:[#allocation14 + $0x60] sm:$0xff]  ;;  %v4401_v17 = vld [vmem:[#allocation14 + $0x68] sm:$0xff] }
 0x388   :  { %v7562_v23 = vcombine.high %v4396_v14, %v4400_v15  ;;  %v7564_v24 = vcombine.high %v4397_v16, %v4401_v17  ;;  %v4408_v26 = vld [vmem:[#allocation14 + $0xa0] sm:$0xff]  ;;  %v4445_v2 = vld [vmem:[#allocation14 + $0x1c8] sm:$0xff] }
 0x389   :  { %v3112_v34 = vmul.f32 0.01, %v3100_v62  ;;  %4184 = vmatpush1.bf16.msra.mxu0 %v8859_v27  ;;  %4313 = vmatpush1.bf16.msra.mxu1 %v8862_v28  ;;  %v3117_v36 = vmax.f32 %v3097_v25, %v3107_v33  ;;  %v4404_v25 = vld [vmem:[#allocation14 + $0x80] sm:$0xff]  ;;  %v4405_v27 = vld [vmem:[#allocation14 + $0x88] sm:$0xff] }
 0x38a   :  { %4196 = vmatprep.subr.bf16.mxu0 %v8867_v30  ;;  %4325 = vmatprep.subr.bf16.mxu1 %v8870_v32  ;;  %v4409_v28 = vld [vmem:[#allocation14 + $0xa8] sm:$0xff]  ;;  %v7561_v30 = vcombine.low %v4396_v14, %v4400_v15  ;;  %v7563_v32 = vcombine.low %v4397_v16, %v4401_v17  ;;  %v7570_v33 = vcombine.high %v4404_v25, %v4408_v26  ;;  %v4444_v63 = vld [vmem:[#allocation14 + $0x1c0] sm:$0xff] }
 0x38b   :  { %v3122_v38 = vmax.f32 %v3100_v62, %v3112_v34  ;;  %v7572_v62 = vcombine.high %v4405_v27, %v4409_v28  ;;  %v4412_v34 = vld [vmem:[#allocation14 + $0xc0] sm:$0xff]  ;;  %v4449_v8 = vld [vmem:[#allocation14 + $0x1e8] sm:$0xff] }
 0x38c   :  { %4186 = vmatmul.mubr.bf16.vlgmr.msra.gmra.mrb[20].mxu0 %v9590_v42  ;;  %4315 = vmatmul.mubr.bf16.vlgmr.msra.gmra.mrb[20].mxu1 %v9590_v42  ;;  %v8885_v42 = vld [vmem:[#allocation11 + $0x464] ss:$16 sps:$4 sm:$0xff]   ;;  %v4453_v16 = vld [vmem:[#allocation14 + $0x208] sm:$0xff] }
 0x38d   :  { %4197 = vmatpush1.bf16.msra.mxu0 %v8865_v60  ;;  %4326 = vmatpush1.bf16.msra.mxu1 %v8868_v29  ;;  %v9602_v41 = vpack.c.bf16 %v3122_v38, %v3117_v36  ;;  %v4416_v60 = vld [vmem:[#allocation14 + $0xe0] sm:$0xff]  ;;  %v4413_v29 = vld [vmem:[#allocation14 + $0xc8] sm:$0xff]  ;;  %v7571_v36 = vcombine.low %v4405_v27, %v4409_v28 }
 0x38e   :  { %4198 = vmatprep.subr.bf16.mxu0 %v8873_v53  ;;  %4327 = vmatprep.subr.bf16.mxu1 %v8876_v35  ;;  %v4417_v53 = vld [vmem:[#allocation14 + $0xe8] sm:$0xff]  ;;  %v7569_v35 = vcombine.low %v4404_v25, %v4408_v26  ;;  %v7578_v38 = vcombine.high %v4412_v34, %v4416_v60  ;;  %v4448_v5 = vld [vmem:[#allocation14 + $0x1e0] sm:$0xff] }
 0x38f   :  { %4228 = vmatprep.mubr.bf16.mxu0 %v9278_v0  ;;  %4357 = vmatprep.mubr.bf16.mxu1 %v9278_v0  ;;  %v8892_v0 = vld [vmem:[#allocation11 + $0x488] ss:$16 sps:$4 sm:$0xff]   ;;  %v4457_v17 = vld [vmem:[#allocation14 + $0x228] sm:$0xff] }
 0x390   :  { %v4452_v14 = vld [vmem:[#allocation14 + $0x200] sm:$0xff]  ;;  %v4461_v27 = vld [vmem:[#allocation14 + $0x248] sm:$0xff] }
 0x391   :  { %4199 = vmatpush1.bf16.msra.mxu0 %v8871_v39  ;;  %4328 = vmatpush1.bf16.msra.mxu1 %v8874_v40  ;;  %v7580_v39 = vcombine.high %v4413_v29, %v4417_v53  ;;  %v4420_v40 = vld [vmem:[#allocation14 + $0x100] sm:$0xff]  ;;  %v4465_v28 = vld [vmem:[#allocation14 + $0x268] sm:$0xff] }
 0x392   :  { %4200 = vmatprep.subr.bf16.mxu0 %v8879_v43  ;;  %4329 = vmatprep.subr.bf16.mxu1 %v8882_v44  ;;  %v4421_v43 = vld [vmem:[#allocation14 + $0x108] sm:$0xff]  ;;  %v4456_v15 = vld [vmem:[#allocation14 + $0x220] sm:$0xff] }
 0x393   :  { %v4425_v44 = vld [vmem:[#allocation14 + $0x128] sm:$0xff]  ;;  %v4460_v25 = vld [vmem:[#allocation14 + $0x240] sm:$0xff] }
 0x394   :  { %v4464_v26 = vld [vmem:[#allocation14 + $0x260] sm:$0xff] }
 0x395   :  { %4201 = vmatpush1.bf16.msra.mxu0 %v8877_v45  ;;  %4330 = vmatpush1.bf16.msra.mxu1 %v8880_v47  ;;  %v7577_v45 = vcombine.low %v4412_v34, %v4416_v60  ;;  %v7579_v47 = vcombine.low %v4413_v29, %v4417_v53  ;;  %v4468_v34 = vld [vmem:[#allocation14 + $0x280] sm:$0xff]  ;;  %v4469_v29 = vld [vmem:[#allocation14 + $0x288] sm:$0xff] }
 0x396   :  { %4202 = vmatprep.subr.bf16.mxu0 %v8885_v42  ;;  %4331 = vmatprep.subr.bf16.mxu1 %v8888_v48  ;;  %v7588_v48 = vcombine.high %v4421_v43, %v4425_v44  ;;  %v4472_v60 = vld [vmem:[#allocation14 + $0x2a0] sm:$0xff]  ;;  %v4473_v53 = vld [vmem:[#allocation14 + $0x2a8] sm:$0xff] }
 0x399   :  { %4203 = vmatpush1.bf16.msra.mxu0 %v8883_v49  ;;  %4332 = vmatpush1.bf16.msra.mxu1 %v8886_v50  ;;  %v4428_v49 = vld [vmem:[#allocation14 + $0x140] sm:$0xff] }
 0x39a   :  { %4204 = vmatprep.subr.bf16.mxu0 %v8891_v52  ;;  %4333 = vmatprep.subr.bf16.mxu1 %v8894_v54  ;;  %v4432_v50 = vld [vmem:[#allocation14 + $0x160] sm:$0xff]  ;;  %v4429_v52 = vld [vmem:[#allocation14 + $0x148] sm:$0xff] }
 0x39b   :  { %v4433_v54 = vld [vmem:[#allocation14 + $0x168] sm:$0xff] }
 0x39d   :  { %4205 = vmatpush1.bf16.msra.mxu0 %v8889_v55  ;;  %4334 = vmatpush1.bf16.msra.mxu1 %v8892_v0  ;;  %v7587_v0 = vcombine.low %v4421_v43, %v4425_v44  ;;  %v4477_v43 = vld [vmem:[#allocation14 + $0x2c8] sm:$0xff] }
 0x39e   :  { %4206 = vmatprep.subr.bf16.mxu0 %v8897_v56  ;;  %4335 = vmatprep.subr.bf16.mxu1 %v8900_v57  ;;  %v7594_v56 = vcombine.high %v4428_v49, %v4432_v50  ;;  %v7596_v57 = vcombine.high %v4429_v52, %v4433_v54  ;;  %v4481_v44 = vld [vmem:[#allocation14 + $0x2e8] sm:$0xff] }
 0x3a1   :  { %4207 = vmatpush1.bf16.msra.mxu0 %v8895_v58  ;;  %4336 = vmatpush1.bf16.msra.mxu1 %v8898_v59  ;;  %v4436_v58 = vld [vmem:[#allocation14 + $0x180] sm:$0xff] }
 0x3a2   :  { %4208 = vmatprep.subr.bf16.mxu0 %v8903_v46  ;;  %4337 = vmatprep.subr.bf16.mxu1 %v8906_v61  ;;  %v4440_v59 = vld [vmem:[#allocation14 + $0x1a0] sm:$0xff]  ;;  %v4437_v46 = vld [vmem:[#allocation14 + $0x188] sm:$0xff] }
 0x3a3   :  { %v4441_v61 = vld [vmem:[#allocation14 + $0x1a8] sm:$0xff] }
 0x3a5   :  { %4209 = vmatpush1.bf16.msra.mxu0 %v8901_v31  ;;  %4338 = vmatpush1.bf16.msra.mxu1 %v8904_v1  ;;  %v7593_v31 = vcombine.low %v4428_v49, %v4432_v50  ;;  %v7595_v1 = vcombine.low %v4429_v52, %v4433_v54  ;;  %v4484_v49 = vld [vmem:[#allocation14 + $0x300] sm:$0xff]  ;;  %v4485_v52 = vld [vmem:[#allocation14 + $0x308] sm:$0xff] }
 0x3a6   :  { %4210 = vmatprep.subr.bf16.mxu0 %v8909_v51  ;;  %4339 = vmatprep.subr.bf16.mxu1 %v8912_v21  ;;  %v7602_v51 = vcombine.high %v4436_v58, %v4440_v59  ;;  %v7604_v21 = vcombine.high %v4437_v46, %v4441_v61  ;;  %v4488_v50 = vld [vmem:[#allocation14 + $0x320] sm:$0xff]  ;;  %v4489_v54 = vld [vmem:[#allocation14 + $0x328] sm:$0xff] }
 0x3a9   :  { %4211 = vmatpush1.bf16.msra.mxu0 %v8907_v9  ;;  %4340 = vmatpush1.bf16.msra.mxu1 %v8910_v11  ;;  %v7601_v9 = vcombine.low %v4436_v58, %v4440_v59  ;;  %v7603_v11 = vcombine.low %v4437_v46, %v4441_v61  ;;  %v7649_v58 = vcombine.low %v4484_v49, %v4488_v50  ;;  %v4492_v46 = vld [vmem:[#allocation14 + $0x340] sm:$0xff] }
 0x3aa   :  { %5966 = vmatprep.subr.bf16.mxu0 %v7554_v12  ;;  %6052 = vmatprep.subr.bf16.mxu1 %v7556_v13  ;;  %v7610_v12 = vcombine.high %v4444_v63, %v4448_v5  ;;  %v7612_v13 = vcombine.high %v4445_v2, %v4449_v8  ;;  %v7651_v59 = vcombine.low %v4485_v52, %v4489_v54  ;;  %v4496_v61 = vld [vmem:[#allocation14 + $0x360] sm:$0xff] }
 0x3ac   :  { %4229 = vmatmul.mubr.bf16.vlgmr.msra.gmra.mrb[20].mxu0 %v9602_v41  ;;  %4358 = vmatmul.mubr.bf16.vlgmr.msra.gmra.mrb[20].mxu1 %v9602_v41  ;;  %v4424_v41 = vld [vmem:[#allocation14 + $0x120] sm:$0xff] }
 0x3ad   :  { %5967 = vmatpush1.bf16.msra.mxu0 %v7553_v18  ;;  %6053 = vmatpush1.bf16.msra.mxu1 %v7555_v19  ;;  %v7586_v42 = vcombine.high %v4420_v40, %v4424_v41  ;;  %v7585_v55 = vcombine.low %v4420_v40, %v4424_v41  ;;  %v7609_v18 = vcombine.low %v4444_v63, %v4448_v5  ;;  %v4476_v40 = vld [vmem:[#allocation14 + $0x2c0] sm:$0xff] }
 0x3ae   :  { %5968 = vmatprep.subr.bf16.mxu0 %v7562_v23  ;;  %6054 = vmatprep.subr.bf16.mxu1 %v7564_v24  ;;  %v7611_v19 = vcombine.low %v4445_v2, %v4449_v8  ;;  %v7618_v23 = vcombine.high %v4452_v14, %v4456_v15  ;;  %v7620_v24 = vcombine.high %v4453_v16, %v4457_v17  ;;  %v4480_v41 = vld [vmem:[#allocation14 + $0x2e0] sm:$0xff] }
 0x3af   :  { %v4500_v2 = vld [vmem:[#allocation14 + $0x380] sm:$0xff] }
 0x3b0   :  { %v4504_v8 = vld [vmem:[#allocation14 + $0x3a0] sm:$0xff] }
 0x3b1   :  { %5969 = vmatpush1.bf16.msra.mxu0 %v7561_v30  ;;  %6055 = vmatpush1.bf16.msra.mxu1 %v7563_v32  ;;  %v7617_v30 = vcombine.low %v4452_v14, %v4456_v15  ;;  %v7619_v32 = vcombine.low %v4453_v16, %v4457_v17  ;;  %v4508_v16 = vld [vmem:[#allocation14 + $0x3c0] sm:$0xff] }
 0x3b2   :  { %5970 = vmatprep.subr.bf16.mxu0 %v7570_v33  ;;  %6056 = vmatprep.subr.bf16.mxu1 %v7572_v62  ;;  %v7626_v33 = vcombine.high %v4460_v25, %v4464_v26  ;;  %v7628_v62 = vcombine.high %v4461_v27, %v4465_v28  ;;  %v4512_v17 = vld [vmem:[#allocation14 + $0x3e0] sm:$0xff] }
 0x3b5   :  { %5971 = vmatpush1.bf16.msra.mxu0 %v7569_v35  ;;  %6057 = vmatpush1.bf16.msra.mxu1 %v7571_v36  ;;  %v7625_v35 = vcombine.low %v4460_v25, %v4464_v26  ;;  %v7627_v36 = vcombine.low %v4461_v27, %v4465_v28  ;;  %v9608_v27 = vld [vmem:[#allocation14 + $0x400] sm:$0xff] }
 0x3b6   :  { %5972 = vmatprep.subr.bf16.mxu0 %v7578_v38  ;;  %6058 = vmatprep.subr.bf16.mxu1 %v7580_v39  ;;  %v7634_v38 = vcombine.high %v4468_v34, %v4472_v60  ;;  %v7636_v39 = vcombine.high %v4469_v29, %v4473_v53  ;;  %v9610_v28 = vld [vmem:[#allocation14 + $0x420] sm:$0xff] }
 0x3b9   :  { %5973 = vmatpush1.bf16.msra.mxu0 %v7577_v45  ;;  %6059 = vmatpush1.bf16.msra.mxu1 %v7579_v47  ;;  %v7633_v45 = vcombine.low %v4468_v34, %v4472_v60  ;;  %v7635_v47 = vcombine.low %v4469_v29, %v4473_v53  ;;  %v3288_v29 = vld [vmem:[#allocation13] sm:$0xf] }
 0x3ba   :  { %5974 = vmatprep.subr.bf16.mxu0 %v7586_v42  ;;  %6060 = vmatprep.subr.bf16.mxu1 %v7588_v48  ;;  %v7642_v42 = vcombine.high %v4476_v40, %v4480_v41  ;;  %v7644_v48 = vcombine.high %v4477_v43, %v4481_v44  ;;  %v3293_v53 = vrot.slane %v3288_v29, %v9499_v4 }
 0x3bd   :  { %5975 = vmatpush1.bf16.msra.mxu0 %v7585_v55  ;;  %6061 = vmatpush1.bf16.msra.mxu1 %v7587_v0  ;;  %v7641_v55 = vcombine.low %v4476_v40, %v4480_v41  ;;  %v7643_v0 = vcombine.low %v4477_v43, %v4481_v44 }
 0x3be   :  { %5976 = vmatprep.subr.bf16.mxu0 %v7594_v56  ;;  %6062 = vmatprep.subr.bf16.mxu1 %v7596_v57  ;;  %v7650_v56 = vcombine.high %v4484_v49, %v4488_v50  ;;  %v7652_v57 = vcombine.high %v4485_v52, %v4489_v54 }
 0x3c1   :  { %5977 = vmatpush1.bf16.msra.mxu0 %v7593_v31  ;;  %6063 = vmatpush1.bf16.msra.mxu1 %v7595_v1  ;;  %v4493_v31 = vld [vmem:[#allocation14 + $0x348] sm:$0xff]  ;;  %v7658_v1 = vcombine.high %v4492_v46, %v4496_v61 }
 0x3c2   :  { %5978 = vmatprep.subr.bf16.mxu0 %v7602_v51  ;;  %6064 = vmatprep.subr.bf16.mxu1 %v7604_v21  ;;  %v4497_v51 = vld [vmem:[#allocation14 + $0x368] sm:$0xff]  ;;  %v7657_v21 = vcombine.low %v4492_v46, %v4496_v61 }
 0x3c3   :  { %v7659_v63 = vcombine.low %v4493_v31, %v4497_v51  ;;  %v7660_v5 = vcombine.high %v4493_v31, %v4497_v51 }
 0x3c5   :  { %5979 = vmatpush1.bf16.msra.mxu0 %v7601_v9  ;;  %6065 = vmatpush1.bf16.msra.mxu1 %v7603_v11  ;;  %v4501_v9 = vld [vmem:[#allocation14 + $0x388] sm:$0xff]  ;;  %v7666_v11 = vcombine.high %v4500_v2, %v4504_v8 }
 0x3c6   :  { %5980 = vmatprep.subr.bf16.mxu0 %v7610_v12  ;;  %6066 = vmatprep.subr.bf16.mxu1 %v7612_v13  ;;  %v4505_v12 = vld [vmem:[#allocation14 + $0x3a8] sm:$0xff]  ;;  %v7665_v13 = vcombine.low %v4500_v2, %v4504_v8 }
 0x3c7   :  { %v7667_v14 = vcombine.low %v4501_v9, %v4505_v12  ;;  %v7668_v15 = vcombine.high %v4501_v9, %v4505_v12 }
 0x3c9   :  { %5981 = vmatpush1.bf16.msra.mxu0 %v7609_v18  ;;  %6067 = vmatpush1.bf16.msra.mxu1 %v7611_v19  ;;  %v4509_v18 = vld [vmem:[#allocation14 + $0x3c8] sm:$0xff]  ;;  %v7674_v19 = vcombine.high %v4508_v16, %v4512_v17 }
 0x3ca   :  { %5982 = vmatprep.subr.bf16.mxu0 %v7618_v23  ;;  %6068 = vmatprep.subr.bf16.mxu1 %v7620_v24  ;;  %v4513_v23 = vld [vmem:[#allocation14 + $0x3e8] sm:$0xff]  ;;  %v7673_v24 = vcombine.low %v4508_v16, %v4512_v17  ;;  %v4528_v16 = vld [vmem:[#allocation14 + $0x460] sm:$0xff] }
 0x3cb   :  { %v7675_v25 = vcombine.low %v4509_v18, %v4513_v23  ;;  %v7676_v26 = vcombine.high %v4509_v18, %v4513_v23  ;;  %v4525_v17 = vld [vmem:[#allocation14 + $0x448] sm:$0xff] }
 0x3cc   :  { %v4529_v18 = vld [vmem:[#allocation14 + $0x468] sm:$0xff] }
 0x3cd   :  { %5983 = vmatpush1.bf16.msra.mxu0 %v7617_v30  ;;  %6069 = vmatpush1.bf16.msra.mxu1 %v7619_v32  ;;  %v9612_v30 = vld [vmem:[#allocation14 + $0x408] sm:$0xff]  ;;  %v7682_v32 = vcombine.high %v9608_v27, %v9610_v28 }
 0x3ce   :  { %5984 = vmatprep.subr.bf16.mxu0 %v7626_v33  ;;  %6070 = vmatprep.subr.bf16.mxu1 %v7628_v62  ;;  %v4521_v33 = vld [vmem:[#allocation14 + $0x428] sm:$0xff]  ;;  %v7681_v62 = vcombine.low %v9608_v27, %v9610_v28  ;;  %v4536_v27 = vld [vmem:[#allocation14 + $0x4a0] sm:$0xff] }
 0x3cf   :  { %v7683_v34 = vcombine.low %v9612_v30, %v4521_v33  ;;  %v7684_v60 = vcombine.high %v9612_v30, %v4521_v33  ;;  %v4533_v28 = vld [vmem:[#allocation14 + $0x488] sm:$0xff]  ;;  %v7691_v33 = vcombine.low %v4525_v17, %v4529_v18 }
 0x3d0   :  { %v4537_v30 = vld [vmem:[#allocation14 + $0x4a8] sm:$0xff] }
 0x3d1   :  { %5985 = vmatpush1.bf16.msra.mxu0 %v7625_v35  ;;  %6071 = vmatpush1.bf16.msra.mxu1 %v7627_v36  ;;  %v3301_v35 = vrot.slane %v3288_v29, %v9511_v20  ;;  %v3297_v36 = vrot.slane %v3288_v29, %v9504_v6 }
 0x3d2   :  { %5986 = vmatprep.subr.bf16.mxu0 %v7634_v38  ;;  %6072 = vmatprep.subr.bf16.mxu1 %v7636_v39  ;;  %v3305_v38 = vrot.slane %v3288_v29, %v9514_v22  ;;  %v7700_v29 = vcombine.high %v4533_v28, %v4537_v30 }
 0x3d5   :  { %5987 = vmatpush1.bf16.msra.mxu0 %v7633_v45  ;;  %6073 = vmatpush1.bf16.msra.mxu1 %v7635_v47 }
 0x3d6   :  { %5988 = vmatprep.subr.bf16.mxu0 %v7642_v42  ;;  %6074 = vmatprep.subr.bf16.mxu1 %v7644_v48 }
 0x3d9   :  { %5989 = vmatpush1.bf16.msra.mxu0 %v7641_v55  ;;  %6075 = vmatpush1.bf16.msra.mxu1 %v7643_v0 }
 0x3da   :  { %5990 = vmatprep.subr.bf16.mxu0 %v7650_v56  ;;  %6076 = vmatprep.subr.bf16.mxu1 %v7652_v57 }
 0x3dd   :  { %5991 = vmatpush1.bf16.msra.mxu0 %v7649_v58  ;;  %6077 = vmatpush1.bf16.msra.mxu1 %v7651_v59 }
 0x3de   :  { %5992 = vmatprep.subr.bf16.mxu0 %v7658_v1  ;;  %6078 = vmatprep.subr.bf16.mxu1 %v7660_v5 }
 0x3e1   :  { %5993 = vmatpush1.bf16.msra.mxu0 %v7657_v21  ;;  %6079 = vmatpush1.bf16.msra.mxu1 %v7659_v63 }
 0x3e2   :  { %5994 = vmatprep.subr.bf16.mxu0 %v7666_v11  ;;  %6080 = vmatprep.subr.bf16.mxu1 %v7668_v15 }
 0x3e5   :  { %5995 = vmatpush1.bf16.msra.mxu0 %v7665_v13  ;;  %6081 = vmatpush1.bf16.msra.mxu1 %v7667_v14  ;;  %v4524_v13 = vld [vmem:[#allocation14 + $0x440] sm:$0xff] }
 0x3e6   :  { %5996 = vmatprep.subr.bf16.mxu0 %v7674_v19  ;;  %6082 = vmatprep.subr.bf16.mxu1 %v7676_v26  ;;  %v7692_v26 = vcombine.high %v4525_v17, %v4529_v18  ;;  %v4580_v17 = vld [vmem:[#allocation14 + $0x600] sm:$0xff] }
 0x3e7   :  { %v4584_v18 = vld [vmem:[#allocation14 + $0x620] sm:$0xff] }
 0x3e9   :  { %5997 = vmatpush1.bf16.msra.mxu0 %v7673_v24  ;;  %6083 = vmatpush1.bf16.msra.mxu1 %v7675_v25  ;;  %v4532_v24 = vld [vmem:[#allocation14 + $0x480] sm:$0xff]  ;;  %v7690_v25 = vcombine.high %v4524_v13, %v4528_v16 }
 0x3ea   :  { %6009 = vmatprep.subr.bf16.mxu0 %v7682_v32  ;;  %6095 = vmatprep.subr.bf16.mxu1 %v7684_v60  ;;  %v7689_v32 = vcombine.low %v4524_v13, %v4528_v16  ;;  %v7698_v60 = vcombine.high %v4532_v24, %v4536_v27 }
 0x47f   :  { %v4230_v39 = vpop.f32.mrb[20].mxu0  ;;  %v4359_v40 = vpop.f32.mrb[20].mxu1 }
 0x480   :  { %v8094_v41 = vadd.f32 %v4230_v39, %v3293_v53  ;;  %v8098_v43 = vadd.f32 %v4359_v40, %v3301_v35  ;;  %v4232_v44 = vpop.f32.mrb[21].mxu0  ;;  %v4361_v45 = vpop.f32.mrb[21].mxu1  ;;  %v7697_v39 = vcombine.low %v4532_v24, %v4536_v27  ;;  %v7699_v40 = vcombine.low %v4533_v28, %v4537_v30  ;;  %v4581_v24 = vld [vmem:[#allocation14 + $0x608] sm:$0xff] }
 0x481   :  { %v8095_v47 = vadd.f32 %v4232_v44, %v3297_v36  ;;  %v8099_v42 = vadd.f32 %v4361_v45, %v3305_v38  ;;  %v4234_v48 = vpop.f32.mrb[22].mxu0  ;;  %v4363_v49 = vpop.f32.mrb[22].mxu1  ;;  %v4549_v44 = vld [vmem:[#allocation14 + $0x508] sm:$0xff]  ;;  %v7746_v28 = vcombine.high %v4580_v17, %v4584_v18 }
 0x482   :  { %v4368_v50 = vmul.f32 0.01, %v8094_v41  ;;  %v4370_v52 = vmul.f32 0.01, %v8098_v43  ;;  %v8096_v54 = vadd.f32 %v4234_v48, %v3293_v53  ;;  %v8100_v55 = vadd.f32 %v4363_v49, %v3301_v35  ;;  %v4236_v0 = vpop.f32.mrb[23].mxu0  ;;  %v4365_v56 = vpop.f32.mrb[23].mxu1 }
 0x483   :  { %v4369_v57 = vmul.f32 0.01, %v8095_v47  ;;  %v4371_v58 = vmul.f32 0.01, %v8099_v42  ;;  %v8097_v59 = vadd.f32 %v4236_v0, %v3297_v36  ;;  %v8101_v46 = vadd.f32 %v4365_v56, %v3305_v38  ;;  %v4540_v53 = vld [vmem:[#allocation14 + $0x4c0] sm:$0xff]  ;;  %v4541_v36 = vld [vmem:[#allocation14 + $0x4c8] sm:$0xff] }
 0x484   :  { %v4372_v61 = vmul.f32 0.01, %v8096_v54  ;;  %v4374_v31 = vmul.f32 0.01, %v8100_v55  ;;  %v4376_v21 = vmax.f32 %v8094_v41, %v4368_v50  ;;  %v4378_v63 = vmax.f32 %v8098_v43, %v4370_v52  ;;  %v4544_v35 = vld [vmem:[#allocation14 + $0x4e0] sm:$0xff]  ;;  %v4545_v38 = vld [vmem:[#allocation14 + $0x4e8] sm:$0xff] }
 0x485   :  { %v4373_v1 = vmul.f32 0.01, %v8097_v59  ;;  %v4375_v51 = vmul.f32 0.01, %v8101_v46  ;;  %v4377_v8 = vmax.f32 %v8095_v47, %v4369_v57  ;;  %v4379_v9 = vmax.f32 %v8099_v42, %v4371_v58  ;;  %v4548_v41 = vld [vmem:[#allocation14 + $0x500] sm:$0xff]  ;;  %v4553_v45 = vld [vmem:[#allocation14 + $0x528] sm:$0xff] }
 0x486   :  { %v4380_v5 = vmax.f32 %v8096_v54, %v4372_v61  ;;  %v4382_v2 = vmax.f32 %v8100_v55, %v4374_v31  ;;  %v4552_v43 = vld [vmem:[#allocation14 + $0x520] sm:$0xff]  ;;  %v7705_v47 = vcombine.low %v4540_v53, %v4544_v35  ;;  %v7707_v42 = vcombine.low %v4541_v36, %v4545_v38  ;;  %v4557_v54 = vld [vmem:[#allocation14 + $0x548] sm:$0xff] }
 0x487   :  { %v4381_v11 = vmax.f32 %v8097_v59, %v4373_v1  ;;  %v4383_v12 = vmax.f32 %v8101_v46, %v4375_v51  ;;  %v7714_v48 = vcombine.high %v4548_v41, %v4552_v43  ;;  %v7716_v49 = vcombine.high %v4549_v44, %v4553_v45  ;;  %v4556_v50 = vld [vmem:[#allocation14 + $0x540] sm:$0xff]  ;;  %v4561_v55 = vld [vmem:[#allocation14 + $0x568] sm:$0xff] }
 0x488   :  { %v9624_v14 = vpack.c.bf16 %v4380_v5, %v4376_v21  ;;  %v9626_v15 = vpack.c.bf16 %v4382_v2, %v4378_v63  ;;  %v4560_v52 = vld [vmem:[#allocation14 + $0x560] sm:$0xff]  ;;  %v7713_v0 = vcombine.low %v4548_v41, %v4552_v43  ;;  %v7715_v56 = vcombine.low %v4549_v44, %v4553_v45  ;;  %v4565_v61 = vld [vmem:[#allocation14 + $0x588] sm:$0xff] }
 0x489   :  { %v9628_v19 = vpack.c.bf16 %v4381_v11, %v4377_v8  ;;  %v9630_v23 = vpack.c.bf16 %v4383_v12, %v4379_v9  ;;  %v7722_v57 = vcombine.high %v4556_v50, %v4560_v52  ;;  %v7724_v58 = vcombine.high %v4557_v54, %v4561_v55  ;;  %v4564_v59 = vld [vmem:[#allocation14 + $0x580] sm:$0xff]  ;;  %v4569_v31 = vld [vmem:[#allocation14 + $0x5a8] sm:$0xff] }
 0x48a   :  { %v4568_v46 = vld [vmem:[#allocation14 + $0x5a0] sm:$0xff]  ;;  %v7721_v1 = vcombine.low %v4556_v50, %v4560_v52  ;;  %v7723_v51 = vcombine.low %v4557_v54, %v4561_v55  ;;  %v7732_v63 = vcombine.high %v4565_v61, %v4569_v31  ;;  %v4573_v8 = vld [vmem:[#allocation14 + $0x5c8] sm:$0xff]  ;;  %v7731_v12 = vcombine.low %v4565_v61, %v4569_v31 }
 0x48b   :  { %5998 = vmatprep.mubr.bf16.mxu0 %v9628_v19  ;;  %6084 = vmatprep.mubr.bf16.mxu1 %v9628_v19  ;;  %v7730_v21 = vcombine.high %v4564_v59, %v4568_v46  ;;  %v4572_v5 = vld [vmem:[#allocation14 + $0x5c0] sm:$0xff]  ;;  %v4577_v9 = vld [vmem:[#allocation14 + $0x5e8] sm:$0xff]  ;;  %v7729_v11 = vcombine.low %v4564_v59, %v4568_v46 }
 0x48c   :  { %5999 = vmatmul.mubr.bf16.vlgmr.msra.gmra.mrb[24].mxu0 %v9624_v14  ;;  %6085 = vmatmul.mubr.bf16.vlgmr.msra.gmra.mrb[24].mxu1 %v9624_v14  ;;  %v4576_v2 = vld [vmem:[#allocation14 + $0x5e0] sm:$0xff]  ;;  %v7740_v16 = vcombine.high %v4573_v8, %v4577_v9  ;;  %v7739_v27 = vcombine.low %v4573_v8, %v4577_v9 }
 0x48d   :  { %6010 = vmatpush1.bf16.msra.mxu0 %v7681_v62  ;;  %6096 = vmatpush1.bf16.msra.mxu1 %v7683_v34  ;;  %v7706_v62 = vcombine.high %v4540_v53, %v4544_v35  ;;  %v7708_v34 = vcombine.high %v4541_v36, %v4545_v38  ;;  %v7738_v13 = vcombine.high %v4572_v5, %v4576_v2 }
 0x48e   :  { %6041 = vmatprep.mubr.bf16.mxu0 %v9630_v23  ;;  %6127 = vmatprep.mubr.bf16.mxu1 %v9630_v23  ;;  %v7745_v53 = vcombine.low %v4580_v17, %v4584_v18 }
 0x48f   :  { %6011 = vmatprep.subr.bf16.mxu0 %v7690_v25  ;;  %6097 = vmatprep.subr.bf16.mxu1 %v7692_v26  ;;  %v4585_v25 = vld [vmem:[#allocation14 + $0x628] sm:$0xff]  ;;  %v7737_v26 = vcombine.low %v4572_v5, %v4576_v2 }
 0x490   :  { %v7748_v30 = vcombine.high %v4581_v24, %v4585_v25  ;;  %v7747_v35 = vcombine.low %v4581_v24, %v4585_v25 }
 0x491   :  { %6012 = vmatpush1.bf16.msra.mxu0 %v7689_v32  ;;  %6098 = vmatpush1.bf16.msra.mxu1 %v7691_v33  ;;  %v4588_v32 = vld [vmem:[#allocation14 + $0x640] sm:$0xff] }
 0x492   :  { %6013 = vmatprep.subr.bf16.mxu0 %v7698_v60  ;;  %6099 = vmatprep.subr.bf16.mxu1 %v7700_v29  ;;  %v4592_v33 = vld [vmem:[#allocation14 + $0x660] sm:$0xff]  ;;  %v4589_v60 = vld [vmem:[#allocation14 + $0x648] sm:$0xff] }
 0x493   :  { %v4593_v29 = vld [vmem:[#allocation14 + $0x668] sm:$0xff]  ;;  %v7754_v36 = vcombine.high %v4588_v32, %v4592_v33  ;;  %v7753_v41 = vcombine.low %v4588_v32, %v4592_v33 }
 0x494   :  { %v7756_v38 = vcombine.high %v4589_v60, %v4593_v29  ;;  %v7755_v43 = vcombine.low %v4589_v60, %v4593_v29 }
 0x495   :  { %6014 = vmatpush1.bf16.msra.mxu0 %v7697_v39  ;;  %6100 = vmatpush1.bf16.msra.mxu1 %v7699_v40  ;;  %v4596_v39 = vld [vmem:[#allocation14 + $0x680] sm:$0xff] }
 0x496   :  { %6015 = vmatprep.subr.bf16.mxu0 %v7706_v62  ;;  %6101 = vmatprep.subr.bf16.mxu1 %v7708_v34  ;;  %v4600_v40 = vld [vmem:[#allocation14 + $0x6a0] sm:$0xff]  ;;  %v4597_v62 = vld [vmem:[#allocation14 + $0x688] sm:$0xff] }
 0x497   :  { %v4601_v34 = vld [vmem:[#allocation14 + $0x6a8] sm:$0xff]  ;;  %v7762_v44 = vcombine.high %v4596_v39, %v4600_v40  ;;  %v7761_v50 = vcombine.low %v4596_v39, %v4600_v40 }
 0x498   :  { %v7764_v45 = vcombine.high %v4597_v62, %v4601_v34  ;;  %v7763_v52 = vcombine.low %v4597_v62, %v4601_v34 }
 0x499   :  { %6016 = vmatpush1.bf16.msra.mxu0 %v7705_v47  ;;  %6102 = vmatpush1.bf16.msra.mxu1 %v7707_v42  ;;  %v4604_v47 = vld [vmem:[#allocation14 + $0x6c0] sm:$0xff] }
 0x49a   :  { %6017 = vmatprep.subr.bf16.mxu0 %v7714_v48  ;;  %6103 = vmatprep.subr.bf16.mxu1 %v7716_v49  ;;  %v4608_v42 = vld [vmem:[#allocation14 + $0x6e0] sm:$0xff]  ;;  %v4605_v48 = vld [vmem:[#allocation14 + $0x6c8] sm:$0xff] }
 0x49b   :  { %v4609_v49 = vld [vmem:[#allocation14 + $0x6e8] sm:$0xff]  ;;  %v7770_v54 = vcombine.high %v4604_v47, %v4608_v42  ;;  %v7769_v59 = vcombine.low %v4604_v47, %v4608_v42 }
 0x49c   :  { %v7772_v55 = vcombine.high %v4605_v48, %v4609_v49  ;;  %v7771_v46 = vcombine.low %v4605_v48, %v4609_v49 }
 0x49d   :  { %6018 = vmatpush1.bf16.msra.mxu0 %v7713_v0  ;;  %6104 = vmatpush1.bf16.msra.mxu1 %v7715_v56  ;;  %v4612_v0 = vld [vmem:[#allocation14 + $0x700] sm:$0xff] }
 0x49e   :  { %6019 = vmatprep.subr.bf16.mxu0 %v7722_v57  ;;  %6105 = vmatprep.subr.bf16.mxu1 %v7724_v58  ;;  %v4616_v56 = vld [vmem:[#allocation14 + $0x720] sm:$0xff]  ;;  %v4613_v57 = vld [vmem:[#allocation14 + $0x708] sm:$0xff] }
 0x49f   :  { %v4617_v58 = vld [vmem:[#allocation14 + $0x728] sm:$0xff]  ;;  %v7778_v61 = vcombine.high %v4612_v0, %v4616_v56  ;;  %v7777_v5 = vcombine.low %v4612_v0, %v4616_v56 }
 0x4a0   :  { %v7780_v31 = vcombine.high %v4613_v57, %v4617_v58  ;;  %v7779_v2 = vcombine.low %v4613_v57, %v4617_v58 }
 0x4a1   :  { %6020 = vmatpush1.bf16.msra.mxu0 %v7721_v1  ;;  %6106 = vmatpush1.bf16.msra.mxu1 %v7723_v51  ;;  %v4620_v1 = vld [vmem:[#allocation14 + $0x740] sm:$0xff] }
 0x4a2   :  { %6021 = vmatprep.subr.bf16.mxu0 %v7730_v21  ;;  %6107 = vmatprep.subr.bf16.mxu1 %v7732_v63  ;;  %v4624_v51 = vld [vmem:[#allocation14 + $0x760] sm:$0xff]  ;;  %v4621_v21 = vld [vmem:[#allocation14 + $0x748] sm:$0xff] }
 0x4a3   :  { %v4625_v63 = vld [vmem:[#allocation14 + $0x768] sm:$0xff]  ;;  %v7786_v8 = vcombine.high %v4620_v1, %v4624_v51  ;;  %v7785_v17 = vcombine.low %v4620_v1, %v4624_v51 }
 0x4a4   :  { %v7788_v9 = vcombine.high %v4621_v21, %v4625_v63  ;;  %v7787_v18 = vcombine.low %v4621_v21, %v4625_v63 }
 0x4a5   :  { %6022 = vmatpush1.bf16.msra.mxu0 %v7729_v11  ;;  %6108 = vmatpush1.bf16.msra.mxu1 %v7731_v12  ;;  %v4628_v11 = vld [vmem:[#allocation14 + $0x780] sm:$0xff] }
 0x4a6   :  { %6023 = vmatprep.subr.bf16.mxu0 %v7738_v13  ;;  %6109 = vmatprep.subr.bf16.mxu1 %v7740_v16  ;;  %v4632_v12 = vld [vmem:[#allocation14 + $0x7a0] sm:$0xff]  ;;  %v4629_v13 = vld [vmem:[#allocation14 + $0x788] sm:$0xff] }
 0x4a7   :  { %v4633_v16 = vld [vmem:[#allocation14 + $0x7a8] sm:$0xff]  ;;  %v7794_v24 = vcombine.high %v4628_v11, %v4632_v12  ;;  %v7793_v32 = vcombine.low %v4628_v11, %v4632_v12 }
 0x4a8   :  { %v7796_v25 = vcombine.high %v4629_v13, %v4633_v16  ;;  %v7795_v33 = vcombine.low %v4629_v13, %v4633_v16  ;;  %v4430_v16 = vld [vmem:[#allocation14 + $0x150] sm:$0xff] }
 0x4a9   :  { %6024 = vmatpush1.bf16.msra.mxu0 %v7737_v26  ;;  %6110 = vmatpush1.bf16.msra.mxu1 %v7739_v27  ;;  %v4636_v26 = vld [vmem:[#allocation14 + $0x7c0] sm:$0xff] }
 0x4aa   :  { %6025 = vmatprep.subr.bf16.mxu0 %v7746_v28  ;;  %6111 = vmatprep.subr.bf16.mxu1 %v7748_v30  ;;  %v4640_v27 = vld [vmem:[#allocation14 + $0x7e0] sm:$0xff]  ;;  %v4637_v28 = vld [vmem:[#allocation14 + $0x7c8] sm:$0xff] }
 0x4ab   :  { %v4641_v30 = vld [vmem:[#allocation14 + $0x7e8] sm:$0xff]  ;;  %v7802_v60 = vcombine.high %v4636_v26, %v4640_v27  ;;  %v7801_v39 = vcombine.low %v4636_v26, %v4640_v27 }
 0x4ac   :  { %v7804_v29 = vcombine.high %v4637_v28, %v4641_v30  ;;  %v7803_v40 = vcombine.low %v4637_v28, %v4641_v30  ;;  %v4438_v30 = vld [vmem:[#allocation14 + $0x190] sm:$0xff] }
 0x4ad   :  { %6026 = vmatpush1.bf16.msra.mxu0 %v7745_v53  ;;  %6112 = vmatpush1.bf16.msra.mxu1 %v7747_v35  ;;  %v4390_v53 = vld [vmem:[#allocation14 + $0x10] sm:$0xff] }
 0x4ae   :  { %6027 = vmatprep.subr.bf16.mxu0 %v7754_v36  ;;  %6113 = vmatprep.subr.bf16.mxu1 %v7756_v38  ;;  %v4394_v35 = vld [vmem:[#allocation14 + $0x30] sm:$0xff]  ;;  %v4391_v36 = vld [vmem:[#allocation14 + $0x18] sm:$0xff] }
 0x4af   :  { %v4395_v38 = vld [vmem:[#allocation14 + $0x38] sm:$0xff]  ;;  %v7558_v62 = vcombine.high %v4390_v53, %v4394_v35  ;;  %v7557_v47 = vcombine.low %v4390_v53, %v4394_v35 }
 0x4b0   :  { %v7560_v34 = vcombine.high %v4391_v36, %v4395_v38  ;;  %v7559_v42 = vcombine.low %v4391_v36, %v4395_v38  ;;  %v4446_v38 = vld [vmem:[#allocation14 + $0x1d0] sm:$0xff] }
 0x4b1   :  { %6028 = vmatpush1.bf16.msra.mxu0 %v7753_v41  ;;  %6114 = vmatpush1.bf16.msra.mxu1 %v7755_v43  ;;  %v4398_v41 = vld [vmem:[#allocation14 + $0x50] sm:$0xff] }
 0x4b2   :  { %6029 = vmatprep.subr.bf16.mxu0 %v7762_v44  ;;  %6115 = vmatprep.subr.bf16.mxu1 %v7764_v45  ;;  %v4402_v43 = vld [vmem:[#allocation14 + $0x70] sm:$0xff]  ;;  %v4399_v44 = vld [vmem:[#allocation14 + $0x58] sm:$0xff] }
 0x4b3   :  { %v4403_v45 = vld [vmem:[#allocation14 + $0x78] sm:$0xff]  ;;  %v7566_v48 = vcombine.high %v4398_v41, %v4402_v43  ;;  %v7565_v0 = vcombine.low %v4398_v41, %v4402_v43 }
 0x4b4   :  { %v7568_v49 = vcombine.high %v4399_v44, %v4403_v45  ;;  %v7567_v56 = vcombine.low %v4399_v44, %v4403_v45  ;;  %v4454_v45 = vld [vmem:[#allocation14 + $0x210] sm:$0xff] }
 0x4b5   :  { %6030 = vmatpush1.bf16.msra.mxu0 %v7761_v50  ;;  %6116 = vmatpush1.bf16.msra.mxu1 %v7763_v52  ;;  %v4406_v50 = vld [vmem:[#allocation14 + $0x90] sm:$0xff] }
 0x4b6   :  { %6031 = vmatprep.subr.bf16.mxu0 %v7770_v54  ;;  %6117 = vmatprep.subr.bf16.mxu1 %v7772_v55  ;;  %v4410_v52 = vld [vmem:[#allocation14 + $0xb0] sm:$0xff]  ;;  %v4407_v54 = vld [vmem:[#allocation14 + $0x98] sm:$0xff] }
 0x4b7   :  { %v4411_v55 = vld [vmem:[#allocation14 + $0xb8] sm:$0xff]  ;;  %v7574_v57 = vcombine.high %v4406_v50, %v4410_v52  ;;  %v7573_v1 = vcombine.low %v4406_v50, %v4410_v52 }
 0x4b8   :  { %v7576_v58 = vcombine.high %v4407_v54, %v4411_v55  ;;  %v7575_v51 = vcombine.low %v4407_v54, %v4411_v55  ;;  %v4462_v55 = vld [vmem:[#allocation14 + $0x250] sm:$0xff] }
 0x4b9   :  { %6032 = vmatpush1.bf16.msra.mxu0 %v7769_v59  ;;  %6118 = vmatpush1.bf16.msra.mxu1 %v7771_v46  ;;  %v4414_v59 = vld [vmem:[#allocation14 + $0xd0] sm:$0xff] }
 0x4ba   :  { %6033 = vmatprep.subr.bf16.mxu0 %v7778_v61  ;;  %6119 = vmatprep.subr.bf16.mxu1 %v7780_v31  ;;  %v4418_v46 = vld [vmem:[#allocation14 + $0xf0] sm:$0xff]  ;;  %v4415_v61 = vld [vmem:[#allocation14 + $0xd8] sm:$0xff] }
 0x4bb   :  { %v4419_v31 = vld [vmem:[#allocation14 + $0xf8] sm:$0xff]  ;;  %v7582_v21 = vcombine.high %v4414_v59, %v4418_v46 }
 0x4bc   :  { %v7584_v63 = vcombine.high %v4415_v61, %v4419_v31  ;;  %v7583_v11 = vcombine.low %v4415_v61, %v4419_v31  ;;  %v4470_v31 = vld [vmem:[#allocation14 + $0x290] sm:$0xff] }
 0x4bd   :  { %6034 = vmatpush1.bf16.msra.mxu0 %v7777_v5  ;;  %6120 = vmatpush1.bf16.msra.mxu1 %v7779_v2  ;;  %v4422_v5 = vld [vmem:[#allocation14 + $0x110] sm:$0xff] }
 0x4be   :  { %6035 = vmatprep.subr.bf16.mxu0 %v7786_v8  ;;  %6121 = vmatprep.subr.bf16.mxu1 %v7788_v9  ;;  %v4426_v2 = vld [vmem:[#allocation14 + $0x130] sm:$0xff]  ;;  %v4427_v8 = vld [vmem:[#allocation14 + $0x138] sm:$0xff]  ;;  %v7581_v9 = vcombine.low %v4414_v59, %v4418_v46 }
 0x4bf   :  { %v7590_v12 = vcombine.high %v4422_v5, %v4426_v2 }
 0x4c1   :  { %6036 = vmatpush1.bf16.msra.mxu0 %v7785_v17  ;;  %6122 = vmatpush1.bf16.msra.mxu1 %v7787_v18  ;;  %v4434_v17 = vld [vmem:[#allocation14 + $0x170] sm:$0xff]  ;;  %v4431_v18 = vld [vmem:[#allocation14 + $0x158] sm:$0xff] }
 0x4c2   :  { %6037 = vmatprep.subr.bf16.mxu0 %v7794_v24  ;;  %6123 = vmatprep.subr.bf16.mxu1 %v7796_v25  ;;  %v4435_v24 = vld [vmem:[#allocation14 + $0x178] sm:$0xff]  ;;  %v7589_v25 = vcombine.low %v4422_v5, %v4426_v2  ;;  %v7598_v27 = vcombine.high %v4430_v16, %v4434_v17 }
 0x4c3   :  { %v7600_v28 = vcombine.high %v4431_v18, %v4435_v24  ;;  %v7599_v53 = vcombine.low %v4431_v18, %v4435_v24  ;;  %v4486_v24 = vld [vmem:[#allocation14 + $0x310] sm:$0xff] }
 0x4c5   :  { %6038 = vmatpush1.bf16.msra.mxu0 %v7793_v32  ;;  %6124 = vmatpush1.bf16.msra.mxu1 %v7795_v33  ;;  %v4442_v32 = vld [vmem:[#allocation14 + $0x1b0] sm:$0xff]  ;;  %v4439_v33 = vld [vmem:[#allocation14 + $0x198] sm:$0xff] }
 0x4c6   :  { %6039 = vmatprep.subr.bf16.mxu0 %v7802_v60  ;;  %6125 = vmatprep.subr.bf16.mxu1 %v7804_v29  ;;  %v4443_v60 = vld [vmem:[#allocation14 + $0x1b8] sm:$0xff]  ;;  %v7597_v29 = vcombine.low %v4430_v16, %v4434_v17  ;;  %v7606_v35 = vcombine.high %v4438_v30, %v4442_v32 }
 0x4c7   :  { %v7608_v36 = vcombine.high %v4439_v33, %v4443_v60  ;;  %v7607_v41 = vcombine.low %v4439_v33, %v4443_v60  ;;  %v4494_v60 = vld [vmem:[#allocation14 + $0x350] sm:$0xff] }
 0x4c9   :  { %6040 = vmatpush1.bf16.msra.mxu0 %v7801_v39  ;;  %6126 = vmatpush1.bf16.msra.mxu1 %v7803_v40  ;;  %v4450_v39 = vld [vmem:[#allocation14 + $0x1f0] sm:$0xff]  ;;  %v4447_v40 = vld [vmem:[#allocation14 + $0x1d8] sm:$0xff] }
 0x4ca   :  { %6138 = vmatprep.subr.bf16.mxu0 %v7558_v62  ;;  %6224 = vmatprep.subr.bf16.mxu1 %v7560_v34  ;;  %v4451_v62 = vld [vmem:[#allocation14 + $0x1f8] sm:$0xff]  ;;  %v7605_v34 = vcombine.low %v4438_v30, %v4442_v32  ;;  %v7614_v43 = vcombine.high %v4446_v38, %v4450_v39 }
 0x4cb   :  { %v7616_v44 = vcombine.high %v4447_v40, %v4451_v62  ;;  %v7615_v50 = vcombine.low %v4447_v40, %v4451_v62  ;;  %v4502_v62 = vld [vmem:[#allocation14 + $0x390] sm:$0xff] }
 0x4cc   :  { %6042 = vmatmul.mubr.bf16.vlgmr.msra.gmra.mrb[24].mxu0 %v9626_v15  ;;  %6128 = vmatmul.mubr.bf16.vlgmr.msra.gmra.mrb[24].mxu1 %v9626_v15 }
 0x4cd   :  { %6139 = vmatpush1.bf16.msra.mxu0 %v7557_v47  ;;  %6170 = vmatprep.mubr.bf16.mxu0 %v9628_v19  ;;  %v4458_v47 = vld [vmem:[#allocation14 + $0x230] sm:$0xff] }
 0x4ce   :  { %6225 = vmatpush1.bf16.msra.mxu1 %v7559_v42  ;;  %6256 = vmatprep.mubr.bf16.mxu1 %v9628_v19  ;;  %v4423_v19 = vld [vmem:[#allocation14 + $0x118] sm:$0xff]  ;;  %v7622_v52 = vcombine.high %v4454_v45, %v4458_v47 }
 0x4cf   :  { %6140 = vmatprep.subr.bf16.mxu0 %v7566_v48  ;;  %6226 = vmatprep.subr.bf16.mxu1 %v7568_v49  ;;  %v7592_v13 = vcombine.high %v4423_v19, %v4427_v8  ;;  %v7591_v26 = vcombine.low %v4423_v19, %v4427_v8  ;;  %v4455_v42 = vld [vmem:[#allocation14 + $0x218] sm:$0xff]  ;;  %v7613_v49 = vcombine.low %v4446_v38, %v4450_v39  ;;  %v4478_v8 = vld [vmem:[#allocation14 + $0x2d0] sm:$0xff] }
 0x4d0   :  { %v4459_v48 = vld [vmem:[#allocation14 + $0x238] sm:$0xff] }
 0x4d1   :  { %6141 = vmatpush1.bf16.msra.mxu0 %v7565_v0  ;;  %v7624_v54 = vcombine.high %v4455_v42, %v4459_v48  ;;  %v4466_v0 = vld [vmem:[#allocation14 + $0x270] sm:$0xff]  ;;  %v7623_v59 = vcombine.low %v4455_v42, %v4459_v48 }
 0x4d2   :  { %6227 = vmatpush1.bf16.msra.mxu1 %v7567_v56  ;;  %6142 = vmatprep.subr.bf16.mxu0 %v7574_v57  ;;  %v4463_v56 = vld [vmem:[#allocation14 + $0x258] sm:$0xff]  ;;  %v7630_v46 = vcombine.high %v4462_v55, %v4466_v0  ;;  %v4510_v48 = vld [vmem:[#allocation14 + $0x3d0] sm:$0xff] }
 0x4d3   :  { %6228 = vmatprep.subr.bf16.mxu1 %v7576_v58  ;;  %v4467_v57 = vld [vmem:[#allocation14 + $0x278] sm:$0xff]  ;;  %v7621_v58 = vcombine.low %v4454_v45, %v4458_v47 }
 0x4d4   :  { %v7632_v61 = vcombine.high %v4463_v56, %v4467_v57  ;;  %v7631_v5 = vcombine.low %v4463_v56, %v4467_v57  ;;  %v4518_v57 = vld [vmem:[#allocation14 + $0x410] sm:$0xff] }
 0x4d5   :  { %6143 = vmatpush1.bf16.msra.mxu0 %v7573_v1  ;;  %v4474_v1 = vld [vmem:[#allocation14 + $0x2b0] sm:$0xff] }
 0x4d6   :  { %6229 = vmatpush1.bf16.msra.mxu1 %v7575_v51  ;;  %6144 = vmatprep.subr.bf16.mxu0 %v7582_v21  ;;  %v4471_v51 = vld [vmem:[#allocation14 + $0x298] sm:$0xff]  ;;  %v7638_v2 = vcombine.high %v4470_v31, %v4474_v1 }
 0x4d7   :  { %6230 = vmatprep.subr.bf16.mxu1 %v7584_v63  ;;  %v4475_v21 = vld [vmem:[#allocation14 + $0x2b8] sm:$0xff]  ;;  %v7629_v63 = vcombine.low %v4462_v55, %v4466_v0 }
 0x4d8   :  { %v7640_v19 = vcombine.high %v4471_v51, %v4475_v21  ;;  %v7639_v16 = vcombine.low %v4471_v51, %v4475_v21  ;;  %v4526_v21 = vld [vmem:[#allocation14 + $0x450] sm:$0xff] }
 0x4d9   :  { %6145 = vmatpush1.bf16.msra.mxu0 %v7581_v9  ;;  %v4482_v9 = vld [vmem:[#allocation14 + $0x2f0] sm:$0xff] }
 0x4da   :  { %6231 = vmatpush1.bf16.msra.mxu1 %v7583_v11  ;;  %6146 = vmatprep.subr.bf16.mxu0 %v7590_v12  ;;  %v4479_v11 = vld [vmem:[#allocation14 + $0x2d8] sm:$0xff]  ;;  %v7646_v17 = vcombine.high %v4478_v8, %v4482_v9 }
 0x4db   :  { %6232 = vmatprep.subr.bf16.mxu1 %v7592_v13  ;;  %v4483_v12 = vld [vmem:[#allocation14 + $0x2f8] sm:$0xff]  ;;  %v7637_v13 = vcombine.low %v4470_v31, %v4474_v1 }
 0x4dc   :  { %v7648_v18 = vcombine.high %v4479_v11, %v4483_v12  ;;  %v7647_v30 = vcombine.low %v4479_v11, %v4483_v12  ;;  %v4534_v11 = vld [vmem:[#allocation14 + $0x490] sm:$0xff] }
 0x4dd   :  { %6147 = vmatpush1.bf16.msra.mxu0 %v7589_v25  ;;  %v4490_v25 = vld [vmem:[#allocation14 + $0x330] sm:$0xff] }
 0x4de   :  { %6233 = vmatpush1.bf16.msra.mxu1 %v7591_v26  ;;  %6148 = vmatprep.subr.bf16.mxu0 %v7598_v27  ;;  %v4487_v26 = vld [vmem:[#allocation14 + $0x318] sm:$0xff]  ;;  %v7654_v32 = vcombine.high %v4486_v24, %v4490_v25  ;;  %v4538_v12 = vld [vmem:[#allocation14 + $0x4b0] sm:$0xff] }
 0x4df   :  { %6234 = vmatprep.subr.bf16.mxu1 %v7600_v28  ;;  %v4491_v27 = vld [vmem:[#allocation14 + $0x338] sm:$0xff]  ;;  %v7645_v28 = vcombine.low %v4478_v8, %v4482_v9 }
 0x4e0   :  { %v7656_v33 = vcombine.high %v4487_v26, %v4491_v27  ;;  %v7655_v38 = vcombine.low %v4487_v26, %v4491_v27  ;;  %v4542_v27 = vld [vmem:[#allocation14 + $0x4d0] sm:$0xff] }
 0x4e1   :  { %6149 = vmatpush1.bf16.msra.mxu0 %v7597_v29  ;;  %v4498_v29 = vld [vmem:[#allocation14 + $0x370] sm:$0xff] }
 0x4e2   :  { %6235 = vmatpush1.bf16.msra.mxu1 %v7599_v53  ;;  %6150 = vmatprep.subr.bf16.mxu0 %v7606_v35  ;;  %v4495_v53 = vld [vmem:[#allocation14 + $0x358] sm:$0xff]  ;;  %v7662_v39 = vcombine.high %v4494_v60, %v4498_v29 }
 0x4e3   :  { %6236 = vmatprep.subr.bf16.mxu1 %v7608_v36  ;;  %v4499_v35 = vld [vmem:[#allocation14 + $0x378] sm:$0xff]  ;;  %v7653_v36 = vcombine.low %v4486_v24, %v4490_v25  ;;  %v7702_v25 = vcombine.high %v4534_v11, %v4538_v12 }
 0x4e4   :  { %v7664_v40 = vcombine.high %v4495_v53, %v4499_v35  ;;  %v7663_v45 = vcombine.low %v4495_v53, %v4499_v35  ;;  %v4550_v53 = vld [vmem:[#allocation14 + $0x510] sm:$0xff] }
 0x4e5   :  { %6151 = vmatpush1.bf16.msra.mxu0 %v7605_v34  ;;  %v4506_v34 = vld [vmem:[#allocation14 + $0x3b0] sm:$0xff] }
 0x4e6   :  { %6237 = vmatpush1.bf16.msra.mxu1 %v7607_v41  ;;  %6152 = vmatprep.subr.bf16.mxu0 %v7614_v43  ;;  %v4503_v41 = vld [vmem:[#allocation14 + $0x398] sm:$0xff]  ;;  %v7670_v47 = vcombine.high %v4502_v62, %v4506_v34  ;;  %v4554_v35 = vld [vmem:[#allocation14 + $0x530] sm:$0xff] }
 0x4e7   :  { %6238 = vmatprep.subr.bf16.mxu1 %v7616_v44  ;;  %v4507_v43 = vld [vmem:[#allocation14 + $0x3b8] sm:$0xff]  ;;  %v7661_v44 = vcombine.low %v4494_v60, %v4498_v29 }
 0x4e8   :  { %v7672_v42 = vcombine.high %v4503_v41, %v4507_v43  ;;  %v7671_v55 = vcombine.low %v4503_v41, %v4507_v43  ;;  %v4562_v41 = vld [vmem:[#allocation14 + $0x570] sm:$0xff]  ;;  %v4559_v43 = vld [vmem:[#allocation14 + $0x558] sm:$0xff] }
 0x4e9   :  { %6153 = vmatpush1.bf16.msra.mxu0 %v7613_v49  ;;  %v4514_v49 = vld [vmem:[#allocation14 + $0x3f0] sm:$0xff] }
 0x4ea   :  { %6239 = vmatpush1.bf16.msra.mxu1 %v7615_v50  ;;  %6154 = vmatprep.subr.bf16.mxu0 %v7622_v52  ;;  %v4511_v50 = vld [vmem:[#allocation14 + $0x3d8] sm:$0xff]  ;;  %v7678_v0 = vcombine.high %v4510_v48, %v4514_v49 }
 0x4eb   :  { %6240 = vmatprep.subr.bf16.mxu1 %v7624_v54  ;;  %v4515_v52 = vld [vmem:[#allocation14 + $0x3f8] sm:$0xff]  ;;  %v7669_v54 = vcombine.low %v4502_v62, %v4506_v34  ;;  %v4558_v34 = vld [vmem:[#allocation14 + $0x550] sm:$0xff] }
 0x4ec   :  { %v7680_v56 = vcombine.high %v4511_v50, %v4515_v52  ;;  %v7679_v31 = vcombine.low %v4511_v50, %v4515_v52  ;;  %v4570_v50 = vld [vmem:[#allocation14 + $0x5b0] sm:$0xff]  ;;  %v4567_v52 = vld [vmem:[#allocation14 + $0x598] sm:$0xff] }
 0x4ed   :  { %6155 = vmatpush1.bf16.msra.mxu0 %v7621_v58  ;;  %v4522_v58 = vld [vmem:[#allocation14 + $0x430] sm:$0xff] }
 0x4ee   :  { %6241 = vmatpush1.bf16.msra.mxu1 %v7623_v59  ;;  %6156 = vmatprep.subr.bf16.mxu0 %v7630_v46  ;;  %v4519_v59 = vld [vmem:[#allocation14 + $0x418] sm:$0xff]  ;;  %v7686_v1 = vcombine.high %v4518_v57, %v4522_v58 }
 0x4ef   :  { %6242 = vmatprep.subr.bf16.mxu1 %v7632_v61  ;;  %v4523_v46 = vld [vmem:[#allocation14 + $0x438] sm:$0xff]  ;;  %v7677_v61 = vcombine.low %v4510_v48, %v4514_v49  ;;  %v4566_v49 = vld [vmem:[#allocation14 + $0x590] sm:$0xff] }
 0x4f0   :  { %v7688_v51 = vcombine.high %v4519_v59, %v4523_v46  ;;  %v7687_v8 = vcombine.low %v4519_v59, %v4523_v46  ;;  %v4578_v59 = vld [vmem:[#allocation14 + $0x5f0] sm:$0xff]  ;;  %v4575_v46 = vld [vmem:[#allocation14 + $0x5d8] sm:$0xff] }
 0x4f1   :  { %6157 = vmatpush1.bf16.msra.mxu0 %v7629_v63  ;;  %v4530_v63 = vld [vmem:[#allocation14 + $0x470] sm:$0xff] }
 0x4f2   :  { %6243 = vmatpush1.bf16.msra.mxu1 %v7631_v5  ;;  %6158 = vmatprep.subr.bf16.mxu0 %v7638_v2  ;;  %v7685_v5 = vcombine.low %v4518_v57, %v4522_v58  ;;  %v4527_v2 = vld [vmem:[#allocation14 + $0x458] sm:$0xff]  ;;  %v7694_v9 = vcombine.high %v4526_v21, %v4530_v63  ;;  %v4574_v58 = vld [vmem:[#allocation14 + $0x5d0] sm:$0xff] }
 0x4f3   :  { %6244 = vmatprep.subr.bf16.mxu1 %v7640_v19  ;;  %v4531_v19 = vld [vmem:[#allocation14 + $0x478] sm:$0xff] }
 0x4f4   :  { %v7695_v24 = vcombine.low %v4527_v2, %v4531_v19 }
 0x4f5   :  { %6159 = vmatpush1.bf16.msra.mxu0 %v7637_v13  ;;  %v7696_v13 = vcombine.high %v4527_v2, %v4531_v19  ;;  %v4583_v2 = vld [vmem:[#allocation14 + $0x618] sm:$0xff] }
 0x4f6   :  { %6245 = vmatpush1.bf16.msra.mxu1 %v7639_v16  ;;  %6160 = vmatprep.subr.bf16.mxu0 %v7646_v17  ;;  %v4535_v16 = vld [vmem:[#allocation14 + $0x498] sm:$0xff] }
 0x4f7   :  { %6246 = vmatprep.subr.bf16.mxu1 %v7648_v18  ;;  %v4539_v17 = vld [vmem:[#allocation14 + $0x4b8] sm:$0xff]  ;;  %v7693_v18 = vcombine.low %v4526_v21, %v4530_v63  ;;  %v4582_v63 = vld [vmem:[#allocation14 + $0x610] sm:$0xff] }
 0x4f8   :  { %v7704_v26 = vcombine.high %v4535_v16, %v4539_v17  ;;  %v4587_v19 = vld [vmem:[#allocation14 + $0x638] sm:$0xff] }
 0x4f9   :  { %6161 = vmatpush1.bf16.msra.mxu0 %v7645_v28  ;;  %v4546_v28 = vld [vmem:[#allocation14 + $0x4f0] sm:$0xff] }
 0x4fa   :  { %6247 = vmatpush1.bf16.msra.mxu1 %v7647_v30  ;;  %6162 = vmatprep.subr.bf16.mxu0 %v7654_v32  ;;  %v4543_v30 = vld [vmem:[#allocation14 + $0x4d8] sm:$0xff]  ;;  %v7710_v60 = vcombine.high %v4542_v27, %v4546_v28 }
 0x4fb   :  { %6248 = vmatprep.subr.bf16.mxu1 %v7656_v33  ;;  %v4547_v32 = vld [vmem:[#allocation14 + $0x4f8] sm:$0xff]  ;;  %v7701_v33 = vcombine.low %v4534_v11, %v4538_v12  ;;  %v7752_v12 = vcombine.high %v4583_v2, %v4587_v19 }
 0x4fc   :  { %v7712_v29 = vcombine.high %v4543_v30, %v4547_v32 }
 0x4fd   :  { %6163 = vmatpush1.bf16.msra.mxu0 %v7653_v36  ;;  %v4551_v36 = vld [vmem:[#allocation14 + $0x518] sm:$0xff] }
 0x4fe   :  { %6249 = vmatpush1.bf16.msra.mxu1 %v7655_v38  ;;  %6164 = vmatprep.subr.bf16.mxu0 %v7662_v39  ;;  %v4555_v38 = vld [vmem:[#allocation14 + $0x538] sm:$0xff]  ;;  %v7711_v39 = vcombine.low %v4543_v30, %v4547_v32  ;;  %v4602_v30 = vld [vmem:[#allocation14 + $0x6b0] sm:$0xff] }
 0x4ff   :  { %6250 = vmatprep.subr.bf16.mxu1 %v7664_v40  ;;  %v7718_v40 = vcombine.high %v4550_v53, %v4554_v35  ;;  %v7720_v62 = vcombine.high %v4551_v36, %v4555_v38  ;;  %v4599_v32 = vld [vmem:[#allocation14 + $0x698] sm:$0xff] }
 0x501   :  { %6165 = vmatpush1.bf16.msra.mxu0 %v7661_v44  ;;  %v4563_v44 = vld [vmem:[#allocation14 + $0x578] sm:$0xff] }
 0x502   :  { %6251 = vmatpush1.bf16.msra.mxu1 %v7663_v45  ;;  %6166 = vmatprep.subr.bf16.mxu0 %v7670_v47  ;;  %v7717_v45 = vcombine.low %v4550_v53, %v4554_v35  ;;  %v7719_v47 = vcombine.low %v4551_v36, %v4555_v38  ;;  %v7728_v48 = vcombine.high %v4559_v43, %v4563_v44  ;;  %v4606_v35 = vld [vmem:[#allocation14 + $0x6d0] sm:$0xff]  ;;  %v4607_v38 = vld [vmem:[#allocation14 + $0x6d8] sm:$0xff] }
 0x503   :  { %6252 = vmatprep.subr.bf16.mxu1 %v7672_v42  ;;  %v7726_v42 = vcombine.high %v4558_v34, %v4562_v41  ;;  %v4610_v36 = vld [vmem:[#allocation14 + $0x6f0] sm:$0xff] }
 0x505   :  { %6167 = vmatpush1.bf16.msra.mxu0 %v7669_v54  ;;  %v4571_v54 = vld [vmem:[#allocation14 + $0x5b8] sm:$0xff] }
 0x506   :  { %6253 = vmatpush1.bf16.msra.mxu1 %v7671_v55  ;;  %6168 = vmatprep.subr.bf16.mxu0 %v7678_v0  ;;  %v7725_v55 = vcombine.low %v4558_v34, %v4562_v41  ;;  %v7727_v0 = vcombine.low %v4559_v43, %v4563_v44  ;;  %v7736_v57 = vcombine.high %v4567_v52, %v4571_v54  ;;  %v4614_v41 = vld [vmem:[#allocation14 + $0x710] sm:$0xff]  ;;  %v4615_v44 = vld [vmem:[#allocation14 + $0x718] sm:$0xff] }
 0x507   :  { %6254 = vmatprep.subr.bf16.mxu1 %v7680_v56  ;;  %v7734_v56 = vcombine.high %v4566_v49, %v4570_v50  ;;  %v4618_v43 = vld [vmem:[#allocation14 + $0x730] sm:$0xff] }
 0x509   :  { %6169 = vmatpush1.bf16.msra.mxu0 %v7677_v61  ;;  %v4579_v61 = vld [vmem:[#allocation14 + $0x5f8] sm:$0xff] }
 0x50a   :  { %6255 = vmatpush1.bf16.msra.mxu1 %v7679_v31  ;;  %6181 = vmatprep.subr.bf16.mxu0 %v7686_v1  ;;  %v7733_v31 = vcombine.low %v4566_v49, %v4570_v50  ;;  %v7735_v1 = vcombine.low %v4567_v52, %v4571_v54  ;;  %v7744_v21 = vcombine.high %v4575_v46, %v4579_v61  ;;  %v4622_v50 = vld [vmem:[#allocation14 + $0x750] sm:$0xff]  ;;  %v4623_v54 = vld [vmem:[#allocation14 + $0x758] sm:$0xff] }
 0x50b   :  { %6267 = vmatprep.subr.bf16.mxu1 %v7688_v51  ;;  %v7742_v51 = vcombine.high %v4574_v58, %v4578_v59  ;;  %v4626_v52 = vld [vmem:[#allocation14 + $0x770] sm:$0xff] }
 0x50c   :  { %6171 = vmatmul.mubr.bf16.vlgmr.msra.gmra.mrb[28].mxu0 %v9624_v14 }
 0x50d   :  { %6257 = vmatmul.mubr.bf16.vlgmr.msra.gmra.mrb[28].mxu1 %v9624_v14  ;;  %6182 = vmatpush1.bf16.msra.mxu0 %v7685_v5  ;;  %v7703_v14 = vcombine.low %v4535_v16, %v4539_v17  ;;  %v4586_v5 = vld [vmem:[#allocation14 + $0x630] sm:$0xff]  ;;  %v4591_v17 = vld [vmem:[#allocation14 + $0x658] sm:$0xff] }
 0x50e   :  { %6213 = vmatprep.mubr.bf16.mxu0 %v9630_v23  ;;  %6268 = vmatpush1.bf16.msra.mxu1 %v7687_v8  ;;  %v7741_v8 = vcombine.low %v4574_v58, %v4578_v59  ;;  %v7750_v11 = vcombine.high %v4582_v63, %v4586_v5  ;;  %v4594_v16 = vld [vmem:[#allocation14 + $0x670] sm:$0xff] }
 0x50f   :  { %6299 = vmatprep.mubr.bf16.mxu1 %v9630_v23  ;;  %6183 = vmatprep.subr.bf16.mxu0 %v7694_v9  ;;  %v7709_v23 = vcombine.low %v4542_v27, %v4546_v28  ;;  %v7743_v9 = vcombine.low %v4575_v46, %v4579_v61  ;;  %v4598_v28 = vld [vmem:[#allocation14 + $0x690] sm:$0xff]  ;;  %v4631_v61 = vld [vmem:[#allocation14 + $0x798] sm:$0xff] }
 0x510   :  { %6269 = vmatprep.subr.bf16.mxu1 %v7696_v13  ;;  %v4590_v13 = vld [vmem:[#allocation14 + $0x650] sm:$0xff] }
 0x511   :  { %6184 = vmatpush1.bf16.msra.mxu0 %v7693_v18  ;;  %v4595_v18 = vld [vmem:[#allocation14 + $0x678] sm:$0xff]  ;;  %v4630_v59 = vld [vmem:[#allocation14 + $0x790] sm:$0xff] }
 0x512   :  { %6270 = vmatpush1.bf16.msra.mxu1 %v7695_v24  ;;  %6185 = vmatprep.subr.bf16.mxu0 %v7702_v25  ;;  %v7749_v24 = vcombine.low %v4582_v63, %v4586_v5  ;;  %v7751_v25 = vcombine.low %v4583_v2, %v4587_v19  ;;  %v7760_v27 = vcombine.high %v4591_v17, %v4595_v18  ;;  %v4634_v46 = vld [vmem:[#allocation14 + $0x7b0] sm:$0xff]  ;;  %v4639_v19 = vld [vmem:[#allocation14 + $0x7d8] sm:$0xff] }
 0x513   :  { %6271 = vmatprep.subr.bf16.mxu1 %v7704_v26  ;;  %v7758_v26 = vcombine.high %v4590_v13, %v4594_v16  ;;  %v4638_v5 = vld [vmem:[#allocation14 + $0x7d0] sm:$0xff] }
 0x514   :  { %v4642_v2 = vld [vmem:[#allocation14 + $0x7f0] sm:$0xff] }
 0x515   :  { %6186 = vmatpush1.bf16.msra.mxu0 %v7701_v33  ;;  %v4603_v33 = vld [vmem:[#allocation14 + $0x6b8] sm:$0xff] }
 0x516   :  { %6272 = vmatpush1.bf16.msra.mxu1 %v7703_v14  ;;  %6187 = vmatprep.subr.bf16.mxu0 %v7710_v60  ;;  %v7757_v14 = vcombine.low %v4590_v13, %v4594_v16  ;;  %v7759_v60 = vcombine.low %v4591_v17, %v4595_v18  ;;  %v7768_v53 = vcombine.high %v4599_v32, %v4603_v33  ;;  %v8913_v18 = vld [vmem:[#allocation17 + $0x40] sm:$0xff]  }
 0x517   :  { %6273 = vmatprep.subr.bf16.mxu1 %v7712_v29  ;;  %v7766_v29 = vcombine.high %v4598_v28, %v4602_v30  ;;  %v7805_v16 = vcombine.low %v4638_v5, %v4642_v2 }
 0x519   :  { %6188 = vmatpush1.bf16.msra.mxu0 %v7709_v23  ;;  %v4611_v23 = vld [vmem:[#allocation14 + $0x6f8] sm:$0xff] }
 0x51a   :  { %6274 = vmatpush1.bf16.msra.mxu1 %v7711_v39  ;;  %6189 = vmatprep.subr.bf16.mxu0 %v7718_v40  ;;  %v7765_v39 = vcombine.low %v4598_v28, %v4602_v30  ;;  %v7767_v40 = vcombine.low %v4599_v32, %v4603_v33  ;;  %v7776_v34 = vcombine.high %v4607_v38, %v4611_v23  ;;  %v8918_v28 = vld [vmem:[#allocation17 + $0xc8] sm:$0xff]   ;;  %v8921_v33 = vld [vmem:[#allocation17 + $0x50] sm:$0xff]  }
 0x51b   :  { %6275 = vmatprep.subr.bf16.mxu1 %v7720_v62  ;;  %v7774_v62 = vcombine.high %v4606_v35, %v4610_v36  ;;  %v8919_v30 = vld [vmem:[#allocation17 + $0x8] sm:$0xff]  }
 0x51c   :  { %v8920_v32 = vld [vmem:[#allocation17 + $0x88] sm:$0xff]  }
 0x51d   :  { %6190 = vmatpush1.bf16.msra.mxu0 %v7717_v45  ;;  %v4619_v45 = vld [vmem:[#allocation14 + $0x738] sm:$0xff] }
 0x51e   :  { %6276 = vmatpush1.bf16.msra.mxu1 %v7719_v47  ;;  %6191 = vmatprep.subr.bf16.mxu0 %v7726_v42  ;;  %v7773_v47 = vcombine.low %v4606_v35, %v4610_v36  ;;  %v7775_v42 = vcombine.low %v4607_v38, %v4611_v23  ;;  %v7784_v49 = vcombine.high %v4615_v44, %v4619_v45  ;;  %v8926_v35 = vld [vmem:[#allocation17 + $0xd8] sm:$0xff]   ;;  %v8929_v38 = vld [vmem:[#allocation17 + $0x60] sm:$0xff]  }
 0x51f   :  { %6277 = vmatprep.subr.bf16.mxu1 %v7728_v48  ;;  %v7782_v48 = vcombine.high %v4614_v41, %v4618_v43  ;;  %v8927_v36 = vld [vmem:[#allocation17 + $0x18] sm:$0xff]   ;;  %v8930_v23 = vld [vmem:[#allocation17 + $0xe0] sm:$0xff]  }
 0x521   :  { %6192 = vmatpush1.bf16.msra.mxu0 %v7725_v55  ;;  %v4627_v55 = vld [vmem:[#allocation14 + $0x778] sm:$0xff] }
 0x522   :  { %6278 = vmatpush1.bf16.msra.mxu1 %v7727_v0  ;;  %6193 = vmatprep.subr.bf16.mxu0 %v7734_v56  ;;  %v7781_v0 = vcombine.low %v4614_v41, %v4618_v43  ;;  %v7783_v56 = vcombine.low %v4615_v44, %v4619_v45  ;;  %v7792_v58 = vcombine.high %v4623_v54, %v4627_v55  ;;  %v8935_v41 = vld [vmem:[#allocation17 + $0x28] sm:$0xff]   ;;  %v8937_v44 = vld [vmem:[#allocation17 + $0x70] sm:$0xff]  }
 0x523   :  { %6279 = vmatprep.subr.bf16.mxu1 %v7736_v57  ;;  %v7790_v57 = vcombine.high %v4622_v50, %v4626_v52  ;;  %v8936_v43 = vld [vmem:[#allocation17 + $0xa8] sm:$0xff]   ;;  %v8938_v45 = vld [vmem:[#allocation17 + $0xf0] sm:$0xff]  }
 0x525   :  { %6194 = vmatpush1.bf16.msra.mxu0 %v7733_v31  ;;  %v4635_v31 = vld [vmem:[#allocation14 + $0x7b8] sm:$0xff] }
 0x526   :  { %6280 = vmatpush1.bf16.msra.mxu1 %v7735_v1  ;;  %6195 = vmatprep.subr.bf16.mxu0 %v7742_v51  ;;  %v7789_v1 = vcombine.low %v4622_v50, %v4626_v52  ;;  %v7791_v51 = vcombine.low %v4623_v54, %v4627_v55  ;;  %v7800_v63 = vcombine.high %v4631_v61, %v4635_v31  ;;  %v8943_v50 = vld [vmem:[#allocation17 + $0x38] sm:$0xff]   ;;  %v8945_v54 = vld [vmem:[#allocation17 + $0x140] sm:$0xff]  }
 0x527   :  { %6281 = vmatprep.subr.bf16.mxu1 %v7744_v21  ;;  %v7798_v21 = vcombine.high %v4630_v59, %v4634_v46  ;;  %v8944_v52 = vld [vmem:[#allocation17 + $0xb8] sm:$0xff]   ;;  %v8946_v55 = vld [vmem:[#allocation17 + $0x1c0] sm:$0xff]  }
 0x529   :  { %6196 = vmatpush1.bf16.msra.mxu0 %v7741_v8  ;;  %v4643_v8 = vld [vmem:[#allocation14 + $0x7f8] sm:$0xff] }
 0x52a   :  { %6282 = vmatpush1.bf16.msra.mxu1 %v7743_v9  ;;  %6197 = vmatprep.subr.bf16.mxu0 %v7750_v11  ;;  %v7797_v9 = vcombine.low %v4630_v59, %v4634_v46  ;;  %v7799_v11 = vcombine.low %v4631_v61, %v4635_v31  ;;  %v7808_v13 = vcombine.high %v4639_v19, %v4643_v8 }
 0x52b   :  { %6283 = vmatprep.subr.bf16.mxu1 %v7752_v12  ;;  %v7806_v12 = vcombine.high %v4638_v5, %v4642_v2  ;;  %v7807_v17 = vcombine.low %v4639_v19, %v4643_v8 }
 0x52d   :  { %6198 = vmatpush1.bf16.msra.mxu0 %v7749_v24  ;;  %v8914_v24 = vld [vmem:[#allocation17 + $0xc0] sm:$0xff]  }
 0x52e   :  { %6284 = vmatpush1.bf16.msra.mxu1 %v7751_v25  ;;  %6199 = vmatprep.subr.bf16.mxu0 %v7758_v26  ;;  %v8915_v25 = vld [vmem:[#allocation17] sm:$0xff]  }
 0x52f   :  { %6285 = vmatprep.subr.bf16.mxu1 %v7760_v27  ;;  %v8916_v26 = vld [vmem:[#allocation17 + $0x80] sm:$0xff]   ;;  %v8917_v27 = vld [vmem:[#allocation17 + $0x48] sm:$0xff]  }
 0x531   :  { %6200 = vmatpush1.bf16.msra.mxu0 %v7757_v14  ;;  %v8922_v14 = vld [vmem:[#allocation17 + $0xd0] sm:$0xff]  }
 0x532   :  { %6286 = vmatpush1.bf16.msra.mxu1 %v7759_v60  ;;  %6201 = vmatprep.subr.bf16.mxu0 %v7766_v29  ;;  %v8923_v60 = vld [vmem:[#allocation17 + $0x10] sm:$0xff]  }
 0x533   :  { %6287 = vmatprep.subr.bf16.mxu1 %v7768_v53  ;;  %v8924_v29 = vld [vmem:[#allocation17 + $0x90] sm:$0xff]   ;;  %v8925_v53 = vld [vmem:[#allocation17 + $0x58] sm:$0xff]  }
 0x535   :  { %6202 = vmatpush1.bf16.msra.mxu0 %v7765_v39  ;;  %v8931_v39 = vld [vmem:[#allocation17 + $0x20] sm:$0xff]  }
 0x536   :  { %6288 = vmatpush1.bf16.msra.mxu1 %v7767_v40  ;;  %6203 = vmatprep.subr.bf16.mxu0 %v7774_v62  ;;  %v8932_v40 = vld [vmem:[#allocation17 + $0xa0] sm:$0xff]   ;;  %v8933_v62 = vld [vmem:[#allocation17 + $0x68] sm:$0xff]  }
 0x537   :  { %6289 = vmatprep.subr.bf16.mxu1 %v7776_v34  ;;  %v8934_v34 = vld [vmem:[#allocation17 + $0xe8] sm:$0xff]  }
 0x539   :  { %6204 = vmatpush1.bf16.msra.mxu0 %v7773_v47  ;;  %v8939_v47 = vld [vmem:[#allocation17 + $0x30] sm:$0xff]  }
 0x53a   :  { %6290 = vmatpush1.bf16.msra.mxu1 %v7775_v42  ;;  %6205 = vmatprep.subr.bf16.mxu0 %v7782_v48  ;;  %v8940_v42 = vld [vmem:[#allocation17 + $0xb0] sm:$0xff]   ;;  %v8941_v48 = vld [vmem:[#allocation17 + $0x78] sm:$0xff]  }
 0x53b   :  { %6291 = vmatprep.subr.bf16.mxu1 %v7784_v49  ;;  %v8942_v49 = vld [vmem:[#allocation17 + $0xf8] sm:$0xff]  }
 0x53d   :  { %6206 = vmatpush1.bf16.msra.mxu0 %v7781_v0  ;;  %v9648_v0 = vld [vmem:[#allocation16] sm:$0xff] }
 0x53e   :  { %6292 = vmatpush1.bf16.msra.mxu1 %v7783_v56  ;;  %6207 = vmatprep.subr.bf16.mxu0 %v7790_v57  ;;  %v4649_v56 = vrot.slane %v9648_v0, %v9499_v4  ;;  %v4657_v57 = vrot.slane %v9648_v0, %v9511_v20  ;;  %v4661_v59 = vrot.slane %v9648_v0, %v9514_v22 }
 0x53f   :  { %6293 = vmatprep.subr.bf16.mxu1 %v7792_v58  ;;  %v4653_v58 = vrot.slane %v9648_v0, %v9504_v6 }
 0x541   :  { %6208 = vmatpush1.bf16.msra.mxu0 %v7789_v1 }
 0x542   :  { %6294 = vmatpush1.bf16.msra.mxu1 %v7791_v51  ;;  %6209 = vmatprep.subr.bf16.mxu0 %v7798_v21 }
 0x543   :  { %6295 = vmatprep.subr.bf16.mxu1 %v7800_v63 }
 0x545   :  { %6210 = vmatpush1.bf16.msra.mxu0 %v7797_v9 }
 0x546   :  { %6296 = vmatpush1.bf16.msra.mxu1 %v7799_v11  ;;  %6211 = vmatprep.subr.bf16.mxu0 %v7806_v12 }
 0x547   :  { %6297 = vmatprep.subr.bf16.mxu1 %v7808_v13 }
 0x549   :  { %6212 = vmatpush1.bf16.msra.mxu0 %v7805_v16 }
 0x54a   :  { %6298 = vmatpush1.bf16.msra.mxu1 %v7807_v17  ;;  %7958 = vmatprep.subr.bf16.mxu0 %v8913_v18 }
 0x54b   :  { %7980 = vmatprep.subr.bf16.mxu1 %v8914_v24 }
 0x54c   :  { %6214 = vmatmul.mubr.bf16.vlgmr.msra.gmra.mrb[28].mxu0 %v9626_v15 }
 0x54d   :  { %6300 = vmatmul.mubr.bf16.vlgmr.msra.gmra.mrb[28].mxu1 %v9626_v15  ;;  %7959 = vmatpush3.bf16.msra.mxu0 %v8915_v25  ;;  %v8928_v15 = vld [vmem:[#allocation17 + $0x98] sm:$0xff]  }
 0x54e   :  { %7981 = vmatpush3.bf16.msra.mxu1 %v8916_v26  ;;  %7960 = vmatprep.subr.bf16.mxu0 %v8917_v27 }
 0x54f   :  { %7982 = vmatprep.subr.bf16.mxu1 %v8918_v28 }
 0x551   :  { %7961 = vmatpush3.bf16.msra.mxu0 %v8919_v30 }
 0x552   :  { %7983 = vmatpush3.bf16.msra.mxu1 %v8920_v32  ;;  %7962 = vmatprep.subr.bf16.mxu0 %v8921_v33 }
 0x553   :  { %7984 = vmatprep.subr.bf16.mxu1 %v8922_v14 }
 0x555   :  { %7963 = vmatpush3.bf16.msra.mxu0 %v8923_v60 }
 0x556   :  { %7985 = vmatpush3.bf16.msra.mxu1 %v8924_v29  ;;  %7964 = vmatprep.subr.bf16.mxu0 %v8925_v53 }
 0x557   :  { %7986 = vmatprep.subr.bf16.mxu1 %v8926_v35 }
 0x559   :  { %7965 = vmatpush3.bf16.msra.mxu0 %v8927_v36 }
 0x55a   :  { %7987 = vmatpush3.bf16.msra.mxu1 %v8928_v15  ;;  %7966 = vmatprep.subr.bf16.mxu0 %v8929_v38  ;;  %v8947_v15 = vld [vmem:[#allocation17 + $0x100] sm:$0xff]  }
 0x55b   :  { %7988 = vmatprep.subr.bf16.mxu1 %v8930_v23  ;;  %v8948_v38 = vld [vmem:[#allocation17 + $0x180] sm:$0xff]   ;;  %v8949_v23 = vld [vmem:[#allocation17 + $0x148] sm:$0xff]  }
 0x55d   :  { %7967 = vmatpush3.bf16.msra.mxu0 %v8931_v39  ;;  %v8950_v39 = vld [vmem:[#allocation17 + $0x1c8] sm:$0xff]  }
 0x55e   :  { %7989 = vmatpush3.bf16.msra.mxu1 %v8932_v40  ;;  %7968 = vmatprep.subr.bf16.mxu0 %v8933_v62  ;;  %v8951_v40 = vld [vmem:[#allocation17 + $0x108] sm:$0xff]  }
 0x55f   :  { %7990 = vmatprep.subr.bf16.mxu1 %v8934_v34  ;;  %v8952_v62 = vld [vmem:[#allocation17 + $0x188] sm:$0xff]   ;;  %v8953_v34 = vld [vmem:[#allocation17 + $0x150] sm:$0xff]  }
 0x561   :  { %7969 = vmatpush3.bf16.msra.mxu0 %v8935_v41  ;;  %v8954_v41 = vld [vmem:[#allocation17 + $0x1d0] sm:$0xff]  }
 0x562   :  { %7991 = vmatpush3.bf16.msra.mxu1 %v8936_v43  ;;  %7970 = vmatprep.subr.bf16.mxu0 %v8937_v44  ;;  %v8955_v43 = vld [vmem:[#allocation17 + $0x110] sm:$0xff]  }
 0x563   :  { %7992 = vmatprep.subr.bf16.mxu1 %v8938_v45  ;;  %v8956_v44 = vld [vmem:[#allocation17 + $0x190] sm:$0xff]   ;;  %v8957_v45 = vld [vmem:[#allocation17 + $0x158] sm:$0xff]  }
 0x565   :  { %7971 = vmatpush3.bf16.msra.mxu0 %v8939_v47  ;;  %v8958_v47 = vld [vmem:[#allocation17 + $0x1d8] sm:$0xff]  }
 0x566   :  { %7993 = vmatpush3.bf16.msra.mxu1 %v8940_v42  ;;  %7972 = vmatprep.subr.bf16.mxu0 %v8941_v48  ;;  %v8959_v42 = vld [vmem:[#allocation17 + $0x118] sm:$0xff]  }
 0x567   :  { %7994 = vmatprep.subr.bf16.mxu1 %v8942_v49  ;;  %v8960_v48 = vld [vmem:[#allocation17 + $0x198] sm:$0xff]   ;;  %v8961_v49 = vld [vmem:[#allocation17 + $0x160] sm:$0xff]  }
 0x569   :  { %7973 = vmatpush3.bf16.msra.mxu0 %v8943_v50  ;;  %v8962_v50 = vld [vmem:[#allocation17 + $0x1e0] sm:$0xff]  }
 0x56a   :  { %7995 = vmatpush3.bf16.msra.mxu1 %v8944_v52  ;;  %8002 = vmatprep.subr.bf16.mxu0 %v8945_v54  ;;  %v8963_v52 = vld [vmem:[#allocation17 + $0x120] sm:$0xff]  }
 0x56b   :  { %8024 = vmatprep.subr.bf16.mxu1 %v8946_v55  ;;  %v8964_v54 = vld [vmem:[#allocation17 + $0x1a0] sm:$0xff]   ;;  %v8965_v55 = vld [vmem:[#allocation17 + $0x168] sm:$0xff]  }
 0x59f   :  { %v6043_v46 = vpop.f32.mrb[24].mxu0  ;;  %v6129_v61 = vpop.f32.mrb[24].mxu1 }
 0x5a0   :  { %v8102_v31 = vadd.f32 %v6043_v46, %v4649_v56  ;;  %v8106_v1 = vadd.f32 %v6129_v61, %v4657_v57  ;;  %v6045_v51 = vpop.f32.mrb[25].mxu0  ;;  %v6131_v21 = vpop.f32.mrb[25].mxu1  ;;  %v8970_v46 = vld [vmem:[#allocation17 + $0x1f0] sm:$0xff]  }
 0x5a1   :  { %v8103_v63 = vadd.f32 %v6045_v51, %v4653_v58  ;;  %v8107_v5 = vadd.f32 %v6131_v21, %v4661_v59  ;;  %v6047_v2 = vpop.f32.mrb[26].mxu0  ;;  %v6133_v19 = vpop.f32.mrb[26].mxu1  ;;  %v8971_v61 = vld [vmem:[#allocation17 + $0x130] sm:$0xff]   ;;  %v8974_v51 = vld [vmem:[#allocation17 + $0x1f8] sm:$0xff]  }
 0x5a2   :  { %v6310_v4 = vmul.f32 0.01, %v8102_v31  ;;  %v6312_v8 = vmul.f32 0.01, %v8106_v1  ;;  %v8104_v9 = vadd.f32 %v6047_v2, %v4649_v56  ;;  %v8108_v20 = vadd.f32 %v6133_v19, %v4657_v57  ;;  %v6049_v11 = vpop.f32.mrb[27].mxu0  ;;  %v6135_v12 = vpop.f32.mrb[27].mxu1 }
 0x5a3   :  { %v6311_v6 = vmul.f32 0.01, %v8103_v63  ;;  %v6313_v13 = vmul.f32 0.01, %v8107_v5  ;;  %v8105_v16 = vadd.f32 %v6049_v11, %v4653_v58  ;;  %v8109_v22 = vadd.f32 %v6135_v12, %v4661_v59  ;;  %v8966_v56 = vld [vmem:[#allocation17 + $0x1e8] sm:$0xff]   ;;  %v8969_v59 = vld [vmem:[#allocation17 + $0x170] sm:$0xff]  }
 0x5a4   :  { %v6318_v17 = vmul.f32 0.01, %v8104_v9  ;;  %v6320_v18 = vmul.f32 0.01, %v8108_v20  ;;  %v6326_v26 = vmax.f32 %v8102_v31, %v6310_v4  ;;  %v6328_v27 = vmax.f32 %v8106_v1, %v6312_v8  ;;  %v8967_v57 = vld [vmem:[#allocation17 + $0x128] sm:$0xff]   ;;  %v8972_v31 = vld [vmem:[#allocation17 + $0x1b0] sm:$0xff]  }
 0x5a5   :  { %v6319_v24 = vmul.f32 0.01, %v8105_v16  ;;  %v6321_v25 = vmul.f32 0.01, %v8109_v22  ;;  %v6327_v32 = vmax.f32 %v8103_v63, %v6311_v6  ;;  %v6329_v33 = vmax.f32 %v8107_v5, %v6313_v13  ;;  %v8968_v58 = vld [vmem:[#allocation17 + $0x1a8] sm:$0xff]   ;;  %v8973_v1 = vld [vmem:[#allocation17 + $0x178] sm:$0xff]  }
 0x5a6   :  { %v6334_v28 = vmax.f32 %v8104_v9, %v6318_v17  ;;  %v6336_v30 = vmax.f32 %v8108_v20, %v6320_v18  ;;  %v8975_v21 = vld [vmem:[#allocation17 + $0x138] sm:$0xff]   ;;  %v4676_v5 = vsub.s32 7, %v9496_v3  ;;  %v4665_v2 = vrot.slane %v9648_v0, %v9535_v7 }
 0x5a7   :  { %v6335_v14 = vmax.f32 %v8105_v16, %v6319_v24  ;;  %v6337_v60 = vmax.f32 %v8109_v22, %v6321_v25  ;;  %v8976_v63 = vld [vmem:[#allocation17 + $0x1b8] sm:$0xff]   ;;  %v4673_v19 = vrot.slane %v9648_v0, %v274_v37  ;;  %v4669_v4 = vrot.slane %v9648_v0, %v270_v10 }
 0x5a8   :  { %v6342_v29 = vpack.c.bf16 %v6334_v28, %v6326_v26  ;;  %v6344_v53 = vpack.c.bf16 %v6336_v30, %v6328_v27  ;;  %v4677_v8 = vrot.slane %v9648_v0, %v4676_v5 }
 0x5a9   :  { %v6343_v35 = vpack.c.bf16 %v6335_v14, %v6327_v32  ;;  %v6345_v36 = vpack.c.bf16 %v6337_v60, %v6329_v33 }
 0x5ab   :  { %6901 = vmatprep.mubr.bf16.mxu0 %v6343_v35  ;;  %6942 = vmatprep.mubr.bf16.mxu1 %v6345_v36 }
 0x5ac   :  { %6902 = vmatmul.mubr.bf16.vlgmr.msra.gmra.mrb[32].mxu0 %v6342_v29  ;;  %6943 = vmatmul.mubr.bf16.vlgmr.msra.gmra.mrb[32].mxu1 %v6344_v53 }
 0x5ad   :  { %8003 = vmatpush3.bf16.msra.mxu0 %v8947_v15  ;;  %8025 = vmatpush3.bf16.msra.mxu1 %v8948_v38 }
 0x5ae   :  { %8004 = vmatprep.subr.bf16.mxu0 %v8949_v23  ;;  %8026 = vmatprep.subr.bf16.mxu1 %v8950_v39 }
 0x5b1   :  { %8005 = vmatpush3.bf16.msra.mxu0 %v8951_v40  ;;  %8027 = vmatpush3.bf16.msra.mxu1 %v8952_v62 }
 0x5b2   :  { %8006 = vmatprep.subr.bf16.mxu0 %v8953_v34  ;;  %8028 = vmatprep.subr.bf16.mxu1 %v8954_v41 }
 0x5b5   :  { %8007 = vmatpush3.bf16.msra.mxu0 %v8955_v43  ;;  %8029 = vmatpush3.bf16.msra.mxu1 %v8956_v44  ;;  %v7809_v44 = vld [vmem:[#allocation19] ss:$0 sm:$0xff] }
 0x5b6   :  { %8008 = vmatprep.subr.bf16.mxu0 %v8957_v45  ;;  %8030 = vmatprep.subr.bf16.mxu1 %v8958_v47 }
 0x5b9   :  { %8009 = vmatpush3.bf16.msra.mxu0 %v8959_v42  ;;  %8031 = vmatpush3.bf16.msra.mxu1 %v8960_v48 }
 0x5ba   :  { %8010 = vmatprep.subr.bf16.mxu0 %v8961_v49  ;;  %8032 = vmatprep.subr.bf16.mxu1 %v8962_v50 }
 0x5bd   :  { %8011 = vmatpush3.bf16.msra.mxu0 %v8963_v52  ;;  %8033 = vmatpush3.bf16.msra.mxu1 %v8964_v54 }
 0x5be   :  { %8012 = vmatprep.subr.bf16.mxu0 %v8965_v55  ;;  %8034 = vmatprep.subr.bf16.mxu1 %v8966_v56 }
 0x5c1   :  { %8013 = vmatpush3.bf16.msra.mxu0 %v8967_v57  ;;  %8035 = vmatpush3.bf16.msra.mxu1 %v8968_v58 }
 0x5c2   :  { %8014 = vmatprep.subr.bf16.mxu0 %v8969_v59  ;;  %8036 = vmatprep.subr.bf16.mxu1 %v8970_v46 }
 0x5c5   :  { %8015 = vmatpush3.bf16.msra.mxu0 %v8971_v61  ;;  %8037 = vmatpush3.bf16.msra.mxu1 %v8972_v31 }
 0x5c6   :  { %8016 = vmatprep.subr.bf16.mxu0 %v8973_v1  ;;  %8038 = vmatprep.subr.bf16.mxu1 %v8974_v51 }
 0x5c9   :  { %8017 = vmatpush3.bf16.msra.mxu0 %v8975_v21  ;;  %8039 = vmatpush3.bf16.msra.mxu1 %v8976_v63 }
 0x61f   :  { %v6215_v9 = vpop.f32.mrb[28].mxu0 }
 0x620   :  { %v8110_v20 = vadd.f32 %v6215_v9, %v4665_v2  ;;  %v6301_v11 = vpop.f32.mrb[28].mxu1  ;;  %v6217_v12 = vpop.f32.mrb[29].mxu0 }
 0x621   :  { %v8114_v6 = vadd.f32 %v6301_v11, %v4673_v19  ;;  %v8111_v13 = vadd.f32 %v6217_v12, %v4669_v4  ;;  %v6303_v16 = vpop.f32.mrb[29].mxu1  ;;  %v6219_v22 = vpop.f32.mrb[30].mxu0 }
 0x622   :  { %v6314_v17 = vmul.f32 0.01, %v8110_v20  ;;  %v8115_v7 = vadd.f32 %v6303_v16, %v4677_v8  ;;  %v8112_v18 = vadd.f32 %v6219_v22, %v4665_v2  ;;  %v6305_v24 = vpop.f32.mrb[30].mxu1  ;;  %v6221_v25 = vpop.f32.mrb[31].mxu0 }
 0x623   :  { %v6316_v37 = vmul.f32 0.01, %v8114_v6  ;;  %v6315_v26 = vmul.f32 0.01, %v8111_v13  ;;  %v8116_v3 = vadd.f32 %v6305_v24, %v4673_v19  ;;  %v8113_v27 = vadd.f32 %v6221_v25, %v4669_v4  ;;  %v6307_v10 = vpop.f32.mrb[31].mxu1 }
 0x624   :  { %v6317_v28 = vmul.f32 0.01, %v8115_v7  ;;  %v6322_v0 = vmul.f32 0.01, %v8112_v18  ;;  %v8117_v30 = vadd.f32 %v6307_v10, %v4677_v8  ;;  %v6330_v14 = vmax.f32 %v8110_v20, %v6314_v17 }
 0x625   :  { %v6324_v32 = vmul.f32 0.01, %v8116_v3  ;;  %v6323_v33 = vmul.f32 0.01, %v8113_v27  ;;  %v6332_v53 = vmax.f32 %v8114_v6, %v6316_v37  ;;  %v6331_v35 = vmax.f32 %v8111_v13, %v6315_v26 }
 0x626   :  { %v6338_v60 = vmax.f32 %v8112_v18, %v6322_v0  ;;  %v6325_v29 = vmul.f32 0.01, %v8117_v30  ;;  %v6333_v38 = vmax.f32 %v8115_v7, %v6317_v28 }
 0x627   :  { %v6340_v36 = vmax.f32 %v8116_v3, %v6324_v32  ;;  %v6339_v15 = vmax.f32 %v8113_v27, %v6323_v33 }
 0x628   :  { %v6346_v23 = vpack.c.bf16 %v6338_v60, %v6330_v14  ;;  %v6341_v39 = vmax.f32 %v8117_v30, %v6325_v29 }
 0x629   :  { %v6348_v40 = vpack.c.bf16 %v6340_v36, %v6332_v53  ;;  %v6347_v62 = vpack.c.bf16 %v6339_v15, %v6331_v35 }
 0x62a   :  { %v6349_v34 = vpack.c.bf16 %v6341_v39, %v6333_v38 }
 0x62b   :  { %6983 = vmatprep.mubr.bf16.mxu0 %v6347_v62 }
 0x62c   :  { %7024 = vmatprep.mubr.bf16.mxu1 %v6349_v34  ;;  %6984 = vmatmul.mubr.bf16.vlgmr.msra.gmra.mrb[36].mxu0 %v6346_v23 }
 0x62d   :  { %7025 = vmatmul.mubr.bf16.vlgmr.msra.gmra.mrb[36].mxu1 %v6348_v40 }
 0x67f   :  { %v7974_v41 = vpop.f32.mrb[32].mxu0  ;;  %v7996_v43 = vpop.f32.mrb[32].mxu1 }
 0x680   :  { %v7975_v45 = vpop.f32.mrb[33].mxu0  ;;  %v7997_v47 = vpop.f32.mrb[33].mxu1 }
 0x681   :  { %v7976_v42 = vadd.f32 %v7975_v45, %v7974_v41  ;;  %v7998_v48 = vadd.f32 %v7997_v47, %v7996_v43  ;;  %v7977_v49 = vpop.f32.mrb[34].mxu0  ;;  %v7999_v50 = vpop.f32.mrb[34].mxu1 }
 0x682   :  { %v7978_v52 = vpop.f32.mrb[35].mxu0  ;;  %v8000_v54 = vpop.f32.mrb[35].mxu1 }
 0x683   :  { %v6904_v55 = vadd.f32 %v7976_v42, %v7809_v44  ;;  %v7979_v56 = vadd.f32 %v7978_v52, %v7977_v49  ;;  %v8001_v57 = vadd.f32 %v8000_v54, %v7999_v50 }
 0x685   :  { %v6945_v58 = vadd.f32 %v7998_v48, %v6904_v55  ;;  %v6907_v59 = vadd.f32 %v7979_v56, %v7809_v44 }
 0x687   :  { %v6948_v46 = vadd.f32 %v8001_v57, %v6907_v59 }
 0x6ff   :  { %v8018_v61 = vpop.f32.mrb[36].mxu0 }
 0x700   :  { %v8040_v31 = vpop.f32.mrb[36].mxu1  ;;  %v8019_v1 = vpop.f32.mrb[37].mxu0 }
 0x701   :  { %v8020_v51 = vadd.f32 %v8019_v1, %v8018_v61  ;;  %v8041_v21 = vpop.f32.mrb[37].mxu1  ;;  %v8021_v63 = vpop.f32.mrb[38].mxu0 }
 0x702   :  { %v8042_v5 = vadd.f32 %v8041_v21, %v8040_v31  ;;  %v8043_v2 = vpop.f32.mrb[38].mxu1  ;;  %v8022_v19 = vpop.f32.mrb[39].mxu0 }
 0x703   :  { %v6986_v4 = vadd.f32 %v8020_v51, %v6945_v58  ;;  %v8023_v8 = vadd.f32 %v8022_v19, %v8021_v63  ;;  %v8044_v9 = vpop.f32.mrb[39].mxu1 }
 0x704   :  { %v8045_v20 = vadd.f32 %v8044_v9, %v8043_v2 }
 0x705   :  { %v7027_v11 = vadd.f32 %v8042_v5, %v6986_v4  ;;  %v6989_v12 = vadd.f32 %v8023_v8, %v6948_v46 }
 0x707   :  { %7033 = vst [vmem:[#allocation20] sm:$0xff] %v7027_v11  ;;  %v7030_v6 = vadd.f32 %v8045_v20, %v6989_v12 }
 0x709   :  { %7034 = vst [vmem:[#allocation20 + $0x8] sm:$0xff] %v7030_v6 }
 0x70a   :  { %9230 = shalt.err (!%p9227_p8)
}
 0x70b   :  { %s9231_s28 = scalar_lea.hbm %s9694_s11, 256 }
 0x70c   :  { %p9232_p9 = scmp.ne.s32.totalorder %s9694_s11, %s9231_s28  ;;  %p9235_p10 = scmp.lt.u32.totalorder %s9231_s28, %s9694_s11 }
 0x70e   :  { %p9237_p11 = pnand %p9235_p10, %p9232_p9 }
 0x710   :  { %9240 = shalt.err (!%p9237_p11)
}
 0x711   :  { %7046 = dma.vmem_to_hbm [thread:$0]  %s7041_s25, 256, %s9694_s11, [#allocation4], %s9271_s9, %s9271_s9, %s9272_s14  }
 0x712   :  { %9253 = dma.done.wait [#allocation4], 256  }
 0x713   :  { %9254 = vsyncadd [#allocation4], 4294967040 }
 0x714   :  { %7050 = vsyncpa [#allocation3], 1 }
 0x715   :  { %7051 = vsyncpa [#allocation6], 1 }
 0x716   :  { %7052 = vsyncpa [#allocation9], 1 }
 0x717   :  { %7053 = vsyncpa [#allocation12], 1 }
 0x718   :  { %7054 = vsyncpa [#allocation15], 1 }
 0x719   :  { %7055 = vsyncpa [#allocation18], 1 }
 0x71a   :  { %7056 = vsyncpa [#allocation4], 1 }

// kernel: tpu_custom_call.1
= control target key start
LH: loop header
LB: loop body
LE: loop exit
PB: predicated region body
PF: predicated region fallthrough
CT: control target
= control target key end

     0   :  { %16 = vsyncpa [#allocation3], 0  ;;  %s9683_s0 = inlined_call_operand.hbm [shape: f32[16,128], index: 0, kind: input, shape index: {}]   ;;  %s9684_s1 = inlined_call_operand.hbm [shape: bf16[128,896], index: 1, kind: input, shape index: {}]   ;;  %s9685_s2 = inlined_call_operand.hbm [shape: f32[1,896], index: 2, kind: input, shape index: {}]   ;;  %s9686_s3 = inlined_call_operand.hbm [shape: bf16[896,640], index: 3, kind: input, shape index: {}]   ;;  %s9687_s4 = inlined_call_operand.hbm [shape: f32[1,640], index: 4, kind: input, shape index: {}]   ;;  %s9688_s5 = inlined_call_operand.hbm [shape: bf16[640,512], index: 5, kind: input, shape index: {}]   ;;  %s9689_s6 = inlined_call_operand.hbm [shape: f32[1,512], index: 6, kind: input, shape index: {}]   ;;  %s9690_s7 = inlined_call_operand.hbm [shape: bf16[512,1024], index: 7, kind: input, shape index: {}]   ;;  %s9691_s8 = inlined_call_operand.hbm [shape: f32[1,1024], index: 8, kind: input, shape index: {}]   ;;  %s9692_s9 = inlined_call_operand.hbm [shape: bf16[1024,128], index: 9, kind: input, shape index: {}]   ;;  %s9693_s10 = inlined_call_operand.hbm [shape: f32[1,128], index: 10, kind: input, shape index: {}]   ;;  %s9694_s11 = inlined_call_operand.hbm [shape: f32[16,128], index: 11, kind: output, shape index: {}]  }
   0x1   :  { %17 = vsyncpa [#allocation6], 0 }
   0x2   :  { %18 = vsyncpa [#allocation9], 0 }
   0x3   :  { %19 = vsyncpa [#allocation12], 0 }
   0x4   :  { %20 = vsyncpa [#allocation15], 0 }
   0x5   :  { %21 = vsyncpa [#allocation18], 0 }
   0x6   :  { %22 = vsyncpa [#allocation4], 0  ;;  %s9255_s17 = smov [#allocation5]   ;;  %s8977_s21 = scalar_lea.hbm %s9684_s1, 7168 }
   0x7   :  { %s40_s18 = sshll.u32 %s9255_s17, 4  ;;  %p8978_p0 = scmp.ne.s32.totalorder %s9684_s1, %s8977_s21  ;;  %s41_s18 = int_to_ptr.vmem [resolvable:$true] %s40_s18 }
   0x8   :  { %p8981_p1 = scmp.lt.u32.totalorder %s8977_s21, %s9684_s1 }
   0xa   :  { %p8983_p2 = pnand %p8981_p1, %p8978_p0 }
   0xc   :  { %8986 = shalt.err (!%p8983_p2)
}
   0xd   :  { %s8987_s26 = scalar_lea.vmem %s41_s18, 7168  ;;  %p8992_p4 = scmp.lt.s32.totalorder %s41_s18, %s41_s18 }
   0xe   :  { %p8988_p3 = scmp.ne.s32.totalorder %s41_s18, %s8987_s26  ;;  %p8993_p5 = scmp.lt.s32.totalorder %s8987_s26, %s8987_s26 }
  0x10   :  { %p8994_p6 = por %p8993_p5, %p8992_p4 }
  0x12   :  { %p8995_p7 = pnand %p8994_p6, %p8988_p3 }
  0x14   :  { %8998 = shalt.err (!%p8995_p7)
}
  0x15   :  { %s9256_s27 = smov 448   ;;  %s9257_s28 = smov 28  }
  0x16   :  { %46 = dma.hbm_to_vmem [thread:$0]  %s9684_s1, 7168, %s41_s18, [#allocation6], %s9256_s27, %s9256_s27, %s9257_s28  }
  0x17   :  { %s9258_s12 = smov [#allocation8]   ;;  %s8999_s16 = scalar_lea.hbm %s9686_s3, 35840 }
  0x18   :  { %s62_s13 = sshll.u32 %s9258_s12, 4  ;;  %p9000_p8 = scmp.ne.s32.totalorder %s9686_s3, %s8999_s16  ;;  %s63_s13 = int_to_ptr.vmem [resolvable:$true] %s62_s13 }
  0x19   :  { %p9003_p9 = scmp.lt.u32.totalorder %s8999_s16, %s9686_s3 }
  0x1b   :  { %p9005_p10 = pnand %p9003_p9, %p9000_p8 }
  0x1d   :  { %9008 = shalt.err (!%p9005_p10)
}
  0x1e   :  { %s9009_s22 = scalar_lea.vmem %s63_s13, 35840  ;;  %p9014_p12 = scmp.lt.s32.totalorder %s63_s13, %s63_s13 }
  0x1f   :  { %p9010_p11 = scmp.ne.s32.totalorder %s63_s13, %s9009_s22  ;;  %p9015_p13 = scmp.lt.s32.totalorder %s9009_s22, %s9009_s22 }
  0x21   :  { %p9016_p0 = por %p9015_p13, %p9014_p12 }
  0x23   :  { %p9017_p1 = pnand %p9016_p0, %p9010_p11 }
  0x25   :  { %9020 = shalt.err (!%p9017_p1)
}
  0x26   :  { %s9259_s1 = smov 320   ;;  %s9260_s18 = smov 20  }
  0x27   :  { %68 = dma.hbm_to_vmem [thread:$0]  %s9686_s3, 35840, %s63_s13, [#allocation9], %s9259_s1, %s9259_s1, %s9260_s18  }
  0x28   :  { %s9261_s25 = smov [#allocation11]   ;;  %s9021_s29 = scalar_lea.hbm %s9688_s5, 20480 }
  0x29   :  { %s84_s26 = sshll.u32 %s9261_s25, 4  ;;  %p9022_p2 = scmp.ne.s32.totalorder %s9688_s5, %s9021_s29  ;;  %s85_s26 = int_to_ptr.vmem [resolvable:$true] %s84_s26 }
  0x2a   :  { %p9025_p3 = scmp.lt.u32.totalorder %s9021_s29, %s9688_s5 }
  0x2c   :  { %p9027_p4 = pnand %p9025_p3, %p9022_p2 }
  0x2e   :  { %9030 = shalt.err (!%p9027_p4)
}
  0x2f   :  { %s9031_s16 = scalar_lea.vmem %s85_s26, 20480  ;;  %p9036_p6 = scmp.lt.s32.totalorder %s85_s26, %s85_s26 }
  0x30   :  { %p9032_p5 = scmp.ne.s32.totalorder %s85_s26, %s9031_s16  ;;  %p9037_p7 = scmp.lt.s32.totalorder %s9031_s16, %s9031_s16 }
  0x32   :  { %p9038_p8 = por %p9037_p7, %p9036_p6 }
  0x34   :  { %p9039_p9 = pnand %p9038_p8, %p9032_p5 }
  0x36   :  { %9042 = shalt.err (!%p9039_p9)
}
  0x37   :  { %s9262_s3 = smov 256   ;;  %s9263_s13 = smov 16  }
  0x38   :  { %90 = dma.hbm_to_vmem [thread:$0]  %s9688_s5, 20480, %s85_s26, [#allocation12], %s9262_s3, %s9262_s3, %s9263_s13  }
  0x39   :  { %s9264_s20 = smov [#allocation14]   ;;  %s9043_s18 = scalar_lea.hbm %s9690_s7, 32768 }
  0x3a   :  { %s106_s21 = sshll.u32 %s9264_s20, 4  ;;  %p9044_p10 = scmp.ne.s32.totalorder %s9690_s7, %s9043_s18  ;;  %s107_s21 = int_to_ptr.vmem [resolvable:$true] %s106_s21 }
  0x3b   :  { %p9047_p11 = scmp.lt.u32.totalorder %s9043_s18, %s9690_s7 }
  0x3d   :  { %p9049_p12 = pnand %p9047_p11, %p9044_p10 }
  0x3f   :  { %9052 = shalt.err (!%p9049_p12)
}
  0x40   :  { %s9053_s28 = scalar_lea.vmem %s107_s21, 32768  ;;  %p9058_p0 = scmp.lt.s32.totalorder %s107_s21, %s107_s21 }
  0x41   :  { %p9054_p13 = scmp.ne.s32.totalorder %s107_s21, %s9053_s28  ;;  %p9059_p1 = scmp.lt.s32.totalorder %s9053_s28, %s9053_s28 }
  0x43   :  { %p9060_p2 = por %p9059_p1, %p9058_p0 }
  0x45   :  { %p9061_p3 = pnand %p9060_p2, %p9054_p13 }
  0x47   :  { %9064 = shalt.err (!%p9061_p3)
}
  0x48   :  { %s9265_s5 = smov 512   ;;  %s9266_s26 = smov 32  }
  0x49   :  { %112 = dma.hbm_to_vmem [thread:$0]  %s9690_s7, 32768, %s107_s21, [#allocation15], %s9265_s5, %s9265_s5, %s9266_s26  }
  0x4a   :  { %s9267_s12 = smov [#allocation17]   ;;  %s9065_s3 = scalar_lea.hbm %s9692_s9, 8192 }
  0x4b   :  { %s128_s14 = sshll.u32 %s9267_s12, 4  ;;  %p9066_p4 = scmp.ne.s32.totalorder %s9692_s9, %s9065_s3  ;;  %s129_s14 = int_to_ptr.vmem [resolvable:$true] %s128_s14 }
  0x4c   :  { %p9069_p5 = scmp.lt.u32.totalorder %s9065_s3, %s9692_s9 }
  0x4e   :  { %p9071_p6 = pnand %p9069_p5, %p9066_p4 }
  0x50   :  { %9074 = shalt.err (!%p9071_p6)
}
  0x51   :  { %s9075_s22 = scalar_lea.vmem %s129_s14, 8192  ;;  %p9080_p8 = scmp.lt.s32.totalorder %s129_s14, %s129_s14 }
  0x52   :  { %p9076_p7 = scmp.ne.s32.totalorder %s129_s14, %s9075_s22  ;;  %p9081_p9 = scmp.lt.s32.totalorder %s9075_s22, %s9075_s22 }
  0x54   :  { %p9082_p10 = por %p9081_p9, %p9080_p8 }
  0x56   :  { %p9083_p11 = pnand %p9082_p10, %p9076_p7 }
  0x58   :  { %9086 = shalt.err (!%p9083_p11)
}
  0x59   :  { %s9268_s7 = smov 64   ;;  %s9269_s21 = smov 4  }
  0x5a   :  { %134 = dma.hbm_to_vmem [thread:$0]  %s9692_s9, 8192, %s129_s14, [#allocation18], %s9268_s7, %s9268_s7, %s9269_s21  }
  0x5b   :  { %s9270_s23 = smov [#allocation2]   ;;  %s9087_s28 = scalar_lea.hbm %s9683_s0, 256 }
  0x5c   :  { %s28_s24 = sshll.u32 %s9270_s23, 4  ;;  %p9088_p12 = scmp.ne.s32.totalorder %s9683_s0, %s9087_s28  ;;  %s29_s24 = int_to_ptr.vmem [resolvable:$true] %s28_s24 }
  0x5d   :  { %p9091_p13 = scmp.lt.u32.totalorder %s9087_s28, %s9683_s0 }
  0x5f   :  { %p9093_p0 = pnand %p9091_p13, %p9088_p12 }
  0x61   :  { %9096 = shalt.err (!%p9093_p0)
}
  0x62   :  { %s9097_s12 = scalar_lea.vmem %s29_s24, 256  ;;  %p9102_p2 = scmp.lt.s32.totalorder %s29_s24, %s29_s24 }
  0x63   :  { %p9098_p1 = scmp.ne.s32.totalorder %s29_s24, %s9097_s12  ;;  %p9103_p3 = scmp.lt.s32.totalorder %s9097_s12, %s9097_s12 }
  0x65   :  { %p9104_p4 = por %p9103_p3, %p9102_p2 }
  0x67   :  { %p9105_p5 = pnand %p9104_p4, %p9098_p1 }
  0x69   :  { %9108 = shalt.err (!%p9105_p5)
}
  0x6a   :  { %s9271_s9 = smov 128   ;;  %s9272_s14 = smov 8  }
  0x6b   :  { %34 = dma.hbm_to_vmem [thread:$0]  %s9683_s0, 256, %s29_s24, [#allocation3], %s9271_s9, %s9271_s9, %s9272_s14  }
  0x6c   :  { %s9273_s3 = smov [#allocation7]   ;;  %s9274_s17 = smov [#allocation10]  }
  0x6d   :  { %s53_s13 = sshll.u32 %s9273_s3, 4  ;;  %s75_s19 = sshll.u32 %s9274_s17, 4  ;;  %s54_s13 = int_to_ptr.vmem [resolvable:$true] %s53_s13  ;;  %s76_s19 = int_to_ptr.vmem [resolvable:$true] %s75_s19 }
  0x6e   :  { %s9109_s7 = scalar_lea.hbm %s9685_s2, 112 }
  0x6f   :  { %p9110_p6 = scmp.ne.s32.totalorder %s9685_s2, %s9109_s7  ;;  %p9113_p7 = scmp.lt.u32.totalorder %s9109_s7, %s9685_s2 }
  0x71   :  { %p9115_p8 = pnand %p9113_p7, %p9110_p6 }
  0x73   :  { %9118 = shalt.err (!%p9115_p8)
}
  0x74   :  { %s9119_s0 = scalar_lea.vmem %s54_s13, 112  ;;  %s9123_s24 = scalar_lea.vmem %s54_s13, 128 }
  0x75   :  { %p9120_p9 = scmp.ne.s32.totalorder %s54_s13, %s9119_s0  ;;  %p9124_p10 = scmp.lt.s32.totalorder %s54_s13, %s54_s13 }
  0x76   :  { %p9125_p11 = scmp.lt.s32.totalorder %s9123_s24, %s9119_s0 }
  0x78   :  { %p9126_p12 = por %p9125_p11, %p9124_p10 }
  0x7a   :  { %p9127_p13 = pnand %p9126_p12, %p9120_p9 }
  0x7c   :  { %9130 = shalt.err (!%p9127_p13)
}
  0x7d   :  { %56 = dma.hbm_to_vmem [thread:$0]  %s9685_s2, 112, %s54_s13, [#allocation6]  }
  0x7e   :  { %s9131_s26 = scalar_lea.hbm %s9687_s4, 80 }
  0x7f   :  { %p9132_p0 = scmp.ne.s32.totalorder %s9687_s4, %s9131_s26  ;;  %p9135_p1 = scmp.lt.u32.totalorder %s9131_s26, %s9687_s4 }
  0x81   :  { %p9137_p2 = pnand %p9135_p1, %p9132_p0 }
  0x83   :  { %9140 = shalt.err (!%p9137_p2)
}
  0x84   :  { %s9141_s16 = scalar_lea.vmem %s76_s19, 80  ;;  %s9145_s3 = scalar_lea.vmem %s76_s19, 96 }
  0x85   :  { %p9142_p3 = scmp.ne.s32.totalorder %s76_s19, %s9141_s16  ;;  %p9146_p4 = scmp.lt.s32.totalorder %s76_s19, %s76_s19 }
  0x86   :  { %p9147_p5 = scmp.lt.s32.totalorder %s9145_s3, %s9141_s16 }
  0x88   :  { %p9148_p6 = por %p9147_p5, %p9146_p4 }
  0x8a   :  { %p9149_p7 = pnand %p9148_p6, %p9142_p3 }
  0x8c   :  { %9152 = shalt.err (!%p9149_p7)
}
  0x8d   :  { %78 = dma.hbm_to_vmem [thread:$0]  %s9687_s4, 80, %s76_s19, [#allocation9]  }
  0x8e   :  { %s9275_s17 = smov [#allocation13]   ;;  %s9276_s22 = smov [#allocation16]  }
  0x8f   :  { %s97_s20 = sshll.u32 %s9275_s17, 4  ;;  %s119_s7 = sshll.u32 %s9276_s22, 4  ;;  %s98_s20 = int_to_ptr.vmem [resolvable:$true] %s97_s20  ;;  %s120_s7 = int_to_ptr.vmem [resolvable:$true] %s119_s7 }
  0x90   :  { %s9153_s18 = scalar_lea.hbm %s9689_s6, 64 }
  0x91   :  { %p9154_p8 = scmp.ne.s32.totalorder %s9689_s6, %s9153_s18  ;;  %p9157_p9 = scmp.lt.u32.totalorder %s9153_s18, %s9689_s6 }
  0x93   :  { %p9159_p10 = pnand %p9157_p9, %p9154_p8 }
  0x95   :  { %9162 = shalt.err (!%p9159_p10)
}
  0x96   :  { %s9163_s4 = scalar_lea.vmem %s98_s20, 64  ;;  %p9168_p12 = scmp.lt.s32.totalorder %s98_s20, %s98_s20 }
  0x97   :  { %p9164_p11 = scmp.ne.s32.totalorder %s98_s20, %s9163_s4  ;;  %p9169_p13 = scmp.lt.s32.totalorder %s9163_s4, %s9163_s4 }
  0x99   :  { %p9170_p0 = por %p9169_p13, %p9168_p12 }
  0x9b   :  { %p9171_p1 = pnand %p9170_p0, %p9164_p11 }
  0x9d   :  { %9174 = shalt.err (!%p9171_p1)
}
  0x9e   :  { %100 = dma.hbm_to_vmem [thread:$0]  %s9689_s6, 64, %s98_s20, [#allocation12]  }
  0x9f   :  { %s9175_s26 = scalar_lea.hbm %s9691_s8, 128 }
  0xa0   :  { %p9176_p2 = scmp.ne.s32.totalorder %s9691_s8, %s9175_s26  ;;  %p9179_p3 = scmp.lt.u32.totalorder %s9175_s26, %s9691_s8 }
  0xa2   :  { %p9181_p4 = pnand %p9179_p3, %p9176_p2 }
  0xa4   :  { %9184 = shalt.err (!%p9181_p4)
}
  0xa5   :  { %s9185_s16 = scalar_lea.vmem %s120_s7, 128  ;;  %p9190_p6 = scmp.lt.s32.totalorder %s120_s7, %s120_s7 }
  0xa6   :  { %p9186_p5 = scmp.ne.s32.totalorder %s120_s7, %s9185_s16  ;;  %p9191_p7 = scmp.lt.s32.totalorder %s9185_s16, %s9185_s16 }
  0xa8   :  { %p9192_p8 = por %p9191_p7, %p9190_p6 }
  0xaa   :  { %p9193_p9 = pnand %p9192_p8, %p9186_p5 }
  0xac   :  { %9196 = shalt.err (!%p9193_p9)
}
  0xad   :  { %122 = dma.hbm_to_vmem [thread:$0]  %s9691_s8, 128, %s120_s7, [#allocation15]  }
  0xae   :  { %s9277_s2 = smov [#allocation19]   ;;  %s9197_s22 = scalar_lea.hbm %s9693_s10, 16 }
  0xaf   :  { %s141_s13 = sshll.u32 %s9277_s2, 4  ;;  %p9198_p10 = scmp.ne.s32.totalorder %s9693_s10, %s9197_s22  ;;  %s142_s13 = int_to_ptr.vmem [resolvable:$true] %s141_s13 }
  0xb0   :  { %p9201_p11 = scmp.lt.u32.totalorder %s9197_s22, %s9693_s10 }
  0xb2   :  { %p9203_p12 = pnand %p9201_p11, %p9198_p10 }
  0xb4   :  { %9206 = shalt.err (!%p9203_p12)
}
  0xb5   :  { %s9207_s0 = scalar_lea.vmem %s142_s13, 16  ;;  %s9211_s8 = scalar_lea.vmem %s142_s13, 32 }
  0xb6   :  { %p9208_p13 = scmp.ne.s32.totalorder %s142_s13, %s9207_s0  ;;  %p9212_p0 = scmp.lt.s32.totalorder %s142_s13, %s142_s13 }
  0xb7   :  { %p9213_p1 = scmp.lt.s32.totalorder %s9211_s8, %s9207_s0 }
  0xb9   :  { %p9214_p2 = por %p9213_p1, %p9212_p0 }
  0xbb   :  { %p9215_p3 = pnand %p9214_p2, %p9208_p13 }
  0xbd   :  { %9218 = shalt.err (!%p9215_p3)
}
  0xbe   :  { %144 = dma.hbm_to_vmem [thread:$0]  %s9693_s10, 16, %s142_s13, [#allocation18]  }
  0xbf   :  { %9241 = dma.done.wait [#allocation3], 256  }
  0xc0   :  { %9242 = vsyncadd [#allocation3], 4294967040 }
  0xc1   :  { %9243 = dma.done.wait [#allocation6], 7280  }
  0xc2   :  { %9244 = vsyncadd [#allocation6], 4294960016 }
  0xc3   :  { %9245 = dma.done.wait [#allocation9], 35920  }
  0xc4   :  { %9246 = vsyncadd [#allocation9], 4294931376 }
  0xc5   :  { %9247 = dma.done.wait [#allocation12], 20544  }
  0xc6   :  { %9248 = vsyncadd [#allocation12], 4294946752 }
  0xc7   :  { %9249 = dma.done.wait [#allocation15], 32896  }
  0xc8   :  { %9250 = vsyncadd [#allocation15], 4294934400 }
  0xc9   :  { %9251 = dma.done.wait [#allocation18], 8208  }
  0xca   :  { %9252 = vsyncadd [#allocation18], 4294959088  ;;  %v9278_v0 = vmov 0   ;;  %v8201_v1 = vld [vmem:[#allocation5 + $0x4] ss:$28 sps:$4 sm:$0xff]   ;;  %v179_v26 = vld [vmem:[#allocation2] sm:$0xff] }
  0xcb   :  { %603 = vmatprep.mubr.bf16.mxu0 %v9278_v0  ;;  %646 = vmatprep.mubr.bf16.mxu1 %v9278_v0  ;;  %v8203_v2 = vld [vmem:[#allocation5] ss:$28 sps:$4 sm:$0xff]   ;;  %v8206_v4 = vld [vmem:[#allocation5 + $0x38] ss:$28 sps:$4 sm:$0xff]   ;;  %v8209_v6 = vld [vmem:[#allocation5 + $0x70] ss:$28 sps:$4 sm:$0xff]  }
  0xcc   :  { %571 = vmatprep.subr.bf16.mxu0 %v8201_v1  ;;  %v8204_v3 = vld [vmem:[#allocation5 + $0x3c] ss:$28 sps:$4 sm:$0xff]   ;;  %v8207_v5 = vld [vmem:[#allocation5 + $0x74] ss:$28 sps:$4 sm:$0xff]   ;;  %v8210_v7 = vld [vmem:[#allocation5 + $0xac] ss:$28 sps:$4 sm:$0xff]  }
  0xcd   :  { %572 = vmatpush1.bf16.msra.mxu0 %v8203_v2  ;;  %v8212_v8 = vld [vmem:[#allocation5 + $0xa8] ss:$28 sps:$4 sm:$0xff]   ;;  %v8215_v13 = vld [vmem:[#allocation5 + $0xe0] ss:$28 sps:$4 sm:$0xff]   ;;  %v8218_v17 = vld [vmem:[#allocation5 + $0x118] ss:$28 sps:$4 sm:$0xff]  }
  0xce   :  { %573 = vmatprep.subr.bf16.mxu0 %v8204_v3  ;;  %v8213_v9 = vld [vmem:[#allocation5 + $0xe4] ss:$28 sps:$4 sm:$0xff]   ;;  %v8225_v10 = vld [vmem:[#allocation5 + $0xc] ss:$28 sps:$4 sm:$0xff]   ;;  %v8216_v15 = vld [vmem:[#allocation5 + $0x11c] ss:$28 sps:$4 sm:$0xff]  }
  0xcf   :  { %v8227_v11 = vld [vmem:[#allocation5 + $0x8] ss:$28 sps:$4 sm:$0xff]   ;;  %614 = vmatprep.subr.bf16.mxu1 %v8225_v10  ;;  %v8230_v14 = vld [vmem:[#allocation5 + $0x40] ss:$28 sps:$4 sm:$0xff]   ;;  %v8233_v18 = vld [vmem:[#allocation5 + $0x78] ss:$28 sps:$4 sm:$0xff]  }
  0xd0   :  { %v8228_v12 = vld [vmem:[#allocation5 + $0x44] ss:$28 sps:$4 sm:$0xff]   ;;  %615 = vmatpush1.bf16.msra.mxu1 %v8227_v11  ;;  %v8231_v16 = vld [vmem:[#allocation5 + $0x7c] ss:$28 sps:$4 sm:$0xff]   ;;  %v8219_v19 = vld [vmem:[#allocation5 + $0x154] ss:$28 sps:$4 sm:$0xff]  }
  0xd1   :  { %574 = vmatpush1.bf16.msra.mxu0 %v8206_v4  ;;  %616 = vmatprep.subr.bf16.mxu1 %v8228_v12  ;;  %v8234_v20 = vld [vmem:[#allocation5 + $0xb4] ss:$28 sps:$4 sm:$0xff]   ;;  %v8222_v23 = vld [vmem:[#allocation5 + $0x18c] ss:$28 sps:$4 sm:$0xff]   ;;  %v180_v27 = vld [vmem:[#allocation2 + $0x8] sm:$0xff]  ;;  %v9279_v46 = vmov 0.0  }
  0xd2   :  { %575 = vmatprep.subr.bf16.mxu0 %v8207_v5  ;;  %v8221_v21 = vld [vmem:[#allocation5 + $0x150] ss:$28 sps:$4 sm:$0xff]   ;;  %v8224_v25 = vld [vmem:[#allocation5 + $0x188] ss:$28 sps:$4 sm:$0xff]   ;;  %v9479_v31 = vpack.c.bf16 %v180_v27, %v179_v26  ;;  %v8242_v32 = vld [vmem:[#allocation5 + $0x120] ss:$28 sps:$4 sm:$0xff]  }
  0xd3   :  { %v8236_v22 = vld [vmem:[#allocation5 + $0xb0] ss:$28 sps:$4 sm:$0xff]   ;;  %v8239_v28 = vld [vmem:[#allocation5 + $0xe8] ss:$28 sps:$4 sm:$0xff]   ;;  %v8243_v34 = vld [vmem:[#allocation5 + $0x15c] ss:$28 sps:$4 sm:$0xff]  }
  0xd4   :  { %617 = vmatpush1.bf16.msra.mxu1 %v8230_v14  ;;  %v8237_v24 = vld [vmem:[#allocation5 + $0xec] ss:$28 sps:$4 sm:$0xff]   ;;  %v8240_v29 = vld [vmem:[#allocation5 + $0x124] ss:$28 sps:$4 sm:$0xff]   ;;  %v8251_v30 = vld [vmem:[#allocation5 + $0x14] ss:$28 sps:$4 sm:$0xff]  }
  0xd5   :  { %576 = vmatpush1.bf16.msra.mxu0 %v8209_v6  ;;  %618 = vmatprep.subr.bf16.mxu1 %v8231_v16  ;;  %v8249_v33 = vld [vmem:[#allocation5 + $0x10] ss:$28 sps:$4 sm:$0xff]   ;;  %v8245_v36 = vld [vmem:[#allocation5 + $0x158] ss:$28 sps:$4 sm:$0xff]   ;;  %v8252_v38 = vld [vmem:[#allocation5 + $0x48] ss:$28 sps:$4 sm:$0xff]  }
  0xd6   :  { %577 = vmatprep.subr.bf16.mxu0 %v8210_v7  ;;  %v8254_v35 = vld [vmem:[#allocation5 + $0x4c] ss:$28 sps:$4 sm:$0xff]   ;;  %v8246_v37 = vld [vmem:[#allocation5 + $0x194] ss:$28 sps:$4 sm:$0xff]   ;;  %v8257_v39 = vld [vmem:[#allocation5 + $0x84] ss:$28 sps:$4 sm:$0xff]  }
  0xd7   :  { %v8248_v40 = vld [vmem:[#allocation5 + $0x190] ss:$28 sps:$4 sm:$0xff]   ;;  %v8255_v41 = vld [vmem:[#allocation5 + $0x80] ss:$28 sps:$4 sm:$0xff]   ;;  %v8258_v43 = vld [vmem:[#allocation5 + $0xb8] ss:$28 sps:$4 sm:$0xff]  }
  0xd8   :  { %619 = vmatpush1.bf16.msra.mxu1 %v8233_v18  ;;  %v8260_v42 = vld [vmem:[#allocation5 + $0xbc] ss:$28 sps:$4 sm:$0xff]   ;;  %v8263_v45 = vld [vmem:[#allocation5 + $0xf4] ss:$28 sps:$4 sm:$0xff]   ;;  %v8266_v49 = vld [vmem:[#allocation5 + $0x12c] ss:$28 sps:$4 sm:$0xff]  }
  0xd9   :  { %578 = vmatpush1.bf16.msra.mxu0 %v8212_v8  ;;  %620 = vmatprep.subr.bf16.mxu1 %v8234_v20  ;;  %v8273_v44 = vld [vmem:[#allocation5 + $0x18] ss:$28 sps:$4 sm:$0xff]   ;;  %v8261_v47 = vld [vmem:[#allocation5 + $0xf0] ss:$28 sps:$4 sm:$0xff]   ;;  %vm9280_vm0 = vmmov 0   ;;  %s9281_s10 = smov [#allocation20]  }
  0xda   :  { %579 = vmatprep.subr.bf16.mxu0 %v8213_v9  ;;  %v8274_v48 = vld [vmem:[#allocation5 + $0x50] ss:$28 sps:$4 sm:$0xff]   ;;  %v8264_v50 = vld [vmem:[#allocation5 + $0x128] ss:$28 sps:$4 sm:$0xff]   ;;  %v8267_v53 = vld [vmem:[#allocation5 + $0x160] ss:$28 sps:$4 sm:$0xff]  }
  0xdb   :  { %v8275_v51 = vld [vmem:[#allocation5 + $0x88] ss:$28 sps:$4 sm:$0xff]   ;;  %v8276_v54 = vld [vmem:[#allocation5 + $0xc0] ss:$28 sps:$4 sm:$0xff]   ;;  %v8270_v56 = vld [vmem:[#allocation5 + $0x198] ss:$28 sps:$4 sm:$0xff]  }
  0xdc   :  { %621 = vmatpush1.bf16.msra.mxu1 %v8236_v22  ;;  %v8269_v52 = vld [vmem:[#allocation5 + $0x164] ss:$28 sps:$4 sm:$0xff]   ;;  %v8272_v55 = vld [vmem:[#allocation5 + $0x19c] ss:$28 sps:$4 sm:$0xff]   ;;  %v8278_v59 = vld [vmem:[#allocation5 + $0x130] ss:$28 sps:$4 sm:$0xff]  }
  0xdd   :  { %580 = vmatpush1.bf16.msra.mxu0 %v8215_v13  ;;  %622 = vmatprep.subr.bf16.mxu1 %v8237_v24  ;;  %v8277_v57 = vld [vmem:[#allocation5 + $0xf8] ss:$28 sps:$4 sm:$0xff]   ;;  %v8283_v58 = vld [vmem:[#allocation8 + $0x4] ss:$20 sps:$4 sm:$0xff]   ;;  %v8281_v60 = vld [vmem:[#allocation8] ss:$20 sps:$4 sm:$0xff]  }
  0xde   :  { %581 = vmatprep.subr.bf16.mxu0 %v8216_v15  ;;  %v8289_v61 = vld [vmem:[#allocation8 + $0x2c] ss:$20 sps:$4 sm:$0xff]   ;;  %v8287_v63 = vld [vmem:[#allocation8 + $0x28] ss:$20 sps:$4 sm:$0xff]   ;;  %v8280_v2 = vld [vmem:[#allocation5 + $0x1a0] ss:$28 sps:$4 sm:$0xff]  }
  0xdf   :  { %v8279_v62 = vld [vmem:[#allocation5 + $0x168] ss:$28 sps:$4 sm:$0xff]   ;;  %v8295_v1 = vld [vmem:[#allocation8 + $0x54] ss:$20 sps:$4 sm:$0xff]   ;;  %v8293_v3 = vld [vmem:[#allocation8 + $0x50] ss:$20 sps:$4 sm:$0xff]  }
  0xe0   :  { %623 = vmatpush1.bf16.msra.mxu1 %v8239_v28  ;;  %v8286_v4 = vld [vmem:[#allocation8 + $0xc] ss:$20 sps:$4 sm:$0xff]   ;;  %v8301_v5 = vld [vmem:[#allocation8 + $0x7c] ss:$20 sps:$4 sm:$0xff]   ;;  %v8292_v7 = vld [vmem:[#allocation8 + $0x34] ss:$20 sps:$4 sm:$0xff]  }
  0xe1   :  { %582 = vmatpush1.bf16.msra.mxu0 %v8218_v17  ;;  %624 = vmatprep.subr.bf16.mxu1 %v8240_v29  ;;  %v8284_v6 = vld [vmem:[#allocation8 + $0x8] ss:$20 sps:$4 sm:$0xff]   ;;  %v8299_v8 = vld [vmem:[#allocation8 + $0x78] ss:$20 sps:$4 sm:$0xff]   ;;  %v8290_v10 = vld [vmem:[#allocation8 + $0x30] ss:$20 sps:$4 sm:$0xff]  }
  0xe2   :  { %583 = vmatprep.subr.bf16.mxu0 %v8219_v19  ;;  %v8307_v9 = vld [vmem:[#allocation8 + $0xa4] ss:$20 sps:$4 sm:$0xff]   ;;  %v8305_v11 = vld [vmem:[#allocation8 + $0xa0] ss:$20 sps:$4 sm:$0xff]   ;;  %v8298_v12 = vld [vmem:[#allocation8 + $0x5c] ss:$20 sps:$4 sm:$0xff]  }
  0xe3   :  { %v8313_v13 = vld [vmem:[#allocation8 + $0xcc] ss:$20 sps:$4 sm:$0xff]   ;;  %v8311_v15 = vld [vmem:[#allocation8 + $0xc8] ss:$20 sps:$4 sm:$0xff]   ;;  %v8304_v16 = vld [vmem:[#allocation8 + $0x84] ss:$20 sps:$4 sm:$0xff]  }
  0xe4   :  { %625 = vmatpush1.bf16.msra.mxu1 %v8242_v32  ;;  %v8296_v14 = vld [vmem:[#allocation8 + $0x58] ss:$20 sps:$4 sm:$0xff]   ;;  %v8319_v17 = vld [vmem:[#allocation8 + $0xf4] ss:$20 sps:$4 sm:$0xff]   ;;  %v8317_v19 = vld [vmem:[#allocation8 + $0xf0] ss:$20 sps:$4 sm:$0xff]  }
  0xe5   :  { %584 = vmatpush1.bf16.msra.mxu0 %v8221_v21  ;;  %626 = vmatprep.subr.bf16.mxu1 %v8243_v34  ;;  %v8302_v18 = vld [vmem:[#allocation8 + $0x80] ss:$20 sps:$4 sm:$0xff]   ;;  %v8325_v21 = vld [vmem:[#allocation8 + $0x11c] ss:$20 sps:$4 sm:$0xff]   ;;  %v8328_v32 = vld [vmem:[#allocation8 + $0x124] ss:$20 sps:$4 sm:$0xff]  }
  0xe6   :  { %585 = vmatprep.subr.bf16.mxu0 %v8222_v23  ;;  %v8310_v20 = vld [vmem:[#allocation8 + $0xac] ss:$20 sps:$4 sm:$0xff]   ;;  %v8308_v22 = vld [vmem:[#allocation8 + $0xa8] ss:$20 sps:$4 sm:$0xff]   ;;  %v8314_v26 = vld [vmem:[#allocation8 + $0xd0] ss:$20 sps:$4 sm:$0xff]  }
  0xe7   :  { %v8323_v23 = vld [vmem:[#allocation8 + $0x118] ss:$20 sps:$4 sm:$0xff]   ;;  %v8316_v24 = vld [vmem:[#allocation8 + $0xd4] ss:$20 sps:$4 sm:$0xff]   ;;  %v8322_v28 = vld [vmem:[#allocation8 + $0xfc] ss:$20 sps:$4 sm:$0xff]  }
  0xe8   :  { %627 = vmatpush1.bf16.msra.mxu1 %v8245_v36  ;;  %v8329_v27 = vld [vmem:[#allocation8 + $0x140] ss:$20 sps:$4 sm:$0xff]   ;;  %s7040_s25 = sshll.u32 %s9281_s10, 4  ;;  %s7041_s25 = int_to_ptr.vmem [resolvable:$true] %s7040_s25 }
  0xe9   :  { %586 = vmatpush1.bf16.msra.mxu0 %v8224_v25  ;;  %628 = vmatprep.subr.bf16.mxu1 %v8246_v37  ;;  %v8331_v25 = vld [vmem:[#allocation8 + $0x144] ss:$20 sps:$4 sm:$0xff]   ;;  %v8337_v29 = vld [vmem:[#allocation8 + $0x16c] ss:$20 sps:$4 sm:$0xff]   ;;  %v8349_v37 = vld [vmem:[#allocation8 + $0x1bc] ss:$20 sps:$4 sm:$0xff]   ;;  %p9224_p5 = scmp.lt.s32.totalorder %s7041_s25, %s7041_s25 }
  0xea   :  { %657 = vmatprep.subr.bf16.mxu0 %v8251_v30  ;;  %v8320_v30 = vld [vmem:[#allocation8 + $0xf8] ss:$20 sps:$4 sm:$0xff]   ;;  %v8326_v34 = vld [vmem:[#allocation8 + $0x120] ss:$20 sps:$4 sm:$0xff]   ;;  %s9219_s4 = scalar_lea.vmem %s7041_s25, 256 }
  0xeb   :  { %v8334_v36 = vld [vmem:[#allocation8 + $0x14c] ss:$20 sps:$4 sm:$0xff]   ;;  %p9220_p4 = scmp.ne.s32.totalorder %s7041_s25, %s9219_s4  ;;  %p9225_p6 = scmp.lt.s32.totalorder %s9219_s4, %s9219_s4 }
  0xec   :  { %604 = vmatmul.mubr.bf16.vlgmr.msra.gmra.mrb[0].mxu0 %v9479_v31  ;;  %629 = vmatpush1.bf16.msra.mxu1 %v8248_v40  ;;  %v8340_v40 = vld [vmem:[#allocation8 + $0x174] ss:$20 sps:$4 sm:$0xff]  }
  0xed   :  { %658 = vmatpush1.bf16.msra.mxu0 %v8249_v33  ;;  %689 = vmatprep.mubr.bf16.mxu0 %v9278_v0  ;;  %v8343_v33 = vld [vmem:[#allocation8 + $0x194] ss:$20 sps:$4 sm:$0xff]   ;;  %p9226_p7 = por %p9225_p6, %p9224_p5 }
  0xee   :  { %659 = vmatprep.subr.bf16.mxu0 %v8254_v35  ;;  %8046 = vmatprep.subr.bf16.mxu1 %v9279_v46  ;;  %v8341_v35 = vld [vmem:[#allocation8 + $0x190] ss:$20 sps:$4 sm:$0xff]  }
  0xef   :  { %647 = vmatmul.mubr.bf16.vlgmr.msra.gmra.mrb[0].mxu1 %v9479_v31  ;;  %p9227_p8 = pnand %p9226_p7, %p9220_p4 }
  0xf0   :  { %8047 = vmatpush3.bf16.msra.mxu1 %v8273_v44  ;;  %8062 = vmatprep.mubr.msk.bf16.mxu1 %vm9280_vm0, %v9279_v46  ;;  %v8346_v44 = vld [vmem:[#allocation8 + $0x19c] ss:$20 sps:$4 sm:$0xff]  }
  0xf1   :  { %660 = vmatpush1.bf16.msra.mxu0 %v8252_v38  ;;  %8048 = vmatprep.subr.bf16.mxu1 %v9279_v46  ;;  %v8332_v38 = vld [vmem:[#allocation8 + $0x148] ss:$20 sps:$4 sm:$0xff]  }
  0xf2   :  { %661 = vmatprep.subr.bf16.mxu0 %v8257_v39  ;;  %v8347_v39 = vld [vmem:[#allocation8 + $0x1b8] ss:$20 sps:$4 sm:$0xff]  }
  0xf4   :  { %8049 = vmatpush3.bf16.msra.mxu1 %v8274_v48  ;;  %v8352_v48 = vld [vmem:[#allocation8 + $0x1c4] ss:$20 sps:$4 sm:$0xff]  }
  0xf5   :  { %662 = vmatpush1.bf16.msra.mxu0 %v8255_v41  ;;  %8050 = vmatprep.subr.bf16.mxu1 %v9279_v46  ;;  %v8355_v41 = vld [vmem:[#allocation8 + $0x1e4] ss:$20 sps:$4 sm:$0xff]  }
  0xf6   :  { %663 = vmatprep.subr.bf16.mxu0 %v8260_v42  ;;  %v8338_v42 = vld [vmem:[#allocation8 + $0x170] ss:$20 sps:$4 sm:$0xff]  }
  0xf8   :  { %8051 = vmatpush3.bf16.msra.mxu1 %v8275_v51  ;;  %v8367_v51 = vld [vmem:[#allocation8 + $0x234] ss:$20 sps:$4 sm:$0xff]  }
  0xf9   :  { %664 = vmatpush1.bf16.msra.mxu0 %v8258_v43  ;;  %8052 = vmatprep.subr.bf16.mxu1 %v9279_v46  ;;  %v8353_v43 = vld [vmem:[#allocation8 + $0x1e0] ss:$20 sps:$4 sm:$0xff]  }
  0xfa   :  { %665 = vmatprep.subr.bf16.mxu0 %v8263_v45  ;;  %v8344_v45 = vld [vmem:[#allocation8 + $0x198] ss:$20 sps:$4 sm:$0xff]  }
  0xfc   :  { %8053 = vmatpush3.bf16.msra.mxu1 %v8276_v54  ;;  %v8356_v54 = vld [vmem:[#allocation8 + $0x1e8] ss:$20 sps:$4 sm:$0xff]  }
  0xfd   :  { %666 = vmatpush1.bf16.msra.mxu0 %v8261_v47  ;;  %8054 = vmatprep.subr.bf16.mxu1 %v9279_v46  ;;  %v8361_v47 = vld [vmem:[#allocation8 + $0x20c] ss:$20 sps:$4 sm:$0xff]  }
  0xfe   :  { %667 = vmatprep.subr.bf16.mxu0 %v8266_v49  ;;  %v8359_v49 = vld [vmem:[#allocation8 + $0x208] ss:$20 sps:$4 sm:$0xff]  }
 0x100   :  { %8055 = vmatpush3.bf16.msra.mxu1 %v8277_v57  ;;  %v8371_v57 = vld [vmem:[#allocation8 + $0x258] ss:$20 sps:$4 sm:$0xff]  }
 0x101   :  { %668 = vmatpush1.bf16.msra.mxu0 %v8264_v50  ;;  %8056 = vmatprep.subr.bf16.mxu1 %v9279_v46  ;;  %v8350_v50 = vld [vmem:[#allocation8 + $0x1c0] ss:$20 sps:$4 sm:$0xff]  }
 0x102   :  { %669 = vmatprep.subr.bf16.mxu0 %v8269_v52  ;;  %v8358_v52 = vld [vmem:[#allocation8 + $0x1ec] ss:$20 sps:$4 sm:$0xff]  }
 0x104   :  { %8057 = vmatpush3.bf16.msra.mxu1 %v8278_v59  ;;  %v8379_v59 = vld [vmem:[#allocation8 + $0x284] ss:$20 sps:$4 sm:$0xff]  }
 0x105   :  { %670 = vmatpush1.bf16.msra.mxu0 %v8267_v53  ;;  %8058 = vmatprep.subr.bf16.mxu1 %v9279_v46  ;;  %v8365_v53 = vld [vmem:[#allocation8 + $0x230] ss:$20 sps:$4 sm:$0xff]  }
 0x106   :  { %671 = vmatprep.subr.bf16.mxu0 %v8272_v55  ;;  %v8373_v55 = vld [vmem:[#allocation8 + $0x25c] ss:$20 sps:$4 sm:$0xff]  }
 0x108   :  { %8059 = vmatpush3.bf16.msra.mxu1 %v8279_v62  ;;  %v8376_v62 = vld [vmem:[#allocation8 + $0x264] ss:$20 sps:$4 sm:$0xff]  }
 0x109   :  { %672 = vmatpush1.bf16.msra.mxu0 %v8270_v56  ;;  %8060 = vmatprep.subr.bf16.mxu1 %v9279_v46  ;;  %v8364_v56 = vld [vmem:[#allocation8 + $0x214] ss:$20 sps:$4 sm:$0xff]  }
 0x10a   :  { %2595 = vmatprep.subr.bf16.mxu0 %v8283_v58  ;;  %v8362_v58 = vld [vmem:[#allocation8 + $0x210] ss:$20 sps:$4 sm:$0xff]  }
 0x10c   :  { %690 = vmatmul.mubr.bf16.vlgmr.msra.gmra.mrb[4].mxu0 %v9479_v31  ;;  %8061 = vmatpush3.bf16.msra.mxu1 %v8280_v2  ;;  %v248_v2 = vlaneseq }
 0x10d   :  { %2596 = vmatpush1.bf16.msra.mxu0 %v8281_v60  ;;  %2767 = vmatprep.subr.bf16.mxu1 %v8286_v4  ;;  %v8370_v60 = vld [vmem:[#allocation8 + $0x23c] ss:$20 sps:$4 sm:$0xff]  }
 0x10e   :  { %2597 = vmatprep.subr.bf16.mxu0 %v8289_v61  ;;  %v8368_v61 = vld [vmem:[#allocation8 + $0x238] ss:$20 sps:$4 sm:$0xff]  }
 0x10f   :  { %8063 = vmatmul.mubr.bf16.vlgmr.msra.gmra.mrb[4].mxu1 %v9479_v31  ;;  %v8335_v31 = vld [vmem:[#allocation8 + $0x168] ss:$20 sps:$4 sm:$0xff]  }
 0x110   :  { %2768 = vmatpush1.bf16.msra.mxu1 %v8284_v6 }
 0x111   :  { %2598 = vmatpush1.bf16.msra.mxu0 %v8287_v63  ;;  %2769 = vmatprep.subr.bf16.mxu1 %v8292_v7  ;;  %v8374_v63 = vld [vmem:[#allocation8 + $0x260] ss:$20 sps:$4 sm:$0xff]  }
 0x112   :  { %2599 = vmatprep.subr.bf16.mxu0 %v8295_v1  ;;  %v8382_v1 = vld [vmem:[#allocation8 + $0x28c] ss:$20 sps:$4 sm:$0xff]  }
 0x114   :  { %2770 = vmatpush1.bf16.msra.mxu1 %v8290_v10 }
 0x115   :  { %2600 = vmatpush1.bf16.msra.mxu0 %v8293_v3  ;;  %2771 = vmatprep.subr.bf16.mxu1 %v8298_v12  ;;  %v9496_v3 = vshrl.u32 %v248_v2, 7  ;;  %v8406_v2 = vld [vmem:[#allocation8 + $0x32c] ss:$20 sps:$4 sm:$0xff]  }
 0x116   :  { %2601 = vmatprep.subr.bf16.mxu0 %v8301_v5  ;;  %v9501_v5 = vld [vmem:[#allocation7] sm:$0xff] }
 0x117   :  { %v9499_v4 = vsub.s32 0, %v9496_v3  ;;  %v9504_v6 = vsub.s32 1, %v9496_v3 }
 0x118   :  { %2772 = vmatpush1.bf16.msra.mxu1 %v8296_v14 }
 0x119   :  { %2602 = vmatpush1.bf16.msra.mxu0 %v8299_v8  ;;  %2773 = vmatprep.subr.bf16.mxu1 %v8304_v16  ;;  %v251_v7 = vrot.slane %v9501_v5, %v9499_v4  ;;  %v255_v8 = vrot.slane %v9501_v5, %v9504_v6 }
 0x11a   :  { %2603 = vmatprep.subr.bf16.mxu0 %v8307_v9 }
 0x11c   :  { %2774 = vmatpush1.bf16.msra.mxu1 %v8302_v18 }
 0x11d   :  { %2604 = vmatpush1.bf16.msra.mxu0 %v8305_v11  ;;  %2775 = vmatprep.subr.bf16.mxu1 %v8310_v20  ;;  %v9511_v20 = vsub.s32 2, %v9496_v3 }
 0x11e   :  { %2605 = vmatprep.subr.bf16.mxu0 %v8313_v13 }
 0x120   :  { %2776 = vmatpush1.bf16.msra.mxu1 %v8308_v22  ;;  %v9514_v22 = vsub.s32 3, %v9496_v3 }
 0x121   :  { %2606 = vmatpush1.bf16.msra.mxu0 %v8311_v15  ;;  %2777 = vmatprep.subr.bf16.mxu1 %v8316_v24 }
 0x122   :  { %2607 = vmatprep.subr.bf16.mxu0 %v8319_v17 }
 0x124   :  { %2778 = vmatpush1.bf16.msra.mxu1 %v8314_v26 }
 0x125   :  { %2608 = vmatpush1.bf16.msra.mxu0 %v8317_v19  ;;  %2779 = vmatprep.subr.bf16.mxu1 %v8322_v28  ;;  %v8380_v28 = vld [vmem:[#allocation8 + $0x288] ss:$20 sps:$4 sm:$0xff]  }
 0x126   :  { %2609 = vmatprep.subr.bf16.mxu0 %v8325_v21 }
 0x128   :  { %2780 = vmatpush1.bf16.msra.mxu1 %v8320_v30  ;;  %v259_v30 = vrot.slane %v9501_v5, %v9511_v20 }
 0x129   :  { %2610 = vmatpush1.bf16.msra.mxu0 %v8323_v23  ;;  %2781 = vmatprep.subr.bf16.mxu1 %v8328_v32  ;;  %v263_v32 = vrot.slane %v9501_v5, %v9514_v22 }
 0x12a   :  { %2611 = vmatprep.subr.bf16.mxu0 %v8331_v25 }
 0x12c   :  { %2782 = vmatpush1.bf16.msra.mxu1 %v8326_v34  ;;  %v8388_v34 = vld [vmem:[#allocation8 + $0x2b4] ss:$20 sps:$4 sm:$0xff]  }
 0x12d   :  { %2612 = vmatpush1.bf16.msra.mxu0 %v8329_v27  ;;  %2783 = vmatprep.subr.bf16.mxu1 %v8334_v36  ;;  %v8377_v27 = vld [vmem:[#allocation8 + $0x280] ss:$20 sps:$4 sm:$0xff]  }
 0x12e   :  { %2613 = vmatprep.subr.bf16.mxu0 %v8337_v29 }
 0x130   :  { %2784 = vmatpush1.bf16.msra.mxu1 %v8332_v38 }
 0x131   :  { %2614 = vmatpush1.bf16.msra.mxu0 %v8335_v31  ;;  %2785 = vmatprep.subr.bf16.mxu1 %v8340_v40  ;;  %v8391_v40 = vld [vmem:[#allocation8 + $0x2d4] ss:$20 sps:$4 sm:$0xff]  }
 0x132   :  { %2615 = vmatprep.subr.bf16.mxu0 %v8343_v33  ;;  %v8385_v33 = vld [vmem:[#allocation8 + $0x2ac] ss:$20 sps:$4 sm:$0xff]  }
 0x134   :  { %2786 = vmatpush1.bf16.msra.mxu1 %v8338_v42 }
 0x135   :  { %2616 = vmatpush1.bf16.msra.mxu0 %v8341_v35  ;;  %2787 = vmatprep.subr.bf16.mxu1 %v8346_v44  ;;  %v8383_v35 = vld [vmem:[#allocation8 + $0x2a8] ss:$20 sps:$4 sm:$0xff]  }
 0x136   :  { %2617 = vmatprep.subr.bf16.mxu0 %v8349_v37 }
 0x138   :  { %2788 = vmatpush1.bf16.msra.mxu1 %v8344_v45 }
 0x139   :  { %2618 = vmatpush1.bf16.msra.mxu0 %v8347_v39  ;;  %2789 = vmatprep.subr.bf16.mxu1 %v8352_v48  ;;  %v8386_v39 = vld [vmem:[#allocation8 + $0x2b0] ss:$20 sps:$4 sm:$0xff]  }
 0x13a   :  { %2619 = vmatprep.subr.bf16.mxu0 %v8355_v41 }
 0x13c   :  { %2790 = vmatpush1.bf16.msra.mxu1 %v8350_v50 }
 0x13d   :  { %2620 = vmatpush1.bf16.msra.mxu0 %v8353_v43  ;;  %2791 = vmatprep.subr.bf16.mxu1 %v8358_v52  ;;  %v8394_v43 = vld [vmem:[#allocation8 + $0x2dc] ss:$20 sps:$4 sm:$0xff]  }
 0x13e   :  { %2621 = vmatprep.subr.bf16.mxu0 %v8361_v47  ;;  %v8389_v52 = vld [vmem:[#allocation8 + $0x2d0] ss:$20 sps:$4 sm:$0xff]  }
 0x140   :  { %2792 = vmatpush1.bf16.msra.mxu1 %v8356_v54 }
 0x141   :  { %2622 = vmatpush1.bf16.msra.mxu0 %v8359_v49  ;;  %2793 = vmatprep.subr.bf16.mxu1 %v8364_v56  ;;  %v8397_v56 = vld [vmem:[#allocation8 + $0x2fc] ss:$20 sps:$4 sm:$0xff]  }
 0x142   :  { %2623 = vmatprep.subr.bf16.mxu0 %v8367_v51 }
 0x144   :  { %2794 = vmatpush1.bf16.msra.mxu1 %v8362_v58 }
 0x145   :  { %2624 = vmatpush1.bf16.msra.mxu0 %v8365_v53  ;;  %2795 = vmatprep.subr.bf16.mxu1 %v8370_v60  ;;  %v8392_v53 = vld [vmem:[#allocation8 + $0x2d8] ss:$20 sps:$4 sm:$0xff]  }
 0x146   :  { %2625 = vmatprep.subr.bf16.mxu0 %v8373_v55 }
 0x148   :  { %2796 = vmatpush1.bf16.msra.mxu1 %v8368_v61  ;;  %v8395_v61 = vld [vmem:[#allocation8 + $0x2f8] ss:$20 sps:$4 sm:$0xff]  }
 0x149   :  { %2626 = vmatpush1.bf16.msra.mxu0 %v8371_v57  ;;  %2797 = vmatprep.subr.bf16.mxu1 %v8376_v62  ;;  %v8400_v57 = vld [vmem:[#allocation8 + $0x304] ss:$20 sps:$4 sm:$0xff]   ;;  %v8398_v62 = vld [vmem:[#allocation8 + $0x300] ss:$20 sps:$4 sm:$0xff]  }
 0x14a   :  { %2638 = vmatprep.subr.bf16.mxu0 %v8379_v59 }
 0x14c   :  { %2798 = vmatpush1.bf16.msra.mxu1 %v8374_v63 }
 0x14d   :  { %2810 = vmatprep.subr.bf16.mxu1 %v8382_v1  ;;  %v8403_v1 = vld [vmem:[#allocation8 + $0x324] ss:$20 sps:$4 sm:$0xff]  }
 0x1bf   :  { %v605_v9 = vpop.f32.mrb[0].mxu0 }
 0x1c0   :  { %v606_v10 = vadd.f32 %v605_v9, %v251_v7  ;;  %v607_v11 = vpop.f32.mrb[1].mxu0  ;;  %v8404_v9 = vld [vmem:[#allocation8 + $0x328] ss:$20 sps:$4 sm:$0xff]  }
 0x1c1   :  { %v608_v12 = vadd.f32 %v607_v11, %v255_v8  ;;  %v609_v13 = vpop.f32.mrb[2].mxu0  ;;  %v8409_v11 = vld [vmem:[#allocation8 + $0x34c] ss:$20 sps:$4 sm:$0xff]  }
 0x1c2   :  { %v741_v14 = vmul.f32 0.01, %v606_v10  ;;  %v610_v15 = vadd.f32 %v609_v13, %v251_v7  ;;  %v611_v16 = vpop.f32.mrb[3].mxu0  ;;  %v648_v36 = vpop.f32.mrb[0].mxu1  ;;  %v9535_v7 = vsub.s32 4, %v9496_v3 }
 0x1c3   :  { %v742_v17 = vmul.f32 0.01, %v608_v12  ;;  %v612_v18 = vadd.f32 %v611_v16, %v255_v8  ;;  %v649_v37 = vadd.f32 %v648_v36, %v259_v30  ;;  %v650_v38 = vpop.f32.mrb[1].mxu1  ;;  %v8401_v8 = vld [vmem:[#allocation8 + $0x320] ss:$20 sps:$4 sm:$0xff]  }
 0x1c4   :  { %v748_v19 = vmul.f32 0.01, %v610_v15  ;;  %v755_v23 = vmax.f32 %v606_v10, %v741_v14  ;;  %v651_v41 = vadd.f32 %v650_v38, %v263_v32  ;;  %v652_v42 = vpop.f32.mrb[2].mxu1  ;;  %v270_v10 = vsub.s32 5, %v9496_v3  ;;  %v8407_v14 = vld [vmem:[#allocation8 + $0x348] ss:$20 sps:$4 sm:$0xff]  }
 0x1c5   :  { %v749_v21 = vmul.f32 0.01, %v612_v18  ;;  %v756_v25 = vmax.f32 %v608_v12, %v742_v17  ;;  %v743_v44 = vmul.f32 0.01, %v649_v37  ;;  %v653_v45 = vadd.f32 %v652_v42, %v259_v30  ;;  %v654_v47 = vpop.f32.mrb[3].mxu1 }
 0x1c6   :  { %v762_v24 = vmax.f32 %v610_v15, %v748_v19  ;;  %v744_v48 = vmul.f32 0.01, %v651_v41  ;;  %v655_v49 = vadd.f32 %v654_v47, %v263_v32  ;;  %v8412_v12 = vld [vmem:[#allocation8 + $0x354] ss:$20 sps:$4 sm:$0xff]   ;;  %v267_v13 = vrot.slane %v9501_v5, %v9535_v7  ;;  %v8410_v15 = vld [vmem:[#allocation8 + $0x350] ss:$20 sps:$4 sm:$0xff]  }
 0x1c7   :  { %v763_v26 = vmax.f32 %v612_v18, %v749_v21  ;;  %v757_v50 = vmax.f32 %v649_v37, %v743_v44  ;;  %v750_v51 = vmul.f32 0.01, %v653_v45  ;;  %v271_v16 = vrot.slane %v9501_v5, %v270_v10  ;;  %v8415_v17 = vld [vmem:[#allocation8 + $0x374] ss:$20 sps:$4 sm:$0xff]   ;;  %v8418_v18 = vld [vmem:[#allocation8 + $0x37c] ss:$20 sps:$4 sm:$0xff]  }
 0x1c8   :  { %v9516_v29 = vpack.c.bf16 %v762_v24, %v755_v23  ;;  %v758_v54 = vmax.f32 %v651_v41, %v744_v48  ;;  %v751_v55 = vmul.f32 0.01, %v655_v49  ;;  %v8413_v19 = vld [vmem:[#allocation8 + $0x370] ss:$20 sps:$4 sm:$0xff]   ;;  %v274_v37 = vsub.s32 6, %v9496_v3 }
 0x1c9   :  { %v9520_v31 = vpack.c.bf16 %v763_v26, %v756_v25  ;;  %v764_v58 = vmax.f32 %v653_v45, %v750_v51  ;;  %v8416_v25 = vld [vmem:[#allocation8 + $0x378] ss:$20 sps:$4 sm:$0xff]   ;;  %v8421_v26 = vld [vmem:[#allocation8 + $0x39c] ss:$20 sps:$4 sm:$0xff]   ;;  %v8422_v41 = vld [vmem:[#allocation8 + $0x3a0] ss:$20 sps:$4 sm:$0xff]  }
 0x1ca   :  { %v765_v59 = vmax.f32 %v655_v49, %v751_v55  ;;  %v8424_v30 = vld [vmem:[#allocation8 + $0x3a4] ss:$20 sps:$4 sm:$0xff]   ;;  %v8430_v45 = vld [vmem:[#allocation8 + $0x3cc] ss:$20 sps:$4 sm:$0xff]   ;;  %v8428_v49 = vld [vmem:[#allocation8 + $0x3c8] ss:$20 sps:$4 sm:$0xff]  }
 0x1cb   :  { %2627 = vmatprep.mubr.bf16.mxu0 %v9520_v31  ;;  %2799 = vmatprep.mubr.bf16.mxu1 %v9520_v31  ;;  %v9528_v60 = vpack.c.bf16 %v764_v58, %v757_v50  ;;  %v8427_v44 = vld [vmem:[#allocation8 + $0x3c4] ss:$20 sps:$4 sm:$0xff]   ;;  %v8425_v48 = vld [vmem:[#allocation8 + $0x3c0] ss:$20 sps:$4 sm:$0xff]  }
 0x1cc   :  { %2628 = vmatmul.mubr.bf16.vlgmr.msra.gmra.mrb[8].mxu0 %v9516_v29  ;;  %2800 = vmatmul.mubr.bf16.vlgmr.msra.gmra.mrb[8].mxu1 %v9516_v29  ;;  %v9530_v63 = vpack.c.bf16 %v765_v59, %v758_v54  ;;  %v8433_v54 = vld [vmem:[#allocation8 + $0x3ec] ss:$20 sps:$4 sm:$0xff]   ;;  %v8436_v55 = vld [vmem:[#allocation8 + $0x3f4] ss:$20 sps:$4 sm:$0xff]  }
 0x1cd   :  { %2639 = vmatpush1.bf16.msra.mxu0 %v8377_v27  ;;  %2811 = vmatpush1.bf16.msra.mxu1 %v8380_v28  ;;  %v8439_v59 = vld [vmem:[#allocation8 + $0x414] ss:$20 sps:$4 sm:$0xff]  }
 0x1ce   :  { %2640 = vmatprep.subr.bf16.mxu0 %v8385_v33  ;;  %2812 = vmatprep.subr.bf16.mxu1 %v8388_v34 }
 0x1cf   :  { %2670 = vmatprep.mubr.bf16.mxu0 %v9530_v63  ;;  %2842 = vmatprep.mubr.bf16.mxu1 %v9530_v63 }
 0x1d1   :  { %2641 = vmatpush1.bf16.msra.mxu0 %v8383_v35  ;;  %2813 = vmatpush1.bf16.msra.mxu1 %v8386_v39 }
 0x1d2   :  { %2642 = vmatprep.subr.bf16.mxu0 %v8391_v40  ;;  %2814 = vmatprep.subr.bf16.mxu1 %v8394_v43  ;;  %v8419_v40 = vld [vmem:[#allocation8 + $0x398] ss:$20 sps:$4 sm:$0xff]  }
 0x1d5   :  { %2643 = vmatpush1.bf16.msra.mxu0 %v8389_v52  ;;  %2815 = vmatpush1.bf16.msra.mxu1 %v8392_v53  ;;  %v275_v52 = vrot.slane %v9501_v5, %v274_v37  ;;  %v8442_v5 = vld [vmem:[#allocation8 + $0x41c] ss:$20 sps:$4 sm:$0xff]  }
 0x1d6   :  { %2644 = vmatprep.subr.bf16.mxu0 %v8397_v56  ;;  %2816 = vmatprep.subr.bf16.mxu1 %v8400_v57  ;;  %v8431_v56 = vld [vmem:[#allocation8 + $0x3e8] ss:$20 sps:$4 sm:$0xff]   ;;  %v8434_v57 = vld [vmem:[#allocation8 + $0x3f0] ss:$20 sps:$4 sm:$0xff]  }
 0x1d9   :  { %2645 = vmatpush1.bf16.msra.mxu0 %v8395_v61  ;;  %2817 = vmatpush1.bf16.msra.mxu1 %v8398_v62 }
 0x1da   :  { %2646 = vmatprep.subr.bf16.mxu0 %v8403_v1  ;;  %2818 = vmatprep.subr.bf16.mxu1 %v8406_v2 }
 0x1dd   :  { %2647 = vmatpush1.bf16.msra.mxu0 %v8401_v8  ;;  %2819 = vmatpush1.bf16.msra.mxu1 %v8404_v9 }
 0x1de   :  { %2648 = vmatprep.subr.bf16.mxu0 %v8409_v11  ;;  %2820 = vmatprep.subr.bf16.mxu1 %v8412_v12  ;;  %v8437_v11 = vld [vmem:[#allocation8 + $0x410] ss:$20 sps:$4 sm:$0xff]   ;;  %v8440_v12 = vld [vmem:[#allocation8 + $0x418] ss:$20 sps:$4 sm:$0xff]  }
 0x1df   :  { %v691_v21 = vpop.f32.mrb[4].mxu0 }
 0x1e0   :  { %v692_v23 = vadd.f32 %v691_v21, %v267_v13  ;;  %v693_v24 = vpop.f32.mrb[5].mxu0 }
 0x1e1   :  { %2649 = vmatpush1.bf16.msra.mxu0 %v8407_v14  ;;  %2821 = vmatpush1.bf16.msra.mxu1 %v8410_v15  ;;  %v694_v27 = vadd.f32 %v693_v24, %v271_v16  ;;  %v695_v28 = vpop.f32.mrb[6].mxu0  ;;  %v8445_v15 = vld [vmem:[#allocation8 + $0x43c] ss:$20 sps:$4 sm:$0xff]   ;;  %v8454_v24 = vld [vmem:[#allocation8 + $0x46c] ss:$20 sps:$4 sm:$0xff]  }
 0x1e2   :  { %2650 = vmatprep.subr.bf16.mxu0 %v8415_v17  ;;  %2822 = vmatprep.subr.bf16.mxu1 %v8418_v18  ;;  %v745_v32 = vmul.f32 0.01, %v692_v23  ;;  %v696_v33 = vadd.f32 %v695_v28, %v267_v13  ;;  %v697_v34 = vpop.f32.mrb[7].mxu0  ;;  %v734_v58 = vpop.f32.mrb[4].mxu1  ;;  %v8443_v18 = vld [vmem:[#allocation8 + $0x438] ss:$20 sps:$4 sm:$0xff]  }
 0x1e3   :  { %v746_v35 = vmul.f32 0.01, %v694_v27  ;;  %v698_v36 = vadd.f32 %v697_v34, %v271_v16  ;;  %v735_v61 = vadd.f32 %v734_v58, %v275_v52  ;;  %v8064_v62 = vpop.f32.mrb[5].mxu1  ;;  %v8448_v16 = vld [vmem:[#allocation8 + $0x444] ss:$20 sps:$4 sm:$0xff]  }
 0x1e4   :  { %v759_v38 = vmax.f32 %v692_v23, %v745_v32  ;;  %v752_v39 = vmul.f32 0.01, %v696_v33  ;;  %v737_v1 = vpop.f32.mrb[6].mxu1  ;;  %v8451_v23 = vld [vmem:[#allocation8 + $0x464] ss:$20 sps:$4 sm:$0xff]  }
 0x1e5   :  { %2651 = vmatpush1.bf16.msra.mxu0 %v8413_v19  ;;  %2823 = vmatpush1.bf16.msra.mxu1 %v8416_v25  ;;  %v760_v42 = vmax.f32 %v694_v27, %v746_v35  ;;  %v753_v43 = vmul.f32 0.01, %v698_v36  ;;  %v747_v2 = vmul.f32 0.01, %v735_v61  ;;  %v738_v8 = vadd.f32 %v737_v1, %v275_v52  ;;  %v8065_v9 = vpop.f32.mrb[7].mxu1 }
 0x1e6   :  { %2652 = vmatprep.subr.bf16.mxu0 %v8421_v26  ;;  %2824 = vmatprep.subr.bf16.mxu1 %v8424_v30  ;;  %v766_v47 = vmax.f32 %v696_v33, %v752_v39  ;;  %v8446_v19 = vld [vmem:[#allocation8 + $0x440] ss:$20 sps:$4 sm:$0xff]   ;;  %v8452_v26 = vld [vmem:[#allocation8 + $0x468] ss:$20 sps:$4 sm:$0xff]   ;;  %v8458_v32 = vld [vmem:[#allocation8 + $0x490] ss:$20 sps:$4 sm:$0xff]  }
 0x1e7   :  { %v767_v50 = vmax.f32 %v698_v36, %v753_v43  ;;  %v761_v13 = vmax.f32 %v735_v61, %v747_v2  ;;  %v754_v14 = vmul.f32 0.01, %v738_v8  ;;  %v8449_v25 = vld [vmem:[#allocation8 + $0x460] ss:$20 sps:$4 sm:$0xff]   ;;  %v8455_v30 = vld [vmem:[#allocation8 + $0x488] ss:$20 sps:$4 sm:$0xff]  }
 0x1e8   :  { %v9544_v51 = vpack.c.bf16 %v766_v47, %v759_v38  ;;  %v8457_v27 = vld [vmem:[#allocation8 + $0x48c] ss:$20 sps:$4 sm:$0xff]   ;;  %v8460_v28 = vld [vmem:[#allocation8 + $0x494] ss:$20 sps:$4 sm:$0xff]   ;;  %v8466_v34 = vld [vmem:[#allocation8 + $0x4bc] ss:$20 sps:$4 sm:$0xff]  }
 0x1e9   :  { %2653 = vmatpush1.bf16.msra.mxu0 %v8419_v40  ;;  %2825 = vmatpush1.bf16.msra.mxu1 %v8422_v41  ;;  %v9549_v53 = vpack.c.bf16 %v767_v50, %v760_v42  ;;  %v768_v17 = vmax.f32 %v738_v8, %v754_v14  ;;  %v8463_v33 = vld [vmem:[#allocation8 + $0x4b4] ss:$20 sps:$4 sm:$0xff]   ;;  %v8461_v35 = vld [vmem:[#allocation8 + $0x4b0] ss:$20 sps:$4 sm:$0xff]   ;;  %v8464_v36 = vld [vmem:[#allocation8 + $0x4b8] ss:$20 sps:$4 sm:$0xff]  }
 0x1ea   :  { %2654 = vmatprep.subr.bf16.mxu0 %v8427_v44  ;;  %2826 = vmatprep.subr.bf16.mxu1 %v8430_v45  ;;  %v8469_v38 = vld [vmem:[#allocation8 + $0x4dc] ss:$20 sps:$4 sm:$0xff]   ;;  %v8472_v39 = vld [vmem:[#allocation8 + $0x4e4] ss:$20 sps:$4 sm:$0xff]   ;;  %v8470_v41 = vld [vmem:[#allocation8 + $0x4e0] ss:$20 sps:$4 sm:$0xff]  }
 0x1eb   :  { %v9551_v21 = vpack.c.bf16 %v768_v17, %v761_v13  ;;  %v8467_v40 = vld [vmem:[#allocation8 + $0x4d8] ss:$20 sps:$4 sm:$0xff]   ;;  %v8473_v44 = vld [vmem:[#allocation8 + $0x500] ss:$20 sps:$4 sm:$0xff]   ;;  %v8476_v45 = vld [vmem:[#allocation8 + $0x508] ss:$20 sps:$4 sm:$0xff]  }
 0x1ec   :  { %v8475_v42 = vld [vmem:[#allocation8 + $0x504] ss:$20 sps:$4 sm:$0xff]   ;;  %v8478_v43 = vld [vmem:[#allocation8 + $0x50c] ss:$20 sps:$4 sm:$0xff]   ;;  %v8487_v52 = vld [vmem:[#allocation8 + $0x554] ss:$20 sps:$4 sm:$0xff]  }
 0x1ed   :  { %2655 = vmatpush1.bf16.msra.mxu0 %v8425_v48  ;;  %2827 = vmatpush1.bf16.msra.mxu1 %v8428_v49  ;;  %v8481_v47 = vld [vmem:[#allocation8 + $0x52c] ss:$20 sps:$4 sm:$0xff]   ;;  %v8484_v48 = vld [vmem:[#allocation8 + $0x534] ss:$20 sps:$4 sm:$0xff]   ;;  %v8482_v50 = vld [vmem:[#allocation8 + $0x530] ss:$20 sps:$4 sm:$0xff]  }
 0x1ee   :  { %2656 = vmatprep.subr.bf16.mxu0 %v8433_v54  ;;  %2828 = vmatprep.subr.bf16.mxu1 %v8436_v55  ;;  %v8479_v49 = vld [vmem:[#allocation8 + $0x528] ss:$20 sps:$4 sm:$0xff]   ;;  %v8485_v55 = vld [vmem:[#allocation8 + $0x550] ss:$20 sps:$4 sm:$0xff]   ;;  %v8494_v61 = vld [vmem:[#allocation8 + $0x580] ss:$20 sps:$4 sm:$0xff]  }
 0x1ef   :  { %v8490_v54 = vld [vmem:[#allocation8 + $0x55c] ss:$20 sps:$4 sm:$0xff]   ;;  %v8496_v58 = vld [vmem:[#allocation8 + $0x584] ss:$20 sps:$4 sm:$0xff]   ;;  %v8502_v1 = vld [vmem:[#allocation8 + $0x5ac] ss:$20 sps:$4 sm:$0xff]  }
 0x1f0   :  { %v8499_v62 = vld [vmem:[#allocation8 + $0x5a4] ss:$20 sps:$4 sm:$0xff]   ;;  %v8500_v2 = vld [vmem:[#allocation8 + $0x5a8] ss:$20 sps:$4 sm:$0xff]   ;;  %v8505_v8 = vld [vmem:[#allocation8 + $0x5cc] ss:$20 sps:$4 sm:$0xff]  }
 0x1f1   :  { %2657 = vmatpush1.bf16.msra.mxu0 %v8431_v56  ;;  %2829 = vmatpush1.bf16.msra.mxu1 %v8434_v57  ;;  %v8488_v56 = vld [vmem:[#allocation8 + $0x558] ss:$20 sps:$4 sm:$0xff]   ;;  %v8493_v57 = vld [vmem:[#allocation8 + $0x57c] ss:$20 sps:$4 sm:$0xff]   ;;  %v8508_v9 = vld [vmem:[#allocation8 + $0x5d4] ss:$20 sps:$4 sm:$0xff]  }
 0x1f2   :  { %2658 = vmatprep.subr.bf16.mxu0 %v8439_v59  ;;  %2830 = vmatprep.subr.bf16.mxu1 %v8442_v5  ;;  %v8491_v59 = vld [vmem:[#allocation8 + $0x578] ss:$20 sps:$4 sm:$0xff]   ;;  %v8497_v5 = vld [vmem:[#allocation8 + $0x5a0] ss:$20 sps:$4 sm:$0xff]   ;;  %v8514_v14 = vld [vmem:[#allocation8 + $0x5fc] ss:$20 sps:$4 sm:$0xff]  }
 0x1f3   :  { %v8511_v13 = vld [vmem:[#allocation8 + $0x5f4] ss:$20 sps:$4 sm:$0xff]   ;;  %v8517_v17 = vld [vmem:[#allocation8 + $0x61c] ss:$20 sps:$4 sm:$0xff]  }
 0x1f5   :  { %2659 = vmatpush1.bf16.msra.mxu0 %v8437_v11  ;;  %2831 = vmatpush1.bf16.msra.mxu1 %v8440_v12  ;;  %v8503_v11 = vld [vmem:[#allocation8 + $0x5c8] ss:$20 sps:$4 sm:$0xff]   ;;  %v8506_v12 = vld [vmem:[#allocation8 + $0x5d0] ss:$20 sps:$4 sm:$0xff]  }
 0x1f6   :  { %2660 = vmatprep.subr.bf16.mxu0 %v8445_v15  ;;  %2832 = vmatprep.subr.bf16.mxu1 %v8448_v16  ;;  %v8509_v15 = vld [vmem:[#allocation8 + $0x5f0] ss:$20 sps:$4 sm:$0xff]   ;;  %v8512_v16 = vld [vmem:[#allocation8 + $0x5f8] ss:$20 sps:$4 sm:$0xff]  }
 0x1f9   :  { %2661 = vmatpush1.bf16.msra.mxu0 %v8443_v18  ;;  %2833 = vmatpush1.bf16.msra.mxu1 %v8446_v19  ;;  %v8520_v18 = vld [vmem:[#allocation8 + $0x624] ss:$20 sps:$4 sm:$0xff]  }
 0x1fa   :  { %2662 = vmatprep.subr.bf16.mxu0 %v8451_v23  ;;  %2834 = vmatprep.subr.bf16.mxu1 %v8454_v24  ;;  %v8515_v19 = vld [vmem:[#allocation8 + $0x618] ss:$20 sps:$4 sm:$0xff]   ;;  %v8518_v23 = vld [vmem:[#allocation8 + $0x620] ss:$20 sps:$4 sm:$0xff]  }
 0x1fb   :  { %v8523_v24 = vld [vmem:[#allocation8 + $0x644] ss:$20 sps:$4 sm:$0xff]  }
 0x1fd   :  { %2663 = vmatpush1.bf16.msra.mxu0 %v8449_v25  ;;  %2835 = vmatpush1.bf16.msra.mxu1 %v8452_v26  ;;  %v8526_v25 = vld [vmem:[#allocation8 + $0x64c] ss:$20 sps:$4 sm:$0xff]  }
 0x1fe   :  { %2664 = vmatprep.subr.bf16.mxu0 %v8457_v27  ;;  %2836 = vmatprep.subr.bf16.mxu1 %v8460_v28  ;;  %v8521_v26 = vld [vmem:[#allocation8 + $0x640] ss:$20 sps:$4 sm:$0xff]   ;;  %v8524_v27 = vld [vmem:[#allocation8 + $0x648] ss:$20 sps:$4 sm:$0xff]  }
 0x1ff   :  { %v8529_v28 = vld [vmem:[#allocation8 + $0x66c] ss:$20 sps:$4 sm:$0xff]  }
 0x201   :  { %2665 = vmatpush1.bf16.msra.mxu0 %v8455_v30  ;;  %2837 = vmatpush1.bf16.msra.mxu1 %v8458_v32  ;;  %v8532_v30 = vld [vmem:[#allocation8 + $0x674] ss:$20 sps:$4 sm:$0xff]  }
 0x202   :  { %2666 = vmatprep.subr.bf16.mxu0 %v8463_v33  ;;  %2838 = vmatprep.subr.bf16.mxu1 %v8466_v34  ;;  %v8527_v32 = vld [vmem:[#allocation8 + $0x668] ss:$20 sps:$4 sm:$0xff]   ;;  %v8530_v33 = vld [vmem:[#allocation8 + $0x670] ss:$20 sps:$4 sm:$0xff]  }
 0x203   :  { %v8535_v34 = vld [vmem:[#allocation8 + $0x694] ss:$20 sps:$4 sm:$0xff]  }
 0x205   :  { %2667 = vmatpush1.bf16.msra.mxu0 %v8461_v35  ;;  %2839 = vmatpush1.bf16.msra.mxu1 %v8464_v36  ;;  %v8538_v35 = vld [vmem:[#allocation8 + $0x69c] ss:$20 sps:$4 sm:$0xff]  }
 0x206   :  { %2668 = vmatprep.subr.bf16.mxu0 %v8469_v38  ;;  %2840 = vmatprep.subr.bf16.mxu1 %v8472_v39  ;;  %v8533_v36 = vld [vmem:[#allocation8 + $0x690] ss:$20 sps:$4 sm:$0xff]   ;;  %v8536_v38 = vld [vmem:[#allocation8 + $0x698] ss:$20 sps:$4 sm:$0xff]  }
 0x207   :  { %v8541_v39 = vld [vmem:[#allocation8 + $0x6bc] ss:$20 sps:$4 sm:$0xff]  }
 0x209   :  { %2669 = vmatpush1.bf16.msra.mxu0 %v8467_v40  ;;  %2841 = vmatpush1.bf16.msra.mxu1 %v8470_v41  ;;  %v8544_v40 = vld [vmem:[#allocation8 + $0x6c4] ss:$20 sps:$4 sm:$0xff]  }
 0x20a   :  { %2681 = vmatprep.subr.bf16.mxu0 %v8475_v42  ;;  %2853 = vmatprep.subr.bf16.mxu1 %v8478_v43  ;;  %v8539_v41 = vld [vmem:[#allocation8 + $0x6b8] ss:$20 sps:$4 sm:$0xff]   ;;  %v8542_v42 = vld [vmem:[#allocation8 + $0x6c0] ss:$20 sps:$4 sm:$0xff]  }
 0x20b   :  { %v8547_v43 = vld [vmem:[#allocation8 + $0x6e4] ss:$20 sps:$4 sm:$0xff]  }
 0x20c   :  { %2671 = vmatmul.mubr.bf16.vlgmr.msra.gmra.mrb[8].mxu0 %v9528_v60  ;;  %2843 = vmatmul.mubr.bf16.vlgmr.msra.gmra.mrb[8].mxu1 %v9528_v60 }
 0x20d   :  { %2682 = vmatpush1.bf16.msra.mxu0 %v8473_v44  ;;  %2854 = vmatpush1.bf16.msra.mxu1 %v8476_v45  ;;  %v8550_v44 = vld [vmem:[#allocation8 + $0x6ec] ss:$20 sps:$4 sm:$0xff]  }
 0x20e   :  { %2683 = vmatprep.subr.bf16.mxu0 %v8481_v47  ;;  %2855 = vmatprep.subr.bf16.mxu1 %v8484_v48  ;;  %v8545_v45 = vld [vmem:[#allocation8 + $0x6e0] ss:$20 sps:$4 sm:$0xff]   ;;  %v8548_v47 = vld [vmem:[#allocation8 + $0x6e8] ss:$20 sps:$4 sm:$0xff]  }
 0x20f   :  { %2713 = vmatprep.mubr.bf16.mxu0 %v9549_v53  ;;  %2885 = vmatprep.mubr.bf16.mxu1 %v9549_v53  ;;  %v8553_v48 = vld [vmem:[#allocation8 + $0x70c] ss:$20 sps:$4 sm:$0xff]  }
 0x211   :  { %2684 = vmatpush1.bf16.msra.mxu0 %v8479_v49  ;;  %2856 = vmatpush1.bf16.msra.mxu1 %v8482_v50  ;;  %v8556_v49 = vld [vmem:[#allocation8 + $0x714] ss:$20 sps:$4 sm:$0xff]  }
 0x212   :  { %2685 = vmatprep.subr.bf16.mxu0 %v8487_v52  ;;  %2857 = vmatprep.subr.bf16.mxu1 %v8490_v54  ;;  %v8551_v50 = vld [vmem:[#allocation8 + $0x708] ss:$20 sps:$4 sm:$0xff]   ;;  %v8554_v52 = vld [vmem:[#allocation8 + $0x710] ss:$20 sps:$4 sm:$0xff]  }
 0x213   :  { %v8559_v54 = vld [vmem:[#allocation8 + $0x734] ss:$20 sps:$4 sm:$0xff]  }
 0x215   :  { %2686 = vmatpush1.bf16.msra.mxu0 %v8485_v55  ;;  %2858 = vmatpush1.bf16.msra.mxu1 %v8488_v56  ;;  %v8562_v55 = vld [vmem:[#allocation8 + $0x73c] ss:$20 sps:$4 sm:$0xff]  }
 0x216   :  { %2687 = vmatprep.subr.bf16.mxu0 %v8493_v57  ;;  %2859 = vmatprep.subr.bf16.mxu1 %v8496_v58  ;;  %v8557_v56 = vld [vmem:[#allocation8 + $0x730] ss:$20 sps:$4 sm:$0xff]   ;;  %v8560_v57 = vld [vmem:[#allocation8 + $0x738] ss:$20 sps:$4 sm:$0xff]  }
 0x217   :  { %v8565_v58 = vld [vmem:[#allocation8 + $0x75c] ss:$20 sps:$4 sm:$0xff]  }
 0x219   :  { %2688 = vmatpush1.bf16.msra.mxu0 %v8491_v59  ;;  %2860 = vmatpush1.bf16.msra.mxu1 %v8494_v61  ;;  %v8568_v59 = vld [vmem:[#allocation8 + $0x764] ss:$20 sps:$4 sm:$0xff]  }
 0x21a   :  { %2689 = vmatprep.subr.bf16.mxu0 %v8499_v62  ;;  %2861 = vmatprep.subr.bf16.mxu1 %v8502_v1  ;;  %v8563_v61 = vld [vmem:[#allocation8 + $0x758] ss:$20 sps:$4 sm:$0xff]   ;;  %v8566_v62 = vld [vmem:[#allocation8 + $0x760] ss:$20 sps:$4 sm:$0xff]  }
 0x21b   :  { %v8571_v1 = vld [vmem:[#allocation8 + $0x784] ss:$20 sps:$4 sm:$0xff]  }
 0x21d   :  { %2690 = vmatpush1.bf16.msra.mxu0 %v8497_v5  ;;  %2862 = vmatpush1.bf16.msra.mxu1 %v8500_v2  ;;  %v8574_v5 = vld [vmem:[#allocation8 + $0x78c] ss:$20 sps:$4 sm:$0xff]  }
 0x21e   :  { %2691 = vmatprep.subr.bf16.mxu0 %v8505_v8  ;;  %2863 = vmatprep.subr.bf16.mxu1 %v8508_v9  ;;  %v8569_v2 = vld [vmem:[#allocation8 + $0x780] ss:$20 sps:$4 sm:$0xff]   ;;  %v8572_v8 = vld [vmem:[#allocation8 + $0x788] ss:$20 sps:$4 sm:$0xff]  }
 0x21f   :  { %v8577_v9 = vld [vmem:[#allocation8 + $0x7ac] ss:$20 sps:$4 sm:$0xff]  }
 0x221   :  { %2692 = vmatpush1.bf16.msra.mxu0 %v8503_v11  ;;  %2864 = vmatpush1.bf16.msra.mxu1 %v8506_v12  ;;  %v8580_v11 = vld [vmem:[#allocation8 + $0x7b4] ss:$20 sps:$4 sm:$0xff]  }
 0x222   :  { %2693 = vmatprep.subr.bf16.mxu0 %v8511_v13  ;;  %2865 = vmatprep.subr.bf16.mxu1 %v8514_v14  ;;  %v8575_v12 = vld [vmem:[#allocation8 + $0x7a8] ss:$20 sps:$4 sm:$0xff]   ;;  %v8578_v13 = vld [vmem:[#allocation8 + $0x7b0] ss:$20 sps:$4 sm:$0xff]  }
 0x223   :  { %v8583_v14 = vld [vmem:[#allocation8 + $0x7d4] ss:$20 sps:$4 sm:$0xff]  }
 0x225   :  { %2694 = vmatpush1.bf16.msra.mxu0 %v8509_v15  ;;  %2866 = vmatpush1.bf16.msra.mxu1 %v8512_v16  ;;  %v8586_v15 = vld [vmem:[#allocation8 + $0x7dc] ss:$20 sps:$4 sm:$0xff]  }
 0x226   :  { %2695 = vmatprep.subr.bf16.mxu0 %v8517_v17  ;;  %2867 = vmatprep.subr.bf16.mxu1 %v8520_v18  ;;  %v8581_v16 = vld [vmem:[#allocation8 + $0x7d0] ss:$20 sps:$4 sm:$0xff]   ;;  %v8584_v17 = vld [vmem:[#allocation8 + $0x7d8] ss:$20 sps:$4 sm:$0xff]  }
 0x227   :  { %v8589_v18 = vld [vmem:[#allocation8 + $0x7fc] ss:$20 sps:$4 sm:$0xff]  }
 0x229   :  { %2696 = vmatpush1.bf16.msra.mxu0 %v8515_v19  ;;  %2868 = vmatpush1.bf16.msra.mxu1 %v8518_v23  ;;  %v8592_v19 = vld [vmem:[#allocation8 + $0x804] ss:$20 sps:$4 sm:$0xff]  }
 0x22a   :  { %2697 = vmatprep.subr.bf16.mxu0 %v8523_v24  ;;  %2869 = vmatprep.subr.bf16.mxu1 %v8526_v25  ;;  %v8587_v23 = vld [vmem:[#allocation8 + $0x7f8] ss:$20 sps:$4 sm:$0xff]   ;;  %v8590_v24 = vld [vmem:[#allocation8 + $0x800] ss:$20 sps:$4 sm:$0xff]  }
 0x22b   :  { %v8595_v25 = vld [vmem:[#allocation8 + $0x824] ss:$20 sps:$4 sm:$0xff]  }
 0x22d   :  { %2698 = vmatpush1.bf16.msra.mxu0 %v8521_v26  ;;  %2870 = vmatpush1.bf16.msra.mxu1 %v8524_v27  ;;  %v8598_v26 = vld [vmem:[#allocation8 + $0x82c] ss:$20 sps:$4 sm:$0xff]  }
 0x22e   :  { %2699 = vmatprep.subr.bf16.mxu0 %v8529_v28  ;;  %2871 = vmatprep.subr.bf16.mxu1 %v8532_v30  ;;  %v8593_v27 = vld [vmem:[#allocation8 + $0x820] ss:$20 sps:$4 sm:$0xff]   ;;  %v8596_v28 = vld [vmem:[#allocation8 + $0x828] ss:$20 sps:$4 sm:$0xff]  }
 0x22f   :  { %v8601_v30 = vld [vmem:[#allocation8 + $0x84c] ss:$20 sps:$4 sm:$0xff]  }
 0x231   :  { %2700 = vmatpush1.bf16.msra.mxu0 %v8527_v32  ;;  %2872 = vmatpush1.bf16.msra.mxu1 %v8530_v33  ;;  %v8604_v32 = vld [vmem:[#allocation8 + $0x854] ss:$20 sps:$4 sm:$0xff]  }
 0x232   :  { %2701 = vmatprep.subr.bf16.mxu0 %v8535_v34  ;;  %2873 = vmatprep.subr.bf16.mxu1 %v8538_v35  ;;  %v8599_v33 = vld [vmem:[#allocation8 + $0x848] ss:$20 sps:$4 sm:$0xff]   ;;  %v8602_v34 = vld [vmem:[#allocation8 + $0x850] ss:$20 sps:$4 sm:$0xff]  }
 0x233   :  { %v8607_v35 = vld [vmem:[#allocation8 + $0x874] ss:$20 sps:$4 sm:$0xff]  }
 0x235   :  { %2702 = vmatpush1.bf16.msra.mxu0 %v8533_v36  ;;  %2874 = vmatpush1.bf16.msra.mxu1 %v8536_v38  ;;  %v8610_v36 = vld [vmem:[#allocation8 + $0x87c] ss:$20 sps:$4 sm:$0xff]  }
 0x236   :  { %2703 = vmatprep.subr.bf16.mxu0 %v8541_v39  ;;  %2875 = vmatprep.subr.bf16.mxu1 %v8544_v40  ;;  %v8605_v38 = vld [vmem:[#allocation8 + $0x870] ss:$20 sps:$4 sm:$0xff]   ;;  %v8608_v39 = vld [vmem:[#allocation8 + $0x878] ss:$20 sps:$4 sm:$0xff]  }
 0x237   :  { %v8613_v40 = vld [vmem:[#allocation8 + $0x89c] ss:$20 sps:$4 sm:$0xff]  }
 0x239   :  { %2704 = vmatpush1.bf16.msra.mxu0 %v8539_v41  ;;  %2876 = vmatpush1.bf16.msra.mxu1 %v8542_v42  ;;  %v8616_v41 = vld [vmem:[#allocation8 + $0x8a4] ss:$20 sps:$4 sm:$0xff]  }
 0x23a   :  { %2705 = vmatprep.subr.bf16.mxu0 %v8547_v43  ;;  %2877 = vmatprep.subr.bf16.mxu1 %v8550_v44  ;;  %v8611_v42 = vld [vmem:[#allocation8 + $0x898] ss:$20 sps:$4 sm:$0xff]   ;;  %v8614_v43 = vld [vmem:[#allocation8 + $0x8a0] ss:$20 sps:$4 sm:$0xff]   ;;  %v8617_v44 = vld [vmem:[#allocation8 + $0x150] ss:$20 sps:$4 sm:$0xff]  }
 0x23d   :  { %2706 = vmatpush1.bf16.msra.mxu0 %v8545_v45  ;;  %2878 = vmatpush1.bf16.msra.mxu1 %v8548_v47  ;;  %v8618_v45 = vld [vmem:[#allocation8 + $0x3d0] ss:$20 sps:$4 sm:$0xff]  }
 0x23e   :  { %2707 = vmatprep.subr.bf16.mxu0 %v8553_v48  ;;  %2879 = vmatprep.subr.bf16.mxu1 %v8556_v49  ;;  %v8619_v47 = vld [vmem:[#allocation8 + $0x10] ss:$20 sps:$4 sm:$0xff]   ;;  %v8621_v49 = vld [vmem:[#allocation8 + $0x178] ss:$20 sps:$4 sm:$0xff]  }
 0x23f   :  { %v8620_v48 = vld [vmem:[#allocation8 + $0x290] ss:$20 sps:$4 sm:$0xff]  }
 0x241   :  { %2708 = vmatpush1.bf16.msra.mxu0 %v8551_v50  ;;  %2880 = vmatpush1.bf16.msra.mxu1 %v8554_v52  ;;  %v8622_v50 = vld [vmem:[#allocation8 + $0x3f8] ss:$20 sps:$4 sm:$0xff]  }
 0x242   :  { %2709 = vmatprep.subr.bf16.mxu0 %v8559_v54  ;;  %2881 = vmatprep.subr.bf16.mxu1 %v8562_v55  ;;  %v8623_v52 = vld [vmem:[#allocation8 + $0x38] ss:$20 sps:$4 sm:$0xff]   ;;  %v8625_v55 = vld [vmem:[#allocation8 + $0x1a0] ss:$20 sps:$4 sm:$0xff]  }
 0x243   :  { %v8624_v54 = vld [vmem:[#allocation8 + $0x2b8] ss:$20 sps:$4 sm:$0xff]  }
 0x245   :  { %2710 = vmatpush1.bf16.msra.mxu0 %v8557_v56  ;;  %2882 = vmatpush1.bf16.msra.mxu1 %v8560_v57  ;;  %v8626_v56 = vld [vmem:[#allocation8 + $0x420] ss:$20 sps:$4 sm:$0xff]  }
 0x246   :  { %2711 = vmatprep.subr.bf16.mxu0 %v8565_v58  ;;  %2883 = vmatprep.subr.bf16.mxu1 %v8568_v59  ;;  %v8627_v57 = vld [vmem:[#allocation8 + $0x60] ss:$20 sps:$4 sm:$0xff]   ;;  %v8629_v59 = vld [vmem:[#allocation8 + $0x1c8] ss:$20 sps:$4 sm:$0xff]  }
 0x247   :  { %v8628_v58 = vld [vmem:[#allocation8 + $0x2e0] ss:$20 sps:$4 sm:$0xff]  }
 0x249   :  { %2712 = vmatpush1.bf16.msra.mxu0 %v8563_v61  ;;  %2884 = vmatpush1.bf16.msra.mxu1 %v8566_v62  ;;  %v8630_v61 = vld [vmem:[#allocation8 + $0x448] ss:$20 sps:$4 sm:$0xff]  }
 0x24a   :  { %2724 = vmatprep.subr.bf16.mxu0 %v8571_v1  ;;  %2896 = vmatprep.subr.bf16.mxu1 %v8574_v5  ;;  %v8631_v62 = vld [vmem:[#allocation8 + $0x88] ss:$20 sps:$4 sm:$0xff]   ;;  %v8633_v1 = vld [vmem:[#allocation8 + $0x1f0] ss:$20 sps:$4 sm:$0xff]  }
 0x24b   :  { %v8635_v5 = vld [vmem:[#allocation8 + $0xb0] ss:$20 sps:$4 sm:$0xff]  }
 0x24c   :  { %2714 = vmatmul.mubr.bf16.vlgmr.msra.gmra.mrb[8].mxu0 %v9544_v51  ;;  %2886 = vmatmul.mubr.bf16.vlgmr.msra.gmra.mrb[8].mxu1 %v9544_v51 }
 0x24d   :  { %2725 = vmatpush1.bf16.msra.mxu0 %v8569_v2  ;;  %2897 = vmatpush1.bf16.msra.mxu1 %v8572_v8  ;;  %v8636_v2 = vld [vmem:[#allocation8 + $0x330] ss:$20 sps:$4 sm:$0xff]   ;;  %v8637_v8 = vld [vmem:[#allocation8 + $0x218] ss:$20 sps:$4 sm:$0xff]  }
 0x24e   :  { %2726 = vmatprep.subr.bf16.mxu0 %v8577_v9  ;;  %2898 = vmatprep.subr.bf16.mxu1 %v8580_v11  ;;  %v8638_v9 = vld [vmem:[#allocation8 + $0x498] ss:$20 sps:$4 sm:$0xff]  }
 0x24f   :  { %2756 = vmatprep.mubr.bf16.mxu0 %v9278_v0  ;;  %2928 = vmatprep.mubr.bf16.mxu1 %v9278_v0  ;;  %v8639_v11 = vld [vmem:[#allocation8 + $0xd8] ss:$20 sps:$4 sm:$0xff]  }
 0x251   :  { %2727 = vmatpush1.bf16.msra.mxu0 %v8575_v12  ;;  %2899 = vmatpush1.bf16.msra.mxu1 %v8578_v13  ;;  %v8640_v12 = vld [vmem:[#allocation8 + $0x358] ss:$20 sps:$4 sm:$0xff]   ;;  %v8641_v13 = vld [vmem:[#allocation8 + $0x240] ss:$20 sps:$4 sm:$0xff]  }
 0x252   :  { %2728 = vmatprep.subr.bf16.mxu0 %v8583_v14  ;;  %2900 = vmatprep.subr.bf16.mxu1 %v8586_v15  ;;  %v8642_v14 = vld [vmem:[#allocation8 + $0x4c0] ss:$20 sps:$4 sm:$0xff]  }
 0x253   :  { %v8643_v15 = vld [vmem:[#allocation8 + $0x100] ss:$20 sps:$4 sm:$0xff]  }
 0x255   :  { %2729 = vmatpush1.bf16.msra.mxu0 %v8581_v16  ;;  %2901 = vmatpush1.bf16.msra.mxu1 %v8584_v17  ;;  %v8644_v16 = vld [vmem:[#allocation8 + $0x380] ss:$20 sps:$4 sm:$0xff]   ;;  %v8645_v17 = vld [vmem:[#allocation8 + $0x268] ss:$20 sps:$4 sm:$0xff]  }
 0x256   :  { %2730 = vmatprep.subr.bf16.mxu0 %v8589_v18  ;;  %2902 = vmatprep.subr.bf16.mxu1 %v8592_v19  ;;  %v8646_v18 = vld [vmem:[#allocation8 + $0x4e8] ss:$20 sps:$4 sm:$0xff]  }
 0x257   :  { %v8647_v19 = vld [vmem:[#allocation8 + $0x128] ss:$20 sps:$4 sm:$0xff]  }
 0x259   :  { %2731 = vmatpush1.bf16.msra.mxu0 %v8587_v23  ;;  %2903 = vmatpush1.bf16.msra.mxu1 %v8590_v24  ;;  %v8648_v23 = vld [vmem:[#allocation8 + $0x3a8] ss:$20 sps:$4 sm:$0xff]   ;;  %v8649_v24 = vld [vmem:[#allocation8 + $0x650] ss:$20 sps:$4 sm:$0xff]  }
 0x25a   :  { %2732 = vmatprep.subr.bf16.mxu0 %v8595_v25  ;;  %2904 = vmatprep.subr.bf16.mxu1 %v8598_v26  ;;  %v8650_v25 = vld [vmem:[#allocation8 + $0x510] ss:$20 sps:$4 sm:$0xff]  }
 0x25b   :  { %v8651_v26 = vld [vmem:[#allocation8 + $0x790] ss:$20 sps:$4 sm:$0xff]  }
 0x25d   :  { %2733 = vmatpush1.bf16.msra.mxu0 %v8593_v27  ;;  %2905 = vmatpush1.bf16.msra.mxu1 %v8596_v28  ;;  %v8652_v27 = vld [vmem:[#allocation8 + $0x678] ss:$20 sps:$4 sm:$0xff]  }
 0x25e   :  { %2734 = vmatprep.subr.bf16.mxu0 %v8601_v30  ;;  %2906 = vmatprep.subr.bf16.mxu1 %v8604_v32  ;;  %v8653_v28 = vld [vmem:[#allocation8 + $0x538] ss:$20 sps:$4 sm:$0xff]   ;;  %v8655_v32 = vld [vmem:[#allocation8 + $0x6a0] ss:$20 sps:$4 sm:$0xff]  }
 0x25f   :  { %v8654_v30 = vld [vmem:[#allocation8 + $0x7b8] ss:$20 sps:$4 sm:$0xff]  }
 0x261   :  { %2735 = vmatpush1.bf16.msra.mxu0 %v8599_v33  ;;  %2907 = vmatpush1.bf16.msra.mxu1 %v8602_v34  ;;  %v8656_v33 = vld [vmem:[#allocation8 + $0x560] ss:$20 sps:$4 sm:$0xff]   ;;  %v8658_v34 = vld [vmem:[#allocation8 + $0x6c8] ss:$20 sps:$4 sm:$0xff]  }
 0x262   :  { %2736 = vmatprep.subr.bf16.mxu0 %v8607_v35  ;;  %2908 = vmatprep.subr.bf16.mxu1 %v8610_v36  ;;  %v8661_v35 = vld [vmem:[#allocation8 + $0x6f0] ss:$20 sps:$4 sm:$0xff]  }
 0x263   :  { %v8662_v36 = vld [vmem:[#allocation8 + $0x5b0] ss:$20 sps:$4 sm:$0xff]  }
 0x265   :  { %2737 = vmatpush1.bf16.msra.mxu0 %v8605_v38  ;;  %2909 = vmatpush1.bf16.msra.mxu1 %v8608_v39  ;;  %v8663_v38 = vld [vmem:[#allocation8 + $0x830] ss:$20 sps:$4 sm:$0xff]   ;;  %v8664_v39 = vld [vmem:[#allocation8 + $0x718] ss:$20 sps:$4 sm:$0xff]  }
 0x266   :  { %2738 = vmatprep.subr.bf16.mxu0 %v8613_v40  ;;  %2910 = vmatprep.subr.bf16.mxu1 %v8616_v41  ;;  %v8665_v40 = vld [vmem:[#allocation8 + $0x5d8] ss:$20 sps:$4 sm:$0xff]  }
 0x267   :  { %v8666_v41 = vld [vmem:[#allocation8 + $0x858] ss:$20 sps:$4 sm:$0xff]  }
 0x269   :  { %2739 = vmatpush1.bf16.msra.mxu0 %v8611_v42  ;;  %2911 = vmatpush1.bf16.msra.mxu1 %v8614_v43  ;;  %v8667_v42 = vld [vmem:[#allocation8 + $0x740] ss:$20 sps:$4 sm:$0xff]  }
 0x26a   :  { %7883 = vmatprep.subr.bf16.mxu0 %v8617_v44  ;;  %7905 = vmatprep.subr.bf16.mxu1 %v8618_v45  ;;  %v8668_v43 = vld [vmem:[#allocation8 + $0x600] ss:$20 sps:$4 sm:$0xff]   ;;  %v8670_v45 = vld [vmem:[#allocation8 + $0x768] ss:$20 sps:$4 sm:$0xff]  }
 0x26b   :  { %v8669_v44 = vld [vmem:[#allocation8 + $0x880] ss:$20 sps:$4 sm:$0xff]  }
 0x26c   :  { %2757 = vmatmul.mubr.bf16.vlgmr.msra.gmra.mrb[8].mxu0 %v9551_v21  ;;  %2929 = vmatmul.mubr.bf16.vlgmr.msra.gmra.mrb[8].mxu1 %v9551_v21 }
 0x26d   :  { %7884 = vmatpush3.bf16.msra.mxu0 %v8619_v47  ;;  %2971 = vmatprep.mubr.bf16.mxu0 %v9520_v31  ;;  %v8632_v31 = vld [vmem:[#allocation8 + $0x308] ss:$20 sps:$4 sm:$0xff]  }
 0x26e   :  { %7906 = vmatpush3.bf16.msra.mxu1 %v8620_v48  ;;  %3012 = vmatprep.mubr.bf16.mxu1 %v9530_v63  ;;  %v8634_v63 = vld [vmem:[#allocation8 + $0x470] ss:$20 sps:$4 sm:$0xff]   ;;  %v8671_v47 = vld [vmem:[#allocation8 + $0x628] ss:$20 sps:$4 sm:$0xff]  }
 0x26f   :  { %7885 = vmatprep.subr.bf16.mxu0 %v8621_v49  ;;  %7907 = vmatprep.subr.bf16.mxu1 %v8622_v50  ;;  %v8672_v48 = vld [vmem:[#allocation8 + $0x8a8] ss:$20 sps:$4 sm:$0xff]   ;;  %v8678_v50 = vld [vmem:[#allocation11 + $0xc] ss:$16 sps:$4 sm:$0xff]  }
 0x270   :  { %v8675_v49 = vld [vmem:[#allocation11 + $0x4] ss:$16 sps:$4 sm:$0xff]  }
 0x271   :  { %7886 = vmatpush3.bf16.msra.mxu0 %v8623_v52  ;;  %v8673_v52 = vld [vmem:[#allocation11] ss:$16 sps:$4 sm:$0xff]  }
 0x272   :  { %7908 = vmatpush3.bf16.msra.mxu1 %v8624_v54  ;;  %7887 = vmatprep.subr.bf16.mxu0 %v8625_v55  ;;  %v8676_v54 = vld [vmem:[#allocation11 + $0x8] ss:$16 sps:$4 sm:$0xff]   ;;  %v8681_v55 = vld [vmem:[#allocation11 + $0x24] ss:$16 sps:$4 sm:$0xff]  }
 0x273   :  { %7909 = vmatprep.subr.bf16.mxu1 %v8626_v56  ;;  %v8684_v56 = vld [vmem:[#allocation11 + $0x2c] ss:$16 sps:$4 sm:$0xff]  }
 0x275   :  { %7888 = vmatpush3.bf16.msra.mxu0 %v8627_v57  ;;  %v8679_v57 = vld [vmem:[#allocation11 + $0x20] ss:$16 sps:$4 sm:$0xff]  }
 0x276   :  { %7910 = vmatpush3.bf16.msra.mxu1 %v8628_v58  ;;  %7889 = vmatprep.subr.bf16.mxu0 %v8629_v59  ;;  %v8682_v58 = vld [vmem:[#allocation11 + $0x28] ss:$16 sps:$4 sm:$0xff]   ;;  %v8687_v59 = vld [vmem:[#allocation11 + $0x44] ss:$16 sps:$4 sm:$0xff]  }
 0x277   :  { %7911 = vmatprep.subr.bf16.mxu1 %v8630_v61  ;;  %v8685_v61 = vld [vmem:[#allocation11 + $0x40] ss:$16 sps:$4 sm:$0xff]  }
 0x279   :  { %7890 = vmatpush3.bf16.msra.mxu0 %v8631_v62  ;;  %v8688_v62 = vld [vmem:[#allocation11 + $0x48] ss:$16 sps:$4 sm:$0xff]  }
 0x27a   :  { %7912 = vmatpush3.bf16.msra.mxu1 %v8632_v31  ;;  %7891 = vmatprep.subr.bf16.mxu0 %v8633_v1  ;;  %v8693_v31 = vld [vmem:[#allocation11 + $0x64] ss:$16 sps:$4 sm:$0xff]   ;;  %v8696_v1 = vld [vmem:[#allocation11 + $0x6c] ss:$16 sps:$4 sm:$0xff]  }
 0x27b   :  { %7913 = vmatprep.subr.bf16.mxu1 %v8634_v63  ;;  %v8699_v63 = vld [vmem:[#allocation11 + $0x84] ss:$16 sps:$4 sm:$0xff]  }
 0x27d   :  { %7892 = vmatpush3.bf16.msra.mxu0 %v8635_v5  ;;  %v8702_v5 = vld [vmem:[#allocation11 + $0x8c] ss:$16 sps:$4 sm:$0xff]  }
 0x27e   :  { %7914 = vmatpush3.bf16.msra.mxu1 %v8636_v2  ;;  %7893 = vmatprep.subr.bf16.mxu0 %v8637_v8  ;;  %v8697_v2 = vld [vmem:[#allocation11 + $0x80] ss:$16 sps:$4 sm:$0xff]   ;;  %v8700_v8 = vld [vmem:[#allocation11 + $0x88] ss:$16 sps:$4 sm:$0xff]  }
 0x27f   :  { %7915 = vmatprep.subr.bf16.mxu1 %v8638_v9  ;;  %v8705_v9 = vld [vmem:[#allocation11 + $0xa4] ss:$16 sps:$4 sm:$0xff]  }
 0x281   :  { %7894 = vmatpush3.bf16.msra.mxu0 %v8639_v11  ;;  %v8708_v11 = vld [vmem:[#allocation11 + $0xac] ss:$16 sps:$4 sm:$0xff]  }
 0x282   :  { %7916 = vmatpush3.bf16.msra.mxu1 %v8640_v12  ;;  %7895 = vmatprep.subr.bf16.mxu0 %v8641_v13  ;;  %v8703_v12 = vld [vmem:[#allocation11 + $0xa0] ss:$16 sps:$4 sm:$0xff]   ;;  %v8706_v13 = vld [vmem:[#allocation11 + $0xa8] ss:$16 sps:$4 sm:$0xff]  }
 0x283   :  { %7917 = vmatprep.subr.bf16.mxu1 %v8642_v14  ;;  %v8711_v14 = vld [vmem:[#allocation11 + $0xc4] ss:$16 sps:$4 sm:$0xff]  }
 0x285   :  { %7896 = vmatpush3.bf16.msra.mxu0 %v8643_v15  ;;  %v8714_v15 = vld [vmem:[#allocation11 + $0xcc] ss:$16 sps:$4 sm:$0xff]  }
 0x286   :  { %7918 = vmatpush3.bf16.msra.mxu1 %v8644_v16  ;;  %7897 = vmatprep.subr.bf16.mxu0 %v8645_v17  ;;  %v8709_v16 = vld [vmem:[#allocation11 + $0xc0] ss:$16 sps:$4 sm:$0xff]   ;;  %v8712_v17 = vld [vmem:[#allocation11 + $0xc8] ss:$16 sps:$4 sm:$0xff]  }
 0x287   :  { %7919 = vmatprep.subr.bf16.mxu1 %v8646_v18  ;;  %v8717_v18 = vld [vmem:[#allocation11 + $0xe4] ss:$16 sps:$4 sm:$0xff]  }
 0x289   :  { %7898 = vmatpush3.bf16.msra.mxu0 %v8647_v19  ;;  %v8720_v19 = vld [vmem:[#allocation11 + $0xec] ss:$16 sps:$4 sm:$0xff]  }
 0x28a   :  { %7920 = vmatpush3.bf16.msra.mxu1 %v8648_v23  ;;  %7927 = vmatprep.subr.bf16.mxu0 %v8649_v24  ;;  %v8715_v23 = vld [vmem:[#allocation11 + $0xe0] ss:$16 sps:$4 sm:$0xff]   ;;  %v8718_v24 = vld [vmem:[#allocation11 + $0xe8] ss:$16 sps:$4 sm:$0xff]  }
 0x28b   :  { %8066 = vmatprep.subr.bf16.mxu1 %v9279_v46 }
 0x28c   :  { %2972 = vmatmul.mubr.bf16.vlgmr.msra.gmra.mrb[12].mxu0 %v9516_v29  ;;  %v8657_v29 = vld [vmem:[#allocation8 + $0x7e0] ss:$20 sps:$4 sm:$0xff]  }
 0x28d   :  { %3013 = vmatmul.mubr.bf16.vlgmr.msra.gmra.mrb[12].mxu1 %v9528_v60  ;;  %7928 = vmatpush3.bf16.msra.mxu0 %v8650_v25  ;;  %v8659_v60 = vld [vmem:[#allocation8 + $0x588] ss:$20 sps:$4 sm:$0xff]  }
 0x28e   :  { %3053 = vmatprep.mubr.bf16.mxu0 %v9549_v53  ;;  %8067 = vmatpush3.bf16.msra.mxu1 %v8651_v26  ;;  %v8660_v53 = vld [vmem:[#allocation8 + $0x808] ss:$20 sps:$4 sm:$0xff]   ;;  %v8726_v26 = vld [vmem:[#allocation11 + $0x10c] ss:$16 sps:$4 sm:$0xff]  }
 0x28f   :  { %7929 = vmatprep.subr.bf16.mxu0 %v8652_v27  ;;  %8068 = vmatprep.subr.bf16.mxu1 %v9279_v46  ;;  %v8723_v25 = vld [vmem:[#allocation11 + $0x104] ss:$16 sps:$4 sm:$0xff]   ;;  %v8721_v27 = vld [vmem:[#allocation11 + $0x100] ss:$16 sps:$4 sm:$0xff]  }
 0x290   :  { %8082 = vmatprep.mubr.msk.bf16.mxu1 %vm9280_vm0, %v9279_v46 }
 0x291   :  { %7930 = vmatpush3.bf16.msra.mxu0 %v8653_v28  ;;  %v8724_v28 = vld [vmem:[#allocation11 + $0x108] ss:$16 sps:$4 sm:$0xff]  }
 0x292   :  { %8069 = vmatpush3.bf16.msra.mxu1 %v8654_v30  ;;  %7931 = vmatprep.subr.bf16.mxu0 %v8655_v32  ;;  %v8729_v30 = vld [vmem:[#allocation11 + $0x124] ss:$16 sps:$4 sm:$0xff]   ;;  %v8732_v32 = vld [vmem:[#allocation11 + $0x12c] ss:$16 sps:$4 sm:$0xff]  }
 0x293   :  { %8070 = vmatprep.subr.bf16.mxu1 %v9279_v46 }
 0x295   :  { %7932 = vmatpush3.bf16.msra.mxu0 %v8656_v33  ;;  %v8727_v33 = vld [vmem:[#allocation11 + $0x120] ss:$16 sps:$4 sm:$0xff]  }
 0x296   :  { %8071 = vmatpush3.bf16.msra.mxu1 %v8657_v29  ;;  %7933 = vmatprep.subr.bf16.mxu0 %v8658_v34  ;;  %v8730_v29 = vld [vmem:[#allocation11 + $0x128] ss:$16 sps:$4 sm:$0xff]   ;;  %v8735_v34 = vld [vmem:[#allocation11 + $0x144] ss:$16 sps:$4 sm:$0xff]  }
 0x297   :  { %8072 = vmatprep.subr.bf16.mxu1 %v9279_v46 }
 0x299   :  { %7934 = vmatpush3.bf16.msra.mxu0 %v8659_v60  ;;  %v8738_v60 = vld [vmem:[#allocation11 + $0x14c] ss:$16 sps:$4 sm:$0xff]  }
 0x29a   :  { %8073 = vmatpush3.bf16.msra.mxu1 %v8660_v53  ;;  %7935 = vmatprep.subr.bf16.mxu0 %v8661_v35  ;;  %v8733_v53 = vld [vmem:[#allocation11 + $0x140] ss:$16 sps:$4 sm:$0xff]   ;;  %v8736_v35 = vld [vmem:[#allocation11 + $0x148] ss:$16 sps:$4 sm:$0xff]  }
 0x29b   :  { %8074 = vmatprep.subr.bf16.mxu1 %v9279_v46 }
 0x29d   :  { %7936 = vmatpush3.bf16.msra.mxu0 %v8662_v36  ;;  %v8741_v36 = vld [vmem:[#allocation11 + $0x164] ss:$16 sps:$4 sm:$0xff]  }
 0x29e   :  { %8075 = vmatpush3.bf16.msra.mxu1 %v8663_v38  ;;  %7937 = vmatprep.subr.bf16.mxu0 %v8664_v39  ;;  %v8744_v38 = vld [vmem:[#allocation11 + $0x16c] ss:$16 sps:$4 sm:$0xff]   ;;  %v8739_v39 = vld [vmem:[#allocation11 + $0x160] ss:$16 sps:$4 sm:$0xff]  }
 0x29f   :  { %8076 = vmatprep.subr.bf16.mxu1 %v9279_v46 }
 0x2a1   :  { %7938 = vmatpush3.bf16.msra.mxu0 %v8665_v40  ;;  %v8742_v40 = vld [vmem:[#allocation11 + $0x168] ss:$16 sps:$4 sm:$0xff]  }
 0x2a2   :  { %8077 = vmatpush3.bf16.msra.mxu1 %v8666_v41  ;;  %7939 = vmatprep.subr.bf16.mxu0 %v8667_v42  ;;  %v8747_v41 = vld [vmem:[#allocation11 + $0x184] ss:$16 sps:$4 sm:$0xff]   ;;  %v8750_v42 = vld [vmem:[#allocation11 + $0x18c] ss:$16 sps:$4 sm:$0xff]  }
 0x2a3   :  { %8078 = vmatprep.subr.bf16.mxu1 %v9279_v46 }
 0x2a5   :  { %7940 = vmatpush3.bf16.msra.mxu0 %v8668_v43  ;;  %v8745_v43 = vld [vmem:[#allocation11 + $0x180] ss:$16 sps:$4 sm:$0xff]  }
 0x2a6   :  { %8079 = vmatpush3.bf16.msra.mxu1 %v8669_v44  ;;  %7941 = vmatprep.subr.bf16.mxu0 %v8670_v45  ;;  %v8748_v44 = vld [vmem:[#allocation11 + $0x188] ss:$16 sps:$4 sm:$0xff]   ;;  %v8753_v45 = vld [vmem:[#allocation11 + $0x1a4] ss:$16 sps:$4 sm:$0xff]  }
 0x2a7   :  { %8080 = vmatprep.subr.bf16.mxu1 %v9279_v46  ;;  %v8690_v46 = vld [vmem:[#allocation11 + $0x4c] ss:$16 sps:$4 sm:$0xff]  }
 0x2a9   :  { %7942 = vmatpush3.bf16.msra.mxu0 %v8671_v47  ;;  %v8756_v47 = vld [vmem:[#allocation11 + $0x1ac] ss:$16 sps:$4 sm:$0xff]  }
 0x2aa   :  { %8081 = vmatpush3.bf16.msra.mxu1 %v8672_v48  ;;  %4110 = vmatprep.subr.bf16.mxu0 %v8675_v49  ;;  %v8751_v48 = vld [vmem:[#allocation11 + $0x1a0] ss:$16 sps:$4 sm:$0xff]   ;;  %v8754_v49 = vld [vmem:[#allocation11 + $0x1a8] ss:$16 sps:$4 sm:$0xff]  }
 0x2ab   :  { %4239 = vmatprep.subr.bf16.mxu1 %v8678_v50  ;;  %v8759_v50 = vld [vmem:[#allocation11 + $0x1c4] ss:$16 sps:$4 sm:$0xff]  }
 0x2ac   :  { %3054 = vmatmul.mubr.bf16.vlgmr.msra.gmra.mrb[16].mxu0 %v9544_v51  ;;  %v8691_v51 = vld [vmem:[#allocation11 + $0x60] ss:$16 sps:$4 sm:$0xff]  }
 0x2ad   :  { %8083 = vmatmul.mubr.bf16.vlgmr.msra.gmra.mrb[16].mxu1 %v9551_v21  ;;  %4111 = vmatpush1.bf16.msra.mxu0 %v8673_v52  ;;  %v8694_v21 = vld [vmem:[#allocation11 + $0x68] ss:$16 sps:$4 sm:$0xff]   ;;  %v8762_v52 = vld [vmem:[#allocation11 + $0x1cc] ss:$16 sps:$4 sm:$0xff]  }
 0x2ae   :  { %4240 = vmatpush1.bf16.msra.mxu1 %v8676_v54  ;;  %4112 = vmatprep.subr.bf16.mxu0 %v8681_v55  ;;  %v8757_v54 = vld [vmem:[#allocation11 + $0x1c0] ss:$16 sps:$4 sm:$0xff]   ;;  %v8760_v55 = vld [vmem:[#allocation11 + $0x1c8] ss:$16 sps:$4 sm:$0xff]  }
 0x2af   :  { %4241 = vmatprep.subr.bf16.mxu1 %v8684_v56  ;;  %v8765_v56 = vld [vmem:[#allocation11 + $0x1e4] ss:$16 sps:$4 sm:$0xff]  }
 0x2b1   :  { %4113 = vmatpush1.bf16.msra.mxu0 %v8679_v57  ;;  %v8768_v57 = vld [vmem:[#allocation11 + $0x1ec] ss:$16 sps:$4 sm:$0xff]  }
 0x2b2   :  { %4242 = vmatpush1.bf16.msra.mxu1 %v8682_v58  ;;  %4114 = vmatprep.subr.bf16.mxu0 %v8687_v59  ;;  %v8763_v58 = vld [vmem:[#allocation11 + $0x1e0] ss:$16 sps:$4 sm:$0xff]   ;;  %v8766_v59 = vld [vmem:[#allocation11 + $0x1e8] ss:$16 sps:$4 sm:$0xff]  }
 0x2b3   :  { %4243 = vmatprep.subr.bf16.mxu1 %v8690_v46  ;;  %v8771_v46 = vld [vmem:[#allocation11 + $0x204] ss:$16 sps:$4 sm:$0xff]  }
 0x2b5   :  { %4115 = vmatpush1.bf16.msra.mxu0 %v8685_v61  ;;  %v8774_v61 = vld [vmem:[#allocation11 + $0x20c] ss:$16 sps:$4 sm:$0xff]  }
 0x2b6   :  { %4244 = vmatpush1.bf16.msra.mxu1 %v8688_v62  ;;  %4116 = vmatprep.subr.bf16.mxu0 %v8693_v31  ;;  %v9580_v62 = vld [vmem:[#allocation10] sm:$0x1f] }
 0x2b7   :  { %4245 = vmatprep.subr.bf16.mxu1 %v8696_v1  ;;  %v1117_v31 = vrot.slane %v9580_v62, %v9499_v4  ;;  %v1125_v1 = vrot.slane %v9580_v62, %v9511_v20 }
 0x2b9   :  { %4117 = vmatpush1.bf16.msra.mxu0 %v8691_v51  ;;  %v1121_v51 = vrot.slane %v9580_v62, %v9504_v6 }
 0x2ba   :  { %4246 = vmatpush1.bf16.msra.mxu1 %v8694_v21  ;;  %4118 = vmatprep.subr.bf16.mxu0 %v8699_v63  ;;  %v1129_v21 = vrot.slane %v9580_v62, %v9514_v22 }
 0x2bb   :  { %4247 = vmatprep.subr.bf16.mxu1 %v8702_v5 }
 0x2bd   :  { %4119 = vmatpush1.bf16.msra.mxu0 %v8697_v2 }
 0x2be   :  { %4248 = vmatpush1.bf16.msra.mxu1 %v8700_v8  ;;  %4120 = vmatprep.subr.bf16.mxu0 %v8705_v9 }
 0x2bf   :  { %4249 = vmatprep.subr.bf16.mxu1 %v8708_v11 }
 0x2c1   :  { %4121 = vmatpush1.bf16.msra.mxu0 %v8703_v12 }
 0x2c2   :  { %4250 = vmatpush1.bf16.msra.mxu1 %v8706_v13  ;;  %4122 = vmatprep.subr.bf16.mxu0 %v8711_v14 }
 0x2c3   :  { %4251 = vmatprep.subr.bf16.mxu1 %v8714_v15 }
 0x2c5   :  { %4123 = vmatpush1.bf16.msra.mxu0 %v8709_v16 }
 0x2c6   :  { %4252 = vmatpush1.bf16.msra.mxu1 %v8712_v17  ;;  %4124 = vmatprep.subr.bf16.mxu0 %v8717_v18 }
 0x2c7   :  { %4253 = vmatprep.subr.bf16.mxu1 %v8720_v19 }
 0x2c9   :  { %4125 = vmatpush1.bf16.msra.mxu0 %v8715_v23 }
 0x2ca   :  { %4254 = vmatpush1.bf16.msra.mxu1 %v8718_v24  ;;  %4126 = vmatprep.subr.bf16.mxu0 %v8723_v25 }
 0x2cb   :  { %4255 = vmatprep.subr.bf16.mxu1 %v8726_v26 }
 0x2cd   :  { %4127 = vmatpush1.bf16.msra.mxu0 %v8721_v27 }
 0x2ce   :  { %4256 = vmatpush1.bf16.msra.mxu1 %v8724_v28  ;;  %4128 = vmatprep.subr.bf16.mxu0 %v8729_v30 }
 0x2cf   :  { %4257 = vmatprep.subr.bf16.mxu1 %v8732_v32 }
 0x2d1   :  { %4129 = vmatpush1.bf16.msra.mxu0 %v8727_v33 }
 0x2d2   :  { %4258 = vmatpush1.bf16.msra.mxu1 %v8730_v29  ;;  %4130 = vmatprep.subr.bf16.mxu0 %v8735_v34 }
 0x2d3   :  { %4259 = vmatprep.subr.bf16.mxu1 %v8738_v60 }
 0x2d5   :  { %4131 = vmatpush1.bf16.msra.mxu0 %v8733_v53 }
 0x2d6   :  { %4260 = vmatpush1.bf16.msra.mxu1 %v8736_v35  ;;  %4132 = vmatprep.subr.bf16.mxu0 %v8741_v36 }
 0x2d7   :  { %4261 = vmatprep.subr.bf16.mxu1 %v8744_v38 }
 0x2d9   :  { %4133 = vmatpush1.bf16.msra.mxu0 %v8739_v39 }
 0x2da   :  { %4262 = vmatpush1.bf16.msra.mxu1 %v8742_v40  ;;  %4134 = vmatprep.subr.bf16.mxu0 %v8747_v41 }
 0x2db   :  { %4263 = vmatprep.subr.bf16.mxu1 %v8750_v42 }
 0x2dd   :  { %4135 = vmatpush1.bf16.msra.mxu0 %v8745_v43 }
 0x2de   :  { %4264 = vmatpush1.bf16.msra.mxu1 %v8748_v44  ;;  %4136 = vmatprep.subr.bf16.mxu0 %v8753_v45  ;;  %v8769_v44 = vld [vmem:[#allocation11 + $0x200] ss:$16 sps:$4 sm:$0xff]   ;;  %v8772_v45 = vld [vmem:[#allocation11 + $0x208] ss:$16 sps:$4 sm:$0xff]  }
 0x2df   :  { %4265 = vmatprep.subr.bf16.mxu1 %v8756_v47 }
 0x2e1   :  { %4137 = vmatpush1.bf16.msra.mxu0 %v8751_v48  ;;  %v8777_v48 = vld [vmem:[#allocation11 + $0x224] ss:$16 sps:$4 sm:$0xff]  }
 0x2e2   :  { %4266 = vmatpush1.bf16.msra.mxu1 %v8754_v49  ;;  %4138 = vmatprep.subr.bf16.mxu0 %v8759_v50  ;;  %v8780_v49 = vld [vmem:[#allocation11 + $0x22c] ss:$16 sps:$4 sm:$0xff]   ;;  %v8775_v50 = vld [vmem:[#allocation11 + $0x220] ss:$16 sps:$4 sm:$0xff]  }
 0x2e3   :  { %4267 = vmatprep.subr.bf16.mxu1 %v8762_v52  ;;  %v8778_v52 = vld [vmem:[#allocation11 + $0x228] ss:$16 sps:$4 sm:$0xff]  }
 0x2e5   :  { %4139 = vmatpush1.bf16.msra.mxu0 %v8757_v54  ;;  %v8783_v54 = vld [vmem:[#allocation11 + $0x244] ss:$16 sps:$4 sm:$0xff]  }
 0x2e6   :  { %4268 = vmatpush1.bf16.msra.mxu1 %v8760_v55  ;;  %4140 = vmatprep.subr.bf16.mxu0 %v8765_v56  ;;  %v8786_v55 = vld [vmem:[#allocation11 + $0x24c] ss:$16 sps:$4 sm:$0xff]   ;;  %v8781_v56 = vld [vmem:[#allocation11 + $0x240] ss:$16 sps:$4 sm:$0xff]  }
 0x2e7   :  { %4269 = vmatprep.subr.bf16.mxu1 %v8768_v57  ;;  %v8784_v57 = vld [vmem:[#allocation11 + $0x248] ss:$16 sps:$4 sm:$0xff]  }
 0x2e9   :  { %4141 = vmatpush1.bf16.msra.mxu0 %v8763_v58  ;;  %v8789_v58 = vld [vmem:[#allocation11 + $0x264] ss:$16 sps:$4 sm:$0xff]  }
 0x2ea   :  { %4270 = vmatpush1.bf16.msra.mxu1 %v8766_v59  ;;  %4153 = vmatprep.subr.bf16.mxu0 %v8771_v46  ;;  %v8792_v59 = vld [vmem:[#allocation11 + $0x26c] ss:$16 sps:$4 sm:$0xff]   ;;  %v8787_v46 = vld [vmem:[#allocation11 + $0x260] ss:$16 sps:$4 sm:$0xff]  }
 0x2eb   :  { %4282 = vmatprep.subr.bf16.mxu1 %v8774_v61  ;;  %v8790_v61 = vld [vmem:[#allocation11 + $0x268] ss:$16 sps:$4 sm:$0xff]  }
 0x33f   :  { %v2758_v63 = vpop.f32.mrb[8].mxu0  ;;  %v2930_v5 = vpop.f32.mrb[8].mxu1 }
 0x340   :  { %v8086_v2 = vadd.f32 %v2758_v63, %v1117_v31  ;;  %v8090_v8 = vadd.f32 %v2930_v5, %v1125_v1  ;;  %v2760_v9 = vpop.f32.mrb[9].mxu0  ;;  %v2932_v11 = vpop.f32.mrb[9].mxu1  ;;  %v8801_v63 = vld [vmem:[#allocation11 + $0x2a4] ss:$16 sps:$4 sm:$0xff]   ;;  %v8804_v5 = vld [vmem:[#allocation11 + $0x2ac] ss:$16 sps:$4 sm:$0xff]  }
 0x341   :  { %v8087_v12 = vadd.f32 %v2760_v9, %v1121_v51  ;;  %v8091_v13 = vadd.f32 %v2932_v11, %v1129_v21  ;;  %v2762_v14 = vpop.f32.mrb[10].mxu0  ;;  %v2934_v15 = vpop.f32.mrb[10].mxu1  ;;  %v8807_v9 = vld [vmem:[#allocation11 + $0x2c4] ss:$16 sps:$4 sm:$0xff]   ;;  %v8810_v11 = vld [vmem:[#allocation11 + $0x2cc] ss:$16 sps:$4 sm:$0xff]  }
 0x342   :  { %v3103_v16 = vmul.f32 0.01, %v8086_v2  ;;  %v3105_v17 = vmul.f32 0.01, %v8090_v8  ;;  %v8088_v18 = vadd.f32 %v2762_v14, %v1117_v31  ;;  %v8092_v19 = vadd.f32 %v2934_v15, %v1125_v1  ;;  %v2764_v23 = vpop.f32.mrb[11].mxu0  ;;  %v2936_v24 = vpop.f32.mrb[11].mxu1 }
 0x343   :  { %v3104_v25 = vmul.f32 0.01, %v8087_v12  ;;  %v3106_v26 = vmul.f32 0.01, %v8091_v13  ;;  %v8089_v27 = vadd.f32 %v2764_v23, %v1121_v51  ;;  %v8093_v28 = vadd.f32 %v2936_v24, %v1129_v21  ;;  %v8795_v31 = vld [vmem:[#allocation11 + $0x284] ss:$16 sps:$4 sm:$0xff]  }
 0x344   :  { %v3108_v30 = vmul.f32 0.01, %v8088_v18  ;;  %v3110_v32 = vmul.f32 0.01, %v8092_v19  ;;  %v3113_v34 = vmax.f32 %v8086_v2, %v3103_v16  ;;  %v3115_v60 = vmax.f32 %v8090_v8, %v3105_v17  ;;  %v8798_v1 = vld [vmem:[#allocation11 + $0x28c] ss:$16 sps:$4 sm:$0xff]  }
 0x345   :  { %v3109_v33 = vmul.f32 0.01, %v8089_v27  ;;  %v3111_v29 = vmul.f32 0.01, %v8093_v28  ;;  %v3114_v36 = vmax.f32 %v8087_v12, %v3104_v25  ;;  %v3116_v38 = vmax.f32 %v8091_v13, %v3106_v26  ;;  %v8793_v51 = vld [vmem:[#allocation11 + $0x280] ss:$16 sps:$4 sm:$0xff]  }
 0x346   :  { %v3118_v53 = vmax.f32 %v8088_v18, %v3108_v30  ;;  %v3120_v35 = vmax.f32 %v8092_v19, %v3110_v32  ;;  %v8796_v21 = vld [vmem:[#allocation11 + $0x288] ss:$16 sps:$4 sm:$0xff]   ;;  %v8799_v2 = vld [vmem:[#allocation11 + $0x2a0] ss:$16 sps:$4 sm:$0xff]   ;;  %v1133_v13 = vrot.slane %v9580_v62, %v9535_v7 }
 0x347   :  { %v3119_v39 = vmax.f32 %v8089_v27, %v3109_v33  ;;  %v3121_v40 = vmax.f32 %v8093_v28, %v3111_v29  ;;  %v8802_v8 = vld [vmem:[#allocation11 + $0x2a8] ss:$16 sps:$4 sm:$0xff]   ;;  %v8805_v19 = vld [vmem:[#allocation11 + $0x2c0] ss:$16 sps:$4 sm:$0xff]   ;;  %v8813_v27 = vld [vmem:[#allocation11 + $0x2e4] ss:$16 sps:$4 sm:$0xff]  }
 0x348   :  { %v3123_v41 = vpack.c.bf16 %v3118_v53, %v3113_v34  ;;  %v9590_v42 = vpack.c.bf16 %v3120_v35, %v3115_v60  ;;  %v8808_v23 = vld [vmem:[#allocation11 + $0x2c8] ss:$16 sps:$4 sm:$0xff]   ;;  %v8816_v28 = vld [vmem:[#allocation11 + $0x2ec] ss:$16 sps:$4 sm:$0xff]   ;;  %v8811_v60 = vld [vmem:[#allocation11 + $0x2e0] ss:$16 sps:$4 sm:$0xff]  }
 0x349   :  { %v3124_v43 = vpack.c.bf16 %v3119_v39, %v3114_v36  ;;  %v3126_v47 = vpack.c.bf16 %v3121_v40, %v3116_v38  ;;  %v8814_v53 = vld [vmem:[#allocation11 + $0x2e8] ss:$16 sps:$4 sm:$0xff]   ;;  %v8819_v35 = vld [vmem:[#allocation11 + $0x304] ss:$16 sps:$4 sm:$0xff]   ;;  %v8822_v36 = vld [vmem:[#allocation11 + $0x30c] ss:$16 sps:$4 sm:$0xff]  }
 0x34a   :  { %v8817_v39 = vld [vmem:[#allocation11 + $0x300] ss:$16 sps:$4 sm:$0xff]   ;;  %v8820_v40 = vld [vmem:[#allocation11 + $0x308] ss:$16 sps:$4 sm:$0xff]  }
 0x34b   :  { %4142 = vmatprep.mubr.bf16.mxu0 %v3124_v43  ;;  %4271 = vmatprep.mubr.bf16.mxu1 %v3124_v43  ;;  %v8828_v43 = vld [vmem:[#allocation11 + $0x32c] ss:$16 sps:$4 sm:$0xff]  }
 0x34c   :  { %4143 = vmatmul.mubr.bf16.vlgmr.msra.gmra.mrb[20].mxu0 %v3123_v41  ;;  %4272 = vmatmul.mubr.bf16.vlgmr.msra.gmra.mrb[20].mxu1 %v3123_v41  ;;  %v8825_v41 = vld [vmem:[#allocation11 + $0x324] ss:$16 sps:$4 sm:$0xff]  }
 0x34d   :  { %4154 = vmatpush1.bf16.msra.mxu0 %v8769_v44  ;;  %4283 = vmatpush1.bf16.msra.mxu1 %v8772_v45  ;;  %v8823_v44 = vld [vmem:[#allocation11 + $0x320] ss:$16 sps:$4 sm:$0xff]   ;;  %v8826_v45 = vld [vmem:[#allocation11 + $0x328] ss:$16 sps:$4 sm:$0xff]  }
 0x34e   :  { %4185 = vmatprep.mubr.bf16.mxu0 %v3126_v47  ;;  %4314 = vmatprep.mubr.bf16.mxu1 %v3126_v47  ;;  %v8831_v47 = vld [vmem:[#allocation11 + $0x344] ss:$16 sps:$4 sm:$0xff]  }
 0x34f   :  { %4155 = vmatprep.subr.bf16.mxu0 %v8777_v48  ;;  %4284 = vmatprep.subr.bf16.mxu1 %v8780_v49  ;;  %v8834_v48 = vld [vmem:[#allocation11 + $0x34c] ss:$16 sps:$4 sm:$0xff]   ;;  %v8829_v49 = vld [vmem:[#allocation11 + $0x340] ss:$16 sps:$4 sm:$0xff]  }
 0x351   :  { %4156 = vmatpush1.bf16.msra.mxu0 %v8775_v50  ;;  %4285 = vmatpush1.bf16.msra.mxu1 %v8778_v52  ;;  %v8832_v50 = vld [vmem:[#allocation11 + $0x348] ss:$16 sps:$4 sm:$0xff]   ;;  %v8837_v52 = vld [vmem:[#allocation11 + $0x364] ss:$16 sps:$4 sm:$0xff]  }
 0x352   :  { %4157 = vmatprep.subr.bf16.mxu0 %v8783_v54  ;;  %4286 = vmatprep.subr.bf16.mxu1 %v8786_v55  ;;  %v8840_v54 = vld [vmem:[#allocation11 + $0x36c] ss:$16 sps:$4 sm:$0xff]   ;;  %v8835_v55 = vld [vmem:[#allocation11 + $0x360] ss:$16 sps:$4 sm:$0xff]  }
 0x355   :  { %4158 = vmatpush1.bf16.msra.mxu0 %v8781_v56  ;;  %4287 = vmatpush1.bf16.msra.mxu1 %v8784_v57  ;;  %v8838_v56 = vld [vmem:[#allocation11 + $0x368] ss:$16 sps:$4 sm:$0xff]   ;;  %v8843_v57 = vld [vmem:[#allocation11 + $0x384] ss:$16 sps:$4 sm:$0xff]  }
 0x356   :  { %4159 = vmatprep.subr.bf16.mxu0 %v8789_v58  ;;  %4288 = vmatprep.subr.bf16.mxu1 %v8792_v59  ;;  %v8846_v58 = vld [vmem:[#allocation11 + $0x38c] ss:$16 sps:$4 sm:$0xff]   ;;  %v8841_v59 = vld [vmem:[#allocation11 + $0x380] ss:$16 sps:$4 sm:$0xff]  }
 0x359   :  { %4160 = vmatpush1.bf16.msra.mxu0 %v8787_v46  ;;  %4289 = vmatpush1.bf16.msra.mxu1 %v8790_v61  ;;  %v8844_v46 = vld [vmem:[#allocation11 + $0x388] ss:$16 sps:$4 sm:$0xff]   ;;  %v8849_v61 = vld [vmem:[#allocation11 + $0x3a4] ss:$16 sps:$4 sm:$0xff]  }
 0x35a   :  { %4161 = vmatprep.subr.bf16.mxu0 %v8795_v31  ;;  %4290 = vmatprep.subr.bf16.mxu1 %v8798_v1  ;;  %v8852_v31 = vld [vmem:[#allocation11 + $0x3ac] ss:$16 sps:$4 sm:$0xff]   ;;  %v8847_v1 = vld [vmem:[#allocation11 + $0x3a0] ss:$16 sps:$4 sm:$0xff]  }
 0x35d   :  { %4162 = vmatpush1.bf16.msra.mxu0 %v8793_v51  ;;  %4291 = vmatpush1.bf16.msra.mxu1 %v8796_v21  ;;  %v8850_v51 = vld [vmem:[#allocation11 + $0x3a8] ss:$16 sps:$4 sm:$0xff]   ;;  %v8855_v21 = vld [vmem:[#allocation11 + $0x3c4] ss:$16 sps:$4 sm:$0xff]  }
 0x35e   :  { %4163 = vmatprep.subr.bf16.mxu0 %v8801_v63  ;;  %4292 = vmatprep.subr.bf16.mxu1 %v8804_v5  ;;  %v8858_v63 = vld [vmem:[#allocation11 + $0x3cc] ss:$16 sps:$4 sm:$0xff]  }
 0x35f   :  { %v7899_v12 = vpop.f32.mrb[12].mxu0 }
 0x360   :  { %v7921_v14 = vpop.f32.mrb[12].mxu1  ;;  %v7900_v15 = vpop.f32.mrb[13].mxu0 }
 0x361   :  { %v7901_v16 = vadd.f32 %v7900_v15, %v7899_v12  ;;  %v7922_v17 = vpop.f32.mrb[13].mxu1  ;;  %4164 = vmatpush1.bf16.msra.mxu0 %v8799_v2  ;;  %4293 = vmatpush1.bf16.msra.mxu1 %v8802_v8  ;;  %v7902_v18 = vpop.f32.mrb[14].mxu0 }
 0x362   :  { %v7923_v24 = vadd.f32 %v7922_v17, %v7921_v14  ;;  %v7924_v25 = vpop.f32.mrb[14].mxu1  ;;  %v7903_v26 = vpop.f32.mrb[15].mxu0  ;;  %4165 = vmatprep.subr.bf16.mxu0 %v8807_v9  ;;  %4294 = vmatprep.subr.bf16.mxu1 %v8810_v11  ;;  %v8856_v14 = vld [vmem:[#allocation11 + $0x3c8] ss:$16 sps:$4 sm:$0xff]   ;;  %v8861_v17 = vld [vmem:[#allocation11 + $0x3e4] ss:$16 sps:$4 sm:$0xff]  }
 0x363   :  { %v2974_v30 = vadd.f32 %v7901_v16, %v1133_v13  ;;  %v7904_v32 = vadd.f32 %v7903_v26, %v7902_v18  ;;  %v7925_v33 = vpop.f32.mrb[15].mxu1  ;;  %v8864_v18 = vld [vmem:[#allocation11 + $0x3ec] ss:$16 sps:$4 sm:$0xff]  }
 0x364   :  { %v7926_v62 = vadd.f32 %v7925_v33, %v7924_v25 }
 0x365   :  { %v9594_v29 = vadd.f32 %v7923_v24, %v2974_v30  ;;  %v2977_v34 = vadd.f32 %v7904_v32, %v1133_v13  ;;  %4166 = vmatpush1.bf16.msra.mxu0 %v8805_v19  ;;  %4295 = vmatpush1.bf16.msra.mxu1 %v8808_v23  ;;  %v8853_v13 = vld [vmem:[#allocation11 + $0x3c0] ss:$16 sps:$4 sm:$0xff]   ;;  %v8867_v30 = vld [vmem:[#allocation11 + $0x404] ss:$16 sps:$4 sm:$0xff]   ;;  %v8870_v32 = vld [vmem:[#allocation11 + $0x40c] ss:$16 sps:$4 sm:$0xff]  }
 0x366   :  { %4167 = vmatprep.subr.bf16.mxu0 %v8813_v27  ;;  %4296 = vmatprep.subr.bf16.mxu1 %v8816_v28  ;;  %v8859_v27 = vld [vmem:[#allocation11 + $0x3e0] ss:$16 sps:$4 sm:$0xff]   ;;  %v8862_v28 = vld [vmem:[#allocation11 + $0x3e8] ss:$16 sps:$4 sm:$0xff]  }
 0x367   :  { %v9596_v38 = vadd.f32 %v7926_v62, %v2977_v34 }
 0x369   :  { %4168 = vmatpush1.bf16.msra.mxu0 %v8811_v60  ;;  %4297 = vmatpush1.bf16.msra.mxu1 %v8814_v53  ;;  %v8865_v60 = vld [vmem:[#allocation11 + $0x400] ss:$16 sps:$4 sm:$0xff]   ;;  %v8873_v53 = vld [vmem:[#allocation11 + $0x424] ss:$16 sps:$4 sm:$0xff]  }
 0x36a   :  { %4169 = vmatprep.subr.bf16.mxu0 %v8819_v35  ;;  %4298 = vmatprep.subr.bf16.mxu1 %v8822_v36  ;;  %v8876_v35 = vld [vmem:[#allocation11 + $0x42c] ss:$16 sps:$4 sm:$0xff]  }
 0x36d   :  { %4170 = vmatpush1.bf16.msra.mxu0 %v8817_v39  ;;  %4299 = vmatpush1.bf16.msra.mxu1 %v8820_v40  ;;  %v8871_v39 = vld [vmem:[#allocation11 + $0x420] ss:$16 sps:$4 sm:$0xff]   ;;  %v8874_v40 = vld [vmem:[#allocation11 + $0x428] ss:$16 sps:$4 sm:$0xff]  }
 0x36e   :  { %4171 = vmatprep.subr.bf16.mxu0 %v8825_v41  ;;  %4300 = vmatprep.subr.bf16.mxu1 %v8828_v43  ;;  %v8879_v43 = vld [vmem:[#allocation11 + $0x444] ss:$16 sps:$4 sm:$0xff]  }
 0x371   :  { %4172 = vmatpush1.bf16.msra.mxu0 %v8823_v44  ;;  %4301 = vmatpush1.bf16.msra.mxu1 %v8826_v45  ;;  %v8882_v44 = vld [vmem:[#allocation11 + $0x44c] ss:$16 sps:$4 sm:$0xff]   ;;  %v8877_v45 = vld [vmem:[#allocation11 + $0x440] ss:$16 sps:$4 sm:$0xff]  }
 0x372   :  { %4173 = vmatprep.subr.bf16.mxu0 %v8831_v47  ;;  %4302 = vmatprep.subr.bf16.mxu1 %v8834_v48  ;;  %v8880_v47 = vld [vmem:[#allocation11 + $0x448] ss:$16 sps:$4 sm:$0xff]   ;;  %v8888_v48 = vld [vmem:[#allocation11 + $0x46c] ss:$16 sps:$4 sm:$0xff]  }
 0x375   :  { %4174 = vmatpush1.bf16.msra.mxu0 %v8829_v49  ;;  %4303 = vmatpush1.bf16.msra.mxu1 %v8832_v50  ;;  %v8883_v49 = vld [vmem:[#allocation11 + $0x460] ss:$16 sps:$4 sm:$0xff]   ;;  %v8886_v50 = vld [vmem:[#allocation11 + $0x468] ss:$16 sps:$4 sm:$0xff]  }
 0x376   :  { %4175 = vmatprep.subr.bf16.mxu0 %v8837_v52  ;;  %4304 = vmatprep.subr.bf16.mxu1 %v8840_v54  ;;  %v8891_v52 = vld [vmem:[#allocation11 + $0x484] ss:$16 sps:$4 sm:$0xff]   ;;  %v8894_v54 = vld [vmem:[#allocation11 + $0x48c] ss:$16 sps:$4 sm:$0xff]  }
 0x379   :  { %4176 = vmatpush1.bf16.msra.mxu0 %v8835_v55  ;;  %4305 = vmatpush1.bf16.msra.mxu1 %v8838_v56  ;;  %v8889_v55 = vld [vmem:[#allocation11 + $0x480] ss:$16 sps:$4 sm:$0xff]   ;;  %v8897_v56 = vld [vmem:[#allocation11 + $0x4a4] ss:$16 sps:$4 sm:$0xff]  }
 0x37a   :  { %4177 = vmatprep.subr.bf16.mxu0 %v8843_v57  ;;  %4306 = vmatprep.subr.bf16.mxu1 %v8846_v58  ;;  %v8900_v57 = vld [vmem:[#allocation11 + $0x4ac] ss:$16 sps:$4 sm:$0xff]   ;;  %v8895_v58 = vld [vmem:[#allocation11 + $0x4a0] ss:$16 sps:$4 sm:$0xff]  }
 0x37d   :  { %4178 = vmatpush1.bf16.msra.mxu0 %v8841_v59  ;;  %4307 = vmatpush1.bf16.msra.mxu1 %v8844_v46  ;;  %v8898_v59 = vld [vmem:[#allocation11 + $0x4a8] ss:$16 sps:$4 sm:$0xff]   ;;  %v8903_v46 = vld [vmem:[#allocation11 + $0x4c4] ss:$16 sps:$4 sm:$0xff]  }
 0x37e   :  { %4179 = vmatprep.subr.bf16.mxu0 %v8849_v61  ;;  %4308 = vmatprep.subr.bf16.mxu1 %v8852_v31  ;;  %v8906_v61 = vld [vmem:[#allocation11 + $0x4cc] ss:$16 sps:$4 sm:$0xff]   ;;  %v8901_v31 = vld [vmem:[#allocation11 + $0x4c0] ss:$16 sps:$4 sm:$0xff]  }
 0x37f   :  { %v7943_v5 = vpop.f32.mrb[16].mxu0 }
 0x380   :  { %v3096_v2 = vpop.f32.mrb[16].mxu1  ;;  %v7944_v8 = vpop.f32.mrb[17].mxu0 }
 0x381   :  { %v7945_v9 = vadd.f32 %v7944_v8, %v7943_v5  ;;  %v8084_v11 = vpop.f32.mrb[17].mxu1  ;;  %4180 = vmatpush1.bf16.msra.mxu0 %v8847_v1  ;;  %4309 = vmatpush1.bf16.msra.mxu1 %v8850_v51  ;;  %v7946_v12 = vpop.f32.mrb[18].mxu0  ;;  %v8904_v1 = vld [vmem:[#allocation11 + $0x4c8] ss:$16 sps:$4 sm:$0xff]   ;;  %v8909_v51 = vld [vmem:[#allocation11 + $0x4e4] ss:$16 sps:$4 sm:$0xff]  }
 0x382   :  { %v3099_v15 = vpop.f32.mrb[18].mxu1  ;;  %v7947_v16 = vpop.f32.mrb[19].mxu0  ;;  %4181 = vmatprep.subr.bf16.mxu0 %v8855_v21  ;;  %4310 = vmatprep.subr.bf16.mxu1 %v8858_v63  ;;  %v8912_v21 = vld [vmem:[#allocation11 + $0x4ec] ss:$16 sps:$4 sm:$0xff]   ;;  %v4388_v63 = vld [vmem:[#allocation14] sm:$0xff] }
 0x383   :  { %v3056_v19 = vadd.f32 %v7945_v9, %v9594_v29  ;;  %v7948_v23 = vadd.f32 %v7947_v16, %v7946_v12  ;;  %v8085_v24 = vpop.f32.mrb[19].mxu1  ;;  %v8868_v29 = vld [vmem:[#allocation11 + $0x408] ss:$16 sps:$4 sm:$0xff]   ;;  %v4393_v8 = vld [vmem:[#allocation14 + $0x28] sm:$0xff] }
 0x384   :  { %v4392_v5 = vld [vmem:[#allocation14 + $0x20] sm:$0xff]  ;;  %v8907_v9 = vld [vmem:[#allocation11 + $0x4e0] ss:$16 sps:$4 sm:$0xff]  }
 0x385   :  { %v3097_v25 = vadd.f32 %v3096_v2, %v3056_v19  ;;  %v3059_v26 = vadd.f32 %v7948_v23, %v9596_v38  ;;  %4182 = vmatpush1.bf16.msra.mxu0 %v8853_v13  ;;  %4311 = vmatpush1.bf16.msra.mxu1 %v8856_v14  ;;  %v4389_v2 = vld [vmem:[#allocation14 + $0x8] sm:$0xff]  ;;  %v8910_v11 = vld [vmem:[#allocation11 + $0x4e8] ss:$16 sps:$4 sm:$0xff]   ;;  %v7554_v12 = vcombine.high %v4388_v63, %v4392_v5 }
 0x386   :  { %4183 = vmatprep.subr.bf16.mxu0 %v8861_v17  ;;  %4312 = vmatprep.subr.bf16.mxu1 %v8864_v18  ;;  %v7556_v13 = vcombine.high %v4389_v2, %v4393_v8  ;;  %v4396_v14 = vld [vmem:[#allocation14 + $0x40] sm:$0xff]  ;;  %v4397_v16 = vld [vmem:[#allocation14 + $0x48] sm:$0xff]  ;;  %v7553_v18 = vcombine.low %v4388_v63, %v4392_v5  ;;  %v7555_v19 = vcombine.low %v4389_v2, %v4393_v8 }
 0x387   :  { %v3107_v33 = vmul.f32 0.01, %v3097_v25  ;;  %v3100_v62 = vadd.f32 %v3099_v15, %v3059_v26  ;;  %v4400_v15 = vld [vmem:[#allocation14 + $0x60] sm:$0xff]  ;;  %v4401_v17 = vld [vmem:[#allocation14 + $0x68] sm:$0xff] }
 0x388   :  { %v7562_v23 = vcombine.high %v4396_v14, %v4400_v15  ;;  %v7564_v24 = vcombine.high %v4397_v16, %v4401_v17  ;;  %v4408_v26 = vld [vmem:[#allocation14 + $0xa0] sm:$0xff]  ;;  %v4445_v2 = vld [vmem:[#allocation14 + $0x1c8] sm:$0xff] }
 0x389   :  { %v3112_v34 = vmul.f32 0.01, %v3100_v62  ;;  %4184 = vmatpush1.bf16.msra.mxu0 %v8859_v27  ;;  %4313 = vmatpush1.bf16.msra.mxu1 %v8862_v28  ;;  %v3117_v36 = vmax.f32 %v3097_v25, %v3107_v33  ;;  %v4404_v25 = vld [vmem:[#allocation14 + $0x80] sm:$0xff]  ;;  %v4405_v27 = vld [vmem:[#allocation14 + $0x88] sm:$0xff] }
 0x38a   :  { %4196 = vmatprep.subr.bf16.mxu0 %v8867_v30  ;;  %4325 = vmatprep.subr.bf16.mxu1 %v8870_v32  ;;  %v4409_v28 = vld [vmem:[#allocation14 + $0xa8] sm:$0xff]  ;;  %v7561_v30 = vcombine.low %v4396_v14, %v4400_v15  ;;  %v7563_v32 = vcombine.low %v4397_v16, %v4401_v17  ;;  %v7570_v33 = vcombine.high %v4404_v25, %v4408_v26  ;;  %v4444_v63 = vld [vmem:[#allocation14 + $0x1c0] sm:$0xff] }
 0x38b   :  { %v3122_v38 = vmax.f32 %v3100_v62, %v3112_v34  ;;  %v7572_v62 = vcombine.high %v4405_v27, %v4409_v28  ;;  %v4412_v34 = vld [vmem:[#allocation14 + $0xc0] sm:$0xff]  ;;  %v4449_v8 = vld [vmem:[#allocation14 + $0x1e8] sm:$0xff] }
 0x38c   :  { %4186 = vmatmul.mubr.bf16.vlgmr.msra.gmra.mrb[20].mxu0 %v9590_v42  ;;  %4315 = vmatmul.mubr.bf16.vlgmr.msra.gmra.mrb[20].mxu1 %v9590_v42  ;;  %v8885_v42 = vld [vmem:[#allocation11 + $0x464] ss:$16 sps:$4 sm:$0xff]   ;;  %v4453_v16 = vld [vmem:[#allocation14 + $0x208] sm:$0xff] }
 0x38d   :  { %4197 = vmatpush1.bf16.msra.mxu0 %v8865_v60  ;;  %4326 = vmatpush1.bf16.msra.mxu1 %v8868_v29  ;;  %v9602_v41 = vpack.c.bf16 %v3122_v38, %v3117_v36  ;;  %v4416_v60 = vld [vmem:[#allocation14 + $0xe0] sm:$0xff]  ;;  %v4413_v29 = vld [vmem:[#allocation14 + $0xc8] sm:$0xff]  ;;  %v7571_v36 = vcombine.low %v4405_v27, %v4409_v28 }
 0x38e   :  { %4198 = vmatprep.subr.bf16.mxu0 %v8873_v53  ;;  %4327 = vmatprep.subr.bf16.mxu1 %v8876_v35  ;;  %v4417_v53 = vld [vmem:[#allocation14 + $0xe8] sm:$0xff]  ;;  %v7569_v35 = vcombine.low %v4404_v25, %v4408_v26  ;;  %v7578_v38 = vcombine.high %v4412_v34, %v4416_v60  ;;  %v4448_v5 = vld [vmem:[#allocation14 + $0x1e0] sm:$0xff] }
 0x38f   :  { %4228 = vmatprep.mubr.bf16.mxu0 %v9278_v0  ;;  %4357 = vmatprep.mubr.bf16.mxu1 %v9278_v0  ;;  %v8892_v0 = vld [vmem:[#allocation11 + $0x488] ss:$16 sps:$4 sm:$0xff]   ;;  %v4457_v17 = vld [vmem:[#allocation14 + $0x228] sm:$0xff] }
 0x390   :  { %v4452_v14 = vld [vmem:[#allocation14 + $0x200] sm:$0xff]  ;;  %v4461_v27 = vld [vmem:[#allocation14 + $0x248] sm:$0xff] }
 0x391   :  { %4199 = vmatpush1.bf16.msra.mxu0 %v8871_v39  ;;  %4328 = vmatpush1.bf16.msra.mxu1 %v8874_v40  ;;  %v7580_v39 = vcombine.high %v4413_v29, %v4417_v53  ;;  %v4420_v40 = vld [vmem:[#allocation14 + $0x100] sm:$0xff]  ;;  %v4465_v28 = vld [vmem:[#allocation14 + $0x268] sm:$0xff] }
 0x392   :  { %4200 = vmatprep.subr.bf16.mxu0 %v8879_v43  ;;  %4329 = vmatprep.subr.bf16.mxu1 %v8882_v44  ;;  %v4421_v43 = vld [vmem:[#allocation14 + $0x108] sm:$0xff]  ;;  %v4456_v15 = vld [vmem:[#allocation14 + $0x220] sm:$0xff] }
 0x393   :  { %v4425_v44 = vld [vmem:[#allocation14 + $0x128] sm:$0xff]  ;;  %v4460_v25 = vld [vmem:[#allocation14 + $0x240] sm:$0xff] }
 0x394   :  { %v4464_v26 = vld [vmem:[#allocation14 + $0x260] sm:$0xff] }
 0x395   :  { %4201 = vmatpush1.bf16.msra.mxu0 %v8877_v45  ;;  %4330 = vmatpush1.bf16.msra.mxu1 %v8880_v47  ;;  %v7577_v45 = vcombine.low %v4412_v34, %v4416_v60  ;;  %v7579_v47 = vcombine.low %v4413_v29, %v4417_v53  ;;  %v4468_v34 = vld [vmem:[#allocation14 + $0x280] sm:$0xff]  ;;  %v4469_v29 = vld [vmem:[#allocation14 + $0x288] sm:$0xff] }
 0x396   :  { %4202 = vmatprep.subr.bf16.mxu0 %v8885_v42  ;;  %4331 = vmatprep.subr.bf16.mxu1 %v8888_v48  ;;  %v7588_v48 = vcombine.high %v4421_v43, %v4425_v44  ;;  %v4472_v60 = vld [vmem:[#allocation14 + $0x2a0] sm:$0xff]  ;;  %v4473_v53 = vld [vmem:[#allocation14 + $0x2a8] sm:$0xff] }
 0x399   :  { %4203 = vmatpush1.bf16.msra.mxu0 %v8883_v49  ;;  %4332 = vmatpush1.bf16.msra.mxu1 %v8886_v50  ;;  %v4428_v49 = vld [vmem:[#allocation14 + $0x140] sm:$0xff] }
 0x39a   :  { %4204 = vmatprep.subr.bf16.mxu0 %v8891_v52  ;;  %4333 = vmatprep.subr.bf16.mxu1 %v8894_v54  ;;  %v4432_v50 = vld [vmem:[#allocation14 + $0x160] sm:$0xff]  ;;  %v4429_v52 = vld [vmem:[#allocation14 + $0x148] sm:$0xff] }
 0x39b   :  { %v4433_v54 = vld [vmem:[#allocation14 + $0x168] sm:$0xff] }
 0x39d   :  { %4205 = vmatpush1.bf16.msra.mxu0 %v8889_v55  ;;  %4334 = vmatpush1.bf16.msra.mxu1 %v8892_v0  ;;  %v7587_v0 = vcombine.low %v4421_v43, %v4425_v44  ;;  %v4477_v43 = vld [vmem:[#allocation14 + $0x2c8] sm:$0xff] }
 0x39e   :  { %4206 = vmatprep.subr.bf16.mxu0 %v8897_v56  ;;  %4335 = vmatprep.subr.bf16.mxu1 %v8900_v57  ;;  %v7594_v56 = vcombine.high %v4428_v49, %v4432_v50  ;;  %v7596_v57 = vcombine.high %v4429_v52, %v4433_v54  ;;  %v4481_v44 = vld [vmem:[#allocation14 + $0x2e8] sm:$0xff] }
 0x3a1   :  { %4207 = vmatpush1.bf16.msra.mxu0 %v8895_v58  ;;  %4336 = vmatpush1.bf16.msra.mxu1 %v8898_v59  ;;  %v4436_v58 = vld [vmem:[#allocation14 + $0x180] sm:$0xff] }
 0x3a2   :  { %4208 = vmatprep.subr.bf16.mxu0 %v8903_v46  ;;  %4337 = vmatprep.subr.bf16.mxu1 %v8906_v61  ;;  %v4440_v59 = vld [vmem:[#allocation14 + $0x1a0] sm:$0xff]  ;;  %v4437_v46 = vld [vmem:[#allocation14 + $0x188] sm:$0xff] }
 0x3a3   :  { %v4441_v61 = vld [vmem:[#allocation14 + $0x1a8] sm:$0xff] }
 0x3a5   :  { %4209 = vmatpush1.bf16.msra.mxu0 %v8901_v31  ;;  %4338 = vmatpush1.bf16.msra.mxu1 %v8904_v1  ;;  %v7593_v31 = vcombine.low %v4428_v49, %v4432_v50  ;;  %v7595_v1 = vcombine.low %v4429_v52, %v4433_v54  ;;  %v4484_v49 = vld [vmem:[#allocation14 + $0x300] sm:$0xff]  ;;  %v4485_v52 = vld [vmem:[#allocation14 + $0x308] sm:$0xff] }
 0x3a6   :  { %4210 = vmatprep.subr.bf16.mxu0 %v8909_v51  ;;  %4339 = vmatprep.subr.bf16.mxu1 %v8912_v21  ;;  %v7602_v51 = vcombine.high %v4436_v58, %v4440_v59  ;;  %v7604_v21 = vcombine.high %v4437_v46, %v4441_v61  ;;  %v4488_v50 = vld [vmem:[#allocation14 + $0x320] sm:$0xff]  ;;  %v4489_v54 = vld [vmem:[#allocation14 + $0x328] sm:$0xff] }
 0x3a9   :  { %4211 = vmatpush1.bf16.msra.mxu0 %v8907_v9  ;;  %4340 = vmatpush1.bf16.msra.mxu1 %v8910_v11  ;;  %v7601_v9 = vcombine.low %v4436_v58, %v4440_v59  ;;  %v7603_v11 = vcombine.low %v4437_v46, %v4441_v61  ;;  %v7649_v58 = vcombine.low %v4484_v49, %v4488_v50  ;;  %v4492_v46 = vld [vmem:[#allocation14 + $0x340] sm:$0xff] }
 0x3aa   :  { %5966 = vmatprep.subr.bf16.mxu0 %v7554_v12  ;;  %6052 = vmatprep.subr.bf16.mxu1 %v7556_v13  ;;  %v7610_v12 = vcombine.high %v4444_v63, %v4448_v5  ;;  %v7612_v13 = vcombine.high %v4445_v2, %v4449_v8  ;;  %v7651_v59 = vcombine.low %v4485_v52, %v4489_v54  ;;  %v4496_v61 = vld [vmem:[#allocation14 + $0x360] sm:$0xff] }
 0x3ac   :  { %4229 = vmatmul.mubr.bf16.vlgmr.msra.gmra.mrb[20].mxu0 %v9602_v41  ;;  %4358 = vmatmul.mubr.bf16.vlgmr.msra.gmra.mrb[20].mxu1 %v9602_v41  ;;  %v4424_v41 = vld [vmem:[#allocation14 + $0x120] sm:$0xff] }
 0x3ad   :  { %5967 = vmatpush1.bf16.msra.mxu0 %v7553_v18  ;;  %6053 = vmatpush1.bf16.msra.mxu1 %v7555_v19  ;;  %v7586_v42 = vcombine.high %v4420_v40, %v4424_v41  ;;  %v7585_v55 = vcombine.low %v4420_v40, %v4424_v41  ;;  %v7609_v18 = vcombine.low %v4444_v63, %v4448_v5  ;;  %v4476_v40 = vld [vmem:[#allocation14 + $0x2c0] sm:$0xff] }
 0x3ae   :  { %5968 = vmatprep.subr.bf16.mxu0 %v7562_v23  ;;  %6054 = vmatprep.subr.bf16.mxu1 %v7564_v24  ;;  %v7611_v19 = vcombine.low %v4445_v2, %v4449_v8  ;;  %v7618_v23 = vcombine.high %v4452_v14, %v4456_v15  ;;  %v7620_v24 = vcombine.high %v4453_v16, %v4457_v17  ;;  %v4480_v41 = vld [vmem:[#allocation14 + $0x2e0] sm:$0xff] }
 0x3af   :  { %v4500_v2 = vld [vmem:[#allocation14 + $0x380] sm:$0xff] }
 0x3b0   :  { %v4504_v8 = vld [vmem:[#allocation14 + $0x3a0] sm:$0xff] }
 0x3b1   :  { %5969 = vmatpush1.bf16.msra.mxu0 %v7561_v30  ;;  %6055 = vmatpush1.bf16.msra.mxu1 %v7563_v32  ;;  %v7617_v30 = vcombine.low %v4452_v14, %v4456_v15  ;;  %v7619_v32 = vcombine.low %v4453_v16, %v4457_v17  ;;  %v4508_v16 = vld [vmem:[#allocation14 + $0x3c0] sm:$0xff] }
 0x3b2   :  { %5970 = vmatprep.subr.bf16.mxu0 %v7570_v33  ;;  %6056 = vmatprep.subr.bf16.mxu1 %v7572_v62  ;;  %v7626_v33 = vcombine.high %v4460_v25, %v4464_v26  ;;  %v7628_v62 = vcombine.high %v4461_v27, %v4465_v28  ;;  %v4512_v17 = vld [vmem:[#allocation14 + $0x3e0] sm:$0xff] }
 0x3b5   :  { %5971 = vmatpush1.bf16.msra.mxu0 %v7569_v35  ;;  %6057 = vmatpush1.bf16.msra.mxu1 %v7571_v36  ;;  %v7625_v35 = vcombine.low %v4460_v25, %v4464_v26  ;;  %v7627_v36 = vcombine.low %v4461_v27, %v4465_v28  ;;  %v9608_v27 = vld [vmem:[#allocation14 + $0x400] sm:$0xff] }
 0x3b6   :  { %5972 = vmatprep.subr.bf16.mxu0 %v7578_v38  ;;  %6058 = vmatprep.subr.bf16.mxu1 %v7580_v39  ;;  %v7634_v38 = vcombine.high %v4468_v34, %v4472_v60  ;;  %v7636_v39 = vcombine.high %v4469_v29, %v4473_v53  ;;  %v9610_v28 = vld [vmem:[#allocation14 + $0x420] sm:$0xff] }
 0x3b9   :  { %5973 = vmatpush1.bf16.msra.mxu0 %v7577_v45  ;;  %6059 = vmatpush1.bf16.msra.mxu1 %v7579_v47  ;;  %v7633_v45 = vcombine.low %v4468_v34, %v4472_v60  ;;  %v7635_v47 = vcombine.low %v4469_v29, %v4473_v53  ;;  %v3288_v29 = vld [vmem:[#allocation13] sm:$0xf] }
 0x3ba   :  { %5974 = vmatprep.subr.bf16.mxu0 %v7586_v42  ;;  %6060 = vmatprep.subr.bf16.mxu1 %v7588_v48  ;;  %v7642_v42 = vcombine.high %v4476_v40, %v4480_v41  ;;  %v7644_v48 = vcombine.high %v4477_v43, %v4481_v44  ;;  %v3293_v53 = vrot.slane %v3288_v29, %v9499_v4 }
 0x3bd   :  { %5975 = vmatpush1.bf16.msra.mxu0 %v7585_v55  ;;  %6061 = vmatpush1.bf16.msra.mxu1 %v7587_v0  ;;  %v7641_v55 = vcombine.low %v4476_v40, %v4480_v41  ;;  %v7643_v0 = vcombine.low %v4477_v43, %v4481_v44 }
 0x3be   :  { %5976 = vmatprep.subr.bf16.mxu0 %v7594_v56  ;;  %6062 = vmatprep.subr.bf16.mxu1 %v7596_v57  ;;  %v7650_v56 = vcombine.high %v4484_v49, %v4488_v50  ;;  %v7652_v57 = vcombine.high %v4485_v52, %v4489_v54 }
 0x3c1   :  { %5977 = vmatpush1.bf16.msra.mxu0 %v7593_v31  ;;  %6063 = vmatpush1.bf16.msra.mxu1 %v7595_v1  ;;  %v4493_v31 = vld [vmem:[#allocation14 + $0x348] sm:$0xff]  ;;  %v7658_v1 = vcombine.high %v4492_v46, %v4496_v61 }
 0x3c2   :  { %5978 = vmatprep.subr.bf16.mxu0 %v7602_v51  ;;  %6064 = vmatprep.subr.bf16.mxu1 %v7604_v21  ;;  %v4497_v51 = vld [vmem:[#allocation14 + $0x368] sm:$0xff]  ;;  %v7657_v21 = vcombine.low %v4492_v46, %v4496_v61 }
 0x3c3   :  { %v7659_v63 = vcombine.low %v4493_v31, %v4497_v51  ;;  %v7660_v5 = vcombine.high %v4493_v31, %v4497_v51 }
 0x3c5   :  { %5979 = vmatpush1.bf16.msra.mxu0 %v7601_v9  ;;  %6065 = vmatpush1.bf16.msra.mxu1 %v7603_v11  ;;  %v4501_v9 = vld [vmem:[#allocation14 + $0x388] sm:$0xff]  ;;  %v7666_v11 = vcombine.high %v4500_v2, %v4504_v8 }
 0x3c6   :  { %5980 = vmatprep.subr.bf16.mxu0 %v7610_v12  ;;  %6066 = vmatprep.subr.bf16.mxu1 %v7612_v13  ;;  %v4505_v12 = vld [vmem:[#allocation14 + $0x3a8] sm:$0xff]  ;;  %v7665_v13 = vcombine.low %v4500_v2, %v4504_v8 }
 0x3c7   :  { %v7667_v14 = vcombine.low %v4501_v9, %v4505_v12  ;;  %v7668_v15 = vcombine.high %v4501_v9, %v4505_v12 }
 0x3c9   :  { %5981 = vmatpush1.bf16.msra.mxu0 %v7609_v18  ;;  %6067 = vmatpush1.bf16.msra.mxu1 %v7611_v19  ;;  %v4509_v18 = vld [vmem:[#allocation14 + $0x3c8] sm:$0xff]  ;;  %v7674_v19 = vcombine.high %v4508_v16, %v4512_v17 }
 0x3ca   :  { %5982 = vmatprep.subr.bf16.mxu0 %v7618_v23  ;;  %6068 = vmatprep.subr.bf16.mxu1 %v7620_v24  ;;  %v4513_v23 = vld [vmem:[#allocation14 + $0x3e8] sm:$0xff]  ;;  %v7673_v24 = vcombine.low %v4508_v16, %v4512_v17  ;;  %v4528_v16 = vld [vmem:[#allocation14 + $0x460] sm:$0xff] }
 0x3cb   :  { %v7675_v25 = vcombine.low %v4509_v18, %v4513_v23  ;;  %v7676_v26 = vcombine.high %v4509_v18, %v4513_v23  ;;  %v4525_v17 = vld [vmem:[#allocation14 + $0x448] sm:$0xff] }
 0x3cc   :  { %v4529_v18 = vld [vmem:[#allocation14 + $0x468] sm:$0xff] }
 0x3cd   :  { %5983 = vmatpush1.bf16.msra.mxu0 %v7617_v30  ;;  %6069 = vmatpush1.bf16.msra.mxu1 %v7619_v32  ;;  %v9612_v30 = vld [vmem:[#allocation14 + $0x408] sm:$0xff]  ;;  %v7682_v32 = vcombine.high %v9608_v27, %v9610_v28 }
 0x3ce   :  { %5984 = vmatprep.subr.bf16.mxu0 %v7626_v33  ;;  %6070 = vmatprep.subr.bf16.mxu1 %v7628_v62  ;;  %v4521_v33 = vld [vmem:[#allocation14 + $0x428] sm:$0xff]  ;;  %v7681_v62 = vcombine.low %v9608_v27, %v9610_v28  ;;  %v4536_v27 = vld [vmem:[#allocation14 + $0x4a0] sm:$0xff] }
 0x3cf   :  { %v7683_v34 = vcombine.low %v9612_v30, %v4521_v33  ;;  %v7684_v60 = vcombine.high %v9612_v30, %v4521_v33  ;;  %v4533_v28 = vld [vmem:[#allocation14 + $0x488] sm:$0xff]  ;;  %v7691_v33 = vcombine.low %v4525_v17, %v4529_v18 }
 0x3d0   :  { %v4537_v30 = vld [vmem:[#allocation14 + $0x4a8] sm:$0xff] }
 0x3d1   :  { %5985 = vmatpush1.bf16.msra.mxu0 %v7625_v35  ;;  %6071 = vmatpush1.bf16.msra.mxu1 %v7627_v36  ;;  %v3301_v35 = vrot.slane %v3288_v29, %v9511_v20  ;;  %v3297_v36 = vrot.slane %v3288_v29, %v9504_v6 }
 0x3d2   :  { %5986 = vmatprep.subr.bf16.mxu0 %v7634_v38  ;;  %6072 = vmatprep.subr.bf16.mxu1 %v7636_v39  ;;  %v3305_v38 = vrot.slane %v3288_v29, %v9514_v22  ;;  %v7700_v29 = vcombine.high %v4533_v28, %v4537_v30 }
 0x3d5   :  { %5987 = vmatpush1.bf16.msra.mxu0 %v7633_v45  ;;  %6073 = vmatpush1.bf16.msra.mxu1 %v7635_v47 }
 0x3d6   :  { %5988 = vmatprep.subr.bf16.mxu0 %v7642_v42  ;;  %6074 = vmatprep.subr.bf16.mxu1 %v7644_v48 }
 0x3d9   :  { %5989 = vmatpush1.bf16.msra.mxu0 %v7641_v55  ;;  %6075 = vmatpush1.bf16.msra.mxu1 %v7643_v0 }
 0x3da   :  { %5990 = vmatprep.subr.bf16.mxu0 %v7650_v56  ;;  %6076 = vmatprep.subr.bf16.mxu1 %v7652_v57 }
 0x3dd   :  { %5991 = vmatpush1.bf16.msra.mxu0 %v7649_v58  ;;  %6077 = vmatpush1.bf16.msra.mxu1 %v7651_v59 }
 0x3de   :  { %5992 = vmatprep.subr.bf16.mxu0 %v7658_v1  ;;  %6078 = vmatprep.subr.bf16.mxu1 %v7660_v5 }
 0x3e1   :  { %5993 = vmatpush1.bf16.msra.mxu0 %v7657_v21  ;;  %6079 = vmatpush1.bf16.msra.mxu1 %v7659_v63 }
 0x3e2   :  { %5994 = vmatprep.subr.bf16.mxu0 %v7666_v11  ;;  %6080 = vmatprep.subr.bf16.mxu1 %v7668_v15 }
 0x3e5   :  { %5995 = vmatpush1.bf16.msra.mxu0 %v7665_v13  ;;  %6081 = vmatpush1.bf16.msra.mxu1 %v7667_v14  ;;  %v4524_v13 = vld [vmem:[#allocation14 + $0x440] sm:$0xff] }
 0x3e6   :  { %5996 = vmatprep.subr.bf16.mxu0 %v7674_v19  ;;  %6082 = vmatprep.subr.bf16.mxu1 %v7676_v26  ;;  %v7692_v26 = vcombine.high %v4525_v17, %v4529_v18  ;;  %v4580_v17 = vld [vmem:[#allocation14 + $0x600] sm:$0xff] }
 0x3e7   :  { %v4584_v18 = vld [vmem:[#allocation14 + $0x620] sm:$0xff] }
 0x3e9   :  { %5997 = vmatpush1.bf16.msra.mxu0 %v7673_v24  ;;  %6083 = vmatpush1.bf16.msra.mxu1 %v7675_v25  ;;  %v4532_v24 = vld [vmem:[#allocation14 + $0x480] sm:$0xff]  ;;  %v7690_v25 = vcombine.high %v4524_v13, %v4528_v16 }
 0x3ea   :  { %6009 = vmatprep.subr.bf16.mxu0 %v7682_v32  ;;  %6095 = vmatprep.subr.bf16.mxu1 %v7684_v60  ;;  %v7689_v32 = vcombine.low %v4524_v13, %v4528_v16  ;;  %v7698_v60 = vcombine.high %v4532_v24, %v4536_v27 }
 0x47f   :  { %v4230_v39 = vpop.f32.mrb[20].mxu0  ;;  %v4359_v40 = vpop.f32.mrb[20].mxu1 }
 0x480   :  { %v8094_v41 = vadd.f32 %v4230_v39, %v3293_v53  ;;  %v8098_v43 = vadd.f32 %v4359_v40, %v3301_v35  ;;  %v4232_v44 = vpop.f32.mrb[21].mxu0  ;;  %v4361_v45 = vpop.f32.mrb[21].mxu1  ;;  %v7697_v39 = vcombine.low %v4532_v24, %v4536_v27  ;;  %v7699_v40 = vcombine.low %v4533_v28, %v4537_v30  ;;  %v4581_v24 = vld [vmem:[#allocation14 + $0x608] sm:$0xff] }
 0x481   :  { %v8095_v47 = vadd.f32 %v4232_v44, %v3297_v36  ;;  %v8099_v42 = vadd.f32 %v4361_v45, %v3305_v38  ;;  %v4234_v48 = vpop.f32.mrb[22].mxu0  ;;  %v4363_v49 = vpop.f32.mrb[22].mxu1  ;;  %v4549_v44 = vld [vmem:[#allocation14 + $0x508] sm:$0xff]  ;;  %v7746_v28 = vcombine.high %v4580_v17, %v4584_v18 }
 0x482   :  { %v4368_v50 = vmul.f32 0.01, %v8094_v41  ;;  %v4370_v52 = vmul.f32 0.01, %v8098_v43  ;;  %v8096_v54 = vadd.f32 %v4234_v48, %v3293_v53  ;;  %v8100_v55 = vadd.f32 %v4363_v49, %v3301_v35  ;;  %v4236_v0 = vpop.f32.mrb[23].mxu0  ;;  %v4365_v56 = vpop.f32.mrb[23].mxu1 }
 0x483   :  { %v4369_v57 = vmul.f32 0.01, %v8095_v47  ;;  %v4371_v58 = vmul.f32 0.01, %v8099_v42  ;;  %v8097_v59 = vadd.f32 %v4236_v0, %v3297_v36  ;;  %v8101_v46 = vadd.f32 %v4365_v56, %v3305_v38  ;;  %v4540_v53 = vld [vmem:[#allocation14 + $0x4c0] sm:$0xff]  ;;  %v4541_v36 = vld [vmem:[#allocation14 + $0x4c8] sm:$0xff] }
 0x484   :  { %v4372_v61 = vmul.f32 0.01, %v8096_v54  ;;  %v4374_v31 = vmul.f32 0.01, %v8100_v55  ;;  %v4376_v21 = vmax.f32 %v8094_v41, %v4368_v50  ;;  %v4378_v63 = vmax.f32 %v8098_v43, %v4370_v52  ;;  %v4544_v35 = vld [vmem:[#allocation14 + $0x4e0] sm:$0xff]  ;;  %v4545_v38 = vld [vmem:[#allocation14 + $0x4e8] sm:$0xff] }
 0x485   :  { %v4373_v1 = vmul.f32 0.01, %v8097_v59  ;;  %v4375_v51 = vmul.f32 0.01, %v8101_v46  ;;  %v4377_v8 = vmax.f32 %v8095_v47, %v4369_v57  ;;  %v4379_v9 = vmax.f32 %v8099_v42, %v4371_v58  ;;  %v4548_v41 = vld [vmem:[#allocation14 + $0x500] sm:$0xff]  ;;  %v4553_v45 = vld [vmem:[#allocation14 + $0x528] sm:$0xff] }
 0x486   :  { %v4380_v5 = vmax.f32 %v8096_v54, %v4372_v61  ;;  %v4382_v2 = vmax.f32 %v8100_v55, %v4374_v31  ;;  %v4552_v43 = vld [vmem:[#allocation14 + $0x520] sm:$0xff]  ;;  %v7705_v47 = vcombine.low %v4540_v53, %v4544_v35  ;;  %v7707_v42 = vcombine.low %v4541_v36, %v4545_v38  ;;  %v4557_v54 = vld [vmem:[#allocation14 + $0x548] sm:$0xff] }
 0x487   :  { %v4381_v11 = vmax.f32 %v8097_v59, %v4373_v1  ;;  %v4383_v12 = vmax.f32 %v8101_v46, %v4375_v51  ;;  %v7714_v48 = vcombine.high %v4548_v41, %v4552_v43  ;;  %v7716_v49 = vcombine.high %v4549_v44, %v4553_v45  ;;  %v4556_v50 = vld [vmem:[#allocation14 + $0x540] sm:$0xff]  ;;  %v4561_v55 = vld [vmem:[#allocation14 + $0x568] sm:$0xff] }
 0x488   :  { %v9624_v14 = vpack.c.bf16 %v4380_v5, %v4376_v21  ;;  %v9626_v15 = vpack.c.bf16 %v4382_v2, %v4378_v63  ;;  %v4560_v52 = vld [vmem:[#allocation14 + $0x560] sm:$0xff]  ;;  %v7713_v0 = vcombine.low %v4548_v41, %v4552_v43  ;;  %v7715_v56 = vcombine.low %v4549_v44, %v4553_v45  ;;  %v4565_v61 = vld [vmem:[#allocation14 + $0x588] sm:$0xff] }
 0x489   :  { %v9628_v19 = vpack.c.bf16 %v4381_v11, %v4377_v8  ;;  %v9630_v23 = vpack.c.bf16 %v4383_v12, %v4379_v9  ;;  %v7722_v57 = vcombine.high %v4556_v50, %v4560_v52  ;;  %v7724_v58 = vcombine.high %v4557_v54, %v4561_v55  ;;  %v4564_v59 = vld [vmem:[#allocation14 + $0x580] sm:$0xff]  ;;  %v4569_v31 = vld [vmem:[#allocation14 + $0x5a8] sm:$0xff] }
 0x48a   :  { %v4568_v46 = vld [vmem:[#allocation14 + $0x5a0] sm:$0xff]  ;;  %v7721_v1 = vcombine.low %v4556_v50, %v4560_v52  ;;  %v7723_v51 = vcombine.low %v4557_v54, %v4561_v55  ;;  %v7732_v63 = vcombine.high %v4565_v61, %v4569_v31  ;;  %v4573_v8 = vld [vmem:[#allocation14 + $0x5c8] sm:$0xff]  ;;  %v7731_v12 = vcombine.low %v4565_v61, %v4569_v31 }
 0x48b   :  { %5998 = vmatprep.mubr.bf16.mxu0 %v9628_v19  ;;  %6084 = vmatprep.mubr.bf16.mxu1 %v9628_v19  ;;  %v7730_v21 = vcombine.high %v4564_v59, %v4568_v46  ;;  %v4572_v5 = vld [vmem:[#allocation14 + $0x5c0] sm:$0xff]  ;;  %v4577_v9 = vld [vmem:[#allocation14 + $0x5e8] sm:$0xff]  ;;  %v7729_v11 = vcombine.low %v4564_v59, %v4568_v46 }
 0x48c   :  { %5999 = vmatmul.mubr.bf16.vlgmr.msra.gmra.mrb[24].mxu0 %v9624_v14  ;;  %6085 = vmatmul.mubr.bf16.vlgmr.msra.gmra.mrb[24].mxu1 %v9624_v14  ;;  %v4576_v2 = vld [vmem:[#allocation14 + $0x5e0] sm:$0xff]  ;;  %v7740_v16 = vcombine.high %v4573_v8, %v4577_v9  ;;  %v7739_v27 = vcombine.low %v4573_v8, %v4577_v9 }
 0x48d   :  { %6010 = vmatpush1.bf16.msra.mxu0 %v7681_v62  ;;  %6096 = vmatpush1.bf16.msra.mxu1 %v7683_v34  ;;  %v7706_v62 = vcombine.high %v4540_v53, %v4544_v35  ;;  %v7708_v34 = vcombine.high %v4541_v36, %v4545_v38  ;;  %v7738_v13 = vcombine.high %v4572_v5, %v4576_v2 }
 0x48e   :  { %6041 = vmatprep.mubr.bf16.mxu0 %v9630_v23  ;;  %6127 = vmatprep.mubr.bf16.mxu1 %v9630_v23  ;;  %v7745_v53 = vcombine.low %v4580_v17, %v4584_v18 }
 0x48f   :  { %6011 = vmatprep.subr.bf16.mxu0 %v7690_v25  ;;  %6097 = vmatprep.subr.bf16.mxu1 %v7692_v26  ;;  %v4585_v25 = vld [vmem:[#allocation14 + $0x628] sm:$0xff]  ;;  %v7737_v26 = vcombine.low %v4572_v5, %v4576_v2 }
 0x490   :  { %v7748_v30 = vcombine.high %v4581_v24, %v4585_v25  ;;  %v7747_v35 = vcombine.low %v4581_v24, %v4585_v25 }
 0x491   :  { %6012 = vmatpush1.bf16.msra.mxu0 %v7689_v32  ;;  %6098 = vmatpush1.bf16.msra.mxu1 %v7691_v33  ;;  %v4588_v32 = vld [vmem:[#allocation14 + $0x640] sm:$0xff] }
 0x492   :  { %6013 = vmatprep.subr.bf16.mxu0 %v7698_v60  ;;  %6099 = vmatprep.subr.bf16.mxu1 %v7700_v29  ;;  %v4592_v33 = vld [vmem:[#allocation14 + $0x660] sm:$0xff]  ;;  %v4589_v60 = vld [vmem:[#allocation14 + $0x648] sm:$0xff] }
 0x493   :  { %v4593_v29 = vld [vmem:[#allocation14 + $0x668] sm:$0xff]  ;;  %v7754_v36 = vcombine.high %v4588_v32, %v4592_v33  ;;  %v7753_v41 = vcombine.low %v4588_v32, %v4592_v33 }
 0x494   :  { %v7756_v38 = vcombine.high %v4589_v60, %v4593_v29  ;;  %v7755_v43 = vcombine.low %v4589_v60, %v4593_v29 }
 0x495   :  { %6014 = vmatpush1.bf16.msra.mxu0 %v7697_v39  ;;  %6100 = vmatpush1.bf16.msra.mxu1 %v7699_v40  ;;  %v4596_v39 = vld [vmem:[#allocation14 + $0x680] sm:$0xff] }
 0x496   :  { %6015 = vmatprep.subr.bf16.mxu0 %v7706_v62  ;;  %6101 = vmatprep.subr.bf16.mxu1 %v7708_v34  ;;  %v4600_v40 = vld [vmem:[#allocation14 + $0x6a0] sm:$0xff]  ;;  %v4597_v62 = vld [vmem:[#allocation14 + $0x688] sm:$0xff] }
 0x497   :  { %v4601_v34 = vld [vmem:[#allocation14 + $0x6a8] sm:$0xff]  ;;  %v7762_v44 = vcombine.high %v4596_v39, %v4600_v40  ;;  %v7761_v50 = vcombine.low %v4596_v39, %v4600_v40 }
 0x498   :  { %v7764_v45 = vcombine.high %v4597_v62, %v4601_v34  ;;  %v7763_v52 = vcombine.low %v4597_v62, %v4601_v34 }
 0x499   :  { %6016 = vmatpush1.bf16.msra.mxu0 %v7705_v47  ;;  %6102 = vmatpush1.bf16.msra.mxu1 %v7707_v42  ;;  %v4604_v47 = vld [vmem:[#allocation14 + $0x6c0] sm:$0xff] }
 0x49a   :  { %6017 = vmatprep.subr.bf16.mxu0 %v7714_v48  ;;  %6103 = vmatprep.subr.bf16.mxu1 %v7716_v49  ;;  %v4608_v42 = vld [vmem:[#allocation14 + $0x6e0] sm:$0xff]  ;;  %v4605_v48 = vld [vmem:[#allocation14 + $0x6c8] sm:$0xff] }
 0x49b   :  { %v4609_v49 = vld [vmem:[#allocation14 + $0x6e8] sm:$0xff]  ;;  %v7770_v54 = vcombine.high %v4604_v47, %v4608_v42  ;;  %v7769_v59 = vcombine.low %v4604_v47, %v4608_v42 }
 0x49c   :  { %v7772_v55 = vcombine.high %v4605_v48, %v4609_v49  ;;  %v7771_v46 = vcombine.low %v4605_v48, %v4609_v49 }
 0x49d   :  { %6018 = vmatpush1.bf16.msra.mxu0 %v7713_v0  ;;  %6104 = vmatpush1.bf16.msra.mxu1 %v7715_v56  ;;  %v4612_v0 = vld [vmem:[#allocation14 + $0x700] sm:$0xff] }
 0x49e   :  { %6019 = vmatprep.subr.bf16.mxu0 %v7722_v57  ;;  %6105 = vmatprep.subr.bf16.mxu1 %v7724_v58  ;;  %v4616_v56 = vld [vmem:[#allocation14 + $0x720] sm:$0xff]  ;;  %v4613_v57 = vld [vmem:[#allocation14 + $0x708] sm:$0xff] }
 0x49f   :  { %v4617_v58 = vld [vmem:[#allocation14 + $0x728] sm:$0xff]  ;;  %v7778_v61 = vcombine.high %v4612_v0, %v4616_v56  ;;  %v7777_v5 = vcombine.low %v4612_v0, %v4616_v56 }
 0x4a0   :  { %v7780_v31 = vcombine.high %v4613_v57, %v4617_v58  ;;  %v7779_v2 = vcombine.low %v4613_v57, %v4617_v58 }
 0x4a1   :  { %6020 = vmatpush1.bf16.msra.mxu0 %v7721_v1  ;;  %6106 = vmatpush1.bf16.msra.mxu1 %v7723_v51  ;;  %v4620_v1 = vld [vmem:[#allocation14 + $0x740] sm:$0xff] }
 0x4a2   :  { %6021 = vmatprep.subr.bf16.mxu0 %v7730_v21  ;;  %6107 = vmatprep.subr.bf16.mxu1 %v7732_v63  ;;  %v4624_v51 = vld [vmem:[#allocation14 + $0x760] sm:$0xff]  ;;  %v4621_v21 = vld [vmem:[#allocation14 + $0x748] sm:$0xff] }
 0x4a3   :  { %v4625_v63 = vld [vmem:[#allocation14 + $0x768] sm:$0xff]  ;;  %v7786_v8 = vcombine.high %v4620_v1, %v4624_v51  ;;  %v7785_v17 = vcombine.low %v4620_v1, %v4624_v51 }
 0x4a4   :  { %v7788_v9 = vcombine.high %v4621_v21, %v4625_v63  ;;  %v7787_v18 = vcombine.low %v4621_v21, %v4625_v63 }
 0x4a5   :  { %6022 = vmatpush1.bf16.msra.mxu0 %v7729_v11  ;;  %6108 = vmatpush1.bf16.msra.mxu1 %v7731_v12  ;;  %v4628_v11 = vld [vmem:[#allocation14 + $0x780] sm:$0xff] }
 0x4a6   :  { %6023 = vmatprep.subr.bf16.mxu0 %v7738_v13  ;;  %6109 = vmatprep.subr.bf16.mxu1 %v7740_v16  ;;  %v4632_v12 = vld [vmem:[#allocation14 + $0x7a0] sm:$0xff]  ;;  %v4629_v13 = vld [vmem:[#allocation14 + $0x788] sm:$0xff] }
 0x4a7   :  { %v4633_v16 = vld [vmem:[#allocation14 + $0x7a8] sm:$0xff]  ;;  %v7794_v24 = vcombine.high %v4628_v11, %v4632_v12  ;;  %v7793_v32 = vcombine.low %v4628_v11, %v4632_v12 }
 0x4a8   :  { %v7796_v25 = vcombine.high %v4629_v13, %v4633_v16  ;;  %v7795_v33 = vcombine.low %v4629_v13, %v4633_v16  ;;  %v4430_v16 = vld [vmem:[#allocation14 + $0x150] sm:$0xff] }
 0x4a9   :  { %6024 = vmatpush1.bf16.msra.mxu0 %v7737_v26  ;;  %6110 = vmatpush1.bf16.msra.mxu1 %v7739_v27  ;;  %v4636_v26 = vld [vmem:[#allocation14 + $0x7c0] sm:$0xff] }
 0x4aa   :  { %6025 = vmatprep.subr.bf16.mxu0 %v7746_v28  ;;  %6111 = vmatprep.subr.bf16.mxu1 %v7748_v30  ;;  %v4640_v27 = vld [vmem:[#allocation14 + $0x7e0] sm:$0xff]  ;;  %v4637_v28 = vld [vmem:[#allocation14 + $0x7c8] sm:$0xff] }
 0x4ab   :  { %v4641_v30 = vld [vmem:[#allocation14 + $0x7e8] sm:$0xff]  ;;  %v7802_v60 = vcombine.high %v4636_v26, %v4640_v27  ;;  %v7801_v39 = vcombine.low %v4636_v26, %v4640_v27 }
 0x4ac   :  { %v7804_v29 = vcombine.high %v4637_v28, %v4641_v30  ;;  %v7803_v40 = vcombine.low %v4637_v28, %v4641_v30  ;;  %v4438_v30 = vld [vmem:[#allocation14 + $0x190] sm:$0xff] }
 0x4ad   :  { %6026 = vmatpush1.bf16.msra.mxu0 %v7745_v53  ;;  %6112 = vmatpush1.bf16.msra.mxu1 %v7747_v35  ;;  %v4390_v53 = vld [vmem:[#allocation14 + $0x10] sm:$0xff] }
 0x4ae   :  { %6027 = vmatprep.subr.bf16.mxu0 %v7754_v36  ;;  %6113 = vmatprep.subr.bf16.mxu1 %v7756_v38  ;;  %v4394_v35 = vld [vmem:[#allocation14 + $0x30] sm:$0xff]  ;;  %v4391_v36 = vld [vmem:[#allocation14 + $0x18] sm:$0xff] }
 0x4af   :  { %v4395_v38 = vld [vmem:[#allocation14 + $0x38] sm:$0xff]  ;;  %v7558_v62 = vcombine.high %v4390_v53, %v4394_v35  ;;  %v7557_v47 = vcombine.low %v4390_v53, %v4394_v35 }
 0x4b0   :  { %v7560_v34 = vcombine.high %v4391_v36, %v4395_v38  ;;  %v7559_v42 = vcombine.low %v4391_v36, %v4395_v38  ;;  %v4446_v38 = vld [vmem:[#allocation14 + $0x1d0] sm:$0xff] }
 0x4b1   :  { %6028 = vmatpush1.bf16.msra.mxu0 %v7753_v41  ;;  %6114 = vmatpush1.bf16.msra.mxu1 %v7755_v43  ;;  %v4398_v41 = vld [vmem:[#allocation14 + $0x50] sm:$0xff] }
 0x4b2   :  { %6029 = vmatprep.subr.bf16.mxu0 %v7762_v44  ;;  %6115 = vmatprep.subr.bf16.mxu1 %v7764_v45  ;;  %v4402_v43 = vld [vmem:[#allocation14 + $0x70] sm:$0xff]  ;;  %v4399_v44 = vld [vmem:[#allocation14 + $0x58] sm:$0xff] }
 0x4b3   :  { %v4403_v45 = vld [vmem:[#allocation14 + $0x78] sm:$0xff]  ;;  %v7566_v48 = vcombine.high %v4398_v41, %v4402_v43  ;;  %v7565_v0 = vcombine.low %v4398_v41, %v4402_v43 }
 0x4b4   :  { %v7568_v49 = vcombine.high %v4399_v44, %v4403_v45  ;;  %v7567_v56 = vcombine.low %v4399_v44, %v4403_v45  ;;  %v4454_v45 = vld [vmem:[#allocation14 + $0x210] sm:$0xff] }
 0x4b5   :  { %6030 = vmatpush1.bf16.msra.mxu0 %v7761_v50  ;;  %6116 = vmatpush1.bf16.msra.mxu1 %v7763_v52  ;;  %v4406_v50 = vld [vmem:[#allocation14 + $0x90] sm:$0xff] }
 0x4b6   :  { %6031 = vmatprep.subr.bf16.mxu0 %v7770_v54  ;;  %6117 = vmatprep.subr.bf16.mxu1 %v7772_v55  ;;  %v4410_v52 = vld [vmem:[#allocation14 + $0xb0] sm:$0xff]  ;;  %v4407_v54 = vld [vmem:[#allocation14 + $0x98] sm:$0xff] }
 0x4b7   :  { %v4411_v55 = vld [vmem:[#allocation14 + $0xb8] sm:$0xff]  ;;  %v7574_v57 = vcombine.high %v4406_v50, %v4410_v52  ;;  %v7573_v1 = vcombine.low %v4406_v50, %v4410_v52 }
 0x4b8   :  { %v7576_v58 = vcombine.high %v4407_v54, %v4411_v55  ;;  %v7575_v51 = vcombine.low %v4407_v54, %v4411_v55  ;;  %v4462_v55 = vld [vmem:[#allocation14 + $0x250] sm:$0xff] }
 0x4b9   :  { %6032 = vmatpush1.bf16.msra.mxu0 %v7769_v59  ;;  %6118 = vmatpush1.bf16.msra.mxu1 %v7771_v46  ;;  %v4414_v59 = vld [vmem:[#allocation14 + $0xd0] sm:$0xff] }
 0x4ba   :  { %6033 = vmatprep.subr.bf16.mxu0 %v7778_v61  ;;  %6119 = vmatprep.subr.bf16.mxu1 %v7780_v31  ;;  %v4418_v46 = vld [vmem:[#allocation14 + $0xf0] sm:$0xff]  ;;  %v4415_v61 = vld [vmem:[#allocation14 + $0xd8] sm:$0xff] }
 0x4bb   :  { %v4419_v31 = vld [vmem:[#allocation14 + $0xf8] sm:$0xff]  ;;  %v7582_v21 = vcombine.high %v4414_v59, %v4418_v46 }
 0x4bc   :  { %v7584_v63 = vcombine.high %v4415_v61, %v4419_v31  ;;  %v7583_v11 = vcombine.low %v4415_v61, %v4419_v31  ;;  %v4470_v31 = vld [vmem:[#allocation14 + $0x290] sm:$0xff] }
 0x4bd   :  { %6034 = vmatpush1.bf16.msra.mxu0 %v7777_v5  ;;  %6120 = vmatpush1.bf16.msra.mxu1 %v7779_v2  ;;  %v4422_v5 = vld [vmem:[#allocation14 + $0x110] sm:$0xff] }
 0x4be   :  { %6035 = vmatprep.subr.bf16.mxu0 %v7786_v8  ;;  %6121 = vmatprep.subr.bf16.mxu1 %v7788_v9  ;;  %v4426_v2 = vld [vmem:[#allocation14 + $0x130] sm:$0xff]  ;;  %v4427_v8 = vld [vmem:[#allocation14 + $0x138] sm:$0xff]  ;;  %v7581_v9 = vcombine.low %v4414_v59, %v4418_v46 }
 0x4bf   :  { %v7590_v12 = vcombine.high %v4422_v5, %v4426_v2 }
 0x4c1   :  { %6036 = vmatpush1.bf16.msra.mxu0 %v7785_v17  ;;  %6122 = vmatpush1.bf16.msra.mxu1 %v7787_v18  ;;  %v4434_v17 = vld [vmem:[#allocation14 + $0x170] sm:$0xff]  ;;  %v4431_v18 = vld [vmem:[#allocation14 + $0x158] sm:$0xff] }
 0x4c2   :  { %6037 = vmatprep.subr.bf16.mxu0 %v7794_v24  ;;  %6123 = vmatprep.subr.bf16.mxu1 %v7796_v25  ;;  %v4435_v24 = vld [vmem:[#allocation14 + $0x178] sm:$0xff]  ;;  %v7589_v25 = vcombine.low %v4422_v5, %v4426_v2  ;;  %v7598_v27 = vcombine.high %v4430_v16, %v4434_v17 }
 0x4c3   :  { %v7600_v28 = vcombine.high %v4431_v18, %v4435_v24  ;;  %v7599_v53 = vcombine.low %v4431_v18, %v4435_v24  ;;  %v4486_v24 = vld [vmem:[#allocation14 + $0x310] sm:$0xff] }
 0x4c5   :  { %6038 = vmatpush1.bf16.msra.mxu0 %v7793_v32  ;;  %6124 = vmatpush1.bf16.msra.mxu1 %v7795_v33  ;;  %v4442_v32 = vld [vmem:[#allocation14 + $0x1b0] sm:$0xff]  ;;  %v4439_v33 = vld [vmem:[#allocation14 + $0x198] sm:$0xff] }
 0x4c6   :  { %6039 = vmatprep.subr.bf16.mxu0 %v7802_v60  ;;  %6125 = vmatprep.subr.bf16.mxu1 %v7804_v29  ;;  %v4443_v60 = vld [vmem:[#allocation14 + $0x1b8] sm:$0xff]  ;;  %v7597_v29 = vcombine.low %v4430_v16, %v4434_v17  ;;  %v7606_v35 = vcombine.high %v4438_v30, %v4442_v32 }
 0x4c7   :  { %v7608_v36 = vcombine.high %v4439_v33, %v4443_v60  ;;  %v7607_v41 = vcombine.low %v4439_v33, %v4443_v60  ;;  %v4494_v60 = vld [vmem:[#allocation14 + $0x350] sm:$0xff] }
 0x4c9   :  { %6040 = vmatpush1.bf16.msra.mxu0 %v7801_v39  ;;  %6126 = vmatpush1.bf16.msra.mxu1 %v7803_v40  ;;  %v4450_v39 = vld [vmem:[#allocation14 + $0x1f0] sm:$0xff]  ;;  %v4447_v40 = vld [vmem:[#allocation14 + $0x1d8] sm:$0xff] }
 0x4ca   :  { %6138 = vmatprep.subr.bf16.mxu0 %v7558_v62  ;;  %6224 = vmatprep.subr.bf16.mxu1 %v7560_v34  ;;  %v4451_v62 = vld [vmem:[#allocation14 + $0x1f8] sm:$0xff]  ;;  %v7605_v34 = vcombine.low %v4438_v30, %v4442_v32  ;;  %v7614_v43 = vcombine.high %v4446_v38, %v4450_v39 }
 0x4cb   :  { %v7616_v44 = vcombine.high %v4447_v40, %v4451_v62  ;;  %v7615_v50 = vcombine.low %v4447_v40, %v4451_v62  ;;  %v4502_v62 = vld [vmem:[#allocation14 + $0x390] sm:$0xff] }
 0x4cc   :  { %6042 = vmatmul.mubr.bf16.vlgmr.msra.gmra.mrb[24].mxu0 %v9626_v15  ;;  %6128 = vmatmul.mubr.bf16.vlgmr.msra.gmra.mrb[24].mxu1 %v9626_v15 }
 0x4cd   :  { %6139 = vmatpush1.bf16.msra.mxu0 %v7557_v47  ;;  %6170 = vmatprep.mubr.bf16.mxu0 %v9628_v19  ;;  %v4458_v47 = vld [vmem:[#allocation14 + $0x230] sm:$0xff] }
 0x4ce   :  { %6225 = vmatpush1.bf16.msra.mxu1 %v7559_v42  ;;  %6256 = vmatprep.mubr.bf16.mxu1 %v9628_v19  ;;  %v4423_v19 = vld [vmem:[#allocation14 + $0x118] sm:$0xff]  ;;  %v7622_v52 = vcombine.high %v4454_v45, %v4458_v47 }
 0x4cf   :  { %6140 = vmatprep.subr.bf16.mxu0 %v7566_v48  ;;  %6226 = vmatprep.subr.bf16.mxu1 %v7568_v49  ;;  %v7592_v13 = vcombine.high %v4423_v19, %v4427_v8  ;;  %v7591_v26 = vcombine.low %v4423_v19, %v4427_v8  ;;  %v4455_v42 = vld [vmem:[#allocation14 + $0x218] sm:$0xff]  ;;  %v7613_v49 = vcombine.low %v4446_v38, %v4450_v39  ;;  %v4478_v8 = vld [vmem:[#allocation14 + $0x2d0] sm:$0xff] }
 0x4d0   :  { %v4459_v48 = vld [vmem:[#allocation14 + $0x238] sm:$0xff] }
 0x4d1   :  { %6141 = vmatpush1.bf16.msra.mxu0 %v7565_v0  ;;  %v7624_v54 = vcombine.high %v4455_v42, %v4459_v48  ;;  %v4466_v0 = vld [vmem:[#allocation14 + $0x270] sm:$0xff]  ;;  %v7623_v59 = vcombine.low %v4455_v42, %v4459_v48 }
 0x4d2   :  { %6227 = vmatpush1.bf16.msra.mxu1 %v7567_v56  ;;  %6142 = vmatprep.subr.bf16.mxu0 %v7574_v57  ;;  %v4463_v56 = vld [vmem:[#allocation14 + $0x258] sm:$0xff]  ;;  %v7630_v46 = vcombine.high %v4462_v55, %v4466_v0  ;;  %v4510_v48 = vld [vmem:[#allocation14 + $0x3d0] sm:$0xff] }
 0x4d3   :  { %6228 = vmatprep.subr.bf16.mxu1 %v7576_v58  ;;  %v4467_v57 = vld [vmem:[#allocation14 + $0x278] sm:$0xff]  ;;  %v7621_v58 = vcombine.low %v4454_v45, %v4458_v47 }
 0x4d4   :  { %v7632_v61 = vcombine.high %v4463_v56, %v4467_v57  ;;  %v7631_v5 = vcombine.low %v4463_v56, %v4467_v57  ;;  %v4518_v57 = vld [vmem:[#allocation14 + $0x410] sm:$0xff] }
 0x4d5   :  { %6143 = vmatpush1.bf16.msra.mxu0 %v7573_v1  ;;  %v4474_v1 = vld [vmem:[#allocation14 + $0x2b0] sm:$0xff] }
 0x4d6   :  { %6229 = vmatpush1.bf16.msra.mxu1 %v7575_v51  ;;  %6144 = vmatprep.subr.bf16.mxu0 %v7582_v21  ;;  %v4471_v51 = vld [vmem:[#allocation14 + $0x298] sm:$0xff]  ;;  %v7638_v2 = vcombine.high %v4470_v31, %v4474_v1 }
 0x4d7   :  { %6230 = vmatprep.subr.bf16.mxu1 %v7584_v63  ;;  %v4475_v21 = vld [vmem:[#allocation14 + $0x2b8] sm:$0xff]  ;;  %v7629_v63 = vcombine.low %v4462_v55, %v4466_v0 }
 0x4d8   :  { %v7640_v19 = vcombine.high %v4471_v51, %v4475_v21  ;;  %v7639_v16 = vcombine.low %v4471_v51, %v4475_v21  ;;  %v4526_v21 = vld [vmem:[#allocation14 + $0x450] sm:$0xff] }
 0x4d9   :  { %6145 = vmatpush1.bf16.msra.mxu0 %v7581_v9  ;;  %v4482_v9 = vld [vmem:[#allocation14 + $0x2f0] sm:$0xff] }
 0x4da   :  { %6231 = vmatpush1.bf16.msra.mxu1 %v7583_v11  ;;  %6146 = vmatprep.subr.bf16.mxu0 %v7590_v12  ;;  %v4479_v11 = vld [vmem:[#allocation14 + $0x2d8] sm:$0xff]  ;;  %v7646_v17 = vcombine.high %v4478_v8, %v4482_v9 }
 0x4db   :  { %6232 = vmatprep.subr.bf16.mxu1 %v7592_v13  ;;  %v4483_v12 = vld [vmem:[#allocation14 + $0x2f8] sm:$0xff]  ;;  %v7637_v13 = vcombine.low %v4470_v31, %v4474_v1 }
 0x4dc   :  { %v7648_v18 = vcombine.high %v4479_v11, %v4483_v12  ;;  %v7647_v30 = vcombine.low %v4479_v11, %v4483_v12  ;;  %v4534_v11 = vld [vmem:[#allocation14 + $0x490] sm:$0xff] }
 0x4dd   :  { %6147 = vmatpush1.bf16.msra.mxu0 %v7589_v25  ;;  %v4490_v25 = vld [vmem:[#allocation14 + $0x330] sm:$0xff] }
 0x4de   :  { %6233 = vmatpush1.bf16.msra.mxu1 %v7591_v26  ;;  %6148 = vmatprep.subr.bf16.mxu0 %v7598_v27  ;;  %v4487_v26 = vld [vmem:[#allocation14 + $0x318] sm:$0xff]  ;;  %v7654_v32 = vcombine.high %v4486_v24, %v4490_v25  ;;  %v4538_v12 = vld [vmem:[#allocation14 + $0x4b0] sm:$0xff] }
 0x4df   :  { %6234 = vmatprep.subr.bf16.mxu1 %v7600_v28  ;;  %v4491_v27 = vld [vmem:[#allocation14 + $0x338] sm:$0xff]  ;;  %v7645_v28 = vcombine.low %v4478_v8, %v4482_v9 }
 0x4e0   :  { %v7656_v33 = vcombine.high %v4487_v26, %v4491_v27  ;;  %v7655_v38 = vcombine.low %v4487_v26, %v4491_v27  ;;  %v4542_v27 = vld [vmem:[#allocation14 + $0x4d0] sm:$0xff] }
 0x4e1   :  { %6149 = vmatpush1.bf16.msra.mxu0 %v7597_v29  ;;  %v4498_v29 = vld [vmem:[#allocation14 + $0x370] sm:$0xff] }
 0x4e2   :  { %6235 = vmatpush1.bf16.msra.mxu1 %v7599_v53  ;;  %6150 = vmatprep.subr.bf16.mxu0 %v7606_v35  ;;  %v4495_v53 = vld [vmem:[#allocation14 + $0x358] sm:$0xff]  ;;  %v7662_v39 = vcombine.high %v4494_v60, %v4498_v29 }
 0x4e3   :  { %6236 = vmatprep.subr.bf16.mxu1 %v7608_v36  ;;  %v4499_v35 = vld [vmem:[#allocation14 + $0x378] sm:$0xff]  ;;  %v7653_v36 = vcombine.low %v4486_v24, %v4490_v25  ;;  %v7702_v25 = vcombine.high %v4534_v11, %v4538_v12 }
 0x4e4   :  { %v7664_v40 = vcombine.high %v4495_v53, %v4499_v35  ;;  %v7663_v45 = vcombine.low %v4495_v53, %v4499_v35  ;;  %v4550_v53 = vld [vmem:[#allocation14 + $0x510] sm:$0xff] }
 0x4e5   :  { %6151 = vmatpush1.bf16.msra.mxu0 %v7605_v34  ;;  %v4506_v34 = vld [vmem:[#allocation14 + $0x3b0] sm:$0xff] }
 0x4e6   :  { %6237 = vmatpush1.bf16.msra.mxu1 %v7607_v41  ;;  %6152 = vmatprep.subr.bf16.mxu0 %v7614_v43  ;;  %v4503_v41 = vld [vmem:[#allocation14 + $0x398] sm:$0xff]  ;;  %v7670_v47 = vcombine.high %v4502_v62, %v4506_v34  ;;  %v4554_v35 = vld [vmem:[#allocation14 + $0x530] sm:$0xff] }
 0x4e7   :  { %6238 = vmatprep.subr.bf16.mxu1 %v7616_v44  ;;  %v4507_v43 = vld [vmem:[#allocation14 + $0x3b8] sm:$0xff]  ;;  %v7661_v44 = vcombine.low %v4494_v60, %v4498_v29 }
 0x4e8   :  { %v7672_v42 = vcombine.high %v4503_v41, %v4507_v43  ;;  %v7671_v55 = vcombine.low %v4503_v41, %v4507_v43  ;;  %v4562_v41 = vld [vmem:[#allocation14 + $0x570] sm:$0xff]  ;;  %v4559_v43 = vld [vmem:[#allocation14 + $0x558] sm:$0xff] }
 0x4e9   :  { %6153 = vmatpush1.bf16.msra.mxu0 %v7613_v49  ;;  %v4514_v49 = vld [vmem:[#allocation14 + $0x3f0] sm:$0xff] }
 0x4ea   :  { %6239 = vmatpush1.bf16.msra.mxu1 %v7615_v50  ;;  %6154 = vmatprep.subr.bf16.mxu0 %v7622_v52  ;;  %v4511_v50 = vld [vmem:[#allocation14 + $0x3d8] sm:$0xff]  ;;  %v7678_v0 = vcombine.high %v4510_v48, %v4514_v49 }
 0x4eb   :  { %6240 = vmatprep.subr.bf16.mxu1 %v7624_v54  ;;  %v4515_v52 = vld [vmem:[#allocation14 + $0x3f8] sm:$0xff]  ;;  %v7669_v54 = vcombine.low %v4502_v62, %v4506_v34  ;;  %v4558_v34 = vld [vmem:[#allocation14 + $0x550] sm:$0xff] }
 0x4ec   :  { %v7680_v56 = vcombine.high %v4511_v50, %v4515_v52  ;;  %v7679_v31 = vcombine.low %v4511_v50, %v4515_v52  ;;  %v4570_v50 = vld [vmem:[#allocation14 + $0x5b0] sm:$0xff]  ;;  %v4567_v52 = vld [vmem:[#allocation14 + $0x598] sm:$0xff] }
 0x4ed   :  { %6155 = vmatpush1.bf16.msra.mxu0 %v7621_v58  ;;  %v4522_v58 = vld [vmem:[#allocation14 + $0x430] sm:$0xff] }
 0x4ee   :  { %6241 = vmatpush1.bf16.msra.mxu1 %v7623_v59  ;;  %6156 = vmatprep.subr.bf16.mxu0 %v7630_v46  ;;  %v4519_v59 = vld [vmem:[#allocation14 + $0x418] sm:$0xff]  ;;  %v7686_v1 = vcombine.high %v4518_v57, %v4522_v58 }
 0x4ef   :  { %6242 = vmatprep.subr.bf16.mxu1 %v7632_v61  ;;  %v4523_v46 = vld [vmem:[#allocation14 + $0x438] sm:$0xff]  ;;  %v7677_v61 = vcombine.low %v4510_v48, %v4514_v49  ;;  %v4566_v49 = vld [vmem:[#allocation14 + $0x590] sm:$0xff] }
 0x4f0   :  { %v7688_v51 = vcombine.high %v4519_v59, %v4523_v46  ;;  %v7687_v8 = vcombine.low %v4519_v59, %v4523_v46  ;;  %v4578_v59 = vld [vmem:[#allocation14 + $0x5f0] sm:$0xff]  ;;  %v4575_v46 = vld [vmem:[#allocation14 + $0x5d8] sm:$0xff] }
 0x4f1   :  { %6157 = vmatpush1.bf16.msra.mxu0 %v7629_v63  ;;  %v4530_v63 = vld [vmem:[#allocation14 + $0x470] sm:$0xff] }
 0x4f2   :  { %6243 = vmatpush1.bf16.msra.mxu1 %v7631_v5  ;;  %6158 = vmatprep.subr.bf16.mxu0 %v7638_v2  ;;  %v7685_v5 = vcombine.low %v4518_v57, %v4522_v58  ;;  %v4527_v2 = vld [vmem:[#allocation14 + $0x458] sm:$0xff]  ;;  %v7694_v9 = vcombine.high %v4526_v21, %v4530_v63  ;;  %v4574_v58 = vld [vmem:[#allocation14 + $0x5d0] sm:$0xff] }
 0x4f3   :  { %6244 = vmatprep.subr.bf16.mxu1 %v7640_v19  ;;  %v4531_v19 = vld [vmem:[#allocation14 + $0x478] sm:$0xff] }
 0x4f4   :  { %v7695_v24 = vcombine.low %v4527_v2, %v4531_v19 }
 0x4f5   :  { %6159 = vmatpush1.bf16.msra.mxu0 %v7637_v13  ;;  %v7696_v13 = vcombine.high %v4527_v2, %v4531_v19  ;;  %v4583_v2 = vld [vmem:[#allocation14 + $0x618] sm:$0xff] }
 0x4f6   :  { %6245 = vmatpush1.bf16.msra.mxu1 %v7639_v16  ;;  %6160 = vmatprep.subr.bf16.mxu0 %v7646_v17  ;;  %v4535_v16 = vld [vmem:[#allocation14 + $0x498] sm:$0xff] }
 0x4f7   :  { %6246 = vmatprep.subr.bf16.mxu1 %v7648_v18  ;;  %v4539_v17 = vld [vmem:[#allocation14 + $0x4b8] sm:$0xff]  ;;  %v7693_v18 = vcombine.low %v4526_v21, %v4530_v63  ;;  %v4582_v63 = vld [vmem:[#allocation14 + $0x610] sm:$0xff] }
 0x4f8   :  { %v7704_v26 = vcombine.high %v4535_v16, %v4539_v17  ;;  %v4587_v19 = vld [vmem:[#allocation14 + $0x638] sm:$0xff] }
 0x4f9   :  { %6161 = vmatpush1.bf16.msra.mxu0 %v7645_v28  ;;  %v4546_v28 = vld [vmem:[#allocation14 + $0x4f0] sm:$0xff] }
 0x4fa   :  { %6247 = vmatpush1.bf16.msra.mxu1 %v7647_v30  ;;  %6162 = vmatprep.subr.bf16.mxu0 %v7654_v32  ;;  %v4543_v30 = vld [vmem:[#allocation14 + $0x4d8] sm:$0xff]  ;;  %v7710_v60 = vcombine.high %v4542_v27, %v4546_v28 }
 0x4fb   :  { %6248 = vmatprep.subr.bf16.mxu1 %v7656_v33  ;;  %v4547_v32 = vld [vmem:[#allocation14 + $0x4f8] sm:$0xff]  ;;  %v7701_v33 = vcombine.low %v4534_v11, %v4538_v12  ;;  %v7752_v12 = vcombine.high %v4583_v2, %v4587_v19 }
 0x4fc   :  { %v7712_v29 = vcombine.high %v4543_v30, %v4547_v32 }
 0x4fd   :  { %6163 = vmatpush1.bf16.msra.mxu0 %v7653_v36  ;;  %v4551_v36 = vld [vmem:[#allocation14 + $0x518] sm:$0xff] }
 0x4fe   :  { %6249 = vmatpush1.bf16.msra.mxu1 %v7655_v38  ;;  %6164 = vmatprep.subr.bf16.mxu0 %v7662_v39  ;;  %v4555_v38 = vld [vmem:[#allocation14 + $0x538] sm:$0xff]  ;;  %v7711_v39 = vcombine.low %v4543_v30, %v4547_v32  ;;  %v4602_v30 = vld [vmem:[#allocation14 + $0x6b0] sm:$0xff] }
 0x4ff   :  { %6250 = vmatprep.subr.bf16.mxu1 %v7664_v40  ;;  %v7718_v40 = vcombine.high %v4550_v53, %v4554_v35  ;;  %v7720_v62 = vcombine.high %v4551_v36, %v4555_v38  ;;  %v4599_v32 = vld [vmem:[#allocation14 + $0x698] sm:$0xff] }
 0x501   :  { %6165 = vmatpush1.bf16.msra.mxu0 %v7661_v44  ;;  %v4563_v44 = vld [vmem:[#allocation14 + $0x578] sm:$0xff] }
 0x502   :  { %6251 = vmatpush1.bf16.msra.mxu1 %v7663_v45  ;;  %6166 = vmatprep.subr.bf16.mxu0 %v7670_v47  ;;  %v7717_v45 = vcombine.low %v4550_v53, %v4554_v35  ;;  %v7719_v47 = vcombine.low %v4551_v36, %v4555_v38  ;;  %v7728_v48 = vcombine.high %v4559_v43, %v4563_v44  ;;  %v4606_v35 = vld [vmem:[#allocation14 + $0x6d0] sm:$0xff]  ;;  %v4607_v38 = vld [vmem:[#allocation14 + $0x6d8] sm:$0xff] }
 0x503   :  { %6252 = vmatprep.subr.bf16.mxu1 %v7672_v42  ;;  %v7726_v42 = vcombine.high %v4558_v34, %v4562_v41  ;;  %v4610_v36 = vld [vmem:[#allocation14 + $0x6f0] sm:$0xff] }
 0x505   :  { %6167 = vmatpush1.bf16.msra.mxu0 %v7669_v54  ;;  %v4571_v54 = vld [vmem:[#allocation14 + $0x5b8] sm:$0xff] }
 0x506   :  { %6253 = vmatpush1.bf16.msra.mxu1 %v7671_v55  ;;  %6168 = vmatprep.subr.bf16.mxu0 %v7678_v0  ;;  %v7725_v55 = vcombine.low %v4558_v34, %v4562_v41  ;;  %v7727_v0 = vcombine.low %v4559_v43, %v4563_v44  ;;  %v7736_v57 = vcombine.high %v4567_v52, %v4571_v54  ;;  %v4614_v41 = vld [vmem:[#allocation14 + $0x710] sm:$0xff]  ;;  %v4615_v44 = vld [vmem:[#allocation14 + $0x718] sm:$0xff] }
 0x507   :  { %6254 = vmatprep.subr.bf16.mxu1 %v7680_v56  ;;  %v7734_v56 = vcombine.high %v4566_v49, %v4570_v50  ;;  %v4618_v43 = vld [vmem:[#allocation14 + $0x730] sm:$0xff] }
 0x509   :  { %6169 = vmatpush1.bf16.msra.mxu0 %v7677_v61  ;;  %v4579_v61 = vld [vmem:[#allocation14 + $0x5f8] sm:$0xff] }
 0x50a   :  { %6255 = vmatpush1.bf16.msra.mxu1 %v7679_v31  ;;  %6181 = vmatprep.subr.bf16.mxu0 %v7686_v1  ;;  %v7733_v31 = vcombine.low %v4566_v49, %v4570_v50  ;;  %v7735_v1 = vcombine.low %v4567_v52, %v4571_v54  ;;  %v7744_v21 = vcombine.high %v4575_v46, %v4579_v61  ;;  %v4622_v50 = vld [vmem:[#allocation14 + $0x750] sm:$0xff]  ;;  %v4623_v54 = vld [vmem:[#allocation14 + $0x758] sm:$0xff] }
 0x50b   :  { %6267 = vmatprep.subr.bf16.mxu1 %v7688_v51  ;;  %v7742_v51 = vcombine.high %v4574_v58, %v4578_v59  ;;  %v4626_v52 = vld [vmem:[#allocation14 + $0x770] sm:$0xff] }
 0x50c   :  { %6171 = vmatmul.mubr.bf16.vlgmr.msra.gmra.mrb[28].mxu0 %v9624_v14 }
 0x50d   :  { %6257 = vmatmul.mubr.bf16.vlgmr.msra.gmra.mrb[28].mxu1 %v9624_v14  ;;  %6182 = vmatpush1.bf16.msra.mxu0 %v7685_v5  ;;  %v7703_v14 = vcombine.low %v4535_v16, %v4539_v17  ;;  %v4586_v5 = vld [vmem:[#allocation14 + $0x630] sm:$0xff]  ;;  %v4591_v17 = vld [vmem:[#allocation14 + $0x658] sm:$0xff] }
 0x50e   :  { %6213 = vmatprep.mubr.bf16.mxu0 %v9630_v23  ;;  %6268 = vmatpush1.bf16.msra.mxu1 %v7687_v8  ;;  %v7741_v8 = vcombine.low %v4574_v58, %v4578_v59  ;;  %v7750_v11 = vcombine.high %v4582_v63, %v4586_v5  ;;  %v4594_v16 = vld [vmem:[#allocation14 + $0x670] sm:$0xff] }
 0x50f   :  { %6299 = vmatprep.mubr.bf16.mxu1 %v9630_v23  ;;  %6183 = vmatprep.subr.bf16.mxu0 %v7694_v9  ;;  %v7709_v23 = vcombine.low %v4542_v27, %v4546_v28  ;;  %v7743_v9 = vcombine.low %v4575_v46, %v4579_v61  ;;  %v4598_v28 = vld [vmem:[#allocation14 + $0x690] sm:$0xff]  ;;  %v4631_v61 = vld [vmem:[#allocation14 + $0x798] sm:$0xff] }
 0x510   :  { %6269 = vmatprep.subr.bf16.mxu1 %v7696_v13  ;;  %v4590_v13 = vld [vmem:[#allocation14 + $0x650] sm:$0xff] }
 0x511   :  { %6184 = vmatpush1.bf16.msra.mxu0 %v7693_v18  ;;  %v4595_v18 = vld [vmem:[#allocation14 + $0x678] sm:$0xff]  ;;  %v4630_v59 = vld [vmem:[#allocation14 + $0x790] sm:$0xff] }
 0x512   :  { %6270 = vmatpush1.bf16.msra.mxu1 %v7695_v24  ;;  %6185 = vmatprep.subr.bf16.mxu0 %v7702_v25  ;;  %v7749_v24 = vcombine.low %v4582_v63, %v4586_v5  ;;  %v7751_v25 = vcombine.low %v4583_v2, %v4587_v19  ;;  %v7760_v27 = vcombine.high %v4591_v17, %v4595_v18  ;;  %v4634_v46 = vld [vmem:[#allocation14 + $0x7b0] sm:$0xff]  ;;  %v4639_v19 = vld [vmem:[#allocation14 + $0x7d8] sm:$0xff] }
 0x513   :  { %6271 = vmatprep.subr.bf16.mxu1 %v7704_v26  ;;  %v7758_v26 = vcombine.high %v4590_v13, %v4594_v16  ;;  %v4638_v5 = vld [vmem:[#allocation14 + $0x7d0] sm:$0xff] }
 0x514   :  { %v4642_v2 = vld [vmem:[#allocation14 + $0x7f0] sm:$0xff] }
 0x515   :  { %6186 = vmatpush1.bf16.msra.mxu0 %v7701_v33  ;;  %v4603_v33 = vld [vmem:[#allocation14 + $0x6b8] sm:$0xff] }
 0x516   :  { %6272 = vmatpush1.bf16.msra.mxu1 %v7703_v14  ;;  %6187 = vmatprep.subr.bf16.mxu0 %v7710_v60  ;;  %v7757_v14 = vcombine.low %v4590_v13, %v4594_v16  ;;  %v7759_v60 = vcombine.low %v4591_v17, %v4595_v18  ;;  %v7768_v53 = vcombine.high %v4599_v32, %v4603_v33  ;;  %v8913_v18 = vld [vmem:[#allocation17 + $0x40] sm:$0xff]  }
 0x517   :  { %6273 = vmatprep.subr.bf16.mxu1 %v7712_v29  ;;  %v7766_v29 = vcombine.high %v4598_v28, %v4602_v30  ;;  %v7805_v16 = vcombine.low %v4638_v5, %v4642_v2 }
 0x519   :  { %6188 = vmatpush1.bf16.msra.mxu0 %v7709_v23  ;;  %v4611_v23 = vld [vmem:[#allocation14 + $0x6f8] sm:$0xff] }
 0x51a   :  { %6274 = vmatpush1.bf16.msra.mxu1 %v7711_v39  ;;  %6189 = vmatprep.subr.bf16.mxu0 %v7718_v40  ;;  %v7765_v39 = vcombine.low %v4598_v28, %v4602_v30  ;;  %v7767_v40 = vcombine.low %v4599_v32, %v4603_v33  ;;  %v7776_v34 = vcombine.high %v4607_v38, %v4611_v23  ;;  %v8918_v28 = vld [vmem:[#allocation17 + $0xc8] sm:$0xff]   ;;  %v8921_v33 = vld [vmem:[#allocation17 + $0x50] sm:$0xff]  }
 0x51b   :  { %6275 = vmatprep.subr.bf16.mxu1 %v7720_v62  ;;  %v7774_v62 = vcombine.high %v4606_v35, %v4610_v36  ;;  %v8919_v30 = vld [vmem:[#allocation17 + $0x8] sm:$0xff]  }
 0x51c   :  { %v8920_v32 = vld [vmem:[#allocation17 + $0x88] sm:$0xff]  }
 0x51d   :  { %6190 = vmatpush1.bf16.msra.mxu0 %v7717_v45  ;;  %v4619_v45 = vld [vmem:[#allocation14 + $0x738] sm:$0xff] }
 0x51e   :  { %6276 = vmatpush1.bf16.msra.mxu1 %v7719_v47  ;;  %6191 = vmatprep.subr.bf16.mxu0 %v7726_v42  ;;  %v7773_v47 = vcombine.low %v4606_v35, %v4610_v36  ;;  %v7775_v42 = vcombine.low %v4607_v38, %v4611_v23  ;;  %v7784_v49 = vcombine.high %v4615_v44, %v4619_v45  ;;  %v8926_v35 = vld [vmem:[#allocation17 + $0xd8] sm:$0xff]   ;;  %v8929_v38 = vld [vmem:[#allocation17 + $0x60] sm:$0xff]  }
 0x51f   :  { %6277 = vmatprep.subr.bf16.mxu1 %v7728_v48  ;;  %v7782_v48 = vcombine.high %v4614_v41, %v4618_v43  ;;  %v8927_v36 = vld [vmem:[#allocation17 + $0x18] sm:$0xff]   ;;  %v8930_v23 = vld [vmem:[#allocation17 + $0xe0] sm:$0xff]  }
 0x521   :  { %6192 = vmatpush1.bf16.msra.mxu0 %v7725_v55  ;;  %v4627_v55 = vld [vmem:[#allocation14 + $0x778] sm:$0xff] }
 0x522   :  { %6278 = vmatpush1.bf16.msra.mxu1 %v7727_v0  ;;  %6193 = vmatprep.subr.bf16.mxu0 %v7734_v56  ;;  %v7781_v0 = vcombine.low %v4614_v41, %v4618_v43  ;;  %v7783_v56 = vcombine.low %v4615_v44, %v4619_v45  ;;  %v7792_v58 = vcombine.high %v4623_v54, %v4627_v55  ;;  %v8935_v41 = vld [vmem:[#allocation17 + $0x28] sm:$0xff]   ;;  %v8937_v44 = vld [vmem:[#allocation17 + $0x70] sm:$0xff]  }
 0x523   :  { %6279 = vmatprep.subr.bf16.mxu1 %v7736_v57  ;;  %v7790_v57 = vcombine.high %v4622_v50, %v4626_v52  ;;  %v8936_v43 = vld [vmem:[#allocation17 + $0xa8] sm:$0xff]   ;;  %v8938_v45 = vld [vmem:[#allocation17 + $0xf0] sm:$0xff]  }
 0x525   :  { %6194 = vmatpush1.bf16.msra.mxu0 %v7733_v31  ;;  %v4635_v31 = vld [vmem:[#allocation14 + $0x7b8] sm:$0xff] }
 0x526   :  { %6280 = vmatpush1.bf16.msra.mxu1 %v7735_v1  ;;  %6195 = vmatprep.subr.bf16.mxu0 %v7742_v51  ;;  %v7789_v1 = vcombine.low %v4622_v50, %v4626_v52  ;;  %v7791_v51 = vcombine.low %v4623_v54, %v4627_v55  ;;  %v7800_v63 = vcombine.high %v4631_v61, %v4635_v31  ;;  %v8943_v50 = vld [vmem:[#allocation17 + $0x38] sm:$0xff]   ;;  %v8945_v54 = vld [vmem:[#allocation17 + $0x140] sm:$0xff]  }
 0x527   :  { %6281 = vmatprep.subr.bf16.mxu1 %v7744_v21  ;;  %v7798_v21 = vcombine.high %v4630_v59, %v4634_v46  ;;  %v8944_v52 = vld [vmem:[#allocation17 + $0xb8] sm:$0xff]   ;;  %v8946_v55 = vld [vmem:[#allocation17 + $0x1c0] sm:$0xff]  }
 0x529   :  { %6196 = vmatpush1.bf16.msra.mxu0 %v7741_v8  ;;  %v4643_v8 = vld [vmem:[#allocation14 + $0x7f8] sm:$0xff] }
 0x52a   :  { %6282 = vmatpush1.bf16.msra.mxu1 %v7743_v9  ;;  %6197 = vmatprep.subr.bf16.mxu0 %v7750_v11  ;;  %v7797_v9 = vcombine.low %v4630_v59, %v4634_v46  ;;  %v7799_v11 = vcombine.low %v4631_v61, %v4635_v31  ;;  %v7808_v13 = vcombine.high %v4639_v19, %v4643_v8 }
 0x52b   :  { %6283 = vmatprep.subr.bf16.mxu1 %v7752_v12  ;;  %v7806_v12 = vcombine.high %v4638_v5, %v4642_v2  ;;  %v7807_v17 = vcombine.low %v4639_v19, %v4643_v8 }
 0x52d   :  { %6198 = vmatpush1.bf16.msra.mxu0 %v7749_v24  ;;  %v8914_v24 = vld [vmem:[#allocation17 + $0xc0] sm:$0xff]  }
 0x52e   :  { %6284 = vmatpush1.bf16.msra.mxu1 %v7751_v25  ;;  %6199 = vmatprep.subr.bf16.mxu0 %v7758_v26  ;;  %v8915_v25 = vld [vmem:[#allocation17] sm:$0xff]  }
 0x52f   :  { %6285 = vmatprep.subr.bf16.mxu1 %v7760_v27  ;;  %v8916_v26 = vld [vmem:[#allocation17 + $0x80] sm:$0xff]   ;;  %v8917_v27 = vld [vmem:[#allocation17 + $0x48] sm:$0xff]  }
 0x531   :  { %6200 = vmatpush1.bf16.msra.mxu0 %v7757_v14  ;;  %v8922_v14 = vld [vmem:[#allocation17 + $0xd0] sm:$0xff]  }
 0x532   :  { %6286 = vmatpush1.bf16.msra.mxu1 %v7759_v60  ;;  %6201 = vmatprep.subr.bf16.mxu0 %v7766_v29  ;;  %v8923_v60 = vld [vmem:[#allocation17 + $0x10] sm:$0xff]  }
 0x533   :  { %6287 = vmatprep.subr.bf16.mxu1 %v7768_v53  ;;  %v8924_v29 = vld [vmem:[#allocation17 + $0x90] sm:$0xff]   ;;  %v8925_v53 = vld [vmem:[#allocation17 + $0x58] sm:$0xff]  }
 0x535   :  { %6202 = vmatpush1.bf16.msra.mxu0 %v7765_v39  ;;  %v8931_v39 = vld [vmem:[#allocation17 + $0x20] sm:$0xff]  }
 0x536   :  { %6288 = vmatpush1.bf16.msra.mxu1 %v7767_v40  ;;  %6203 = vmatprep.subr.bf16.mxu0 %v7774_v62  ;;  %v8932_v40 = vld [vmem:[#allocation17 + $0xa0] sm:$0xff]   ;;  %v8933_v62 = vld [vmem:[#allocation17 + $0x68] sm:$0xff]  }
 0x537   :  { %6289 = vmatprep.subr.bf16.mxu1 %v7776_v34  ;;  %v8934_v34 = vld [vmem:[#allocation17 + $0xe8] sm:$0xff]  }
 0x539   :  { %6204 = vmatpush1.bf16.msra.mxu0 %v7773_v47  ;;  %v8939_v47 = vld [vmem:[#allocation17 + $0x30] sm:$0xff]  }
 0x53a   :  { %6290 = vmatpush1.bf16.msra.mxu1 %v7775_v42  ;;  %6205 = vmatprep.subr.bf16.mxu0 %v7782_v48  ;;  %v8940_v42 = vld [vmem:[#allocation17 + $0xb0] sm:$0xff]   ;;  %v8941_v48 = vld [vmem:[#allocation17 + $0x78] sm:$0xff]  }
 0x53b   :  { %6291 = vmatprep.subr.bf16.mxu1 %v7784_v49  ;;  %v8942_v49 = vld [vmem:[#allocation17 + $0xf8] sm:$0xff]  }
 0x53d   :  { %6206 = vmatpush1.bf16.msra.mxu0 %v7781_v0  ;;  %v9648_v0 = vld [vmem:[#allocation16] sm:$0xff] }
 0x53e   :  { %6292 = vmatpush1.bf16.msra.mxu1 %v7783_v56  ;;  %6207 = vmatprep.subr.bf16.mxu0 %v7790_v57  ;;  %v4649_v56 = vrot.slane %v9648_v0, %v9499_v4  ;;  %v4657_v57 = vrot.slane %v9648_v0, %v9511_v20  ;;  %v4661_v59 = vrot.slane %v9648_v0, %v9514_v22 }
 0x53f   :  { %6293 = vmatprep.subr.bf16.mxu1 %v7792_v58  ;;  %v4653_v58 = vrot.slane %v9648_v0, %v9504_v6 }
 0x541   :  { %6208 = vmatpush1.bf16.msra.mxu0 %v7789_v1 }
 0x542   :  { %6294 = vmatpush1.bf16.msra.mxu1 %v7791_v51  ;;  %6209 = vmatprep.subr.bf16.mxu0 %v7798_v21 }
 0x543   :  { %6295 = vmatprep.subr.bf16.mxu1 %v7800_v63 }
 0x545   :  { %6210 = vmatpush1.bf16.msra.mxu0 %v7797_v9 }
 0x546   :  { %6296 = vmatpush1.bf16.msra.mxu1 %v7799_v11  ;;  %6211 = vmatprep.subr.bf16.mxu0 %v7806_v12 }
 0x547   :  { %6297 = vmatprep.subr.bf16.mxu1 %v7808_v13 }
 0x549   :  { %6212 = vmatpush1.bf16.msra.mxu0 %v7805_v16 }
 0x54a   :  { %6298 = vmatpush1.bf16.msra.mxu1 %v7807_v17  ;;  %7958 = vmatprep.subr.bf16.mxu0 %v8913_v18 }
 0x54b   :  { %7980 = vmatprep.subr.bf16.mxu1 %v8914_v24 }
 0x54c   :  { %6214 = vmatmul.mubr.bf16.vlgmr.msra.gmra.mrb[28].mxu0 %v9626_v15 }
 0x54d   :  { %6300 = vmatmul.mubr.bf16.vlgmr.msra.gmra.mrb[28].mxu1 %v9626_v15  ;;  %7959 = vmatpush3.bf16.msra.mxu0 %v8915_v25  ;;  %v8928_v15 = vld [vmem:[#allocation17 + $0x98] sm:$0xff]  }
 0x54e   :  { %7981 = vmatpush3.bf16.msra.mxu1 %v8916_v26  ;;  %7960 = vmatprep.subr.bf16.mxu0 %v8917_v27 }
 0x54f   :  { %7982 = vmatprep.subr.bf16.mxu1 %v8918_v28 }
 0x551   :  { %7961 = vmatpush3.bf16.msra.mxu0 %v8919_v30 }
 0x552   :  { %7983 = vmatpush3.bf16.msra.mxu1 %v8920_v32  ;;  %7962 = vmatprep.subr.bf16.mxu0 %v8921_v33 }
 0x553   :  { %7984 = vmatprep.subr.bf16.mxu1 %v8922_v14 }
 0x555   :  { %7963 = vmatpush3.bf16.msra.mxu0 %v8923_v60 }
 0x556   :  { %7985 = vmatpush3.bf16.msra.mxu1 %v8924_v29  ;;  %7964 = vmatprep.subr.bf16.mxu0 %v8925_v53 }
 0x557   :  { %7986 = vmatprep.subr.bf16.mxu1 %v8926_v35 }
 0x559   :  { %7965 = vmatpush3.bf16.msra.mxu0 %v8927_v36 }
 0x55a   :  { %7987 = vmatpush3.bf16.msra.mxu1 %v8928_v15  ;;  %7966 = vmatprep.subr.bf16.mxu0 %v8929_v38  ;;  %v8947_v15 = vld [vmem:[#allocation17 + $0x100] sm:$0xff]  }
 0x55b   :  { %7988 = vmatprep.subr.bf16.mxu1 %v8930_v23  ;;  %v8948_v38 = vld [vmem:[#allocation17 + $0x180] sm:$0xff]   ;;  %v8949_v23 = vld [vmem:[#allocation17 + $0x148] sm:$0xff]  }
 0x55d   :  { %7967 = vmatpush3.bf16.msra.mxu0 %v8931_v39  ;;  %v8950_v39 = vld [vmem:[#allocation17 + $0x1c8] sm:$0xff]  }
 0x55e   :  { %7989 = vmatpush3.bf16.msra.mxu1 %v8932_v40  ;;  %7968 = vmatprep.subr.bf16.mxu0 %v8933_v62  ;;  %v8951_v40 = vld [vmem:[#allocation17 + $0x108] sm:$0xff]  }
 0x55f   :  { %7990 = vmatprep.subr.bf16.mxu1 %v8934_v34  ;;  %v8952_v62 = vld [vmem:[#allocation17 + $0x188] sm:$0xff]   ;;  %v8953_v34 = vld [vmem:[#allocation17 + $0x150] sm:$0xff]  }
 0x561   :  { %7969 = vmatpush3.bf16.msra.mxu0 %v8935_v41  ;;  %v8954_v41 = vld [vmem:[#allocation17 + $0x1d0] sm:$0xff]  }
 0x562   :  { %7991 = vmatpush3.bf16.msra.mxu1 %v8936_v43  ;;  %7970 = vmatprep.subr.bf16.mxu0 %v8937_v44  ;;  %v8955_v43 = vld [vmem:[#allocation17 + $0x110] sm:$0xff]  }
 0x563   :  { %7992 = vmatprep.subr.bf16.mxu1 %v8938_v45  ;;  %v8956_v44 = vld [vmem:[#allocation17 + $0x190] sm:$0xff]   ;;  %v8957_v45 = vld [vmem:[#allocation17 + $0x158] sm:$0xff]  }
 0x565   :  { %7971 = vmatpush3.bf16.msra.mxu0 %v8939_v47  ;;  %v8958_v47 = vld [vmem:[#allocation17 + $0x1d8] sm:$0xff]  }
 0x566   :  { %7993 = vmatpush3.bf16.msra.mxu1 %v8940_v42  ;;  %7972 = vmatprep.subr.bf16.mxu0 %v8941_v48  ;;  %v8959_v42 = vld [vmem:[#allocation17 + $0x118] sm:$0xff]  }
 0x567   :  { %7994 = vmatprep.subr.bf16.mxu1 %v8942_v49  ;;  %v8960_v48 = vld [vmem:[#allocation17 + $0x198] sm:$0xff]   ;;  %v8961_v49 = vld [vmem:[#allocation17 + $0x160] sm:$0xff]  }
 0x569   :  { %7973 = vmatpush3.bf16.msra.mxu0 %v8943_v50  ;;  %v8962_v50 = vld [vmem:[#allocation17 + $0x1e0] sm:$0xff]  }
 0x56a   :  { %7995 = vmatpush3.bf16.msra.mxu1 %v8944_v52  ;;  %8002 = vmatprep.subr.bf16.mxu0 %v8945_v54  ;;  %v8963_v52 = vld [vmem:[#allocation17 + $0x120] sm:$0xff]  }
 0x56b   :  { %8024 = vmatprep.subr.bf16.mxu1 %v8946_v55  ;;  %v8964_v54 = vld [vmem:[#allocation17 + $0x1a0] sm:$0xff]   ;;  %v8965_v55 = vld [vmem:[#allocation17 + $0x168] sm:$0xff]  }
 0x59f   :  { %v6043_v46 = vpop.f32.mrb[24].mxu0  ;;  %v6129_v61 = vpop.f32.mrb[24].mxu1 }
 0x5a0   :  { %v8102_v31 = vadd.f32 %v6043_v46, %v4649_v56  ;;  %v8106_v1 = vadd.f32 %v6129_v61, %v4657_v57  ;;  %v6045_v51 = vpop.f32.mrb[25].mxu0  ;;  %v6131_v21 = vpop.f32.mrb[25].mxu1  ;;  %v8970_v46 = vld [vmem:[#allocation17 + $0x1f0] sm:$0xff]  }
 0x5a1   :  { %v8103_v63 = vadd.f32 %v6045_v51, %v4653_v58  ;;  %v8107_v5 = vadd.f32 %v6131_v21, %v4661_v59  ;;  %v6047_v2 = vpop.f32.mrb[26].mxu0  ;;  %v6133_v19 = vpop.f32.mrb[26].mxu1  ;;  %v8971_v61 = vld [vmem:[#allocation17 + $0x130] sm:$0xff]   ;;  %v8974_v51 = vld [vmem:[#allocation17 + $0x1f8] sm:$0xff]  }
 0x5a2   :  { %v6310_v4 = vmul.f32 0.01, %v8102_v31  ;;  %v6312_v8 = vmul.f32 0.01, %v8106_v1  ;;  %v8104_v9 = vadd.f32 %v6047_v2, %v4649_v56  ;;  %v8108_v20 = vadd.f32 %v6133_v19, %v4657_v57  ;;  %v6049_v11 = vpop.f32.mrb[27].mxu0  ;;  %v6135_v12 = vpop.f32.mrb[27].mxu1 }
 0x5a3   :  { %v6311_v6 = vmul.f32 0.01, %v8103_v63  ;;  %v6313_v13 = vmul.f32 0.01, %v8107_v5  ;;  %v8105_v16 = vadd.f32 %v6049_v11, %v4653_v58  ;;  %v8109_v22 = vadd.f32 %v6135_v12, %v4661_v59  ;;  %v8966_v56 = vld [vmem:[#allocation17 + $0x1e8] sm:$0xff]   ;;  %v8969_v59 = vld [vmem:[#allocation17 + $0x170] sm:$0xff]  }
 0x5a4   :  { %v6318_v17 = vmul.f32 0.01, %v8104_v9  ;;  %v6320_v18 = vmul.f32 0.01, %v8108_v20  ;;  %v6326_v26 = vmax.f32 %v8102_v31, %v6310_v4  ;;  %v6328_v27 = vmax.f32 %v8106_v1, %v6312_v8  ;;  %v8967_v57 = vld [vmem:[#allocation17 + $0x128] sm:$0xff]   ;;  %v8972_v31 = vld [vmem:[#allocation17 + $0x1b0] sm:$0xff]  }
 0x5a5   :  { %v6319_v24 = vmul.f32 0.01, %v8105_v16  ;;  %v6321_v25 = vmul.f32 0.01, %v8109_v22  ;;  %v6327_v32 = vmax.f32 %v8103_v63, %v6311_v6  ;;  %v6329_v33 = vmax.f32 %v8107_v5, %v6313_v13  ;;  %v8968_v58 = vld [vmem:[#allocation17 + $0x1a8] sm:$0xff]   ;;  %v8973_v1 = vld [vmem:[#allocation17 + $0x178] sm:$0xff]  }
 0x5a6   :  { %v6334_v28 = vmax.f32 %v8104_v9, %v6318_v17  ;;  %v6336_v30 = vmax.f32 %v8108_v20, %v6320_v18  ;;  %v8975_v21 = vld [vmem:[#allocation17 + $0x138] sm:$0xff]   ;;  %v4676_v5 = vsub.s32 7, %v9496_v3  ;;  %v4665_v2 = vrot.slane %v9648_v0, %v9535_v7 }
 0x5a7   :  { %v6335_v14 = vmax.f32 %v8105_v16, %v6319_v24  ;;  %v6337_v60 = vmax.f32 %v8109_v22, %v6321_v25  ;;  %v8976_v63 = vld [vmem:[#allocation17 + $0x1b8] sm:$0xff]   ;;  %v4673_v19 = vrot.slane %v9648_v0, %v274_v37  ;;  %v4669_v4 = vrot.slane %v9648_v0, %v270_v10 }
 0x5a8   :  { %v6342_v29 = vpack.c.bf16 %v6334_v28, %v6326_v26  ;;  %v6344_v53 = vpack.c.bf16 %v6336_v30, %v6328_v27  ;;  %v4677_v8 = vrot.slane %v9648_v0, %v4676_v5 }
 0x5a9   :  { %v6343_v35 = vpack.c.bf16 %v6335_v14, %v6327_v32  ;;  %v6345_v36 = vpack.c.bf16 %v6337_v60, %v6329_v33 }
 0x5ab   :  { %6901 = vmatprep.mubr.bf16.mxu0 %v6343_v35  ;;  %6942 = vmatprep.mubr.bf16.mxu1 %v6345_v36 }
 0x5ac   :  { %6902 = vmatmul.mubr.bf16.vlgmr.msra.gmra.mrb[32].mxu0 %v6342_v29  ;;  %6943 = vmatmul.mubr.bf16.vlgmr.msra.gmra.mrb[32].mxu1 %v6344_v53 }
 0x5ad   :  { %8003 = vmatpush3.bf16.msra.mxu0 %v8947_v15  ;;  %8025 = vmatpush3.bf16.msra.mxu1 %v8948_v38 }
 0x5ae   :  { %8004 = vmatprep.subr.bf16.mxu0 %v8949_v23  ;;  %8026 = vmatprep.subr.bf16.mxu1 %v8950_v39 }
 0x5b1   :  { %8005 = vmatpush3.bf16.msra.mxu0 %v8951_v40  ;;  %8027 = vmatpush3.bf16.msra.mxu1 %v8952_v62 }
 0x5b2   :  { %8006 = vmatprep.subr.bf16.mxu0 %v8953_v34  ;;  %8028 = vmatprep.subr.bf16.mxu1 %v8954_v41 }
 0x5b5   :  { %8007 = vmatpush3.bf16.msra.mxu0 %v8955_v43  ;;  %8029 = vmatpush3.bf16.msra.mxu1 %v8956_v44  ;;  %v7809_v44 = vld [vmem:[#allocation19] ss:$0 sm:$0xff] }
 0x5b6   :  { %8008 = vmatprep.subr.bf16.mxu0 %v8957_v45  ;;  %8030 = vmatprep.subr.bf16.mxu1 %v8958_v47 }
 0x5b9   :  { %8009 = vmatpush3.bf16.msra.mxu0 %v8959_v42  ;;  %8031 = vmatpush3.bf16.msra.mxu1 %v8960_v48 }
 0x5ba   :  { %8010 = vmatprep.subr.bf16.mxu0 %v8961_v49  ;;  %8032 = vmatprep.subr.bf16.mxu1 %v8962_v50 }
 0x5bd   :  { %8011 = vmatpush3.bf16.msra.mxu0 %v8963_v52  ;;  %8033 = vmatpush3.bf16.msra.mxu1 %v8964_v54 }
 0x5be   :  { %8012 = vmatprep.subr.bf16.mxu0 %v8965_v55  ;;  %8034 = vmatprep.subr.bf16.mxu1 %v8966_v56 }
 0x5c1   :  { %8013 = vmatpush3.bf16.msra.mxu0 %v8967_v57  ;;  %8035 = vmatpush3.bf16.msra.mxu1 %v8968_v58 }
 0x5c2   :  { %8014 = vmatprep.subr.bf16.mxu0 %v8969_v59  ;;  %8036 = vmatprep.subr.bf16.mxu1 %v8970_v46 }
 0x5c5   :  { %8015 = vmatpush3.bf16.msra.mxu0 %v8971_v61  ;;  %8037 = vmatpush3.bf16.msra.mxu1 %v8972_v31 }
 0x5c6   :  { %8016 = vmatprep.subr.bf16.mxu0 %v8973_v1  ;;  %8038 = vmatprep.subr.bf16.mxu1 %v8974_v51 }
 0x5c9   :  { %8017 = vmatpush3.bf16.msra.mxu0 %v8975_v21  ;;  %8039 = vmatpush3.bf16.msra.mxu1 %v8976_v63 }
 0x61f   :  { %v6215_v9 = vpop.f32.mrb[28].mxu0 }
 0x620   :  { %v8110_v20 = vadd.f32 %v6215_v9, %v4665_v2  ;;  %v6301_v11 = vpop.f32.mrb[28].mxu1  ;;  %v6217_v12 = vpop.f32.mrb[29].mxu0 }
 0x621   :  { %v8114_v6 = vadd.f32 %v6301_v11, %v4673_v19  ;;  %v8111_v13 = vadd.f32 %v6217_v12, %v4669_v4  ;;  %v6303_v16 = vpop.f32.mrb[29].mxu1  ;;  %v6219_v22 = vpop.f32.mrb[30].mxu0 }
 0x622   :  { %v6314_v17 = vmul.f32 0.01, %v8110_v20  ;;  %v8115_v7 = vadd.f32 %v6303_v16, %v4677_v8  ;;  %v8112_v18 = vadd.f32 %v6219_v22, %v4665_v2  ;;  %v6305_v24 = vpop.f32.mrb[30].mxu1  ;;  %v6221_v25 = vpop.f32.mrb[31].mxu0 }
 0x623   :  { %v6316_v37 = vmul.f32 0.01, %v8114_v6  ;;  %v6315_v26 = vmul.f32 0.01, %v8111_v13  ;;  %v8116_v3 = vadd.f32 %v6305_v24, %v4673_v19  ;;  %v8113_v27 = vadd.f32 %v6221_v25, %v4669_v4  ;;  %v6307_v10 = vpop.f32.mrb[31].mxu1 }
 0x624   :  { %v6317_v28 = vmul.f32 0.01, %v8115_v7  ;;  %v6322_v0 = vmul.f32 0.01, %v8112_v18  ;;  %v8117_v30 = vadd.f32 %v6307_v10, %v4677_v8  ;;  %v6330_v14 = vmax.f32 %v8110_v20, %v6314_v17 }
 0x625   :  { %v6324_v32 = vmul.f32 0.01, %v8116_v3  ;;  %v6323_v33 = vmul.f32 0.01, %v8113_v27  ;;  %v6332_v53 = vmax.f32 %v8114_v6, %v6316_v37  ;;  %v6331_v35 = vmax.f32 %v8111_v13, %v6315_v26 }
 0x626   :  { %v6338_v60 = vmax.f32 %v8112_v18, %v6322_v0  ;;  %v6325_v29 = vmul.f32 0.01, %v8117_v30  ;;  %v6333_v38 = vmax.f32 %v8115_v7, %v6317_v28 }
 0x627   :  { %v6340_v36 = vmax.f32 %v8116_v3, %v6324_v32  ;;  %v6339_v15 = vmax.f32 %v8113_v27, %v6323_v33 }
 0x628   :  { %v6346_v23 = vpack.c.bf16 %v6338_v60, %v6330_v14  ;;  %v6341_v39 = vmax.f32 %v8117_v30, %v6325_v29 }
 0x629   :  { %v6348_v40 = vpack.c.bf16 %v6340_v36, %v6332_v53  ;;  %v6347_v62 = vpack.c.bf16 %v6339_v15, %v6331_v35 }
 0x62a   :  { %v6349_v34 = vpack.c.bf16 %v6341_v39, %v6333_v38 }
 0x62b   :  { %6983 = vmatprep.mubr.bf16.mxu0 %v6347_v62 }
 0x62c   :  { %7024 = vmatprep.mubr.bf16.mxu1 %v6349_v34  ;;  %6984 = vmatmul.mubr.bf16.vlgmr.msra.gmra.mrb[36].mxu0 %v6346_v23 }
 0x62d   :  { %7025 = vmatmul.mubr.bf16.vlgmr.msra.gmra.mrb[36].mxu1 %v6348_v40 }
 0x67f   :  { %v7974_v41 = vpop.f32.mrb[32].mxu0  ;;  %v7996_v43 = vpop.f32.mrb[32].mxu1 }
 0x680   :  { %v7975_v45 = vpop.f32.mrb[33].mxu0  ;;  %v7997_v47 = vpop.f32.mrb[33].mxu1 }
 0x681   :  { %v7976_v42 = vadd.f32 %v7975_v45, %v7974_v41  ;;  %v7998_v48 = vadd.f32 %v7997_v47, %v7996_v43  ;;  %v7977_v49 = vpop.f32.mrb[34].mxu0  ;;  %v7999_v50 = vpop.f32.mrb[34].mxu1 }
 0x682   :  { %v7978_v52 = vpop.f32.mrb[35].mxu0  ;;  %v8000_v54 = vpop.f32.mrb[35].mxu1 }
 0x683   :  { %v6904_v55 = vadd.f32 %v7976_v42, %v7809_v44  ;;  %v7979_v56 = vadd.f32 %v7978_v52, %v7977_v49  ;;  %v8001_v57 = vadd.f32 %v8000_v54, %v7999_v50 }
 0x685   :  { %v6945_v58 = vadd.f32 %v7998_v48, %v6904_v55  ;;  %v6907_v59 = vadd.f32 %v7979_v56, %v7809_v44 }
 0x687   :  { %v6948_v46 = vadd.f32 %v8001_v57, %v6907_v59 }
 0x6ff   :  { %v8018_v61 = vpop.f32.mrb[36].mxu0 }
 0x700   :  { %v8040_v31 = vpop.f32.mrb[36].mxu1  ;;  %v8019_v1 = vpop.f32.mrb[37].mxu0 }
 0x701   :  { %v8020_v51 = vadd.f32 %v8019_v1, %v8018_v61  ;;  %v8041_v21 = vpop.f32.mrb[37].mxu1  ;;  %v8021_v63 = vpop.f32.mrb[38].mxu0 }
 0x702   :  { %v8042_v5 = vadd.f32 %v8041_v21, %v8040_v31  ;;  %v8043_v2 = vpop.f32.mrb[38].mxu1  ;;  %v8022_v19 = vpop.f32.mrb[39].mxu0 }
 0x703   :  { %v6986_v4 = vadd.f32 %v8020_v51, %v6945_v58  ;;  %v8023_v8 = vadd.f32 %v8022_v19, %v8021_v63  ;;  %v8044_v9 = vpop.f32.mrb[39].mxu1 }
 0x704   :  { %v8045_v20 = vadd.f32 %v8044_v9, %v8043_v2 }
 0x705   :  { %v7027_v11 = vadd.f32 %v8042_v5, %v6986_v4  ;;  %v6989_v12 = vadd.f32 %v8023_v8, %v6948_v46 }
 0x707   :  { %7033 = vst [vmem:[#allocation20] sm:$0xff] %v7027_v11  ;;  %v7030_v6 = vadd.f32 %v8045_v20, %v6989_v12 }
 0x709   :  { %7034 = vst [vmem:[#allocation20 + $0x8] sm:$0xff] %v7030_v6 }
 0x70a   :  { %9230 = shalt.err (!%p9227_p8)
}
 0x70b   :  { %s9231_s28 = scalar_lea.hbm %s9694_s11, 256 }
 0x70c   :  { %p9232_p9 = scmp.ne.s32.totalorder %s9694_s11, %s9231_s28  ;;  %p9235_p10 = scmp.lt.u32.totalorder %s9231_s28, %s9694_s11 }
 0x70e   :  { %p9237_p11 = pnand %p9235_p10, %p9232_p9 }
 0x710   :  { %9240 = shalt.err (!%p9237_p11)
}
 0x711   :  { %7046 = dma.vmem_to_hbm [thread:$0]  %s7041_s25, 256, %s9694_s11, [#allocation4], %s9271_s9, %s9271_s9, %s9272_s14  }
 0x712   :  { %9253 = dma.done.wait [#allocation4], 256  }
 0x713   :  { %9254 = vsyncadd [#allocation4], 4294967040 }
 0x714   :  { %7050 = vsyncpa [#allocation3], 1 }
 0x715   :  { %7051 = vsyncpa [#allocation6], 1 }
 0x716   :  { %7052 = vsyncpa [#allocation9], 1 }
 0x717   :  { %7053 = vsyncpa [#allocation12], 1 }
 0x718   :  { %7054 = vsyncpa [#allocation15], 1 }
 0x719   :  { %7055 = vsyncpa [#allocation18], 1 }
 0x71a   :  { %7056 = vsyncpa [#allocation4], 1 }

</bundles_post_ra>
